<compile_context>
chip_gen: v7x
topology: tpu7x:2x2x1
jax: 0.10.0
libtpu: 0.0.40
codegen_flags: <defaults>
</compile_context>

<pallas_src>
import functools

import numpy as np
import jax
import jax.numpy as jnp
from jax import lax
from jax.experimental import pallas as pl
from jax.experimental.pallas import tpu as pltpu


# ---------------------------------------------------------------------------
# Fused kernel: conv1 -> conv2 -> flatten -> fc1(+ReLU) -> fc2
# ---------------------------------------------------------------------------
def _fused_kernel(p1_ref, w1_ref, b1_ref, w2t_ref, b2_ref,
                  fc1w_hbm, fc1b_ref, fc2w_hbm, fc2b_ref,
                  out_ref,
                  h1_ref, p2_ref, flat_ref, fc1w_vmem, fc2w_vmem, sem,
                  *, N, H1, W1, C1, H2, W2, C2, K):
    P = H2 * W2                      # spatial positions per sample after conv2

    # ---- kick off fc weight DMAs (HBM -> VMEM); they overlap the conv work --
    cp1 = pltpu.make_async_copy(fc1w_hbm, fc1w_vmem, sem.at[0])
    cp2 = pltpu.make_async_copy(fc2w_hbm, fc2w_vmem, sem.at[1])
    cp1.start()
    cp2.start()

    # ---- conv1: im2col GEMM + bias + ReLU (MXU, f32) ------------------------
    h1 = jnp.dot(p1_ref[...], w1_ref[...], preferred_element_type=jnp.float32)
    h1_ref[...] = jnp.maximum(h1 + b1_ref[...], 0.0)          # (N*H1*W1, C1)

    # ---- conv2 im2col (3x3, stride 2, pad 1) via strided sublane reads ------
    # patches2 row = n*P + ho*W2 + wo ; column = (dy*K + dx)*C1 + ci
    # Pad-1 boundary is handled by zero init + static edge clipping (only the
    # top row (ho=0, dy=0) and left column (wo=0, dx=0) touch the padding).
    p2_ref[...] = jnp.zeros(p2_ref.shape, jnp.float32)
    for n in range(N):
        for ho in range(H2):
            r0 = (n * H2 + ho) * W2
            for dy in range(K):
                h_src = 2 * ho + dy - 1
                if h_src < 0 or h_src >= H1:
                    continue                                   # row is in the pad
                base = (n * H1 + h_src) * W1
                for dx in range(K):
                    c0 = (dy * K + dx) * C1
                    w0 = dx - 1                                # source col at wo = 0
                    if w0 < 0:
                        # wo = 0 falls in the zero pad; fill wo = 1..W2-1.
                        p2_ref[r0 + 1:r0 + W2, c0:c0 + C1] = \
                            h1_ref[pl.ds(base + w0 + 2, W2 - 1, stride=2), :]
                    else:
                        p2_ref[r0:r0 + W2, c0:c0 + C1] = \
                            h1_ref[pl.ds(base + w0, W2, stride=2), :]

    # ---- conv2 GEMM in transposed (lane-dense) form + bias + ReLU -----------
    # h2t[c, n*P + ho*W2 + wo] == conv2 output at (n, c, ho, wo)
    h2t = lax.dot_general(w2t_ref[...], p2_ref[...],
                          dimension_numbers=(((1,), (1,)), ((), ())),
                          preferred_element_type=jnp.float32)   # (C2, N*P)
    h2t = jnp.maximum(h2t + b2_ref[...], 0.0)

    # ---- nn.Flatten over NCHW: flat[n, c*P + p] = h2t[c, n*P + p] -----------
    for n in range(N):
        for c in range(C2):
            flat_ref[n:n + 1, c * P:(c + 1) * P] = h2t[c:c + 1, n * P:(n + 1) * P]

    # ---- fc1 (+ReLU) and fc2: bf16 weights, f32 accumulation ----------------
    cp1.wait()
    xb = flat_ref[...].astype(jnp.bfloat16)
    y = jnp.dot(xb, fc1w_vmem[...], preferred_element_type=jnp.float32)
    y = jnp.maximum(y + fc1b_ref[...], 0.0)
    cp2.wait()
    out = jnp.dot(y.astype(jnp.bfloat16), fc2w_vmem[...],
                  preferred_element_type=jnp.float32) + fc2b_ref[...]
    out_ref[...] = out.astype(out_ref.dtype)


# ---------------------------------------------------------------------------
# JAX wrapper (glue on tiny tensors only) + single pallas_call
# ---------------------------------------------------------------------------
def _im2col_s1p1(x_nhwc, k):
    """3x3 stride-1 pad-1 im2col; columns ordered (dy, dx, c)."""
    N, H, W, C = x_nhwc.shape
    xp = jnp.pad(x_nhwc, ((0, 0), (1, 1), (1, 1), (0, 0)))
    cols = [xp[:, dy:dy + H, dx:dx + W, :] for dy in range(k) for dx in range(k)]
    patches = jnp.stack(cols, axis=3)                 # (N, H, W, k*k, C)
    return patches.reshape(N * H * W, k * k * C)


@jax.jit
def encoder_pretrain_net(x_nchw, params):
    N, Cin, H, W = x_nchw.shape
    F0, _, K, _ = params["w1"].shape
    F1 = params["w2"].shape[0]
    H1, W1 = H, W                       # conv1: 3x3, stride 1, pad 1
    H2, W2 = H1 // 2, W1 // 2           # conv2: 3x3, stride 2, pad 1
    assert H1 % 2 == 0 and W1 % 2 == 0
    n_hidden = params["fc1_w"].shape[1]
    n_out = params["fc2_w"].shape[1]
    inter_ch = F1 * H2 * W2

    x_nhwc = jnp.transpose(x_nchw, (0, 2, 3, 1)).astype(jnp.float32)
    patches1 = _im2col_s1p1(x_nhwc, K)                                  # (N*H*W, K*K*Cin)
    # weight matrices: rows/cols ordered (dy, dx, c) to match the patch layout
    w1_mat = jnp.transpose(params["w1"], (2, 3, 1, 0)).reshape(K * K * Cin, F0)
    w2t_mat = jnp.transpose(params["w2"], (0, 2, 3, 1)).reshape(F1, K * K * F0)

    kernel = functools.partial(_fused_kernel, N=N, H1=H1, W1=W1, C1=F0,
                               H2=H2, W2=W2, C2=F1, K=K)
    vm = pltpu.MemorySpace.VMEM

    return pl.pallas_call(
        kernel,
        out_shape=jax.ShapeDtypeStruct((N, n_out), jnp.float32),
        in_specs=[
            pl.BlockSpec(memory_space=vm),       # conv1 im2col patches
            pl.BlockSpec(memory_space=vm),       # w1 matrix
            pl.BlockSpec(memory_space=vm),       # b1
            pl.BlockSpec(memory_space=vm),       # w2 matrix (transposed)
            pl.BlockSpec(memory_space=vm),       # b2
            pl.BlockSpec(memory_space=pl.ANY),   # fc1_w -> stays in HBM, manual DMA
            pl.BlockSpec(memory_space=vm),       # fc1_b
            pl.BlockSpec(memory_space=pl.ANY),   # fc2_w -> stays in HBM, manual DMA
            pl.BlockSpec(memory_space=vm),       # fc2_b
        ],
        out_specs=pl.BlockSpec(memory_space=vm),
        scratch_shapes=[
            pltpu.VMEM((N * H1 * W1, F0), jnp.float32),          # conv1 output
            pltpu.VMEM((N * H2 * W2, K * K * F0), jnp.float32),  # conv2 im2col
            pltpu.VMEM((N, inter_ch), jnp.float32),              # NCHW-flattened feats
            pltpu.VMEM((inter_ch, n_hidden), jnp.bfloat16),      # fc1 weight buffer
            pltpu.VMEM((n_hidden, n_out), jnp.bfloat16),         # fc2 weight buffer
            pltpu.SemaphoreType.DMA((2,)),                       # fc weight DMA sems
        ],
    )(
        patches1.astype(jnp.float32),
        w1_mat.astype(jnp.float32),
        params["b1"].reshape(1, F0).astype(jnp.float32),
        w2t_mat.astype(jnp.float32),
        params["b2"].reshape(F1, 1).astype(jnp.float32),
        params["fc1_w"].astype(jnp.bfloat16),
        params["fc1_b"].reshape(1, n_hidden).astype(jnp.float32),
        params["fc2_w"].astype(jnp.bfloat16),
        params["fc2_b"].reshape(1, n_out).astype(jnp.float32),
    )


# ---------------------------------------------------------------------------
# Pure-JAX f32 reference (module semantics) for correctness checking
# ---------------------------------------------------------------------------
def _reference(x_nchw, params):
    x = jnp.transpose(x_nchw, (0, 2, 3, 1)).astype(jnp.float32)

    def conv(h, w_oihw, b, stride):
        y = lax.conv_general_dilated(
            h, jnp.transpose(w_oihw, (2, 3, 1, 0)),
            window_strides=(stride, stride), padding=((1, 1), (1, 1)),
            dimension_numbers=("NHWC", "HWIO", "NHWC"))
        return jnp.maximum(y + b, 0.0)

    h = conv(x, params["w1"], params["b1"], 1)
    h = conv(h, params["w2"], params["b2"], 2)
    h = jnp.transpose(h, (0, 3, 1, 2)).reshape(h.shape[0], -1)   # nn.Flatten (NCHW)
    h = jnp.maximum(h @ params["fc1_w"] + params["fc1_b"], 0.0)
    return h @ params["fc2_w"] + params["fc2_b"]


def init_params(key, in_ch, no_filters, inter_ch):
    k = jax.random.split(key, 8)
    s = 0.1
    f0, f1 = no_filters
    return {
        "w1": s * jax.random.normal(k[0], (f0, in_ch, 3, 3), jnp.float32),
        "b1": s * jax.random.normal(k[1], (f0,), jnp.float32),
        "w2": s * jax.random.normal(k[2], (f1, f0, 3, 3), jnp.float32),
        "b2": s * jax.random.normal(k[3], (f1,), jnp.float32),
        "fc1_w": s * jax.random.normal(k[4], (inter_ch, 1024), jnp.float32),
        "fc1_b": s * jax.random.normal(k[5], (1024,), jnp.float32),
        "fc2_w": s * jax.random.normal(k[6], (1024, 128), jnp.float32),
        "fc2_b": s * jax.random.normal(k[7], (128,), jnp.float32),
    }


if __name__ == "__main__":
    # Small config consistent with the module's shape arithmetic.
    config = {"resize_size": [16, 16], "no_filters": [8, 16]}
    in_ch = 4
    # Same formula as the PyTorch __init__ (`1 << len(...) - 1` == 1 << (len-1)).
    output_size_squared = int(np.prod(
        np.array(config["resize_size"]) // (1 << len(config["no_filters"]) - 1)))
    inter_ch = int(output_size_squared * config["no_filters"][-1])    # 8*8*16 = 1024

    key = jax.random.PRNGKey(0)
    kx, kp = jax.random.split(key)
    x = jax.random.normal(kx, (2, in_ch, 16, 16), jnp.float32)        # NCHW input
    params = init_params(kp, in_ch, config["no_filters"], inter_ch)

    out = jax.block_until_ready(encoder_pretrain_net(x, params))
    assert out.shape == (2, 128), out.shape
    assert bool(jnp.all(jnp.isfinite(out)))

    ref = jax.block_until_ready(_reference(x, params))
    max_err = float(jnp.max(jnp.abs(out - ref)))
    assert np.allclose(np.asarray(out), np.asarray(ref), rtol=1e-1, atol=1e-1), (
        f"mismatch vs f32 reference, max abs err = {max_err}")
    print("KERNEL_OK")
</pallas_src>

<mosaic_0001>
module attributes {stable_mosaic.version = 11 : i64} {
  func.func @_fused_kernel(%arg0: memref<512x36xf32, #tpu.memory_space<vmem>>, %arg1: memref<36x8xf32, #tpu.memory_space<vmem>>, %arg2: memref<1x8xf32, #tpu.memory_space<vmem>>, %arg3: memref<16x72xf32, #tpu.memory_space<vmem>>, %arg4: memref<16x1xf32, #tpu.memory_space<vmem>>, %arg5: memref<1024x1024xbf16, #tpu.memory_space<any>>, %arg6: memref<1x1024xf32, #tpu.memory_space<vmem>>, %arg7: memref<1024x128xbf16, #tpu.memory_space<any>>, %arg8: memref<1x128xf32, #tpu.memory_space<vmem>>, %arg9: memref<2x128xf32, #tpu.memory_space<vmem>>, %arg10: memref<512x8xf32, #tpu.memory_space<vmem>>, %arg11: memref<128x72xf32, #tpu.memory_space<vmem>>, %arg12: memref<2x1024xf32, #tpu.memory_space<vmem>>, %arg13: memref<1024x1024xbf16, #tpu.memory_space<vmem>>, %arg14: memref<1024x128xbf16, #tpu.memory_space<vmem>>, %arg15: memref<2x!tpu.dma_semaphore, #tpu.memory_space<semaphore_mem>>) attributes {dimension_semantics = [], scalar_prefetch = 0 : i64, scratch_operands = 6 : i64, tpu.core_type = #tpu.core_type<tc>} {
    %c0_i32 = arith.constant 0 : i32
    %0 = tpu.memref_slice %arg15[%c0_i32] : memref<2x!tpu.dma_semaphore, #tpu.memory_space<semaphore_mem>> -> memref<1x!tpu.dma_semaphore, #tpu.memory_space<semaphore_mem>>
    %1 = tpu.memref_squeeze %0 : memref<1x!tpu.dma_semaphore, #tpu.memory_space<semaphore_mem>> -> memref<!tpu.dma_semaphore, #tpu.memory_space<semaphore_mem>>
    tpu.enqueue_dma source(%arg5 : memref<1024x1024xbf16, #tpu.memory_space<any>>) target(%arg13 : memref<1024x1024xbf16, #tpu.memory_space<vmem>>) target_semaphore(%1 : memref<!tpu.dma_semaphore, #tpu.memory_space<semaphore_mem>>)
    %c1_i32 = arith.constant 1 : i32
    %2 = tpu.memref_slice %arg15[%c1_i32] : memref<2x!tpu.dma_semaphore, #tpu.memory_space<semaphore_mem>> -> memref<1x!tpu.dma_semaphore, #tpu.memory_space<semaphore_mem>>
    %3 = tpu.memref_squeeze %2 : memref<1x!tpu.dma_semaphore, #tpu.memory_space<semaphore_mem>> -> memref<!tpu.dma_semaphore, #tpu.memory_space<semaphore_mem>>
    tpu.enqueue_dma source(%arg7 : memref<1024x128xbf16, #tpu.memory_space<any>>) target(%arg14 : memref<1024x128xbf16, #tpu.memory_space<vmem>>) target_semaphore(%3 : memref<!tpu.dma_semaphore, #tpu.memory_space<semaphore_mem>>)
    %c0 = arith.constant 0 : index
    %c0_0 = arith.constant 0 : index
    %4 = vector.load %arg0[%c0, %c0_0] : memref<512x36xf32, #tpu.memory_space<vmem>>, vector<512x36xf32>
    %c0_1 = arith.constant 0 : index
    %c0_2 = arith.constant 0 : index
    %5 = vector.load %arg1[%c0_1, %c0_2] : memref<36x8xf32, #tpu.memory_space<vmem>>, vector<36x8xf32>
    %cst = arith.constant dense<0.000000e+00> : vector<512x8xf32>
    %6 = tpu.matmul %4, %5, %cst {dimension_numbers = #tpu.dot_dimension_numbers<[1], [0], [0], [1], [0, 0, 1, 1], [], []>} : vector<512x36xf32>, vector<36x8xf32>, vector<512x8xf32> -> vector<512x8xf32>
    %c0_3 = arith.constant 0 : index
    %c0_4 = arith.constant 0 : index
    %7 = vector.load %arg2[%c0_3, %c0_4] : memref<1x8xf32, #tpu.memory_space<vmem>>, vector<1x8xf32>
    %8 = vector.broadcast %7 : vector<1x8xf32> to vector<512x8xf32>
    %9 = arith.addf %6, %8 : vector<512x8xf32>
    %cst_5 = arith.constant 0.000000e+00 : f32
    %10 = vector.broadcast %cst_5 : f32 to vector<512x8xf32>
    %11 = arith.maximumf %9, %10 : vector<512x8xf32>
    %c0_6 = arith.constant 0 : index
    %c0_7 = arith.constant 0 : index
    %12 = vector.load %arg10[%c0_6, %c0_7] : memref<512x8xf32, #tpu.memory_space<vmem>>, vector<512x8xf32>
    tpu.vector_store %arg10[%c0_6, %c0_7], %11 {strides = array<i32>} : memref<512x8xf32, #tpu.memory_space<vmem>>, vector<512x8xf32>,
    %cst_8 = arith.constant 0.000000e+00 : f32
    %13 = vector.broadcast %cst_8 : f32 to vector<128x72xf32>
    %c0_9 = arith.constant 0 : index
    %c0_10 = arith.constant 0 : index
    %14 = vector.load %arg11[%c0_9, %c0_10] : memref<128x72xf32, #tpu.memory_space<vmem>>, vector<128x72xf32>
    tpu.vector_store %arg11[%c0_9, %c0_10], %13 {strides = array<i32>} : memref<128x72xf32, #tpu.memory_space<vmem>>, vector<128x72xf32>,
    %c1 = arith.constant 1 : index
    %c0_11 = arith.constant 0 : index
    %15 = tpu.strided_load %arg10[%c1, %c0_11] {strides = array<i32: 2, 1>} : memref<512x8xf32, #tpu.memory_space<vmem>>, vector<7x8xf32>
    %c1_12 = arith.constant 1 : index
    %c24 = arith.constant 24 : index
    %16 = vector.load %arg11[%c1_12, %c24] : memref<128x72xf32, #tpu.memory_space<vmem>>, vector<7x8xf32>
    tpu.vector_store %arg11[%c1_12, %c24], %15 {strides = array<i32>} : memref<128x72xf32, #tpu.memory_space<vmem>>, vector<7x8xf32>,
    %c0_13 = arith.constant 0 : index
    %c0_14 = arith.constant 0 : index
    %17 = tpu.strided_load %arg10[%c0_13, %c0_14] {strides = array<i32: 2, 1>} : memref<512x8xf32, #tpu.memory_space<vmem>>, vector<8x8xf32>
    %c0_15 = arith.constant 0 : index
    %c32 = arith.constant 32 : index
    %18 = vector.load %arg11[%c0_15, %c32] : memref<128x72xf32, #tpu.memory_space<vmem>>, vector<8x8xf32>
    tpu.vector_store %arg11[%c0_15, %c32], %17 {strides = array<i32>} : memref<128x72xf32, #tpu.memory_space<vmem>>, vector<8x8xf32>,
    %c1_16 = arith.constant 1 : index
    %c0_17 = arith.constant 0 : index
    %19 = tpu.strided_load %arg10[%c1_16, %c0_17] {strides = array<i32: 2, 1>} : memref<512x8xf32, #tpu.memory_space<vmem>>, vector<8x8xf32>
    %c0_18 = arith.constant 0 : index
    %c40 = arith.constant 40 : index
    %20 = vector.load %arg11[%c0_18, %c40] : memref<128x72xf32, #tpu.memory_space<vmem>>, vector<8x8xf32>
    tpu.vector_store %arg11[%c0_18, %c40], %19 {strides = array<i32>} : memref<128x72xf32, #tpu.memory_space<vmem>>, vector<8x8xf32>,
    %c17 = arith.constant 17 : index
    %c0_19 = arith.constant 0 : index
    %21 = tpu.strided_load %arg10[%c17, %c0_19] {strides = array<i32: 2, 1>} : memref<512x8xf32, #tpu.memory_space<vmem>>, vector<7x8xf32>
    %c1_20 = arith.constant 1 : index
    %c48 = arith.constant 48 : index
    %22 = vector.load %arg11[%c1_20, %c48] : memref<128x72xf32, #tpu.memory_space<vmem>>, vector<7x8xf32>
    tpu.vector_store %arg11[%c1_20, %c48], %21 {strides = array<i32>} : memref<128x72xf32, #tpu.memory_space<vmem>>, vector<7x8xf32>,
    %c16 = arith.constant 16 : index
    %c0_21 = arith.constant 0 : index
    %23 = tpu.strided_load %arg10[%c16, %c0_21] {strides = array<i32: 2, 1>} : memref<512x8xf32, #tpu.memory_space<vmem>>, vector<8x8xf32>
    %c0_22 = arith.constant 0 : index
    %c56 = arith.constant 56 : index
    %24 = vector.load %arg11[%c0_22, %c56] : memref<128x72xf32, #tpu.memory_space<vmem>>, vector<8x8xf32>
    tpu.vector_store %arg11[%c0_22, %c56], %23 {strides = array<i32>} : memref<128x72xf32, #tpu.memory_space<vmem>>, vector<8x8xf32>,
    %c17_23 = arith.constant 17 : index
    %c0_24 = arith.constant 0 : index
    %25 = tpu.strided_load %arg10[%c17_23, %c0_24] {strides = array<i32: 2, 1>} : memref<512x8xf32, #tpu.memory_space<vmem>>, vector<8x8xf32>
    %c0_25 = arith.constant 0 : index
    %c64 = arith.constant 64 : index
    %26 = vector.load %arg11[%c0_25, %c64] : memref<128x72xf32, #tpu.memory_space<vmem>>, vector<8x8xf32>
    tpu.vector_store %arg11[%c0_25, %c64], %25 {strides = array<i32>} : memref<128x72xf32, #tpu.memory_space<vmem>>, vector<8x8xf32>,
    %c17_26 = arith.constant 17 : index
    %c0_27 = arith.constant 0 : index
    %27 = tpu.strided_load %arg10[%c17_26, %c0_27] {strides = array<i32: 2, 1>} : memref<512x8xf32, #tpu.memory_space<vmem>>, vector<7x8xf32>
    %c9 = arith.constant 9 : index
    %c0_28 = arith.constant 0 : index
    %28 = vector.load %arg11[%c9, %c0_28] : memref<128x72xf32, #tpu.memory_space<vmem>>, vector<7x8xf32>
    tpu.vector_store %arg11[%c9, %c0_28], %27 {strides = array<i32>} : memref<128x72xf32, #tpu.memory_space<vmem>>, vector<7x8xf32>,
    %c16_29 = arith.constant 16 : index
    %c0_30 = arith.constant 0 : index
    %29 = tpu.strided_load %arg10[%c16_29, %c0_30] {strides = array<i32: 2, 1>} : memref<512x8xf32, #tpu.memory_space<vmem>>, vector<8x8xf32>
    %c8 = arith.constant 8 : index
    %c8_31 = arith.constant 8 : index
    %30 = vector.load %arg11[%c8, %c8_31] : memref<128x72xf32, #tpu.memory_space<vmem>>, vector<8x8xf32>
    tpu.vector_store %arg11[%c8, %c8_31], %29 {strides = array<i32>} : memref<128x72xf32, #tpu.memory_space<vmem>>, vector<8x8xf32>,
    %c17_32 = arith.constant 17 : index
    %c0_33 = arith.constant 0 : index
    %31 = tpu.strided_load %arg10[%c17_32, %c0_33] {strides = array<i32: 2, 1>} : memref<512x8xf32, #tpu.memory_space<vmem>>, vector<8x8xf32>
    %c8_34 = arith.constant 8 : index
    %c16_35 = arith.constant 16 : index
    %32 = vector.load %arg11[%c8_34, %c16_35] : memref<128x72xf32, #tpu.memory_space<vmem>>, vector<8x8xf32>
    tpu.vector_store %arg11[%c8_34, %c16_35], %31 {strides = array<i32>} : memref<128x72xf32, #tpu.memory_space<vmem>>, vector<8x8xf32>,
    %c33 = arith.constant 33 : index
    %c0_36 = arith.constant 0 : index
    %33 = tpu.strided_load %arg10[%c33, %c0_36] {strides = array<i32: 2, 1>} : memref<512x8xf32, #tpu.memory_space<vmem>>, vector<7x8xf32>
    %c9_37 = arith.constant 9 : index
    %c24_38 = arith.constant 24 : index
    %34 = vector.load %arg11[%c9_37, %c24_38] : memref<128x72xf32, #tpu.memory_space<vmem>>, vector<7x8xf32>
    tpu.vector_store %arg11[%c9_37, %c24_38], %33 {strides = array<i32>} : memref<128x72xf32, #tpu.memory_space<vmem>>, vector<7x8xf32>,
    %c32_39 = arith.constant 32 : index
    %c0_40 = arith.constant 0 : index
    %35 = tpu.strided_load %arg10[%c32_39, %c0_40] {strides = array<i32: 2, 1>} : memref<512x8xf32, #tpu.memory_space<vmem>>, vector<8x8xf32>
    %c8_41 = arith.constant 8 : index
    %c32_42 = arith.constant 32 : index
    %36 = vector.load %arg11[%c8_41, %c32_42] : memref<128x72xf32, #tpu.memory_space<vmem>>, vector<8x8xf32>
    tpu.vector_store %arg11[%c8_41, %c32_42], %35 {strides = array<i32>} : memref<128x72xf32, #tpu.memory_space<vmem>>, vector<8x8xf32>,
    %c33_43 = arith.constant 33 : index
    %c0_44 = arith.constant 0 : index
    %37 = tpu.strided_load %arg10[%c33_43, %c0_44] {strides = array<i32: 2, 1>} : memref<512x8xf32, #tpu.memory_space<vmem>>, vector<8x8xf32>
    %c8_45 = arith.constant 8 : index
    %c40_46 = arith.constant 40 : index
    %38 = vector.load %arg11[%c8_45, %c40_46] : memref<128x72xf32, #tpu.memory_space<vmem>>, vector<8x8xf32>
    tpu.vector_store %arg11[%c8_45, %c40_46], %37 {strides = array<i32>} : memref<128x72xf32, #tpu.memory_space<vmem>>, vector<8x8xf32>,
    %c49 = arith.constant 49 : index
    %c0_47 = arith.constant 0 : index
    %39 = tpu.strided_load %arg10[%c49, %c0_47] {strides = array<i32: 2, 1>} : memref<512x8xf32, #tpu.memory_space<vmem>>, vector<7x8xf32>
    %c9_48 = arith.constant 9 : index
    %c48_49 = arith.constant 48 : index
    %40 = vector.load %arg11[%c9_48, %c48_49] : memref<128x72xf32, #tpu.memory_space<vmem>>, vector<7x8xf32>
    tpu.vector_store %arg11[%c9_48, %c48_49], %39 {strides = array<i32>} : memref<128x72xf32, #tpu.memory_space<vmem>>, vector<7x8xf32>,
    %c48_50 = arith.constant 48 : index
    %c0_51 = arith.constant 0 : index
    %41 = tpu.strided_load %arg10[%c48_50, %c0_51] {strides = array<i32: 2, 1>} : memref<512x8xf32, #tpu.memory_space<vmem>>, vector<8x8xf32>
    %c8_52 = arith.constant 8 : index
    %c56_53 = arith.constant 56 : index
    %42 = vector.load %arg11[%c8_52, %c56_53] : memref<128x72xf32, #tpu.memory_space<vmem>>, vector<8x8xf32>
    tpu.vector_store %arg11[%c8_52, %c56_53], %41 {strides = array<i32>} : memref<128x72xf32, #tpu.memory_space<vmem>>, vector<8x8xf32>,
    %c49_54 = arith.constant 49 : index
    %c0_55 = arith.constant 0 : index
    %43 = tpu.strided_load %arg10[%c49_54, %c0_55] {strides = array<i32: 2, 1>} : memref<512x8xf32, #tpu.memory_space<vmem>>, vector<8x8xf32>
    %c8_56 = arith.constant 8 : index
    %c64_57 = arith.constant 64 : index
    %44 = vector.load %arg11[%c8_56, %c64_57] : memref<128x72xf32, #tpu.memory_space<vmem>>, vector<8x8xf32>
    tpu.vector_store %arg11[%c8_56, %c64_57], %43 {strides = array<i32>} : memref<128x72xf32, #tpu.memory_space<vmem>>, vector<8x8xf32>,
    %c49_58 = arith.constant 49 : index
    %c0_59 = arith.constant 0 : index
    %45 = tpu.strided_load %arg10[%c49_58, %c0_59] {strides = array<i32: 2, 1>} : memref<512x8xf32, #tpu.memory_space<vmem>>, vector<7x8xf32>
    %c17_60 = arith.constant 17 : index
    %c0_61 = arith.constant 0 : index
    %46 = vector.load %arg11[%c17_60, %c0_61] : memref<128x72xf32, #tpu.memory_space<vmem>>, vector<7x8xf32>
    tpu.vector_store %arg11[%c17_60, %c0_61], %45 {strides = array<i32>} : memref<128x72xf32, #tpu.memory_space<vmem>>, vector<7x8xf32>,
    %c48_62 = arith.constant 48 : index
    %c0_63 = arith.constant 0 : index
    %47 = tpu.strided_load %arg10[%c48_62, %c0_63] {strides = array<i32: 2, 1>} : memref<512x8xf32, #tpu.memory_space<vmem>>, vector<8x8xf32>
    %c16_64 = arith.constant 16 : index
    %c8_65 = arith.constant 8 : index
    %48 = vector.load %arg11[%c16_64, %c8_65] : memref<128x72xf32, #tpu.memory_space<vmem>>, vector<8x8xf32>
    tpu.vector_store %arg11[%c16_64, %c8_65], %47 {strides = array<i32>} : memref<128x72xf32, #tpu.memory_space<vmem>>, vector<8x8xf32>,
    %c49_66 = arith.constant 49 : index
    %c0_67 = arith.constant 0 : index
    %49 = tpu.strided_load %arg10[%c49_66, %c0_67] {strides = array<i32: 2, 1>} : memref<512x8xf32, #tpu.memory_space<vmem>>, vector<8x8xf32>
    %c16_68 = arith.constant 16 : index
    %c16_69 = arith.constant 16 : index
    %50 = vector.load %arg11[%c16_68, %c16_69] : memref<128x72xf32, #tpu.memory_space<vmem>>, vector<8x8xf32>
    tpu.vector_store %arg11[%c16_68, %c16_69], %49 {strides = array<i32>} : memref<128x72xf32, #tpu.memory_space<vmem>>, vector<8x8xf32>,
    %c65 = arith.constant 65 : index
    %c0_70 = arith.constant 0 : index
    %51 = tpu.strided_load %arg10[%c65, %c0_70] {strides = array<i32: 2, 1>} : memref<512x8xf32, #tpu.memory_space<vmem>>, vector<7x8xf32>
    %c17_71 = arith.constant 17 : index
    %c24_72 = arith.constant 24 : index
    %52 = vector.load %arg11[%c17_71, %c24_72] : memref<128x72xf32, #tpu.memory_space<vmem>>, vector<7x8xf32>
    tpu.vector_store %arg11[%c17_71, %c24_72], %51 {strides = array<i32>} : memref<128x72xf32, #tpu.memory_space<vmem>>, vector<7x8xf32>,
    %c64_73 = arith.constant 64 : index
    %c0_74 = arith.constant 0 : index
    %53 = tpu.strided_load %arg10[%c64_73, %c0_74] {strides = array<i32: 2, 1>} : memref<512x8xf32, #tpu.memory_space<vmem>>, vector<8x8xf32>
    %c16_75 = arith.constant 16 : index
    %c32_76 = arith.constant 32 : index
    %54 = vector.load %arg11[%c16_75, %c32_76] : memref<128x72xf32, #tpu.memory_space<vmem>>, vector<8x8xf32>
    tpu.vector_store %arg11[%c16_75, %c32_76], %53 {strides = array<i32>} : memref<128x72xf32, #tpu.memory_space<vmem>>, vector<8x8xf32>,
    %c65_77 = arith.constant 65 : index
    %c0_78 = arith.constant 0 : index
    %55 = tpu.strided_load %arg10[%c65_77, %c0_78] {strides = array<i32: 2, 1>} : memref<512x8xf32, #tpu.memory_space<vmem>>, vector<8x8xf32>
    %c16_79 = arith.constant 16 : index
    %c40_80 = arith.constant 40 : index
    %56 = vector.load %arg11[%c16_79, %c40_80] : memref<128x72xf32, #tpu.memory_space<vmem>>, vector<8x8xf32>
    tpu.vector_store %arg11[%c16_79, %c40_80], %55 {strides = array<i32>} : memref<128x72xf32, #tpu.memory_space<vmem>>, vector<8x8xf32>,
    %c81 = arith.constant 81 : index
    %c0_81 = arith.constant 0 : index
    %57 = tpu.strided_load %arg10[%c81, %c0_81] {strides = array<i32: 2, 1>} : memref<512x8xf32, #tpu.memory_space<vmem>>, vector<7x8xf32>
    %c17_82 = arith.constant 17 : index
    %c48_83 = arith.constant 48 : index
    %58 = vector.load %arg11[%c17_82, %c48_83] : memref<128x72xf32, #tpu.memory_space<vmem>>, vector<7x8xf32>
    tpu.vector_store %arg11[%c17_82, %c48_83], %57 {strides = array<i32>} : memref<128x72xf32, #tpu.memory_space<vmem>>, vector<7x8xf32>,
    %c80 = arith.constant 80 : index
    %c0_84 = arith.constant 0 : index
    %59 = tpu.strided_load %arg10[%c80, %c0_84] {strides = array<i32: 2, 1>} : memref<512x8xf32, #tpu.memory_space<vmem>>, vector<8x8xf32>
    %c16_85 = arith.constant 16 : index
    %c56_86 = arith.constant 56 : index
    %60 = vector.load %arg11[%c16_85, %c56_86] : memref<128x72xf32, #tpu.memory_space<vmem>>, vector<8x8xf32>
    tpu.vector_store %arg11[%c16_85, %c56_86], %59 {strides = array<i32>} : memref<128x72xf32, #tpu.memory_space<vmem>>, vector<8x8xf32>,
    %c81_87 = arith.constant 81 : index
    %c0_88 = arith.constant 0 : index
    %61 = tpu.strided_load %arg10[%c81_87, %c0_88] {strides = array<i32: 2, 1>} : memref<512x8xf32, #tpu.memory_space<vmem>>, vector<8x8xf32>
    %c16_89 = arith.constant 16 : index
    %c64_90 = arith.constant 64 : index
    %62 = vector.load %arg11[%c16_89, %c64_90] : memref<128x72xf32, #tpu.memory_space<vmem>>, vector<8x8xf32>
    tpu.vector_store %arg11[%c16_89, %c64_90], %61 {strides = array<i32>} : memref<128x72xf32, #tpu.memory_space<vmem>>, vector<8x8xf32>,
    %c81_91 = arith.constant 81 : index
    %c0_92 = arith.constant 0 : index
    %63 = tpu.strided_load %arg10[%c81_91, %c0_92] {strides = array<i32: 2, 1>} : memref<512x8xf32, #tpu.memory_space<vmem>>, vector<7x8xf32>
    %c25 = arith.constant 25 : index
    %c0_93 = arith.constant 0 : index
    %64 = vector.load %arg11[%c25, %c0_93] : memref<128x72xf32, #tpu.memory_space<vmem>>, vector<7x8xf32>
    tpu.vector_store %arg11[%c25, %c0_93], %63 {strides = array<i32>} : memref<128x72xf32, #tpu.memory_space<vmem>>, vector<7x8xf32>,
    %c80_94 = arith.constant 80 : index
    %c0_95 = arith.constant 0 : index
    %65 = tpu.strided_load %arg10[%c80_94, %c0_95] {strides = array<i32: 2, 1>} : memref<512x8xf32, #tpu.memory_space<vmem>>, vector<8x8xf32>
    %c24_96 = arith.constant 24 : index
    %c8_97 = arith.constant 8 : index
    %66 = vector.load %arg11[%c24_96, %c8_97] : memref<128x72xf32, #tpu.memory_space<vmem>>, vector<8x8xf32>
    tpu.vector_store %arg11[%c24_96, %c8_97], %65 {strides = array<i32>} : memref<128x72xf32, #tpu.memory_space<vmem>>, vector<8x8xf32>,
    %c81_98 = arith.constant 81 : index
    %c0_99 = arith.constant 0 : index
    %67 = tpu.strided_load %arg10[%c81_98, %c0_99] {strides = array<i32: 2, 1>} : memref<512x8xf32, #tpu.memory_space<vmem>>, vector<8x8xf32>
    %c24_100 = arith.constant 24 : index
    %c16_101 = arith.constant 16 : index
    %68 = vector.load %arg11[%c24_100, %c16_101] : memref<128x72xf32, #tpu.memory_space<vmem>>, vector<8x8xf32>
    tpu.vector_store %arg11[%c24_100, %c16_101], %67 {strides = array<i32>} : memref<128x72xf32, #tpu.memory_space<vmem>>, vector<8x8xf32>,
    %c97 = arith.constant 97 : index
    %c0_102 = arith.constant 0 : index
    %69 = tpu.strided_load %arg10[%c97, %c0_102] {strides = array<i32: 2, 1>} : memref<512x8xf32, #tpu.memory_space<vmem>>, vector<7x8xf32>
    %c25_103 = arith.constant 25 : index
    %c24_104 = arith.constant 24 : index
    %70 = vector.load %arg11[%c25_103, %c24_104] : memref<128x72xf32, #tpu.memory_space<vmem>>, vector<7x8xf32>
    tpu.vector_store %arg11[%c25_103, %c24_104], %69 {strides = array<i32>} : memref<128x72xf32, #tpu.memory_space<vmem>>, vector<7x8xf32>,
    %c96 = arith.constant 96 : index
    %c0_105 = arith.constant 0 : index
    %71 = tpu.strided_load %arg10[%c96, %c0_105] {strides = array<i32: 2, 1>} : memref<512x8xf32, #tpu.memory_space<vmem>>, vector<8x8xf32>
    %c24_106 = arith.constant 24 : index
    %c32_107 = arith.constant 32 : index
    %72 = vector.load %arg11[%c24_106, %c32_107] : memref<128x72xf32, #tpu.memory_space<vmem>>, vector<8x8xf32>
    tpu.vector_store %arg11[%c24_106, %c32_107], %71 {strides = array<i32>} : memref<128x72xf32, #tpu.memory_space<vmem>>, vector<8x8xf32>,
    %c97_108 = arith.constant 97 : index
    %c0_109 = arith.constant 0 : index
    %73 = tpu.strided_load %arg10[%c97_108, %c0_109] {strides = array<i32: 2, 1>} : memref<512x8xf32, #tpu.memory_space<vmem>>, vector<8x8xf32>
    %c24_110 = arith.constant 24 : index
    %c40_111 = arith.constant 40 : index
    %74 = vector.load %arg11[%c24_110, %c40_111] : memref<128x72xf32, #tpu.memory_space<vmem>>, vector<8x8xf32>
    tpu.vector_store %arg11[%c24_110, %c40_111], %73 {strides = array<i32>} : memref<128x72xf32, #tpu.memory_space<vmem>>, vector<8x8xf32>,
    %c113 = arith.constant 113 : index
    %c0_112 = arith.constant 0 : index
    %75 = tpu.strided_load %arg10[%c113, %c0_112] {strides = array<i32: 2, 1>} : memref<512x8xf32, #tpu.memory_space<vmem>>, vector<7x8xf32>
    %c25_113 = arith.constant 25 : index
    %c48_114 = arith.constant 48 : index
    %76 = vector.load %arg11[%c25_113, %c48_114] : memref<128x72xf32, #tpu.memory_space<vmem>>, vector<7x8xf32>
    tpu.vector_store %arg11[%c25_113, %c48_114], %75 {strides = array<i32>} : memref<128x72xf32, #tpu.memory_space<vmem>>, vector<7x8xf32>,
    %c112 = arith.constant 112 : index
    %c0_115 = arith.constant 0 : index
    %77 = tpu.strided_load %arg10[%c112, %c0_115] {strides = array<i32: 2, 1>} : memref<512x8xf32, #tpu.memory_space<vmem>>, vector<8x8xf32>
    %c24_116 = arith.constant 24 : index
    %c56_117 = arith.constant 56 : index
    %78 = vector.load %arg11[%c24_116, %c56_117] : memref<128x72xf32, #tpu.memory_space<vmem>>, vector<8x8xf32>
    tpu.vector_store %arg11[%c24_116, %c56_117], %77 {strides = array<i32>} : memref<128x72xf32, #tpu.memory_space<vmem>>, vector<8x8xf32>,
    %c113_118 = arith.constant 113 : index
    %c0_119 = arith.constant 0 : index
    %79 = tpu.strided_load %arg10[%c113_118, %c0_119] {strides = array<i32: 2, 1>} : memref<512x8xf32, #tpu.memory_space<vmem>>, vector<8x8xf32>
    %c24_120 = arith.constant 24 : index
    %c64_121 = arith.constant 64 : index
    %80 = vector.load %arg11[%c24_120, %c64_121] : memref<128x72xf32, #tpu.memory_space<vmem>>, vector<8x8xf32>
    tpu.vector_store %arg11[%c24_120, %c64_121], %79 {strides = array<i32>} : memref<128x72xf32, #tpu.memory_space<vmem>>, vector<8x8xf32>,
    %c113_122 = arith.constant 113 : index
    %c0_123 = arith.constant 0 : index
    %81 = tpu.strided_load %arg10[%c113_122, %c0_123] {strides = array<i32: 2, 1>} : memref<512x8xf32, #tpu.memory_space<vmem>>, vector<7x8xf32>
    %c33_124 = arith.constant 33 : index
    %c0_125 = arith.constant 0 : index
    %82 = vector.load %arg11[%c33_124, %c0_125] : memref<128x72xf32, #tpu.memory_space<vmem>>, vector<7x8xf32>
    tpu.vector_store %arg11[%c33_124, %c0_125], %81 {strides = array<i32>} : memref<128x72xf32, #tpu.memory_space<vmem>>, vector<7x8xf32>,
    %c112_126 = arith.constant 112 : index
    %c0_127 = arith.constant 0 : index
    %83 = tpu.strided_load %arg10[%c112_126, %c0_127] {strides = array<i32: 2, 1>} : memref<512x8xf32, #tpu.memory_space<vmem>>, vector<8x8xf32>
    %c32_128 = arith.constant 32 : index
    %c8_129 = arith.constant 8 : index
    %84 = vector.load %arg11[%c32_128, %c8_129] : memref<128x72xf32, #tpu.memory_space<vmem>>, vector<8x8xf32>
    tpu.vector_store %arg11[%c32_128, %c8_129], %83 {strides = array<i32>} : memref<128x72xf32, #tpu.memory_space<vmem>>, vector<8x8xf32>,
    %c113_130 = arith.constant 113 : index
    %c0_131 = arith.constant 0 : index
    %85 = tpu.strided_load %arg10[%c113_130, %c0_131] {strides = array<i32: 2, 1>} : memref<512x8xf32, #tpu.memory_space<vmem>>, vector<8x8xf32>
    %c32_132 = arith.constant 32 : index
    %c16_133 = arith.constant 16 : index
    %86 = vector.load %arg11[%c32_132, %c16_133] : memref<128x72xf32, #tpu.memory_space<vmem>>, vector<8x8xf32>
    tpu.vector_store %arg11[%c32_132, %c16_133], %85 {strides = array<i32>} : memref<128x72xf32, #tpu.memory_space<vmem>>, vector<8x8xf32>,
    %c129 = arith.constant 129 : index
    %c0_134 = arith.constant 0 : index
    %87 = tpu.strided_load %arg10[%c129, %c0_134] {strides = array<i32: 2, 1>} : memref<512x8xf32, #tpu.memory_space<vmem>>, vector<7x8xf32>
    %c33_135 = arith.constant 33 : index
    %c24_136 = arith.constant 24 : index
    %88 = vector.load %arg11[%c33_135, %c24_136] : memref<128x72xf32, #tpu.memory_space<vmem>>, vector<7x8xf32>
    tpu.vector_store %arg11[%c33_135, %c24_136], %87 {strides = array<i32>} : memref<128x72xf32, #tpu.memory_space<vmem>>, vector<7x8xf32>,
    %c128 = arith.constant 128 : index
    %c0_137 = arith.constant 0 : index
    %89 = tpu.strided_load %arg10[%c128, %c0_137] {strides = array<i32: 2, 1>} : memref<512x8xf32, #tpu.memory_space<vmem>>, vector<8x8xf32>
    %c32_138 = arith.constant 32 : index
    %c32_139 = arith.constant 32 : index
    %90 = vector.load %arg11[%c32_138, %c32_139] : memref<128x72xf32, #tpu.memory_space<vmem>>, vector<8x8xf32>
    tpu.vector_store %arg11[%c32_138, %c32_139], %89 {strides = array<i32>} : memref<128x72xf32, #tpu.memory_space<vmem>>, vector<8x8xf32>,
    %c129_140 = arith.constant 129 : index
    %c0_141 = arith.constant 0 : index
    %91 = tpu.strided_load %arg10[%c129_140, %c0_141] {strides = array<i32: 2, 1>} : memref<512x8xf32, #tpu.memory_space<vmem>>, vector<8x8xf32>
    %c32_142 = arith.constant 32 : index
    %c40_143 = arith.constant 40 : index
    %92 = vector.load %arg11[%c32_142, %c40_143] : memref<128x72xf32, #tpu.memory_space<vmem>>, vector<8x8xf32>
    tpu.vector_store %arg11[%c32_142, %c40_143], %91 {strides = array<i32>} : memref<128x72xf32, #tpu.memory_space<vmem>>, vector<8x8xf32>,
    %c145 = arith.constant 145 : index
    %c0_144 = arith.constant 0 : index
    %93 = tpu.strided_load %arg10[%c145, %c0_144] {strides = array<i32: 2, 1>} : memref<512x8xf32, #tpu.memory_space<vmem>>, vector<7x8xf32>
    %c33_145 = arith.constant 33 : index
    %c48_146 = arith.constant 48 : index
    %94 = vector.load %arg11[%c33_145, %c48_146] : memref<128x72xf32, #tpu.memory_space<vmem>>, vector<7x8xf32>
    tpu.vector_store %arg11[%c33_145, %c48_146], %93 {strides = array<i32>} : memref<128x72xf32, #tpu.memory_space<vmem>>, vector<7x8xf32>,
    %c144 = arith.constant 144 : index
    %c0_147 = arith.constant 0 : index
    %95 = tpu.strided_load %arg10[%c144, %c0_147] {strides = array<i32: 2, 1>} : memref<512x8xf32, #tpu.memory_space<vmem>>, vector<8x8xf32>
    %c32_148 = arith.constant 32 : index
    %c56_149 = arith.constant 56 : index
    %96 = vector.load %arg11[%c32_148, %c56_149] : memref<128x72xf32, #tpu.memory_space<vmem>>, vector<8x8xf32>
    tpu.vector_store %arg11[%c32_148, %c56_149], %95 {strides = array<i32>} : memref<128x72xf32, #tpu.memory_space<vmem>>, vector<8x8xf32>,
    %c145_150 = arith.constant 145 : index
    %c0_151 = arith.constant 0 : index
    %97 = tpu.strided_load %arg10[%c145_150, %c0_151] {strides = array<i32: 2, 1>} : memref<512x8xf32, #tpu.memory_space<vmem>>, vector<8x8xf32>
    %c32_152 = arith.constant 32 : index
    %c64_153 = arith.constant 64 : index
    %98 = vector.load %arg11[%c32_152, %c64_153] : memref<128x72xf32, #tpu.memory_space<vmem>>, vector<8x8xf32>
    tpu.vector_store %arg11[%c32_152, %c64_153], %97 {strides = array<i32>} : memref<128x72xf32, #tpu.memory_space<vmem>>, vector<8x8xf32>,
    %c145_154 = arith.constant 145 : index
    %c0_155 = arith.constant 0 : index
    %99 = tpu.strided_load %arg10[%c145_154, %c0_155] {strides = array<i32: 2, 1>} : memref<512x8xf32, #tpu.memory_space<vmem>>, vector<7x8xf32>
    %c41 = arith.constant 41 : index
    %c0_156 = arith.constant 0 : index
    %100 = vector.load %arg11[%c41, %c0_156] : memref<128x72xf32, #tpu.memory_space<vmem>>, vector<7x8xf32>
    tpu.vector_store %arg11[%c41, %c0_156], %99 {strides = array<i32>} : memref<128x72xf32, #tpu.memory_space<vmem>>, vector<7x8xf32>,
    %c144_157 = arith.constant 144 : index
    %c0_158 = arith.constant 0 : index
    %101 = tpu.strided_load %arg10[%c144_157, %c0_158] {strides = array<i32: 2, 1>} : memref<512x8xf32, #tpu.memory_space<vmem>>, vector<8x8xf32>
    %c40_159 = arith.constant 40 : index
    %c8_160 = arith.constant 8 : index
    %102 = vector.load %arg11[%c40_159, %c8_160] : memref<128x72xf32, #tpu.memory_space<vmem>>, vector<8x8xf32>
    tpu.vector_store %arg11[%c40_159, %c8_160], %101 {strides = array<i32>} : memref<128x72xf32, #tpu.memory_space<vmem>>, vector<8x8xf32>,
    %c145_161 = arith.constant 145 : index
    %c0_162 = arith.constant 0 : index
    %103 = tpu.strided_load %arg10[%c145_161, %c0_162] {strides = array<i32: 2, 1>} : memref<512x8xf32, #tpu.memory_space<vmem>>, vector<8x8xf32>
    %c40_163 = arith.constant 40 : index
    %c16_164 = arith.constant 16 : index
    %104 = vector.load %arg11[%c40_163, %c16_164] : memref<128x72xf32, #tpu.memory_space<vmem>>, vector<8x8xf32>
    tpu.vector_store %arg11[%c40_163, %c16_164], %103 {strides = array<i32>} : memref<128x72xf32, #tpu.memory_space<vmem>>, vector<8x8xf32>,
    %c161 = arith.constant 161 : index
    %c0_165 = arith.constant 0 : index
    %105 = tpu.strided_load %arg10[%c161, %c0_165] {strides = array<i32: 2, 1>} : memref<512x8xf32, #tpu.memory_space<vmem>>, vector<7x8xf32>
    %c41_166 = arith.constant 41 : index
    %c24_167 = arith.constant 24 : index
    %106 = vector.load %arg11[%c41_166, %c24_167] : memref<128x72xf32, #tpu.memory_space<vmem>>, vector<7x8xf32>
    tpu.vector_store %arg11[%c41_166, %c24_167], %105 {strides = array<i32>} : memref<128x72xf32, #tpu.memory_space<vmem>>, vector<7x8xf32>,
    %c160 = arith.constant 160 : index
    %c0_168 = arith.constant 0 : index
    %107 = tpu.strided_load %arg10[%c160, %c0_168] {strides = array<i32: 2, 1>} : memref<512x8xf32, #tpu.memory_space<vmem>>, vector<8x8xf32>
    %c40_169 = arith.constant 40 : index
    %c32_170 = arith.constant 32 : index
    %108 = vector.load %arg11[%c40_169, %c32_170] : memref<128x72xf32, #tpu.memory_space<vmem>>, vector<8x8xf32>
    tpu.vector_store %arg11[%c40_169, %c32_170], %107 {strides = array<i32>} : memref<128x72xf32, #tpu.memory_space<vmem>>, vector<8x8xf32>,
    %c161_171 = arith.constant 161 : index
    %c0_172 = arith.constant 0 : index
    %109 = tpu.strided_load %arg10[%c161_171, %c0_172] {strides = array<i32: 2, 1>} : memref<512x8xf32, #tpu.memory_space<vmem>>, vector<8x8xf32>
    %c40_173 = arith.constant 40 : index
    %c40_174 = arith.constant 40 : index
    %110 = vector.load %arg11[%c40_173, %c40_174] : memref<128x72xf32, #tpu.memory_space<vmem>>, vector<8x8xf32>
    tpu.vector_store %arg11[%c40_173, %c40_174], %109 {strides = array<i32>} : memref<128x72xf32, #tpu.memory_space<vmem>>, vector<8x8xf32>,
    %c177 = arith.constant 177 : index
    %c0_175 = arith.constant 0 : index
    %111 = tpu.strided_load %arg10[%c177, %c0_175] {strides = array<i32: 2, 1>} : memref<512x8xf32, #tpu.memory_space<vmem>>, vector<7x8xf32>
    %c41_176 = arith.constant 41 : index
    %c48_177 = arith.constant 48 : index
    %112 = vector.load %arg11[%c41_176, %c48_177] : memref<128x72xf32, #tpu.memory_space<vmem>>, vector<7x8xf32>
    tpu.vector_store %arg11[%c41_176, %c48_177], %111 {strides = array<i32>} : memref<128x72xf32, #tpu.memory_space<vmem>>, vector<7x8xf32>,
    %c176 = arith.constant 176 : index
    %c0_178 = arith.constant 0 : index
    %113 = tpu.strided_load %arg10[%c176, %c0_178] {strides = array<i32: 2, 1>} : memref<512x8xf32, #tpu.memory_space<vmem>>, vector<8x8xf32>
    %c40_179 = arith.constant 40 : index
    %c56_180 = arith.constant 56 : index
    %114 = vector.load %arg11[%c40_179, %c56_180] : memref<128x72xf32, #tpu.memory_space<vmem>>, vector<8x8xf32>
    tpu.vector_store %arg11[%c40_179, %c56_180], %113 {strides = array<i32>} : memref<128x72xf32, #tpu.memory_space<vmem>>, vector<8x8xf32>,
    %c177_181 = arith.constant 177 : index
    %c0_182 = arith.constant 0 : index
    %115 = tpu.strided_load %arg10[%c177_181, %c0_182] {strides = array<i32: 2, 1>} : memref<512x8xf32, #tpu.memory_space<vmem>>, vector<8x8xf32>
    %c40_183 = arith.constant 40 : index
    %c64_184 = arith.constant 64 : index
    %116 = vector.load %arg11[%c40_183, %c64_184] : memref<128x72xf32, #tpu.memory_space<vmem>>, vector<8x8xf32>
    tpu.vector_store %arg11[%c40_183, %c64_184], %115 {strides = array<i32>} : memref<128x72xf32, #tpu.memory_space<vmem>>, vector<8x8xf32>,
    %c177_185 = arith.constant 177 : index
    %c0_186 = arith.constant 0 : index
    %117 = tpu.strided_load %arg10[%c177_185, %c0_186] {strides = array<i32: 2, 1>} : memref<512x8xf32, #tpu.memory_space<vmem>>, vector<7x8xf32>
    %c49_187 = arith.constant 49 : index
    %c0_188 = arith.constant 0 : index
    %118 = vector.load %arg11[%c49_187, %c0_188] : memref<128x72xf32, #tpu.memory_space<vmem>>, vector<7x8xf32>
    tpu.vector_store %arg11[%c49_187, %c0_188], %117 {strides = array<i32>} : memref<128x72xf32, #tpu.memory_space<vmem>>, vector<7x8xf32>,
    %c176_189 = arith.constant 176 : index
    %c0_190 = arith.constant 0 : index
    %119 = tpu.strided_load %arg10[%c176_189, %c0_190] {strides = array<i32: 2, 1>} : memref<512x8xf32, #tpu.memory_space<vmem>>, vector<8x8xf32>
    %c48_191 = arith.constant 48 : index
    %c8_192 = arith.constant 8 : index
    %120 = vector.load %arg11[%c48_191, %c8_192] : memref<128x72xf32, #tpu.memory_space<vmem>>, vector<8x8xf32>
    tpu.vector_store %arg11[%c48_191, %c8_192], %119 {strides = array<i32>} : memref<128x72xf32, #tpu.memory_space<vmem>>, vector<8x8xf32>,
    %c177_193 = arith.constant 177 : index
    %c0_194 = arith.constant 0 : index
    %121 = tpu.strided_load %arg10[%c177_193, %c0_194] {strides = array<i32: 2, 1>} : memref<512x8xf32, #tpu.memory_space<vmem>>, vector<8x8xf32>
    %c48_195 = arith.constant 48 : index
    %c16_196 = arith.constant 16 : index
    %122 = vector.load %arg11[%c48_195, %c16_196] : memref<128x72xf32, #tpu.memory_space<vmem>>, vector<8x8xf32>
    tpu.vector_store %arg11[%c48_195, %c16_196], %121 {strides = array<i32>} : memref<128x72xf32, #tpu.memory_space<vmem>>, vector<8x8xf32>,
    %c193 = arith.constant 193 : index
    %c0_197 = arith.constant 0 : index
    %123 = tpu.strided_load %arg10[%c193, %c0_197] {strides = array<i32: 2, 1>} : memref<512x8xf32, #tpu.memory_space<vmem>>, vector<7x8xf32>
    %c49_198 = arith.constant 49 : index
    %c24_199 = arith.constant 24 : index
    %124 = vector.load %arg11[%c49_198, %c24_199] : memref<128x72xf32, #tpu.memory_space<vmem>>, vector<7x8xf32>
    tpu.vector_store %arg11[%c49_198, %c24_199], %123 {strides = array<i32>} : memref<128x72xf32, #tpu.memory_space<vmem>>, vector<7x8xf32>,
    %c192 = arith.constant 192 : index
    %c0_200 = arith.constant 0 : index
    %125 = tpu.strided_load %arg10[%c192, %c0_200] {strides = array<i32: 2, 1>} : memref<512x8xf32, #tpu.memory_space<vmem>>, vector<8x8xf32>
    %c48_201 = arith.constant 48 : index
    %c32_202 = arith.constant 32 : index
    %126 = vector.load %arg11[%c48_201, %c32_202] : memref<128x72xf32, #tpu.memory_space<vmem>>, vector<8x8xf32>
    tpu.vector_store %arg11[%c48_201, %c32_202], %125 {strides = array<i32>} : memref<128x72xf32, #tpu.memory_space<vmem>>, vector<8x8xf32>,
    %c193_203 = arith.constant 193 : index
    %c0_204 = arith.constant 0 : index
    %127 = tpu.strided_load %arg10[%c193_203, %c0_204] {strides = array<i32: 2, 1>} : memref<512x8xf32, #tpu.memory_space<vmem>>, vector<8x8xf32>
    %c48_205 = arith.constant 48 : index
    %c40_206 = arith.constant 40 : index
    %128 = vector.load %arg11[%c48_205, %c40_206] : memref<128x72xf32, #tpu.memory_space<vmem>>, vector<8x8xf32>
    tpu.vector_store %arg11[%c48_205, %c40_206], %127 {strides = array<i32>} : memref<128x72xf32, #tpu.memory_space<vmem>>, vector<8x8xf32>,
    %c209 = arith.constant 209 : index
    %c0_207 = arith.constant 0 : index
    %129 = tpu.strided_load %arg10[%c209, %c0_207] {strides = array<i32: 2, 1>} : memref<512x8xf32, #tpu.memory_space<vmem>>, vector<7x8xf32>
    %c49_208 = arith.constant 49 : index
    %c48_209 = arith.constant 48 : index
    %130 = vector.load %arg11[%c49_208, %c48_209] : memref<128x72xf32, #tpu.memory_space<vmem>>, vector<7x8xf32>
    tpu.vector_store %arg11[%c49_208, %c48_209], %129 {strides = array<i32>} : memref<128x72xf32, #tpu.memory_space<vmem>>, vector<7x8xf32>,
    %c208 = arith.constant 208 : index
    %c0_210 = arith.constant 0 : index
    %131 = tpu.strided_load %arg10[%c208, %c0_210] {strides = array<i32: 2, 1>} : memref<512x8xf32, #tpu.memory_space<vmem>>, vector<8x8xf32>
    %c48_211 = arith.constant 48 : index
    %c56_212 = arith.constant 56 : index
    %132 = vector.load %arg11[%c48_211, %c56_212] : memref<128x72xf32, #tpu.memory_space<vmem>>, vector<8x8xf32>
    tpu.vector_store %arg11[%c48_211, %c56_212], %131 {strides = array<i32>} : memref<128x72xf32, #tpu.memory_space<vmem>>, vector<8x8xf32>,
    %c209_213 = arith.constant 209 : index
    %c0_214 = arith.constant 0 : index
    %133 = tpu.strided_load %arg10[%c209_213, %c0_214] {strides = array<i32: 2, 1>} : memref<512x8xf32, #tpu.memory_space<vmem>>, vector<8x8xf32>
    %c48_215 = arith.constant 48 : index
    %c64_216 = arith.constant 64 : index
    %134 = vector.load %arg11[%c48_215, %c64_216] : memref<128x72xf32, #tpu.memory_space<vmem>>, vector<8x8xf32>
    tpu.vector_store %arg11[%c48_215, %c64_216], %133 {strides = array<i32>} : memref<128x72xf32, #tpu.memory_space<vmem>>, vector<8x8xf32>,
    %c209_217 = arith.constant 209 : index
    %c0_218 = arith.constant 0 : index
    %135 = tpu.strided_load %arg10[%c209_217, %c0_218] {strides = array<i32: 2, 1>} : memref<512x8xf32, #tpu.memory_space<vmem>>, vector<7x8xf32>
    %c57 = arith.constant 57 : index
    %c0_219 = arith.constant 0 : index
    %136 = vector.load %arg11[%c57, %c0_219] : memref<128x72xf32, #tpu.memory_space<vmem>>, vector<7x8xf32>
    tpu.vector_store %arg11[%c57, %c0_219], %135 {strides = array<i32>} : memref<128x72xf32, #tpu.memory_space<vmem>>, vector<7x8xf32>,
    %c208_220 = arith.constant 208 : index
    %c0_221 = arith.constant 0 : index
    %137 = tpu.strided_load %arg10[%c208_220, %c0_221] {strides = array<i32: 2, 1>} : memref<512x8xf32, #tpu.memory_space<vmem>>, vector<8x8xf32>
    %c56_222 = arith.constant 56 : index
    %c8_223 = arith.constant 8 : index
    %138 = vector.load %arg11[%c56_222, %c8_223] : memref<128x72xf32, #tpu.memory_space<vmem>>, vector<8x8xf32>
    tpu.vector_store %arg11[%c56_222, %c8_223], %137 {strides = array<i32>} : memref<128x72xf32, #tpu.memory_space<vmem>>, vector<8x8xf32>,
    %c209_224 = arith.constant 209 : index
    %c0_225 = arith.constant 0 : index
    %139 = tpu.strided_load %arg10[%c209_224, %c0_225] {strides = array<i32: 2, 1>} : memref<512x8xf32, #tpu.memory_space<vmem>>, vector<8x8xf32>
    %c56_226 = arith.constant 56 : index
    %c16_227 = arith.constant 16 : index
    %140 = vector.load %arg11[%c56_226, %c16_227] : memref<128x72xf32, #tpu.memory_space<vmem>>, vector<8x8xf32>
    tpu.vector_store %arg11[%c56_226, %c16_227], %139 {strides = array<i32>} : memref<128x72xf32, #tpu.memory_space<vmem>>, vector<8x8xf32>,
    %c225 = arith.constant 225 : index
    %c0_228 = arith.constant 0 : index
    %141 = tpu.strided_load %arg10[%c225, %c0_228] {strides = array<i32: 2, 1>} : memref<512x8xf32, #tpu.memory_space<vmem>>, vector<7x8xf32>
    %c57_229 = arith.constant 57 : index
    %c24_230 = arith.constant 24 : index
    %142 = vector.load %arg11[%c57_229, %c24_230] : memref<128x72xf32, #tpu.memory_space<vmem>>, vector<7x8xf32>
    tpu.vector_store %arg11[%c57_229, %c24_230], %141 {strides = array<i32>} : memref<128x72xf32, #tpu.memory_space<vmem>>, vector<7x8xf32>,
    %c224 = arith.constant 224 : index
    %c0_231 = arith.constant 0 : index
    %143 = tpu.strided_load %arg10[%c224, %c0_231] {strides = array<i32: 2, 1>} : memref<512x8xf32, #tpu.memory_space<vmem>>, vector<8x8xf32>
    %c56_232 = arith.constant 56 : index
    %c32_233 = arith.constant 32 : index
    %144 = vector.load %arg11[%c56_232, %c32_233] : memref<128x72xf32, #tpu.memory_space<vmem>>, vector<8x8xf32>
    tpu.vector_store %arg11[%c56_232, %c32_233], %143 {strides = array<i32>} : memref<128x72xf32, #tpu.memory_space<vmem>>, vector<8x8xf32>,
    %c225_234 = arith.constant 225 : index
    %c0_235 = arith.constant 0 : index
    %145 = tpu.strided_load %arg10[%c225_234, %c0_235] {strides = array<i32: 2, 1>} : memref<512x8xf32, #tpu.memory_space<vmem>>, vector<8x8xf32>
    %c56_236 = arith.constant 56 : index
    %c40_237 = arith.constant 40 : index
    %146 = vector.load %arg11[%c56_236, %c40_237] : memref<128x72xf32, #tpu.memory_space<vmem>>, vector<8x8xf32>
    tpu.vector_store %arg11[%c56_236, %c40_237], %145 {strides = array<i32>} : memref<128x72xf32, #tpu.memory_space<vmem>>, vector<8x8xf32>,
    %c241 = arith.constant 241 : index
    %c0_238 = arith.constant 0 : index
    %147 = tpu.strided_load %arg10[%c241, %c0_238] {strides = array<i32: 2, 1>} : memref<512x8xf32, #tpu.memory_space<vmem>>, vector<7x8xf32>
    %c57_239 = arith.constant 57 : index
    %c48_240 = arith.constant 48 : index
    %148 = vector.load %arg11[%c57_239, %c48_240] : memref<128x72xf32, #tpu.memory_space<vmem>>, vector<7x8xf32>
    tpu.vector_store %arg11[%c57_239, %c48_240], %147 {strides = array<i32>} : memref<128x72xf32, #tpu.memory_space<vmem>>, vector<7x8xf32>,
    %c240 = arith.constant 240 : index
    %c0_241 = arith.constant 0 : index
    %149 = tpu.strided_load %arg10[%c240, %c0_241] {strides = array<i32: 2, 1>} : memref<512x8xf32, #tpu.memory_space<vmem>>, vector<8x8xf32>
    %c56_242 = arith.constant 56 : index
    %c56_243 = arith.constant 56 : index
    %150 = vector.load %arg11[%c56_242, %c56_243] : memref<128x72xf32, #tpu.memory_space<vmem>>, vector<8x8xf32>
    tpu.vector_store %arg11[%c56_242, %c56_243], %149 {strides = array<i32>} : memref<128x72xf32, #tpu.memory_space<vmem>>, vector<8x8xf32>,
    %c241_244 = arith.constant 241 : index
    %c0_245 = arith.constant 0 : index
    %151 = tpu.strided_load %arg10[%c241_244, %c0_245] {strides = array<i32: 2, 1>} : memref<512x8xf32, #tpu.memory_space<vmem>>, vector<8x8xf32>
    %c56_246 = arith.constant 56 : index
    %c64_247 = arith.constant 64 : index
    %152 = vector.load %arg11[%c56_246, %c64_247] : memref<128x72xf32, #tpu.memory_space<vmem>>, vector<8x8xf32>
    tpu.vector_store %arg11[%c56_246, %c64_247], %151 {strides = array<i32>} : memref<128x72xf32, #tpu.memory_space<vmem>>, vector<8x8xf32>,
    %c257 = arith.constant 257 : index
    %c0_248 = arith.constant 0 : index
    %153 = tpu.strided_load %arg10[%c257, %c0_248] {strides = array<i32: 2, 1>} : memref<512x8xf32, #tpu.memory_space<vmem>>, vector<7x8xf32>
    %c65_249 = arith.constant 65 : index
    %c24_250 = arith.constant 24 : index
    %154 = vector.load %arg11[%c65_249, %c24_250] : memref<128x72xf32, #tpu.memory_space<vmem>>, vector<7x8xf32>
    tpu.vector_store %arg11[%c65_249, %c24_250], %153 {strides = array<i32>} : memref<128x72xf32, #tpu.memory_space<vmem>>, vector<7x8xf32>,
    %c256 = arith.constant 256 : index
    %c0_251 = arith.constant 0 : index
    %155 = tpu.strided_load %arg10[%c256, %c0_251] {strides = array<i32: 2, 1>} : memref<512x8xf32, #tpu.memory_space<vmem>>, vector<8x8xf32>
    %c64_252 = arith.constant 64 : index
    %c32_253 = arith.constant 32 : index
    %156 = vector.load %arg11[%c64_252, %c32_253] : memref<128x72xf32, #tpu.memory_space<vmem>>, vector<8x8xf32>
    tpu.vector_store %arg11[%c64_252, %c32_253], %155 {strides = array<i32>} : memref<128x72xf32, #tpu.memory_space<vmem>>, vector<8x8xf32>,
    %c257_254 = arith.constant 257 : index
    %c0_255 = arith.constant 0 : index
    %157 = tpu.strided_load %arg10[%c257_254, %c0_255] {strides = array<i32: 2, 1>} : memref<512x8xf32, #tpu.memory_space<vmem>>, vector<8x8xf32>
    %c64_256 = arith.constant 64 : index
    %c40_257 = arith.constant 40 : index
    %158 = vector.load %arg11[%c64_256, %c40_257] : memref<128x72xf32, #tpu.memory_space<vmem>>, vector<8x8xf32>
    tpu.vector_store %arg11[%c64_256, %c40_257], %157 {strides = array<i32>} : memref<128x72xf32, #tpu.memory_space<vmem>>, vector<8x8xf32>,
    %c273 = arith.constant 273 : index
    %c0_258 = arith.constant 0 : index
    %159 = tpu.strided_load %arg10[%c273, %c0_258] {strides = array<i32: 2, 1>} : memref<512x8xf32, #tpu.memory_space<vmem>>, vector<7x8xf32>
    %c65_259 = arith.constant 65 : index
    %c48_260 = arith.constant 48 : index
    %160 = vector.load %arg11[%c65_259, %c48_260] : memref<128x72xf32, #tpu.memory_space<vmem>>, vector<7x8xf32>
    tpu.vector_store %arg11[%c65_259, %c48_260], %159 {strides = array<i32>} : memref<128x72xf32, #tpu.memory_space<vmem>>, vector<7x8xf32>,
    %c272 = arith.constant 272 : index
    %c0_261 = arith.constant 0 : index
    %161 = tpu.strided_load %arg10[%c272, %c0_261] {strides = array<i32: 2, 1>} : memref<512x8xf32, #tpu.memory_space<vmem>>, vector<8x8xf32>
    %c64_262 = arith.constant 64 : index
    %c56_263 = arith.constant 56 : index
    %162 = vector.load %arg11[%c64_262, %c56_263] : memref<128x72xf32, #tpu.memory_space<vmem>>, vector<8x8xf32>
    tpu.vector_store %arg11[%c64_262, %c56_263], %161 {strides = array<i32>} : memref<128x72xf32, #tpu.memory_space<vmem>>, vector<8x8xf32>,
    %c273_264 = arith.constant 273 : index
    %c0_265 = arith.constant 0 : index
    %163 = tpu.strided_load %arg10[%c273_264, %c0_265] {strides = array<i32: 2, 1>} : memref<512x8xf32, #tpu.memory_space<vmem>>, vector<8x8xf32>
    %c64_266 = arith.constant 64 : index
    %c64_267 = arith.constant 64 : index
    %164 = vector.load %arg11[%c64_266, %c64_267] : memref<128x72xf32, #tpu.memory_space<vmem>>, vector<8x8xf32>
    tpu.vector_store %arg11[%c64_266, %c64_267], %163 {strides = array<i32>} : memref<128x72xf32, #tpu.memory_space<vmem>>, vector<8x8xf32>,
    %c273_268 = arith.constant 273 : index
    %c0_269 = arith.constant 0 : index
    %165 = tpu.strided_load %arg10[%c273_268, %c0_269] {strides = array<i32: 2, 1>} : memref<512x8xf32, #tpu.memory_space<vmem>>, vector<7x8xf32>
    %c73 = arith.constant 73 : index
    %c0_270 = arith.constant 0 : index
    %166 = vector.load %arg11[%c73, %c0_270] : memref<128x72xf32, #tpu.memory_space<vmem>>, vector<7x8xf32>
    tpu.vector_store %arg11[%c73, %c0_270], %165 {strides = array<i32>} : memref<128x72xf32, #tpu.memory_space<vmem>>, vector<7x8xf32>,
    %c272_271 = arith.constant 272 : index
    %c0_272 = arith.constant 0 : index
    %167 = tpu.strided_load %arg10[%c272_271, %c0_272] {strides = array<i32: 2, 1>} : memref<512x8xf32, #tpu.memory_space<vmem>>, vector<8x8xf32>
    %c72 = arith.constant 72 : index
    %c8_273 = arith.constant 8 : index
    %168 = vector.load %arg11[%c72, %c8_273] : memref<128x72xf32, #tpu.memory_space<vmem>>, vector<8x8xf32>
    tpu.vector_store %arg11[%c72, %c8_273], %167 {strides = array<i32>} : memref<128x72xf32, #tpu.memory_space<vmem>>, vector<8x8xf32>,
    %c273_274 = arith.constant 273 : index
    %c0_275 = arith.constant 0 : index
    %169 = tpu.strided_load %arg10[%c273_274, %c0_275] {strides = array<i32: 2, 1>} : memref<512x8xf32, #tpu.memory_space<vmem>>, vector<8x8xf32>
    %c72_276 = arith.constant 72 : index
    %c16_277 = arith.constant 16 : index
    %170 = vector.load %arg11[%c72_276, %c16_277] : memref<128x72xf32, #tpu.memory_space<vmem>>, vector<8x8xf32>
    tpu.vector_store %arg11[%c72_276, %c16_277], %169 {strides = array<i32>} : memref<128x72xf32, #tpu.memory_space<vmem>>, vector<8x8xf32>,
    %c289 = arith.constant 289 : index
    %c0_278 = arith.constant 0 : index
    %171 = tpu.strided_load %arg10[%c289, %c0_278] {strides = array<i32: 2, 1>} : memref<512x8xf32, #tpu.memory_space<vmem>>, vector<7x8xf32>
    %c73_279 = arith.constant 73 : index
    %c24_280 = arith.constant 24 : index
    %172 = vector.load %arg11[%c73_279, %c24_280] : memref<128x72xf32, #tpu.memory_space<vmem>>, vector<7x8xf32>
    tpu.vector_store %arg11[%c73_279, %c24_280], %171 {strides = array<i32>} : memref<128x72xf32, #tpu.memory_space<vmem>>, vector<7x8xf32>,
    %c288 = arith.constant 288 : index
    %c0_281 = arith.constant 0 : index
    %173 = tpu.strided_load %arg10[%c288, %c0_281] {strides = array<i32: 2, 1>} : memref<512x8xf32, #tpu.memory_space<vmem>>, vector<8x8xf32>
    %c72_282 = arith.constant 72 : index
    %c32_283 = arith.constant 32 : index
    %174 = vector.load %arg11[%c72_282, %c32_283] : memref<128x72xf32, #tpu.memory_space<vmem>>, vector<8x8xf32>
    tpu.vector_store %arg11[%c72_282, %c32_283], %173 {strides = array<i32>} : memref<128x72xf32, #tpu.memory_space<vmem>>, vector<8x8xf32>,
    %c289_284 = arith.constant 289 : index
    %c0_285 = arith.constant 0 : index
    %175 = tpu.strided_load %arg10[%c289_284, %c0_285] {strides = array<i32: 2, 1>} : memref<512x8xf32, #tpu.memory_space<vmem>>, vector<8x8xf32>
    %c72_286 = arith.constant 72 : index
    %c40_287 = arith.constant 40 : index
    %176 = vector.load %arg11[%c72_286, %c40_287] : memref<128x72xf32, #tpu.memory_space<vmem>>, vector<8x8xf32>
    tpu.vector_store %arg11[%c72_286, %c40_287], %175 {strides = array<i32>} : memref<128x72xf32, #tpu.memory_space<vmem>>, vector<8x8xf32>,
    %c305 = arith.constant 305 : index
    %c0_288 = arith.constant 0 : index
    %177 = tpu.strided_load %arg10[%c305, %c0_288] {strides = array<i32: 2, 1>} : memref<512x8xf32, #tpu.memory_space<vmem>>, vector<7x8xf32>
    %c73_289 = arith.constant 73 : index
    %c48_290 = arith.constant 48 : index
    %178 = vector.load %arg11[%c73_289, %c48_290] : memref<128x72xf32, #tpu.memory_space<vmem>>, vector<7x8xf32>
    tpu.vector_store %arg11[%c73_289, %c48_290], %177 {strides = array<i32>} : memref<128x72xf32, #tpu.memory_space<vmem>>, vector<7x8xf32>,
    %c304 = arith.constant 304 : index
    %c0_291 = arith.constant 0 : index
    %179 = tpu.strided_load %arg10[%c304, %c0_291] {strides = array<i32: 2, 1>} : memref<512x8xf32, #tpu.memory_space<vmem>>, vector<8x8xf32>
    %c72_292 = arith.constant 72 : index
    %c56_293 = arith.constant 56 : index
    %180 = vector.load %arg11[%c72_292, %c56_293] : memref<128x72xf32, #tpu.memory_space<vmem>>, vector<8x8xf32>
    tpu.vector_store %arg11[%c72_292, %c56_293], %179 {strides = array<i32>} : memref<128x72xf32, #tpu.memory_space<vmem>>, vector<8x8xf32>,
    %c305_294 = arith.constant 305 : index
    %c0_295 = arith.constant 0 : index
    %181 = tpu.strided_load %arg10[%c305_294, %c0_295] {strides = array<i32: 2, 1>} : memref<512x8xf32, #tpu.memory_space<vmem>>, vector<8x8xf32>
    %c72_296 = arith.constant 72 : index
    %c64_297 = arith.constant 64 : index
    %182 = vector.load %arg11[%c72_296, %c64_297] : memref<128x72xf32, #tpu.memory_space<vmem>>, vector<8x8xf32>
    tpu.vector_store %arg11[%c72_296, %c64_297], %181 {strides = array<i32>} : memref<128x72xf32, #tpu.memory_space<vmem>>, vector<8x8xf32>,
    %c305_298 = arith.constant 305 : index
    %c0_299 = arith.constant 0 : index
    %183 = tpu.strided_load %arg10[%c305_298, %c0_299] {strides = array<i32: 2, 1>} : memref<512x8xf32, #tpu.memory_space<vmem>>, vector<7x8xf32>
    %c81_300 = arith.constant 81 : index
    %c0_301 = arith.constant 0 : index
    %184 = vector.load %arg11[%c81_300, %c0_301] : memref<128x72xf32, #tpu.memory_space<vmem>>, vector<7x8xf32>
    tpu.vector_store %arg11[%c81_300, %c0_301], %183 {strides = array<i32>} : memref<128x72xf32, #tpu.memory_space<vmem>>, vector<7x8xf32>,
    %c304_302 = arith.constant 304 : index
    %c0_303 = arith.constant 0 : index
    %185 = tpu.strided_load %arg10[%c304_302, %c0_303] {strides = array<i32: 2, 1>} : memref<512x8xf32, #tpu.memory_space<vmem>>, vector<8x8xf32>
    %c80_304 = arith.constant 80 : index
    %c8_305 = arith.constant 8 : index
    %186 = vector.load %arg11[%c80_304, %c8_305] : memref<128x72xf32, #tpu.memory_space<vmem>>, vector<8x8xf32>
    tpu.vector_store %arg11[%c80_304, %c8_305], %185 {strides = array<i32>} : memref<128x72xf32, #tpu.memory_space<vmem>>, vector<8x8xf32>,
    %c305_306 = arith.constant 305 : index
    %c0_307 = arith.constant 0 : index
    %187 = tpu.strided_load %arg10[%c305_306, %c0_307] {strides = array<i32: 2, 1>} : memref<512x8xf32, #tpu.memory_space<vmem>>, vector<8x8xf32>
    %c80_308 = arith.constant 80 : index
    %c16_309 = arith.constant 16 : index
    %188 = vector.load %arg11[%c80_308, %c16_309] : memref<128x72xf32, #tpu.memory_space<vmem>>, vector<8x8xf32>
    tpu.vector_store %arg11[%c80_308, %c16_309], %187 {strides = array<i32>} : memref<128x72xf32, #tpu.memory_space<vmem>>, vector<8x8xf32>,
    %c321 = arith.constant 321 : index
    %c0_310 = arith.constant 0 : index
    %189 = tpu.strided_load %arg10[%c321, %c0_310] {strides = array<i32: 2, 1>} : memref<512x8xf32, #tpu.memory_space<vmem>>, vector<7x8xf32>
    %c81_311 = arith.constant 81 : index
    %c24_312 = arith.constant 24 : index
    %190 = vector.load %arg11[%c81_311, %c24_312] : memref<128x72xf32, #tpu.memory_space<vmem>>, vector<7x8xf32>
    tpu.vector_store %arg11[%c81_311, %c24_312], %189 {strides = array<i32>} : memref<128x72xf32, #tpu.memory_space<vmem>>, vector<7x8xf32>,
    %c320 = arith.constant 320 : index
    %c0_313 = arith.constant 0 : index
    %191 = tpu.strided_load %arg10[%c320, %c0_313] {strides = array<i32: 2, 1>} : memref<512x8xf32, #tpu.memory_space<vmem>>, vector<8x8xf32>
    %c80_314 = arith.constant 80 : index
    %c32_315 = arith.constant 32 : index
    %192 = vector.load %arg11[%c80_314, %c32_315] : memref<128x72xf32, #tpu.memory_space<vmem>>, vector<8x8xf32>
    tpu.vector_store %arg11[%c80_314, %c32_315], %191 {strides = array<i32>} : memref<128x72xf32, #tpu.memory_space<vmem>>, vector<8x8xf32>,
    %c321_316 = arith.constant 321 : index
    %c0_317 = arith.constant 0 : index
    %193 = tpu.strided_load %arg10[%c321_316, %c0_317] {strides = array<i32: 2, 1>} : memref<512x8xf32, #tpu.memory_space<vmem>>, vector<8x8xf32>
    %c80_318 = arith.constant 80 : index
    %c40_319 = arith.constant 40 : index
    %194 = vector.load %arg11[%c80_318, %c40_319] : memref<128x72xf32, #tpu.memory_space<vmem>>, vector<8x8xf32>
    tpu.vector_store %arg11[%c80_318, %c40_319], %193 {strides = array<i32>} : memref<128x72xf32, #tpu.memory_space<vmem>>, vector<8x8xf32>,
    %c337 = arith.constant 337 : index
    %c0_320 = arith.constant 0 : index
    %195 = tpu.strided_load %arg10[%c337, %c0_320] {strides = array<i32: 2, 1>} : memref<512x8xf32, #tpu.memory_space<vmem>>, vector<7x8xf32>
    %c81_321 = arith.constant 81 : index
    %c48_322 = arith.constant 48 : index
    %196 = vector.load %arg11[%c81_321, %c48_322] : memref<128x72xf32, #tpu.memory_space<vmem>>, vector<7x8xf32>
    tpu.vector_store %arg11[%c81_321, %c48_322], %195 {strides = array<i32>} : memref<128x72xf32, #tpu.memory_space<vmem>>, vector<7x8xf32>,
    %c336 = arith.constant 336 : index
    %c0_323 = arith.constant 0 : index
    %197 = tpu.strided_load %arg10[%c336, %c0_323] {strides = array<i32: 2, 1>} : memref<512x8xf32, #tpu.memory_space<vmem>>, vector<8x8xf32>
    %c80_324 = arith.constant 80 : index
    %c56_325 = arith.constant 56 : index
    %198 = vector.load %arg11[%c80_324, %c56_325] : memref<128x72xf32, #tpu.memory_space<vmem>>, vector<8x8xf32>
    tpu.vector_store %arg11[%c80_324, %c56_325], %197 {strides = array<i32>} : memref<128x72xf32, #tpu.memory_space<vmem>>, vector<8x8xf32>,
    %c337_326 = arith.constant 337 : index
    %c0_327 = arith.constant 0 : index
    %199 = tpu.strided_load %arg10[%c337_326, %c0_327] {strides = array<i32: 2, 1>} : memref<512x8xf32, #tpu.memory_space<vmem>>, vector<8x8xf32>
    %c80_328 = arith.constant 80 : index
    %c64_329 = arith.constant 64 : index
    %200 = vector.load %arg11[%c80_328, %c64_329] : memref<128x72xf32, #tpu.memory_space<vmem>>, vector<8x8xf32>
    tpu.vector_store %arg11[%c80_328, %c64_329], %199 {strides = array<i32>} : memref<128x72xf32, #tpu.memory_space<vmem>>, vector<8x8xf32>,
    %c337_330 = arith.constant 337 : index
    %c0_331 = arith.constant 0 : index
    %201 = tpu.strided_load %arg10[%c337_330, %c0_331] {strides = array<i32: 2, 1>} : memref<512x8xf32, #tpu.memory_space<vmem>>, vector<7x8xf32>
    %c89 = arith.constant 89 : index
    %c0_332 = arith.constant 0 : index
    %202 = vector.load %arg11[%c89, %c0_332] : memref<128x72xf32, #tpu.memory_space<vmem>>, vector<7x8xf32>
    tpu.vector_store %arg11[%c89, %c0_332], %201 {strides = array<i32>} : memref<128x72xf32, #tpu.memory_space<vmem>>, vector<7x8xf32>,
    %c336_333 = arith.constant 336 : index
    %c0_334 = arith.constant 0 : index
    %203 = tpu.strided_load %arg10[%c336_333, %c0_334] {strides = array<i32: 2, 1>} : memref<512x8xf32, #tpu.memory_space<vmem>>, vector<8x8xf32>
    %c88 = arith.constant 88 : index
    %c8_335 = arith.constant 8 : index
    %204 = vector.load %arg11[%c88, %c8_335] : memref<128x72xf32, #tpu.memory_space<vmem>>, vector<8x8xf32>
    tpu.vector_store %arg11[%c88, %c8_335], %203 {strides = array<i32>} : memref<128x72xf32, #tpu.memory_space<vmem>>, vector<8x8xf32>,
    %c337_336 = arith.constant 337 : index
    %c0_337 = arith.constant 0 : index
    %205 = tpu.strided_load %arg10[%c337_336, %c0_337] {strides = array<i32: 2, 1>} : memref<512x8xf32, #tpu.memory_space<vmem>>, vector<8x8xf32>
    %c88_338 = arith.constant 88 : index
    %c16_339 = arith.constant 16 : index
    %206 = vector.load %arg11[%c88_338, %c16_339] : memref<128x72xf32, #tpu.memory_space<vmem>>, vector<8x8xf32>
    tpu.vector_store %arg11[%c88_338, %c16_339], %205 {strides = array<i32>} : memref<128x72xf32, #tpu.memory_space<vmem>>, vector<8x8xf32>,
    %c353 = arith.constant 353 : index
    %c0_340 = arith.constant 0 : index
    %207 = tpu.strided_load %arg10[%c353, %c0_340] {strides = array<i32: 2, 1>} : memref<512x8xf32, #tpu.memory_space<vmem>>, vector<7x8xf32>
    %c89_341 = arith.constant 89 : index
    %c24_342 = arith.constant 24 : index
    %208 = vector.load %arg11[%c89_341, %c24_342] : memref<128x72xf32, #tpu.memory_space<vmem>>, vector<7x8xf32>
    tpu.vector_store %arg11[%c89_341, %c24_342], %207 {strides = array<i32>} : memref<128x72xf32, #tpu.memory_space<vmem>>, vector<7x8xf32>,
    %c352 = arith.constant 352 : index
    %c0_343 = arith.constant 0 : index
    %209 = tpu.strided_load %arg10[%c352, %c0_343] {strides = array<i32: 2, 1>} : memref<512x8xf32, #tpu.memory_space<vmem>>, vector<8x8xf32>
    %c88_344 = arith.constant 88 : index
    %c32_345 = arith.constant 32 : index
    %210 = vector.load %arg11[%c88_344, %c32_345] : memref<128x72xf32, #tpu.memory_space<vmem>>, vector<8x8xf32>
    tpu.vector_store %arg11[%c88_344, %c32_345], %209 {strides = array<i32>} : memref<128x72xf32, #tpu.memory_space<vmem>>, vector<8x8xf32>,
    %c353_346 = arith.constant 353 : index
    %c0_347 = arith.constant 0 : index
    %211 = tpu.strided_load %arg10[%c353_346, %c0_347] {strides = array<i32: 2, 1>} : memref<512x8xf32, #tpu.memory_space<vmem>>, vector<8x8xf32>
    %c88_348 = arith.constant 88 : index
    %c40_349 = arith.constant 40 : index
    %212 = vector.load %arg11[%c88_348, %c40_349] : memref<128x72xf32, #tpu.memory_space<vmem>>, vector<8x8xf32>
    tpu.vector_store %arg11[%c88_348, %c40_349], %211 {strides = array<i32>} : memref<128x72xf32, #tpu.memory_space<vmem>>, vector<8x8xf32>,
    %c369 = arith.constant 369 : index
    %c0_350 = arith.constant 0 : index
    %213 = tpu.strided_load %arg10[%c369, %c0_350] {strides = array<i32: 2, 1>} : memref<512x8xf32, #tpu.memory_space<vmem>>, vector<7x8xf32>
    %c89_351 = arith.constant 89 : index
    %c48_352 = arith.constant 48 : index
    %214 = vector.load %arg11[%c89_351, %c48_352] : memref<128x72xf32, #tpu.memory_space<vmem>>, vector<7x8xf32>
    tpu.vector_store %arg11[%c89_351, %c48_352], %213 {strides = array<i32>} : memref<128x72xf32, #tpu.memory_space<vmem>>, vector<7x8xf32>,
    %c368 = arith.constant 368 : index
    %c0_353 = arith.constant 0 : index
    %215 = tpu.strided_load %arg10[%c368, %c0_353] {strides = array<i32: 2, 1>} : memref<512x8xf32, #tpu.memory_space<vmem>>, vector<8x8xf32>
    %c88_354 = arith.constant 88 : index
    %c56_355 = arith.constant 56 : index
    %216 = vector.load %arg11[%c88_354, %c56_355] : memref<128x72xf32, #tpu.memory_space<vmem>>, vector<8x8xf32>
    tpu.vector_store %arg11[%c88_354, %c56_355], %215 {strides = array<i32>} : memref<128x72xf32, #tpu.memory_space<vmem>>, vector<8x8xf32>,
    %c369_356 = arith.constant 369 : index
    %c0_357 = arith.constant 0 : index
    %217 = tpu.strided_load %arg10[%c369_356, %c0_357] {strides = array<i32: 2, 1>} : memref<512x8xf32, #tpu.memory_space<vmem>>, vector<8x8xf32>
    %c88_358 = arith.constant 88 : index
    %c64_359 = arith.constant 64 : index
    %218 = vector.load %arg11[%c88_358, %c64_359] : memref<128x72xf32, #tpu.memory_space<vmem>>, vector<8x8xf32>
    tpu.vector_store %arg11[%c88_358, %c64_359], %217 {strides = array<i32>} : memref<128x72xf32, #tpu.memory_space<vmem>>, vector<8x8xf32>,
    %c369_360 = arith.constant 369 : index
    %c0_361 = arith.constant 0 : index
    %219 = tpu.strided_load %arg10[%c369_360, %c0_361] {strides = array<i32: 2, 1>} : memref<512x8xf32, #tpu.memory_space<vmem>>, vector<7x8xf32>
    %c97_362 = arith.constant 97 : index
    %c0_363 = arith.constant 0 : index
    %220 = vector.load %arg11[%c97_362, %c0_363] : memref<128x72xf32, #tpu.memory_space<vmem>>, vector<7x8xf32>
    tpu.vector_store %arg11[%c97_362, %c0_363], %219 {strides = array<i32>} : memref<128x72xf32, #tpu.memory_space<vmem>>, vector<7x8xf32>,
    %c368_364 = arith.constant 368 : index
    %c0_365 = arith.constant 0 : index
    %221 = tpu.strided_load %arg10[%c368_364, %c0_365] {strides = array<i32: 2, 1>} : memref<512x8xf32, #tpu.memory_space<vmem>>, vector<8x8xf32>
    %c96_366 = arith.constant 96 : index
    %c8_367 = arith.constant 8 : index
    %222 = vector.load %arg11[%c96_366, %c8_367] : memref<128x72xf32, #tpu.memory_space<vmem>>, vector<8x8xf32>
    tpu.vector_store %arg11[%c96_366, %c8_367], %221 {strides = array<i32>} : memref<128x72xf32, #tpu.memory_space<vmem>>, vector<8x8xf32>,
    %c369_368 = arith.constant 369 : index
    %c0_369 = arith.constant 0 : index
    %223 = tpu.strided_load %arg10[%c369_368, %c0_369] {strides = array<i32: 2, 1>} : memref<512x8xf32, #tpu.memory_space<vmem>>, vector<8x8xf32>
    %c96_370 = arith.constant 96 : index
    %c16_371 = arith.constant 16 : index
    %224 = vector.load %arg11[%c96_370, %c16_371] : memref<128x72xf32, #tpu.memory_space<vmem>>, vector<8x8xf32>
    tpu.vector_store %arg11[%c96_370, %c16_371], %223 {strides = array<i32>} : memref<128x72xf32, #tpu.memory_space<vmem>>, vector<8x8xf32>,
    %c385 = arith.constant 385 : index
    %c0_372 = arith.constant 0 : index
    %225 = tpu.strided_load %arg10[%c385, %c0_372] {strides = array<i32: 2, 1>} : memref<512x8xf32, #tpu.memory_space<vmem>>, vector<7x8xf32>
    %c97_373 = arith.constant 97 : index
    %c24_374 = arith.constant 24 : index
    %226 = vector.load %arg11[%c97_373, %c24_374] : memref<128x72xf32, #tpu.memory_space<vmem>>, vector<7x8xf32>
    tpu.vector_store %arg11[%c97_373, %c24_374], %225 {strides = array<i32>} : memref<128x72xf32, #tpu.memory_space<vmem>>, vector<7x8xf32>,
    %c384 = arith.constant 384 : index
    %c0_375 = arith.constant 0 : index
    %227 = tpu.strided_load %arg10[%c384, %c0_375] {strides = array<i32: 2, 1>} : memref<512x8xf32, #tpu.memory_space<vmem>>, vector<8x8xf32>
    %c96_376 = arith.constant 96 : index
    %c32_377 = arith.constant 32 : index
    %228 = vector.load %arg11[%c96_376, %c32_377] : memref<128x72xf32, #tpu.memory_space<vmem>>, vector<8x8xf32>
    tpu.vector_store %arg11[%c96_376, %c32_377], %227 {strides = array<i32>} : memref<128x72xf32, #tpu.memory_space<vmem>>, vector<8x8xf32>,
    %c385_378 = arith.constant 385 : index
    %c0_379 = arith.constant 0 : index
    %229 = tpu.strided_load %arg10[%c385_378, %c0_379] {strides = array<i32: 2, 1>} : memref<512x8xf32, #tpu.memory_space<vmem>>, vector<8x8xf32>
    %c96_380 = arith.constant 96 : index
    %c40_381 = arith.constant 40 : index
    %230 = vector.load %arg11[%c96_380, %c40_381] : memref<128x72xf32, #tpu.memory_space<vmem>>, vector<8x8xf32>
    tpu.vector_store %arg11[%c96_380, %c40_381], %229 {strides = array<i32>} : memref<128x72xf32, #tpu.memory_space<vmem>>, vector<8x8xf32>,
    %c401 = arith.constant 401 : index
    %c0_382 = arith.constant 0 : index
    %231 = tpu.strided_load %arg10[%c401, %c0_382] {strides = array<i32: 2, 1>} : memref<512x8xf32, #tpu.memory_space<vmem>>, vector<7x8xf32>
    %c97_383 = arith.constant 97 : index
    %c48_384 = arith.constant 48 : index
    %232 = vector.load %arg11[%c97_383, %c48_384] : memref<128x72xf32, #tpu.memory_space<vmem>>, vector<7x8xf32>
    tpu.vector_store %arg11[%c97_383, %c48_384], %231 {strides = array<i32>} : memref<128x72xf32, #tpu.memory_space<vmem>>, vector<7x8xf32>,
    %c400 = arith.constant 400 : index
    %c0_385 = arith.constant 0 : index
    %233 = tpu.strided_load %arg10[%c400, %c0_385] {strides = array<i32: 2, 1>} : memref<512x8xf32, #tpu.memory_space<vmem>>, vector<8x8xf32>
    %c96_386 = arith.constant 96 : index
    %c56_387 = arith.constant 56 : index
    %234 = vector.load %arg11[%c96_386, %c56_387] : memref<128x72xf32, #tpu.memory_space<vmem>>, vector<8x8xf32>
    tpu.vector_store %arg11[%c96_386, %c56_387], %233 {strides = array<i32>} : memref<128x72xf32, #tpu.memory_space<vmem>>, vector<8x8xf32>,
    %c401_388 = arith.constant 401 : index
    %c0_389 = arith.constant 0 : index
    %235 = tpu.strided_load %arg10[%c401_388, %c0_389] {strides = array<i32: 2, 1>} : memref<512x8xf32, #tpu.memory_space<vmem>>, vector<8x8xf32>
    %c96_390 = arith.constant 96 : index
    %c64_391 = arith.constant 64 : index
    %236 = vector.load %arg11[%c96_390, %c64_391] : memref<128x72xf32, #tpu.memory_space<vmem>>, vector<8x8xf32>
    tpu.vector_store %arg11[%c96_390, %c64_391], %235 {strides = array<i32>} : memref<128x72xf32, #tpu.memory_space<vmem>>, vector<8x8xf32>,
    %c401_392 = arith.constant 401 : index
    %c0_393 = arith.constant 0 : index
    %237 = tpu.strided_load %arg10[%c401_392, %c0_393] {strides = array<i32: 2, 1>} : memref<512x8xf32, #tpu.memory_space<vmem>>, vector<7x8xf32>
    %c105 = arith.constant 105 : index
    %c0_394 = arith.constant 0 : index
    %238 = vector.load %arg11[%c105, %c0_394] : memref<128x72xf32, #tpu.memory_space<vmem>>, vector<7x8xf32>
    tpu.vector_store %arg11[%c105, %c0_394], %237 {strides = array<i32>} : memref<128x72xf32, #tpu.memory_space<vmem>>, vector<7x8xf32>,
    %c400_395 = arith.constant 400 : index
    %c0_396 = arith.constant 0 : index
    %239 = tpu.strided_load %arg10[%c400_395, %c0_396] {strides = array<i32: 2, 1>} : memref<512x8xf32, #tpu.memory_space<vmem>>, vector<8x8xf32>
    %c104 = arith.constant 104 : index
    %c8_397 = arith.constant 8 : index
    %240 = vector.load %arg11[%c104, %c8_397] : memref<128x72xf32, #tpu.memory_space<vmem>>, vector<8x8xf32>
    tpu.vector_store %arg11[%c104, %c8_397], %239 {strides = array<i32>} : memref<128x72xf32, #tpu.memory_space<vmem>>, vector<8x8xf32>,
    %c401_398 = arith.constant 401 : index
    %c0_399 = arith.constant 0 : index
    %241 = tpu.strided_load %arg10[%c401_398, %c0_399] {strides = array<i32: 2, 1>} : memref<512x8xf32, #tpu.memory_space<vmem>>, vector<8x8xf32>
    %c104_400 = arith.constant 104 : index
    %c16_401 = arith.constant 16 : index
    %242 = vector.load %arg11[%c104_400, %c16_401] : memref<128x72xf32, #tpu.memory_space<vmem>>, vector<8x8xf32>
    tpu.vector_store %arg11[%c104_400, %c16_401], %241 {strides = array<i32>} : memref<128x72xf32, #tpu.memory_space<vmem>>, vector<8x8xf32>,
    %c417 = arith.constant 417 : index
    %c0_402 = arith.constant 0 : index
    %243 = tpu.strided_load %arg10[%c417, %c0_402] {strides = array<i32: 2, 1>} : memref<512x8xf32, #tpu.memory_space<vmem>>, vector<7x8xf32>
    %c105_403 = arith.constant 105 : index
    %c24_404 = arith.constant 24 : index
    %244 = vector.load %arg11[%c105_403, %c24_404] : memref<128x72xf32, #tpu.memory_space<vmem>>, vector<7x8xf32>
    tpu.vector_store %arg11[%c105_403, %c24_404], %243 {strides = array<i32>} : memref<128x72xf32, #tpu.memory_space<vmem>>, vector<7x8xf32>,
    %c416 = arith.constant 416 : index
    %c0_405 = arith.constant 0 : index
    %245 = tpu.strided_load %arg10[%c416, %c0_405] {strides = array<i32: 2, 1>} : memref<512x8xf32, #tpu.memory_space<vmem>>, vector<8x8xf32>
    %c104_406 = arith.constant 104 : index
    %c32_407 = arith.constant 32 : index
    %246 = vector.load %arg11[%c104_406, %c32_407] : memref<128x72xf32, #tpu.memory_space<vmem>>, vector<8x8xf32>
    tpu.vector_store %arg11[%c104_406, %c32_407], %245 {strides = array<i32>} : memref<128x72xf32, #tpu.memory_space<vmem>>, vector<8x8xf32>,
    %c417_408 = arith.constant 417 : index
    %c0_409 = arith.constant 0 : index
    %247 = tpu.strided_load %arg10[%c417_408, %c0_409] {strides = array<i32: 2, 1>} : memref<512x8xf32, #tpu.memory_space<vmem>>, vector<8x8xf32>
    %c104_410 = arith.constant 104 : index
    %c40_411 = arith.constant 40 : index
    %248 = vector.load %arg11[%c104_410, %c40_411] : memref<128x72xf32, #tpu.memory_space<vmem>>, vector<8x8xf32>
    tpu.vector_store %arg11[%c104_410, %c40_411], %247 {strides = array<i32>} : memref<128x72xf32, #tpu.memory_space<vmem>>, vector<8x8xf32>,
    %c433 = arith.constant 433 : index
    %c0_412 = arith.constant 0 : index
    %249 = tpu.strided_load %arg10[%c433, %c0_412] {strides = array<i32: 2, 1>} : memref<512x8xf32, #tpu.memory_space<vmem>>, vector<7x8xf32>
    %c105_413 = arith.constant 105 : index
    %c48_414 = arith.constant 48 : index
    %250 = vector.load %arg11[%c105_413, %c48_414] : memref<128x72xf32, #tpu.memory_space<vmem>>, vector<7x8xf32>
    tpu.vector_store %arg11[%c105_413, %c48_414], %249 {strides = array<i32>} : memref<128x72xf32, #tpu.memory_space<vmem>>, vector<7x8xf32>,
    %c432 = arith.constant 432 : index
    %c0_415 = arith.constant 0 : index
    %251 = tpu.strided_load %arg10[%c432, %c0_415] {strides = array<i32: 2, 1>} : memref<512x8xf32, #tpu.memory_space<vmem>>, vector<8x8xf32>
    %c104_416 = arith.constant 104 : index
    %c56_417 = arith.constant 56 : index
    %252 = vector.load %arg11[%c104_416, %c56_417] : memref<128x72xf32, #tpu.memory_space<vmem>>, vector<8x8xf32>
    tpu.vector_store %arg11[%c104_416, %c56_417], %251 {strides = array<i32>} : memref<128x72xf32, #tpu.memory_space<vmem>>, vector<8x8xf32>,
    %c433_418 = arith.constant 433 : index
    %c0_419 = arith.constant 0 : index
    %253 = tpu.strided_load %arg10[%c433_418, %c0_419] {strides = array<i32: 2, 1>} : memref<512x8xf32, #tpu.memory_space<vmem>>, vector<8x8xf32>
    %c104_420 = arith.constant 104 : index
    %c64_421 = arith.constant 64 : index
    %254 = vector.load %arg11[%c104_420, %c64_421] : memref<128x72xf32, #tpu.memory_space<vmem>>, vector<8x8xf32>
    tpu.vector_store %arg11[%c104_420, %c64_421], %253 {strides = array<i32>} : memref<128x72xf32, #tpu.memory_space<vmem>>, vector<8x8xf32>,
    %c433_422 = arith.constant 433 : index
    %c0_423 = arith.constant 0 : index
    %255 = tpu.strided_load %arg10[%c433_422, %c0_423] {strides = array<i32: 2, 1>} : memref<512x8xf32, #tpu.memory_space<vmem>>, vector<7x8xf32>
    %c113_424 = arith.constant 113 : index
    %c0_425 = arith.constant 0 : index
    %256 = vector.load %arg11[%c113_424, %c0_425] : memref<128x72xf32, #tpu.memory_space<vmem>>, vector<7x8xf32>
    tpu.vector_store %arg11[%c113_424, %c0_425], %255 {strides = array<i32>} : memref<128x72xf32, #tpu.memory_space<vmem>>, vector<7x8xf32>,
    %c432_426 = arith.constant 432 : index
    %c0_427 = arith.constant 0 : index
    %257 = tpu.strided_load %arg10[%c432_426, %c0_427] {strides = array<i32: 2, 1>} : memref<512x8xf32, #tpu.memory_space<vmem>>, vector<8x8xf32>
    %c112_428 = arith.constant 112 : index
    %c8_429 = arith.constant 8 : index
    %258 = vector.load %arg11[%c112_428, %c8_429] : memref<128x72xf32, #tpu.memory_space<vmem>>, vector<8x8xf32>
    tpu.vector_store %arg11[%c112_428, %c8_429], %257 {strides = array<i32>} : memref<128x72xf32, #tpu.memory_space<vmem>>, vector<8x8xf32>,
    %c433_430 = arith.constant 433 : index
    %c0_431 = arith.constant 0 : index
    %259 = tpu.strided_load %arg10[%c433_430, %c0_431] {strides = array<i32: 2, 1>} : memref<512x8xf32, #tpu.memory_space<vmem>>, vector<8x8xf32>
    %c112_432 = arith.constant 112 : index
    %c16_433 = arith.constant 16 : index
    %260 = vector.load %arg11[%c112_432, %c16_433] : memref<128x72xf32, #tpu.memory_space<vmem>>, vector<8x8xf32>
    tpu.vector_store %arg11[%c112_432, %c16_433], %259 {strides = array<i32>} : memref<128x72xf32, #tpu.memory_space<vmem>>, vector<8x8xf32>,
    %c449 = arith.constant 449 : index
    %c0_434 = arith.constant 0 : index
    %261 = tpu.strided_load %arg10[%c449, %c0_434] {strides = array<i32: 2, 1>} : memref<512x8xf32, #tpu.memory_space<vmem>>, vector<7x8xf32>
    %c113_435 = arith.constant 113 : index
    %c24_436 = arith.constant 24 : index
    %262 = vector.load %arg11[%c113_435, %c24_436] : memref<128x72xf32, #tpu.memory_space<vmem>>, vector<7x8xf32>
    tpu.vector_store %arg11[%c113_435, %c24_436], %261 {strides = array<i32>} : memref<128x72xf32, #tpu.memory_space<vmem>>, vector<7x8xf32>,
    %c448 = arith.constant 448 : index
    %c0_437 = arith.constant 0 : index
    %263 = tpu.strided_load %arg10[%c448, %c0_437] {strides = array<i32: 2, 1>} : memref<512x8xf32, #tpu.memory_space<vmem>>, vector<8x8xf32>
    %c112_438 = arith.constant 112 : index
    %c32_439 = arith.constant 32 : index
    %264 = vector.load %arg11[%c112_438, %c32_439] : memref<128x72xf32, #tpu.memory_space<vmem>>, vector<8x8xf32>
    tpu.vector_store %arg11[%c112_438, %c32_439], %263 {strides = array<i32>} : memref<128x72xf32, #tpu.memory_space<vmem>>, vector<8x8xf32>,
    %c449_440 = arith.constant 449 : index
    %c0_441 = arith.constant 0 : index
    %265 = tpu.strided_load %arg10[%c449_440, %c0_441] {strides = array<i32: 2, 1>} : memref<512x8xf32, #tpu.memory_space<vmem>>, vector<8x8xf32>
    %c112_442 = arith.constant 112 : index
    %c40_443 = arith.constant 40 : index
    %266 = vector.load %arg11[%c112_442, %c40_443] : memref<128x72xf32, #tpu.memory_space<vmem>>, vector<8x8xf32>
    tpu.vector_store %arg11[%c112_442, %c40_443], %265 {strides = array<i32>} : memref<128x72xf32, #tpu.memory_space<vmem>>, vector<8x8xf32>,
    %c465 = arith.constant 465 : index
    %c0_444 = arith.constant 0 : index
    %267 = tpu.strided_load %arg10[%c465, %c0_444] {strides = array<i32: 2, 1>} : memref<512x8xf32, #tpu.memory_space<vmem>>, vector<7x8xf32>
    %c113_445 = arith.constant 113 : index
    %c48_446 = arith.constant 48 : index
    %268 = vector.load %arg11[%c113_445, %c48_446] : memref<128x72xf32, #tpu.memory_space<vmem>>, vector<7x8xf32>
    tpu.vector_store %arg11[%c113_445, %c48_446], %267 {strides = array<i32>} : memref<128x72xf32, #tpu.memory_space<vmem>>, vector<7x8xf32>,
    %c464 = arith.constant 464 : index
    %c0_447 = arith.constant 0 : index
    %269 = tpu.strided_load %arg10[%c464, %c0_447] {strides = array<i32: 2, 1>} : memref<512x8xf32, #tpu.memory_space<vmem>>, vector<8x8xf32>
    %c112_448 = arith.constant 112 : index
    %c56_449 = arith.constant 56 : index
    %270 = vector.load %arg11[%c112_448, %c56_449] : memref<128x72xf32, #tpu.memory_space<vmem>>, vector<8x8xf32>
    tpu.vector_store %arg11[%c112_448, %c56_449], %269 {strides = array<i32>} : memref<128x72xf32, #tpu.memory_space<vmem>>, vector<8x8xf32>,
    %c465_450 = arith.constant 465 : index
    %c0_451 = arith.constant 0 : index
    %271 = tpu.strided_load %arg10[%c465_450, %c0_451] {strides = array<i32: 2, 1>} : memref<512x8xf32, #tpu.memory_space<vmem>>, vector<8x8xf32>
    %c112_452 = arith.constant 112 : index
    %c64_453 = arith.constant 64 : index
    %272 = vector.load %arg11[%c112_452, %c64_453] : memref<128x72xf32, #tpu.memory_space<vmem>>, vector<8x8xf32>
    tpu.vector_store %arg11[%c112_452, %c64_453], %271 {strides = array<i32>} : memref<128x72xf32, #tpu.memory_space<vmem>>, vector<8x8xf32>,
    %c465_454 = arith.constant 465 : index
    %c0_455 = arith.constant 0 : index
    %273 = tpu.strided_load %arg10[%c465_454, %c0_455] {strides = array<i32: 2, 1>} : memref<512x8xf32, #tpu.memory_space<vmem>>, vector<7x8xf32>
    %c121 = arith.constant 121 : index
    %c0_456 = arith.constant 0 : index
    %274 = vector.load %arg11[%c121, %c0_456] : memref<128x72xf32, #tpu.memory_space<vmem>>, vector<7x8xf32>
    tpu.vector_store %arg11[%c121, %c0_456], %273 {strides = array<i32>} : memref<128x72xf32, #tpu.memory_space<vmem>>, vector<7x8xf32>,
    %c464_457 = arith.constant 464 : index
    %c0_458 = arith.constant 0 : index
    %275 = tpu.strided_load %arg10[%c464_457, %c0_458] {strides = array<i32: 2, 1>} : memref<512x8xf32, #tpu.memory_space<vmem>>, vector<8x8xf32>
    %c120 = arith.constant 120 : index
    %c8_459 = arith.constant 8 : index
    %276 = vector.load %arg11[%c120, %c8_459] : memref<128x72xf32, #tpu.memory_space<vmem>>, vector<8x8xf32>
    tpu.vector_store %arg11[%c120, %c8_459], %275 {strides = array<i32>} : memref<128x72xf32, #tpu.memory_space<vmem>>, vector<8x8xf32>,
    %c465_460 = arith.constant 465 : index
    %c0_461 = arith.constant 0 : index
    %277 = tpu.strided_load %arg10[%c465_460, %c0_461] {strides = array<i32: 2, 1>} : memref<512x8xf32, #tpu.memory_space<vmem>>, vector<8x8xf32>
    %c120_462 = arith.constant 120 : index
    %c16_463 = arith.constant 16 : index
    %278 = vector.load %arg11[%c120_462, %c16_463] : memref<128x72xf32, #tpu.memory_space<vmem>>, vector<8x8xf32>
    tpu.vector_store %arg11[%c120_462, %c16_463], %277 {strides = array<i32>} : memref<128x72xf32, #tpu.memory_space<vmem>>, vector<8x8xf32>,
    %c481 = arith.constant 481 : index
    %c0_464 = arith.constant 0 : index
    %279 = tpu.strided_load %arg10[%c481, %c0_464] {strides = array<i32: 2, 1>} : memref<512x8xf32, #tpu.memory_space<vmem>>, vector<7x8xf32>
    %c121_465 = arith.constant 121 : index
    %c24_466 = arith.constant 24 : index
    %280 = vector.load %arg11[%c121_465, %c24_466] : memref<128x72xf32, #tpu.memory_space<vmem>>, vector<7x8xf32>
    tpu.vector_store %arg11[%c121_465, %c24_466], %279 {strides = array<i32>} : memref<128x72xf32, #tpu.memory_space<vmem>>, vector<7x8xf32>,
    %c480 = arith.constant 480 : index
    %c0_467 = arith.constant 0 : index
    %281 = tpu.strided_load %arg10[%c480, %c0_467] {strides = array<i32: 2, 1>} : memref<512x8xf32, #tpu.memory_space<vmem>>, vector<8x8xf32>
    %c120_468 = arith.constant 120 : index
    %c32_469 = arith.constant 32 : index
    %282 = vector.load %arg11[%c120_468, %c32_469] : memref<128x72xf32, #tpu.memory_space<vmem>>, vector<8x8xf32>
    tpu.vector_store %arg11[%c120_468, %c32_469], %281 {strides = array<i32>} : memref<128x72xf32, #tpu.memory_space<vmem>>, vector<8x8xf32>,
    %c481_470 = arith.constant 481 : index
    %c0_471 = arith.constant 0 : index
    %283 = tpu.strided_load %arg10[%c481_470, %c0_471] {strides = array<i32: 2, 1>} : memref<512x8xf32, #tpu.memory_space<vmem>>, vector<8x8xf32>
    %c120_472 = arith.constant 120 : index
    %c40_473 = arith.constant 40 : index
    %284 = vector.load %arg11[%c120_472, %c40_473] : memref<128x72xf32, #tpu.memory_space<vmem>>, vector<8x8xf32>
    tpu.vector_store %arg11[%c120_472, %c40_473], %283 {strides = array<i32>} : memref<128x72xf32, #tpu.memory_space<vmem>>, vector<8x8xf32>,
    %c497 = arith.constant 497 : index
    %c0_474 = arith.constant 0 : index
    %285 = tpu.strided_load %arg10[%c497, %c0_474] {strides = array<i32: 2, 1>} : memref<512x8xf32, #tpu.memory_space<vmem>>, vector<7x8xf32>
    %c121_475 = arith.constant 121 : index
    %c48_476 = arith.constant 48 : index
    %286 = vector.load %arg11[%c121_475, %c48_476] : memref<128x72xf32, #tpu.memory_space<vmem>>, vector<7x8xf32>
    tpu.vector_store %arg11[%c121_475, %c48_476], %285 {strides = array<i32>} : memref<128x72xf32, #tpu.memory_space<vmem>>, vector<7x8xf32>,
    %c496 = arith.constant 496 : index
    %c0_477 = arith.constant 0 : index
    %287 = tpu.strided_load %arg10[%c496, %c0_477] {strides = array<i32: 2, 1>} : memref<512x8xf32, #tpu.memory_space<vmem>>, vector<8x8xf32>
    %c120_478 = arith.constant 120 : index
    %c56_479 = arith.constant 56 : index
    %288 = vector.load %arg11[%c120_478, %c56_479] : memref<128x72xf32, #tpu.memory_space<vmem>>, vector<8x8xf32>
    tpu.vector_store %arg11[%c120_478, %c56_479], %287 {strides = array<i32>} : memref<128x72xf32, #tpu.memory_space<vmem>>, vector<8x8xf32>,
    %c497_480 = arith.constant 497 : index
    %c0_481 = arith.constant 0 : index
    %289 = tpu.strided_load %arg10[%c497_480, %c0_481] {strides = array<i32: 2, 1>} : memref<512x8xf32, #tpu.memory_space<vmem>>, vector<8x8xf32>
    %c120_482 = arith.constant 120 : index
    %c64_483 = arith.constant 64 : index
    %290 = vector.load %arg11[%c120_482, %c64_483] : memref<128x72xf32, #tpu.memory_space<vmem>>, vector<8x8xf32>
    tpu.vector_store %arg11[%c120_482, %c64_483], %289 {strides = array<i32>} : memref<128x72xf32, #tpu.memory_space<vmem>>, vector<8x8xf32>,
    %c0_484 = arith.constant 0 : index
    %c0_485 = arith.constant 0 : index
    %291 = vector.load %arg3[%c0_484, %c0_485] : memref<16x72xf32, #tpu.memory_space<vmem>>, vector<16x72xf32>
    %c0_486 = arith.constant 0 : index
    %c0_487 = arith.constant 0 : index
    %292 = vector.load %arg11[%c0_486, %c0_487] : memref<128x72xf32, #tpu.memory_space<vmem>>, vector<128x72xf32>
    %cst_488 = arith.constant dense<0.000000e+00> : vector<16x128xf32>
    %293 = tpu.matmul %291, %292, %cst_488 {dimension_numbers = #tpu.dot_dimension_numbers<[1], [1], [0], [0], [0, 0, 1, 0], [], []>} : vector<16x72xf32>, vector<128x72xf32>, vector<16x128xf32> -> vector<16x128xf32>
    %c0_489 = arith.constant 0 : index
    %c0_490 = arith.constant 0 : index
    %294 = vector.load %arg4[%c0_489, %c0_490] : memref<16x1xf32, #tpu.memory_space<vmem>>, vector<16x1xf32>
    %295 = vector.broadcast %294 : vector<16x1xf32> to vector<16x128xf32>
    %296 = arith.addf %293, %295 : vector<16x128xf32>
    %cst_491 = arith.constant 0.000000e+00 : f32
    %297 = vector.broadcast %cst_491 : f32 to vector<16x128xf32>
    %298 = arith.maximumf %296, %297 : vector<16x128xf32>
    %299 = vector.extract_strided_slice %298 {offsets = [0, 0], sizes = [1, 64], strides = [1, 1]} : vector<16x128xf32> to vector<1x64xf32>
    %c0_492 = arith.constant 0 : index
    %c0_493 = arith.constant 0 : index
    %300 = vector.load %arg12[%c0_492, %c0_493] : memref<2x1024xf32, #tpu.memory_space<vmem>>, vector<1x64xf32>
    tpu.vector_store %arg12[%c0_492, %c0_493], %299 {strides = array<i32>} : memref<2x1024xf32, #tpu.memory_space<vmem>>, vector<1x64xf32>,
    %301 = vector.extract_strided_slice %298 {offsets = [1, 0], sizes = [1, 64], strides = [1, 1]} : vector<16x128xf32> to vector<1x64xf32>
    %c0_494 = arith.constant 0 : index
    %c64_495 = arith.constant 64 : index
    %302 = vector.load %arg12[%c0_494, %c64_495] : memref<2x1024xf32, #tpu.memory_space<vmem>>, vector<1x64xf32>
    tpu.vector_store %arg12[%c0_494, %c64_495], %301 {strides = array<i32>} : memref<2x1024xf32, #tpu.memory_space<vmem>>, vector<1x64xf32>,
    %303 = vector.extract_strided_slice %298 {offsets = [2, 0], sizes = [1, 64], strides = [1, 1]} : vector<16x128xf32> to vector<1x64xf32>
    %c0_496 = arith.constant 0 : index
    %c128_497 = arith.constant 128 : index
    %304 = vector.load %arg12[%c0_496, %c128_497] : memref<2x1024xf32, #tpu.memory_space<vmem>>, vector<1x64xf32>
    tpu.vector_store %arg12[%c0_496, %c128_497], %303 {strides = array<i32>} : memref<2x1024xf32, #tpu.memory_space<vmem>>, vector<1x64xf32>,
    %305 = vector.extract_strided_slice %298 {offsets = [3, 0], sizes = [1, 64], strides = [1, 1]} : vector<16x128xf32> to vector<1x64xf32>
    %c0_498 = arith.constant 0 : index
    %c192_499 = arith.constant 192 : index
    %306 = vector.load %arg12[%c0_498, %c192_499] : memref<2x1024xf32, #tpu.memory_space<vmem>>, vector<1x64xf32>
    tpu.vector_store %arg12[%c0_498, %c192_499], %305 {strides = array<i32>} : memref<2x1024xf32, #tpu.memory_space<vmem>>, vector<1x64xf32>,
    %307 = vector.extract_strided_slice %298 {offsets = [4, 0], sizes = [1, 64], strides = [1, 1]} : vector<16x128xf32> to vector<1x64xf32>
    %c0_500 = arith.constant 0 : index
    %c256_501 = arith.constant 256 : index
    %308 = vector.load %arg12[%c0_500, %c256_501] : memref<2x1024xf32, #tpu.memory_space<vmem>>, vector<1x64xf32>
    tpu.vector_store %arg12[%c0_500, %c256_501], %307 {strides = array<i32>} : memref<2x1024xf32, #tpu.memory_space<vmem>>, vector<1x64xf32>,
    %309 = vector.extract_strided_slice %298 {offsets = [5, 0], sizes = [1, 64], strides = [1, 1]} : vector<16x128xf32> to vector<1x64xf32>
    %c0_502 = arith.constant 0 : index
    %c320_503 = arith.constant 320 : index
    %310 = vector.load %arg12[%c0_502, %c320_503] : memref<2x1024xf32, #tpu.memory_space<vmem>>, vector<1x64xf32>
    tpu.vector_store %arg12[%c0_502, %c320_503], %309 {strides = array<i32>} : memref<2x1024xf32, #tpu.memory_space<vmem>>, vector<1x64xf32>,
    %311 = vector.extract_strided_slice %298 {offsets = [6, 0], sizes = [1, 64], strides = [1, 1]} : vector<16x128xf32> to vector<1x64xf32>
    %c0_504 = arith.constant 0 : index
    %c384_505 = arith.constant 384 : index
    %312 = vector.load %arg12[%c0_504, %c384_505] : memref<2x1024xf32, #tpu.memory_space<vmem>>, vector<1x64xf32>
    tpu.vector_store %arg12[%c0_504, %c384_505], %311 {strides = array<i32>} : memref<2x1024xf32, #tpu.memory_space<vmem>>, vector<1x64xf32>,
    %313 = vector.extract_strided_slice %298 {offsets = [7, 0], sizes = [1, 64], strides = [1, 1]} : vector<16x128xf32> to vector<1x64xf32>
    %c0_506 = arith.constant 0 : index
    %c448_507 = arith.constant 448 : index
    %314 = vector.load %arg12[%c0_506, %c448_507] : memref<2x1024xf32, #tpu.memory_space<vmem>>, vector<1x64xf32>
    tpu.vector_store %arg12[%c0_506, %c448_507], %313 {strides = array<i32>} : memref<2x1024xf32, #tpu.memory_space<vmem>>, vector<1x64xf32>,
    %315 = vector.extract_strided_slice %298 {offsets = [8, 0], sizes = [1, 64], strides = [1, 1]} : vector<16x128xf32> to vector<1x64xf32>
    %c0_508 = arith.constant 0 : index
    %c512 = arith.constant 512 : index
    %316 = vector.load %arg12[%c0_508, %c512] : memref<2x1024xf32, #tpu.memory_space<vmem>>, vector<1x64xf32>
    tpu.vector_store %arg12[%c0_508, %c512], %315 {strides = array<i32>} : memref<2x1024xf32, #tpu.memory_space<vmem>>, vector<1x64xf32>,
    %317 = vector.extract_strided_slice %298 {offsets = [9, 0], sizes = [1, 64], strides = [1, 1]} : vector<16x128xf32> to vector<1x64xf32>
    %c0_509 = arith.constant 0 : index
    %c576 = arith.constant 576 : index
    %318 = vector.load %arg12[%c0_509, %c576] : memref<2x1024xf32, #tpu.memory_space<vmem>>, vector<1x64xf32>
    tpu.vector_store %arg12[%c0_509, %c576], %317 {strides = array<i32>} : memref<2x1024xf32, #tpu.memory_space<vmem>>, vector<1x64xf32>,
    %319 = vector.extract_strided_slice %298 {offsets = [10, 0], sizes = [1, 64], strides = [1, 1]} : vector<16x128xf32> to vector<1x64xf32>
    %c0_510 = arith.constant 0 : index
    %c640 = arith.constant 640 : index
    %320 = vector.load %arg12[%c0_510, %c640] : memref<2x1024xf32, #tpu.memory_space<vmem>>, vector<1x64xf32>
    tpu.vector_store %arg12[%c0_510, %c640], %319 {strides = array<i32>} : memref<2x1024xf32, #tpu.memory_space<vmem>>, vector<1x64xf32>,
    %321 = vector.extract_strided_slice %298 {offsets = [11, 0], sizes = [1, 64], strides = [1, 1]} : vector<16x128xf32> to vector<1x64xf32>
    %c0_511 = arith.constant 0 : index
    %c704 = arith.constant 704 : index
    %322 = vector.load %arg12[%c0_511, %c704] : memref<2x1024xf32, #tpu.memory_space<vmem>>, vector<1x64xf32>
    tpu.vector_store %arg12[%c0_511, %c704], %321 {strides = array<i32>} : memref<2x1024xf32, #tpu.memory_space<vmem>>, vector<1x64xf32>,
    %323 = vector.extract_strided_slice %298 {offsets = [12, 0], sizes = [1, 64], strides = [1, 1]} : vector<16x128xf32> to vector<1x64xf32>
    %c0_512 = arith.constant 0 : index
    %c768 = arith.constant 768 : index
    %324 = vector.load %arg12[%c0_512, %c768] : memref<2x1024xf32, #tpu.memory_space<vmem>>, vector<1x64xf32>
    tpu.vector_store %arg12[%c0_512, %c768], %323 {strides = array<i32>} : memref<2x1024xf32, #tpu.memory_space<vmem>>, vector<1x64xf32>,
    %325 = vector.extract_strided_slice %298 {offsets = [13, 0], sizes = [1, 64], strides = [1, 1]} : vector<16x128xf32> to vector<1x64xf32>
    %c0_513 = arith.constant 0 : index
    %c832 = arith.constant 832 : index
    %326 = vector.load %arg12[%c0_513, %c832] : memref<2x1024xf32, #tpu.memory_space<vmem>>, vector<1x64xf32>
    tpu.vector_store %arg12[%c0_513, %c832], %325 {strides = array<i32>} : memref<2x1024xf32, #tpu.memory_space<vmem>>, vector<1x64xf32>,
    %327 = vector.extract_strided_slice %298 {offsets = [14, 0], sizes = [1, 64], strides = [1, 1]} : vector<16x128xf32> to vector<1x64xf32>
    %c0_514 = arith.constant 0 : index
    %c896 = arith.constant 896 : index
    %328 = vector.load %arg12[%c0_514, %c896] : memref<2x1024xf32, #tpu.memory_space<vmem>>, vector<1x64xf32>
    tpu.vector_store %arg12[%c0_514, %c896], %327 {strides = array<i32>} : memref<2x1024xf32, #tpu.memory_space<vmem>>, vector<1x64xf32>,
    %329 = vector.extract_strided_slice %298 {offsets = [15, 0], sizes = [1, 64], strides = [1, 1]} : vector<16x128xf32> to vector<1x64xf32>
    %c0_515 = arith.constant 0 : index
    %c960 = arith.constant 960 : index
    %330 = vector.load %arg12[%c0_515, %c960] : memref<2x1024xf32, #tpu.memory_space<vmem>>, vector<1x64xf32>
    tpu.vector_store %arg12[%c0_515, %c960], %329 {strides = array<i32>} : memref<2x1024xf32, #tpu.memory_space<vmem>>, vector<1x64xf32>,
    %331 = vector.extract_strided_slice %298 {offsets = [0, 64], sizes = [1, 64], strides = [1, 1]} : vector<16x128xf32> to vector<1x64xf32>
    %c1_516 = arith.constant 1 : index
    %c0_517 = arith.constant 0 : index
    %332 = vector.load %arg12[%c1_516, %c0_517] : memref<2x1024xf32, #tpu.memory_space<vmem>>, vector<1x64xf32>
    tpu.vector_store %arg12[%c1_516, %c0_517], %331 {strides = array<i32>} : memref<2x1024xf32, #tpu.memory_space<vmem>>, vector<1x64xf32>,
    %333 = vector.extract_strided_slice %298 {offsets = [1, 64], sizes = [1, 64], strides = [1, 1]} : vector<16x128xf32> to vector<1x64xf32>
    %c1_518 = arith.constant 1 : index
    %c64_519 = arith.constant 64 : index
    %334 = vector.load %arg12[%c1_518, %c64_519] : memref<2x1024xf32, #tpu.memory_space<vmem>>, vector<1x64xf32>
    tpu.vector_store %arg12[%c1_518, %c64_519], %333 {strides = array<i32>} : memref<2x1024xf32, #tpu.memory_space<vmem>>, vector<1x64xf32>,
    %335 = vector.extract_strided_slice %298 {offsets = [2, 64], sizes = [1, 64], strides = [1, 1]} : vector<16x128xf32> to vector<1x64xf32>
    %c1_520 = arith.constant 1 : index
    %c128_521 = arith.constant 128 : index
    %336 = vector.load %arg12[%c1_520, %c128_521] : memref<2x1024xf32, #tpu.memory_space<vmem>>, vector<1x64xf32>
    tpu.vector_store %arg12[%c1_520, %c128_521], %335 {strides = array<i32>} : memref<2x1024xf32, #tpu.memory_space<vmem>>, vector<1x64xf32>,
    %337 = vector.extract_strided_slice %298 {offsets = [3, 64], sizes = [1, 64], strides = [1, 1]} : vector<16x128xf32> to vector<1x64xf32>
    %c1_522 = arith.constant 1 : index
    %c192_523 = arith.constant 192 : index
    %338 = vector.load %arg12[%c1_522, %c192_523] : memref<2x1024xf32, #tpu.memory_space<vmem>>, vector<1x64xf32>
    tpu.vector_store %arg12[%c1_522, %c192_523], %337 {strides = array<i32>} : memref<2x1024xf32, #tpu.memory_space<vmem>>, vector<1x64xf32>,
    %339 = vector.extract_strided_slice %298 {offsets = [4, 64], sizes = [1, 64], strides = [1, 1]} : vector<16x128xf32> to vector<1x64xf32>
    %c1_524 = arith.constant 1 : index
    %c256_525 = arith.constant 256 : index
    %340 = vector.load %arg12[%c1_524, %c256_525] : memref<2x1024xf32, #tpu.memory_space<vmem>>, vector<1x64xf32>
    tpu.vector_store %arg12[%c1_524, %c256_525], %339 {strides = array<i32>} : memref<2x1024xf32, #tpu.memory_space<vmem>>, vector<1x64xf32>,
    %341 = vector.extract_strided_slice %298 {offsets = [5, 64], sizes = [1, 64], strides = [1, 1]} : vector<16x128xf32> to vector<1x64xf32>
    %c1_526 = arith.constant 1 : index
    %c320_527 = arith.constant 320 : index
    %342 = vector.load %arg12[%c1_526, %c320_527] : memref<2x1024xf32, #tpu.memory_space<vmem>>, vector<1x64xf32>
    tpu.vector_store %arg12[%c1_526, %c320_527], %341 {strides = array<i32>} : memref<2x1024xf32, #tpu.memory_space<vmem>>, vector<1x64xf32>,
    %343 = vector.extract_strided_slice %298 {offsets = [6, 64], sizes = [1, 64], strides = [1, 1]} : vector<16x128xf32> to vector<1x64xf32>
    %c1_528 = arith.constant 1 : index
    %c384_529 = arith.constant 384 : index
    %344 = vector.load %arg12[%c1_528, %c384_529] : memref<2x1024xf32, #tpu.memory_space<vmem>>, vector<1x64xf32>
    tpu.vector_store %arg12[%c1_528, %c384_529], %343 {strides = array<i32>} : memref<2x1024xf32, #tpu.memory_space<vmem>>, vector<1x64xf32>,
    %345 = vector.extract_strided_slice %298 {offsets = [7, 64], sizes = [1, 64], strides = [1, 1]} : vector<16x128xf32> to vector<1x64xf32>
    %c1_530 = arith.constant 1 : index
    %c448_531 = arith.constant 448 : index
    %346 = vector.load %arg12[%c1_530, %c448_531] : memref<2x1024xf32, #tpu.memory_space<vmem>>, vector<1x64xf32>
    tpu.vector_store %arg12[%c1_530, %c448_531], %345 {strides = array<i32>} : memref<2x1024xf32, #tpu.memory_space<vmem>>, vector<1x64xf32>,
    %347 = vector.extract_strided_slice %298 {offsets = [8, 64], sizes = [1, 64], strides = [1, 1]} : vector<16x128xf32> to vector<1x64xf32>
    %c1_532 = arith.constant 1 : index
    %c512_533 = arith.constant 512 : index
    %348 = vector.load %arg12[%c1_532, %c512_533] : memref<2x1024xf32, #tpu.memory_space<vmem>>, vector<1x64xf32>
    tpu.vector_store %arg12[%c1_532, %c512_533], %347 {strides = array<i32>} : memref<2x1024xf32, #tpu.memory_space<vmem>>, vector<1x64xf32>,
    %349 = vector.extract_strided_slice %298 {offsets = [9, 64], sizes = [1, 64], strides = [1, 1]} : vector<16x128xf32> to vector<1x64xf32>
    %c1_534 = arith.constant 1 : index
    %c576_535 = arith.constant 576 : index
    %350 = vector.load %arg12[%c1_534, %c576_535] : memref<2x1024xf32, #tpu.memory_space<vmem>>, vector<1x64xf32>
    tpu.vector_store %arg12[%c1_534, %c576_535], %349 {strides = array<i32>} : memref<2x1024xf32, #tpu.memory_space<vmem>>, vector<1x64xf32>,
    %351 = vector.extract_strided_slice %298 {offsets = [10, 64], sizes = [1, 64], strides = [1, 1]} : vector<16x128xf32> to vector<1x64xf32>
    %c1_536 = arith.constant 1 : index
    %c640_537 = arith.constant 640 : index
    %352 = vector.load %arg12[%c1_536, %c640_537] : memref<2x1024xf32, #tpu.memory_space<vmem>>, vector<1x64xf32>
    tpu.vector_store %arg12[%c1_536, %c640_537], %351 {strides = array<i32>} : memref<2x1024xf32, #tpu.memory_space<vmem>>, vector<1x64xf32>,
    %353 = vector.extract_strided_slice %298 {offsets = [11, 64], sizes = [1, 64], strides = [1, 1]} : vector<16x128xf32> to vector<1x64xf32>
    %c1_538 = arith.constant 1 : index
    %c704_539 = arith.constant 704 : index
    %354 = vector.load %arg12[%c1_538, %c704_539] : memref<2x1024xf32, #tpu.memory_space<vmem>>, vector<1x64xf32>
    tpu.vector_store %arg12[%c1_538, %c704_539], %353 {strides = array<i32>} : memref<2x1024xf32, #tpu.memory_space<vmem>>, vector<1x64xf32>,
    %355 = vector.extract_strided_slice %298 {offsets = [12, 64], sizes = [1, 64], strides = [1, 1]} : vector<16x128xf32> to vector<1x64xf32>
    %c1_540 = arith.constant 1 : index
    %c768_541 = arith.constant 768 : index
    %356 = vector.load %arg12[%c1_540, %c768_541] : memref<2x1024xf32, #tpu.memory_space<vmem>>, vector<1x64xf32>
    tpu.vector_store %arg12[%c1_540, %c768_541], %355 {strides = array<i32>} : memref<2x1024xf32, #tpu.memory_space<vmem>>, vector<1x64xf32>,
    %357 = vector.extract_strided_slice %298 {offsets = [13, 64], sizes = [1, 64], strides = [1, 1]} : vector<16x128xf32> to vector<1x64xf32>
    %c1_542 = arith.constant 1 : index
    %c832_543 = arith.constant 832 : index
    %358 = vector.load %arg12[%c1_542, %c832_543] : memref<2x1024xf32, #tpu.memory_space<vmem>>, vector<1x64xf32>
    tpu.vector_store %arg12[%c1_542, %c832_543], %357 {strides = array<i32>} : memref<2x1024xf32, #tpu.memory_space<vmem>>, vector<1x64xf32>,
    %359 = vector.extract_strided_slice %298 {offsets = [14, 64], sizes = [1, 64], strides = [1, 1]} : vector<16x128xf32> to vector<1x64xf32>
    %c1_544 = arith.constant 1 : index
    %c896_545 = arith.constant 896 : index
    %360 = vector.load %arg12[%c1_544, %c896_545] : memref<2x1024xf32, #tpu.memory_space<vmem>>, vector<1x64xf32>
    tpu.vector_store %arg12[%c1_544, %c896_545], %359 {strides = array<i32>} : memref<2x1024xf32, #tpu.memory_space<vmem>>, vector<1x64xf32>,
    %361 = vector.extract_strided_slice %298 {offsets = [15, 64], sizes = [1, 64], strides = [1, 1]} : vector<16x128xf32> to vector<1x64xf32>
    %c1_546 = arith.constant 1 : index
    %c960_547 = arith.constant 960 : index
    %362 = vector.load %arg12[%c1_546, %c960_547] : memref<2x1024xf32, #tpu.memory_space<vmem>>, vector<1x64xf32>
    tpu.vector_store %arg12[%c1_546, %c960_547], %361 {strides = array<i32>} : memref<2x1024xf32, #tpu.memory_space<vmem>>, vector<1x64xf32>,
    %c0_i32_548 = arith.constant 0 : i32
    %363 = tpu.memref_slice %arg15[%c0_i32_548] : memref<2x!tpu.dma_semaphore, #tpu.memory_space<semaphore_mem>> -> memref<1x!tpu.dma_semaphore, #tpu.memory_space<semaphore_mem>>
    %364 = tpu.memref_squeeze %363 : memref<1x!tpu.dma_semaphore, #tpu.memory_space<semaphore_mem>> -> memref<!tpu.dma_semaphore, #tpu.memory_space<semaphore_mem>>
    tpu.wait_dma2 semaphore(%364 : memref<!tpu.dma_semaphore, #tpu.memory_space<semaphore_mem>>) src(%arg5 : memref<1024x1024xbf16, #tpu.memory_space<any>>) dst(%arg13 : memref<1024x1024xbf16, #tpu.memory_space<vmem>>)
    %c0_549 = arith.constant 0 : index
    %c0_550 = arith.constant 0 : index
    %365 = vector.load %arg12[%c0_549, %c0_550] : memref<2x1024xf32, #tpu.memory_space<vmem>>, vector<2x1024xf32>
    %366 = arith.truncf %365 : vector<2x1024xf32> to vector<2x1024xbf16>
    %c0_551 = arith.constant 0 : index
    %c0_552 = arith.constant 0 : index
    %367 = vector.load %arg13[%c0_551, %c0_552] : memref<1024x1024xbf16, #tpu.memory_space<vmem>>, vector<1024x1024xbf16>
    %cst_553 = arith.constant dense<0.000000e+00> : vector<2x1024xf32>
    %368 = tpu.matmul %366, %367, %cst_553 {dimension_numbers = #tpu.dot_dimension_numbers<[1], [0], [0], [1], [0, 0, 1, 1], [], []>} : vector<2x1024xbf16>, vector<1024x1024xbf16>, vector<2x1024xf32> -> vector<2x1024xf32>
    %c0_554 = arith.constant 0 : index
    %c0_555 = arith.constant 0 : index
    %369 = vector.load %arg6[%c0_554, %c0_555] : memref<1x1024xf32, #tpu.memory_space<vmem>>, vector<1x1024xf32>
    %370 = vector.broadcast %369 : vector<1x1024xf32> to vector<2x1024xf32>
    %371 = arith.addf %368, %370 : vector<2x1024xf32>
    %cst_556 = arith.constant 0.000000e+00 : f32
    %372 = vector.broadcast %cst_556 : f32 to vector<2x1024xf32>
    %373 = arith.maximumf %371, %372 : vector<2x1024xf32>
    %c1_i32_557 = arith.constant 1 : i32
    %374 = tpu.memref_slice %arg15[%c1_i32_557] : memref<2x!tpu.dma_semaphore, #tpu.memory_space<semaphore_mem>> -> memref<1x!tpu.dma_semaphore, #tpu.memory_space<semaphore_mem>>
    %375 = tpu.memref_squeeze %374 : memref<1x!tpu.dma_semaphore, #tpu.memory_space<semaphore_mem>> -> memref<!tpu.dma_semaphore, #tpu.memory_space<semaphore_mem>>
    tpu.wait_dma2 semaphore(%375 : memref<!tpu.dma_semaphore, #tpu.memory_space<semaphore_mem>>) src(%arg7 : memref<1024x128xbf16, #tpu.memory_space<any>>) dst(%arg14 : memref<1024x128xbf16, #tpu.memory_space<vmem>>)
    %376 = arith.truncf %373 : vector<2x1024xf32> to vector<2x1024xbf16>
    %c0_558 = arith.constant 0 : index
    %c0_559 = arith.constant 0 : index
    %377 = vector.load %arg14[%c0_558, %c0_559] : memref<1024x128xbf16, #tpu.memory_space<vmem>>, vector<1024x128xbf16>
    %cst_560 = arith.constant dense<0.000000e+00> : vector<2x128xf32>
    %378 = tpu.matmul %376, %377, %cst_560 {dimension_numbers = #tpu.dot_dimension_numbers<[1], [0], [0], [1], [0, 0, 1, 1], [], []>} : vector<2x1024xbf16>, vector<1024x128xbf16>, vector<2x128xf32> -> vector<2x128xf32>
    %c0_561 = arith.constant 0 : index
    %c0_562 = arith.constant 0 : index
    %379 = vector.load %arg8[%c0_561, %c0_562] : memref<1x128xf32, #tpu.memory_space<vmem>>, vector<1x128xf32>
    %380 = vector.broadcast %379 : vector<1x128xf32> to vector<2x128xf32>
    %381 = arith.addf %378, %380 : vector<2x128xf32>
    %c0_563 = arith.constant 0 : index
    %c0_564 = arith.constant 0 : index
    %382 = vector.load %arg9[%c0_563, %c0_564] : memref<2x128xf32, #tpu.memory_space<vmem>>, vector<2x128xf32>
    tpu.vector_store %arg9[%c0_563, %c0_564], %381 {strides = array<i32>} : memref<2x128xf32, #tpu.memory_space<vmem>>, vector<2x128xf32>,
    return
  }
}

</mosaic_0001>

<bundles_post_ra>
// kernel: encoder_pretrain_net.1
= control target key start
LH: loop header
LB: loop body
LE: loop exit
PB: predicated region body
PF: predicated region fallthrough
CT: control target
= control target key end

     0   :  { %14 = vsyncpa [#allocation9], 0  ;;  %s8716_s30 = smov [#allocation5]   ;;  %s8723_s13 = smov 0   ;;  %s11109_s0 = inlined_call_operand.vmem [shape: f32[512,36], index: 0, kind: input, shape index: {}]   ;;  %s11110_s1 = inlined_call_operand.vmem [shape: f32[36,8], index: 1, kind: input, shape index: {}]   ;;  %s11111_s2 = inlined_call_operand.vmem [shape: f32[1,8], index: 2, kind: input, shape index: {}]   ;;  %s11112_s3 = inlined_call_operand.vmem [shape: f32[16,72], index: 3, kind: input, shape index: {}]   ;;  %s11113_s4 = inlined_call_operand.vmem [shape: f32[16,1], index: 4, kind: input, shape index: {}]   ;;  %s11114_s5 = inlined_call_operand.vmem [shape: bf16[1024,1024], index: 5, kind: input, shape index: {}]   ;;  %s11115_s6 = inlined_call_operand.vmem [shape: f32[1,1024], index: 6, kind: input, shape index: {}]   ;;  %s11116_s7 = inlined_call_operand.vmem [shape: bf16[1024,128], index: 7, kind: input, shape index: {}]   ;;  %s11117_s8 = inlined_call_operand.vmem [shape: f32[1,128], index: 8, kind: input, shape index: {}]   ;;  %s11118_s9 = inlined_call_operand.hbm [shape: f32[2,128], index: 9, kind: output, shape index: {}]  }
   0x1   :  { %s11119_s12 = smov %s11114_s5  ;;  %s8725_s14 = smov 0  }
   0x2 LB: > { %v50_v0 = vld [vmem:[%s8644_s12] sm:$0xf]  ;;  %v52_v1 = vld [vmem:[%s8644_s12 + $0x4] sm:$0xf]  ;;  %v54_v2 = vld [vmem:[%s8644_s12 + $0x8] sm:$0xf]  ;;  %s8652_s14 = sphi %s8725_s14, %s46_s14   ;;  %s8648_s13 = sphi %s8723_s13, %s11120_s13   ;;  %s8644_s12 = sphi %s11119_s12, %s1079_s12   ;;  %s8640_s30 = sphi %s8716_s30, %s1080_s30  }
   0x3   : > { %51 = vst [vmem:[%s8640_s30] sm:$0xf] %v50_v0  ;;  %53 = vst [vmem:[%s8640_s30 + $0x8] sm:$0xf] %v52_v1  ;;  %v56_v3 = vld [vmem:[%s8644_s12 + $0xc] sm:$0xf]  ;;  %s1074_s15 = sadd.s32 1, %s8648_s13 }
   0x4   : > { %55 = vst [vmem:[%s8640_s30 + $0x10] sm:$0xf] %v54_v2  ;;  %v58_v4 = vld [vmem:[%s8644_s12 + $0x10] sm:$0xf]  ;;  %v60_v5 = vld [vmem:[%s8644_s12 + $0x14] sm:$0xf] }
   0x5   : > { %57 = vst [vmem:[%s8640_s30 + $0x18] sm:$0xf] %v56_v3  ;;  %59 = vst [vmem:[%s8640_s30 + $0x20] sm:$0xf] %v58_v4  ;;  %v62_v6 = vld [vmem:[%s8644_s12 + $0x18] sm:$0xf] }
   0x6   : > { %61 = vst [vmem:[%s8640_s30 + $0x28] sm:$0xf] %v60_v5  ;;  %v64_v7 = vld [vmem:[%s8644_s12 + $0x1c] sm:$0xf]  ;;  %v66_v8 = vld [vmem:[%s8644_s12 + $0x40] sm:$0xf] }
   0x7   : > { %63 = vst [vmem:[%s8640_s30 + $0x30] sm:$0xf] %v62_v6  ;;  %65 = vst [vmem:[%s8640_s30 + $0x38] sm:$0xf] %v64_v7  ;;  %v68_v9 = vld [vmem:[%s8644_s12 + $0x44] sm:$0xf] }
   0x8   : > { %67 = vst [vmem:[%s8640_s30 + $0x40] sm:$0xf] %v66_v8  ;;  %v70_v10 = vld [vmem:[%s8644_s12 + $0x48] sm:$0xf]  ;;  %v72_v11 = vld [vmem:[%s8644_s12 + $0x4c] sm:$0xf] }
   0x9   : > { %69 = vst [vmem:[%s8640_s30 + $0x48] sm:$0xf] %v68_v9  ;;  %71 = vst [vmem:[%s8640_s30 + $0x50] sm:$0xf] %v70_v10  ;;  %v74_v12 = vld [vmem:[%s8644_s12 + $0x50] sm:$0xf] }
   0xa   : > { %73 = vst [vmem:[%s8640_s30 + $0x58] sm:$0xf] %v72_v11  ;;  %v76_v13 = vld [vmem:[%s8644_s12 + $0x54] sm:$0xf]  ;;  %v78_v14 = vld [vmem:[%s8644_s12 + $0x58] sm:$0xf] }
   0xb   : > { %75 = vst [vmem:[%s8640_s30 + $0x60] sm:$0xf] %v74_v12  ;;  %77 = vst [vmem:[%s8640_s30 + $0x68] sm:$0xf] %v76_v13  ;;  %v80_v15 = vld [vmem:[%s8644_s12 + $0x5c] sm:$0xf] }
   0xc   : > { %79 = vst [vmem:[%s8640_s30 + $0x70] sm:$0xf] %v78_v14  ;;  %v82_v16 = vld [vmem:[%s8644_s12 + $0x80] sm:$0xf]  ;;  %v84_v17 = vld [vmem:[%s8644_s12 + $0x84] sm:$0xf] }
   0xd   : > { %81 = vst [vmem:[%s8640_s30 + $0x78] sm:$0xf] %v80_v15  ;;  %83 = vst [vmem:[%s8640_s30 + $0x80] sm:$0xf] %v82_v16  ;;  %v86_v18 = vld [vmem:[%s8644_s12 + $0x88] sm:$0xf] }
   0xe   : > { %85 = vst [vmem:[%s8640_s30 + $0x88] sm:$0xf] %v84_v17  ;;  %v88_v19 = vld [vmem:[%s8644_s12 + $0x8c] sm:$0xf]  ;;  %v90_v20 = vld [vmem:[%s8644_s12 + $0x90] sm:$0xf] }
   0xf   : > { %87 = vst [vmem:[%s8640_s30 + $0x90] sm:$0xf] %v86_v18  ;;  %89 = vst [vmem:[%s8640_s30 + $0x98] sm:$0xf] %v88_v19  ;;  %v92_v21 = vld [vmem:[%s8644_s12 + $0x94] sm:$0xf] }
  0x10   : > { %91 = vst [vmem:[%s8640_s30 + $0xa0] sm:$0xf] %v90_v20  ;;  %v94_v22 = vld [vmem:[%s8644_s12 + $0x98] sm:$0xf]  ;;  %v96_v23 = vld [vmem:[%s8644_s12 + $0x9c] sm:$0xf] }
  0x11   : > { %93 = vst [vmem:[%s8640_s30 + $0xa8] sm:$0xf] %v92_v21  ;;  %95 = vst [vmem:[%s8640_s30 + $0xb0] sm:$0xf] %v94_v22  ;;  %v98_v24 = vld [vmem:[%s8644_s12 + $0xc0] sm:$0xf] }
  0x12   : > { %97 = vst [vmem:[%s8640_s30 + $0xb8] sm:$0xf] %v96_v23  ;;  %v100_v25 = vld [vmem:[%s8644_s12 + $0xc4] sm:$0xf]  ;;  %v102_v26 = vld [vmem:[%s8644_s12 + $0xc8] sm:$0xf] }
  0x13   : > { %99 = vst [vmem:[%s8640_s30 + $0xc0] sm:$0xf] %v98_v24  ;;  %101 = vst [vmem:[%s8640_s30 + $0xc8] sm:$0xf] %v100_v25  ;;  %v104_v27 = vld [vmem:[%s8644_s12 + $0xcc] sm:$0xf] }
  0x14   : > { %103 = vst [vmem:[%s8640_s30 + $0xd0] sm:$0xf] %v102_v26  ;;  %v106_v28 = vld [vmem:[%s8644_s12 + $0xd0] sm:$0xf]  ;;  %v108_v29 = vld [vmem:[%s8644_s12 + $0xd4] sm:$0xf] }
  0x15   : > { %105 = vst [vmem:[%s8640_s30 + $0xd8] sm:$0xf] %v104_v27  ;;  %107 = vst [vmem:[%s8640_s30 + $0xe0] sm:$0xf] %v106_v28  ;;  %v110_v30 = vld [vmem:[%s8644_s12 + $0xd8] sm:$0xf] }
  0x16   : > { %109 = vst [vmem:[%s8640_s30 + $0xe8] sm:$0xf] %v108_v29  ;;  %v112_v31 = vld [vmem:[%s8644_s12 + $0xdc] sm:$0xf]  ;;  %v114_v32 = vld [vmem:[%s8644_s12 + $0x100] sm:$0xf] }
  0x17   : > { %111 = vst [vmem:[%s8640_s30 + $0xf0] sm:$0xf] %v110_v30  ;;  %113 = vst [vmem:[%s8640_s30 + $0xf8] sm:$0xf] %v112_v31  ;;  %v116_v33 = vld [vmem:[%s8644_s12 + $0x104] sm:$0xf] }
  0x18   : > { %115 = vst [vmem:[%s8640_s30 + $0x100] sm:$0xf] %v114_v32  ;;  %v118_v34 = vld [vmem:[%s8644_s12 + $0x108] sm:$0xf]  ;;  %v120_v35 = vld [vmem:[%s8644_s12 + $0x10c] sm:$0xf] }
  0x19   : > { %117 = vst [vmem:[%s8640_s30 + $0x108] sm:$0xf] %v116_v33  ;;  %119 = vst [vmem:[%s8640_s30 + $0x110] sm:$0xf] %v118_v34  ;;  %v122_v36 = vld [vmem:[%s8644_s12 + $0x110] sm:$0xf] }
  0x1a   : > { %121 = vst [vmem:[%s8640_s30 + $0x118] sm:$0xf] %v120_v35  ;;  %v124_v37 = vld [vmem:[%s8644_s12 + $0x114] sm:$0xf]  ;;  %v126_v38 = vld [vmem:[%s8644_s12 + $0x118] sm:$0xf] }
  0x1b   : > { %123 = vst [vmem:[%s8640_s30 + $0x120] sm:$0xf] %v122_v36  ;;  %125 = vst [vmem:[%s8640_s30 + $0x128] sm:$0xf] %v124_v37  ;;  %v128_v39 = vld [vmem:[%s8644_s12 + $0x11c] sm:$0xf] }
  0x1c   : > { %127 = vst [vmem:[%s8640_s30 + $0x130] sm:$0xf] %v126_v38  ;;  %v130_v40 = vld [vmem:[%s8644_s12 + $0x140] sm:$0xf]  ;;  %v132_v41 = vld [vmem:[%s8644_s12 + $0x144] sm:$0xf] }
  0x1d   : > { %129 = vst [vmem:[%s8640_s30 + $0x138] sm:$0xf] %v128_v39  ;;  %131 = vst [vmem:[%s8640_s30 + $0x140] sm:$0xf] %v130_v40  ;;  %v134_v42 = vld [vmem:[%s8644_s12 + $0x148] sm:$0xf] }
  0x1e   : > { %133 = vst [vmem:[%s8640_s30 + $0x148] sm:$0xf] %v132_v41  ;;  %v136_v43 = vld [vmem:[%s8644_s12 + $0x14c] sm:$0xf]  ;;  %v138_v44 = vld [vmem:[%s8644_s12 + $0x150] sm:$0xf] }
  0x1f   : > { %135 = vst [vmem:[%s8640_s30 + $0x150] sm:$0xf] %v134_v42  ;;  %137 = vst [vmem:[%s8640_s30 + $0x158] sm:$0xf] %v136_v43  ;;  %v140_v45 = vld [vmem:[%s8644_s12 + $0x154] sm:$0xf] }
  0x20   : > { %139 = vst [vmem:[%s8640_s30 + $0x160] sm:$0xf] %v138_v44  ;;  %v142_v46 = vld [vmem:[%s8644_s12 + $0x158] sm:$0xf]  ;;  %v144_v47 = vld [vmem:[%s8644_s12 + $0x15c] sm:$0xf] }
  0x21   : > { %141 = vst [vmem:[%s8640_s30 + $0x168] sm:$0xf] %v140_v45  ;;  %143 = vst [vmem:[%s8640_s30 + $0x170] sm:$0xf] %v142_v46  ;;  %v146_v48 = vld [vmem:[%s8644_s12 + $0x180] sm:$0xf] }
  0x22   : > { %145 = vst [vmem:[%s8640_s30 + $0x178] sm:$0xf] %v144_v47  ;;  %v148_v49 = vld [vmem:[%s8644_s12 + $0x184] sm:$0xf]  ;;  %v150_v50 = vld [vmem:[%s8644_s12 + $0x188] sm:$0xf] }
  0x23   : > { %147 = vst [vmem:[%s8640_s30 + $0x180] sm:$0xf] %v146_v48  ;;  %149 = vst [vmem:[%s8640_s30 + $0x188] sm:$0xf] %v148_v49  ;;  %v152_v51 = vld [vmem:[%s8644_s12 + $0x18c] sm:$0xf] }
  0x24   : > { %151 = vst [vmem:[%s8640_s30 + $0x190] sm:$0xf] %v150_v50  ;;  %v154_v52 = vld [vmem:[%s8644_s12 + $0x190] sm:$0xf]  ;;  %v156_v53 = vld [vmem:[%s8644_s12 + $0x194] sm:$0xf] }
  0x25   : > { %153 = vst [vmem:[%s8640_s30 + $0x198] sm:$0xf] %v152_v51  ;;  %155 = vst [vmem:[%s8640_s30 + $0x1a0] sm:$0xf] %v154_v52  ;;  %v158_v54 = vld [vmem:[%s8644_s12 + $0x198] sm:$0xf] }
  0x26   : > { %157 = vst [vmem:[%s8640_s30 + $0x1a8] sm:$0xf] %v156_v53  ;;  %v160_v55 = vld [vmem:[%s8644_s12 + $0x19c] sm:$0xf]  ;;  %v162_v56 = vld [vmem:[%s8644_s12 + $0x1c0] sm:$0xf] }
  0x27   : > { %159 = vst [vmem:[%s8640_s30 + $0x1b0] sm:$0xf] %v158_v54  ;;  %161 = vst [vmem:[%s8640_s30 + $0x1b8] sm:$0xf] %v160_v55  ;;  %v164_v57 = vld [vmem:[%s8644_s12 + $0x1c4] sm:$0xf] }
  0x28   : > { %163 = vst [vmem:[%s8640_s30 + $0x1c0] sm:$0xf] %v162_v56  ;;  %v166_v58 = vld [vmem:[%s8644_s12 + $0x1c8] sm:$0xf]  ;;  %v168_v59 = vld [vmem:[%s8644_s12 + $0x1cc] sm:$0xf] }
  0x29   : > { %165 = vst [vmem:[%s8640_s30 + $0x1c8] sm:$0xf] %v164_v57  ;;  %167 = vst [vmem:[%s8640_s30 + $0x1d0] sm:$0xf] %v166_v58  ;;  %v170_v60 = vld [vmem:[%s8644_s12 + $0x1d0] sm:$0xf] }
  0x2a   : > { %169 = vst [vmem:[%s8640_s30 + $0x1d8] sm:$0xf] %v168_v59  ;;  %v172_v61 = vld [vmem:[%s8644_s12 + $0x1d4] sm:$0xf]  ;;  %v174_v62 = vld [vmem:[%s8644_s12 + $0x1d8] sm:$0xf] }
  0x2b   : > { %171 = vst [vmem:[%s8640_s30 + $0x1e0] sm:$0xf] %v170_v60  ;;  %173 = vst [vmem:[%s8640_s30 + $0x1e8] sm:$0xf] %v172_v61  ;;  %v176_v63 = vld [vmem:[%s8644_s12 + $0x1dc] sm:$0xf] }
  0x2c   : > { %175 = vst [vmem:[%s8640_s30 + $0x1f0] sm:$0xf] %v174_v62  ;;  %v178_v0 = vld [vmem:[%s8644_s12 + $0x200] sm:$0xf]  ;;  %v180_v1 = vld [vmem:[%s8644_s12 + $0x204] sm:$0xf] }
  0x2d   : > { %177 = vst [vmem:[%s8640_s30 + $0x1f8] sm:$0xf] %v176_v63  ;;  %179 = vst [vmem:[%s8640_s30 + $0x200] sm:$0xf] %v178_v0  ;;  %v182_v2 = vld [vmem:[%s8644_s12 + $0x208] sm:$0xf] }
  0x2e   : > { %181 = vst [vmem:[%s8640_s30 + $0x208] sm:$0xf] %v180_v1  ;;  %v184_v3 = vld [vmem:[%s8644_s12 + $0x20c] sm:$0xf]  ;;  %v186_v4 = vld [vmem:[%s8644_s12 + $0x210] sm:$0xf] }
  0x2f   : > { %183 = vst [vmem:[%s8640_s30 + $0x210] sm:$0xf] %v182_v2  ;;  %185 = vst [vmem:[%s8640_s30 + $0x218] sm:$0xf] %v184_v3  ;;  %v188_v5 = vld [vmem:[%s8644_s12 + $0x214] sm:$0xf] }
  0x30   : > { %187 = vst [vmem:[%s8640_s30 + $0x220] sm:$0xf] %v186_v4  ;;  %v190_v6 = vld [vmem:[%s8644_s12 + $0x218] sm:$0xf]  ;;  %v192_v7 = vld [vmem:[%s8644_s12 + $0x21c] sm:$0xf] }
  0x31   : > { %189 = vst [vmem:[%s8640_s30 + $0x228] sm:$0xf] %v188_v5  ;;  %191 = vst [vmem:[%s8640_s30 + $0x230] sm:$0xf] %v190_v6  ;;  %v194_v8 = vld [vmem:[%s8644_s12 + $0x240] sm:$0xf] }
  0x32   : > { %193 = vst [vmem:[%s8640_s30 + $0x238] sm:$0xf] %v192_v7  ;;  %v196_v9 = vld [vmem:[%s8644_s12 + $0x244] sm:$0xf]  ;;  %v198_v10 = vld [vmem:[%s8644_s12 + $0x248] sm:$0xf] }
  0x33   : > { %195 = vst [vmem:[%s8640_s30 + $0x240] sm:$0xf] %v194_v8  ;;  %197 = vst [vmem:[%s8640_s30 + $0x248] sm:$0xf] %v196_v9  ;;  %v200_v11 = vld [vmem:[%s8644_s12 + $0x24c] sm:$0xf] }
  0x34   : > { %199 = vst [vmem:[%s8640_s30 + $0x250] sm:$0xf] %v198_v10  ;;  %v202_v12 = vld [vmem:[%s8644_s12 + $0x250] sm:$0xf]  ;;  %v204_v13 = vld [vmem:[%s8644_s12 + $0x254] sm:$0xf] }
  0x35   : > { %201 = vst [vmem:[%s8640_s30 + $0x258] sm:$0xf] %v200_v11  ;;  %203 = vst [vmem:[%s8640_s30 + $0x260] sm:$0xf] %v202_v12  ;;  %v206_v14 = vld [vmem:[%s8644_s12 + $0x258] sm:$0xf] }
  0x36   : > { %205 = vst [vmem:[%s8640_s30 + $0x268] sm:$0xf] %v204_v13  ;;  %v208_v15 = vld [vmem:[%s8644_s12 + $0x25c] sm:$0xf]  ;;  %v210_v16 = vld [vmem:[%s8644_s12 + $0x280] sm:$0xf] }
  0x37   : > { %207 = vst [vmem:[%s8640_s30 + $0x270] sm:$0xf] %v206_v14  ;;  %209 = vst [vmem:[%s8640_s30 + $0x278] sm:$0xf] %v208_v15  ;;  %v212_v17 = vld [vmem:[%s8644_s12 + $0x284] sm:$0xf] }
  0x38   : > { %211 = vst [vmem:[%s8640_s30 + $0x280] sm:$0xf] %v210_v16  ;;  %v214_v18 = vld [vmem:[%s8644_s12 + $0x288] sm:$0xf]  ;;  %v216_v19 = vld [vmem:[%s8644_s12 + $0x28c] sm:$0xf] }
  0x39   : > { %213 = vst [vmem:[%s8640_s30 + $0x288] sm:$0xf] %v212_v17  ;;  %215 = vst [vmem:[%s8640_s30 + $0x290] sm:$0xf] %v214_v18  ;;  %v218_v20 = vld [vmem:[%s8644_s12 + $0x290] sm:$0xf] }
  0x3a   : > { %217 = vst [vmem:[%s8640_s30 + $0x298] sm:$0xf] %v216_v19  ;;  %v220_v21 = vld [vmem:[%s8644_s12 + $0x294] sm:$0xf]  ;;  %v222_v22 = vld [vmem:[%s8644_s12 + $0x298] sm:$0xf] }
  0x3b   : > { %219 = vst [vmem:[%s8640_s30 + $0x2a0] sm:$0xf] %v218_v20  ;;  %221 = vst [vmem:[%s8640_s30 + $0x2a8] sm:$0xf] %v220_v21  ;;  %v224_v23 = vld [vmem:[%s8644_s12 + $0x29c] sm:$0xf] }
  0x3c   : > { %223 = vst [vmem:[%s8640_s30 + $0x2b0] sm:$0xf] %v222_v22  ;;  %v226_v24 = vld [vmem:[%s8644_s12 + $0x2c0] sm:$0xf]  ;;  %v228_v25 = vld [vmem:[%s8644_s12 + $0x2c4] sm:$0xf] }
  0x3d   : > { %225 = vst [vmem:[%s8640_s30 + $0x2b8] sm:$0xf] %v224_v23  ;;  %227 = vst [vmem:[%s8640_s30 + $0x2c0] sm:$0xf] %v226_v24  ;;  %v230_v26 = vld [vmem:[%s8644_s12 + $0x2c8] sm:$0xf] }
  0x3e   : > { %229 = vst [vmem:[%s8640_s30 + $0x2c8] sm:$0xf] %v228_v25  ;;  %v232_v27 = vld [vmem:[%s8644_s12 + $0x2cc] sm:$0xf]  ;;  %v234_v28 = vld [vmem:[%s8644_s12 + $0x2d0] sm:$0xf] }
  0x3f   : > { %231 = vst [vmem:[%s8640_s30 + $0x2d0] sm:$0xf] %v230_v26  ;;  %233 = vst [vmem:[%s8640_s30 + $0x2d8] sm:$0xf] %v232_v27  ;;  %v236_v29 = vld [vmem:[%s8644_s12 + $0x2d4] sm:$0xf] }
  0x40   : > { %235 = vst [vmem:[%s8640_s30 + $0x2e0] sm:$0xf] %v234_v28  ;;  %v238_v30 = vld [vmem:[%s8644_s12 + $0x2d8] sm:$0xf]  ;;  %v240_v31 = vld [vmem:[%s8644_s12 + $0x2dc] sm:$0xf] }
  0x41   : > { %237 = vst [vmem:[%s8640_s30 + $0x2e8] sm:$0xf] %v236_v29  ;;  %239 = vst [vmem:[%s8640_s30 + $0x2f0] sm:$0xf] %v238_v30  ;;  %v242_v32 = vld [vmem:[%s8644_s12 + $0x300] sm:$0xf] }
  0x42   : > { %241 = vst [vmem:[%s8640_s30 + $0x2f8] sm:$0xf] %v240_v31  ;;  %v244_v33 = vld [vmem:[%s8644_s12 + $0x304] sm:$0xf]  ;;  %v246_v34 = vld [vmem:[%s8644_s12 + $0x308] sm:$0xf] }
  0x43   : > { %243 = vst [vmem:[%s8640_s30 + $0x300] sm:$0xf] %v242_v32  ;;  %245 = vst [vmem:[%s8640_s30 + $0x308] sm:$0xf] %v244_v33  ;;  %v248_v35 = vld [vmem:[%s8644_s12 + $0x30c] sm:$0xf] }
  0x44   : > { %247 = vst [vmem:[%s8640_s30 + $0x310] sm:$0xf] %v246_v34  ;;  %v250_v36 = vld [vmem:[%s8644_s12 + $0x310] sm:$0xf]  ;;  %v252_v37 = vld [vmem:[%s8644_s12 + $0x314] sm:$0xf] }
  0x45   : > { %249 = vst [vmem:[%s8640_s30 + $0x318] sm:$0xf] %v248_v35  ;;  %251 = vst [vmem:[%s8640_s30 + $0x320] sm:$0xf] %v250_v36  ;;  %v254_v38 = vld [vmem:[%s8644_s12 + $0x318] sm:$0xf] }
  0x46   : > { %253 = vst [vmem:[%s8640_s30 + $0x328] sm:$0xf] %v252_v37  ;;  %v256_v39 = vld [vmem:[%s8644_s12 + $0x31c] sm:$0xf]  ;;  %v258_v40 = vld [vmem:[%s8644_s12 + $0x340] sm:$0xf] }
  0x47   : > { %255 = vst [vmem:[%s8640_s30 + $0x330] sm:$0xf] %v254_v38  ;;  %257 = vst [vmem:[%s8640_s30 + $0x338] sm:$0xf] %v256_v39  ;;  %v260_v41 = vld [vmem:[%s8644_s12 + $0x344] sm:$0xf] }
  0x48   : > { %259 = vst [vmem:[%s8640_s30 + $0x340] sm:$0xf] %v258_v40  ;;  %v262_v42 = vld [vmem:[%s8644_s12 + $0x348] sm:$0xf]  ;;  %v264_v43 = vld [vmem:[%s8644_s12 + $0x34c] sm:$0xf] }
  0x49   : > { %261 = vst [vmem:[%s8640_s30 + $0x348] sm:$0xf] %v260_v41  ;;  %263 = vst [vmem:[%s8640_s30 + $0x350] sm:$0xf] %v262_v42  ;;  %v266_v44 = vld [vmem:[%s8644_s12 + $0x350] sm:$0xf] }
  0x4a   : > { %265 = vst [vmem:[%s8640_s30 + $0x358] sm:$0xf] %v264_v43  ;;  %v268_v45 = vld [vmem:[%s8644_s12 + $0x354] sm:$0xf]  ;;  %v270_v46 = vld [vmem:[%s8644_s12 + $0x358] sm:$0xf] }
  0x4b   : > { %267 = vst [vmem:[%s8640_s30 + $0x360] sm:$0xf] %v266_v44  ;;  %269 = vst [vmem:[%s8640_s30 + $0x368] sm:$0xf] %v268_v45  ;;  %v272_v47 = vld [vmem:[%s8644_s12 + $0x35c] sm:$0xf] }
  0x4c   : > { %271 = vst [vmem:[%s8640_s30 + $0x370] sm:$0xf] %v270_v46  ;;  %v274_v48 = vld [vmem:[%s8644_s12 + $0x380] sm:$0xf]  ;;  %v276_v49 = vld [vmem:[%s8644_s12 + $0x384] sm:$0xf] }
  0x4d   : > { %273 = vst [vmem:[%s8640_s30 + $0x378] sm:$0xf] %v272_v47  ;;  %275 = vst [vmem:[%s8640_s30 + $0x380] sm:$0xf] %v274_v48  ;;  %v278_v50 = vld [vmem:[%s8644_s12 + $0x388] sm:$0xf] }
  0x4e   : > { %277 = vst [vmem:[%s8640_s30 + $0x388] sm:$0xf] %v276_v49  ;;  %v280_v51 = vld [vmem:[%s8644_s12 + $0x38c] sm:$0xf]  ;;  %v282_v52 = vld [vmem:[%s8644_s12 + $0x390] sm:$0xf] }
  0x4f   : > { %279 = vst [vmem:[%s8640_s30 + $0x390] sm:$0xf] %v278_v50  ;;  %281 = vst [vmem:[%s8640_s30 + $0x398] sm:$0xf] %v280_v51  ;;  %v284_v53 = vld [vmem:[%s8644_s12 + $0x394] sm:$0xf] }
  0x50   : > { %283 = vst [vmem:[%s8640_s30 + $0x3a0] sm:$0xf] %v282_v52  ;;  %v286_v54 = vld [vmem:[%s8644_s12 + $0x398] sm:$0xf]  ;;  %v288_v55 = vld [vmem:[%s8644_s12 + $0x39c] sm:$0xf] }
  0x51   : > { %285 = vst [vmem:[%s8640_s30 + $0x3a8] sm:$0xf] %v284_v53  ;;  %287 = vst [vmem:[%s8640_s30 + $0x3b0] sm:$0xf] %v286_v54  ;;  %v290_v56 = vld [vmem:[%s8644_s12 + $0x3c0] sm:$0xf] }
  0x52   : > { %289 = vst [vmem:[%s8640_s30 + $0x3b8] sm:$0xf] %v288_v55  ;;  %v292_v57 = vld [vmem:[%s8644_s12 + $0x3c4] sm:$0xf]  ;;  %v294_v58 = vld [vmem:[%s8644_s12 + $0x3c8] sm:$0xf] }
  0x53   : > { %291 = vst [vmem:[%s8640_s30 + $0x3c0] sm:$0xf] %v290_v56  ;;  %293 = vst [vmem:[%s8640_s30 + $0x3c8] sm:$0xf] %v292_v57  ;;  %v296_v59 = vld [vmem:[%s8644_s12 + $0x3cc] sm:$0xf] }
  0x54   : > { %295 = vst [vmem:[%s8640_s30 + $0x3d0] sm:$0xf] %v294_v58  ;;  %v298_v60 = vld [vmem:[%s8644_s12 + $0x3d0] sm:$0xf]  ;;  %v300_v61 = vld [vmem:[%s8644_s12 + $0x3d4] sm:$0xf] }
  0x55   : > { %297 = vst [vmem:[%s8640_s30 + $0x3d8] sm:$0xf] %v296_v59  ;;  %299 = vst [vmem:[%s8640_s30 + $0x3e0] sm:$0xf] %v298_v60  ;;  %v302_v62 = vld [vmem:[%s8644_s12 + $0x3d8] sm:$0xf] }
  0x56   : > { %301 = vst [vmem:[%s8640_s30 + $0x3e8] sm:$0xf] %v300_v61  ;;  %v304_v63 = vld [vmem:[%s8644_s12 + $0x3dc] sm:$0xf]  ;;  %v306_v0 = vld [vmem:[%s8644_s12 + $0x400] sm:$0xf] }
  0x57   : > { %303 = vst [vmem:[%s8640_s30 + $0x3f0] sm:$0xf] %v302_v62  ;;  %305 = vst [vmem:[%s8640_s30 + $0x3f8] sm:$0xf] %v304_v63  ;;  %v308_v1 = vld [vmem:[%s8644_s12 + $0x404] sm:$0xf] }
  0x58   : > { %307 = vst [vmem:[%s8640_s30 + $0x400] sm:$0xf] %v306_v0  ;;  %v310_v2 = vld [vmem:[%s8644_s12 + $0x408] sm:$0xf]  ;;  %v312_v3 = vld [vmem:[%s8644_s12 + $0x40c] sm:$0xf] }
  0x59   : > { %309 = vst [vmem:[%s8640_s30 + $0x408] sm:$0xf] %v308_v1  ;;  %311 = vst [vmem:[%s8640_s30 + $0x410] sm:$0xf] %v310_v2  ;;  %v314_v4 = vld [vmem:[%s8644_s12 + $0x410] sm:$0xf] }
  0x5a   : > { %313 = vst [vmem:[%s8640_s30 + $0x418] sm:$0xf] %v312_v3  ;;  %v316_v5 = vld [vmem:[%s8644_s12 + $0x414] sm:$0xf]  ;;  %v318_v6 = vld [vmem:[%s8644_s12 + $0x418] sm:$0xf] }
  0x5b   : > { %315 = vst [vmem:[%s8640_s30 + $0x420] sm:$0xf] %v314_v4  ;;  %317 = vst [vmem:[%s8640_s30 + $0x428] sm:$0xf] %v316_v5  ;;  %v320_v7 = vld [vmem:[%s8644_s12 + $0x41c] sm:$0xf] }
  0x5c   : > { %319 = vst [vmem:[%s8640_s30 + $0x430] sm:$0xf] %v318_v6  ;;  %v322_v8 = vld [vmem:[%s8644_s12 + $0x440] sm:$0xf]  ;;  %v324_v9 = vld [vmem:[%s8644_s12 + $0x444] sm:$0xf] }
  0x5d   : > { %321 = vst [vmem:[%s8640_s30 + $0x438] sm:$0xf] %v320_v7  ;;  %323 = vst [vmem:[%s8640_s30 + $0x440] sm:$0xf] %v322_v8  ;;  %v326_v10 = vld [vmem:[%s8644_s12 + $0x448] sm:$0xf] }
  0x5e   : > { %325 = vst [vmem:[%s8640_s30 + $0x448] sm:$0xf] %v324_v9  ;;  %v328_v11 = vld [vmem:[%s8644_s12 + $0x44c] sm:$0xf]  ;;  %v330_v12 = vld [vmem:[%s8644_s12 + $0x450] sm:$0xf] }
  0x5f   : > { %327 = vst [vmem:[%s8640_s30 + $0x450] sm:$0xf] %v326_v10  ;;  %329 = vst [vmem:[%s8640_s30 + $0x458] sm:$0xf] %v328_v11  ;;  %v332_v13 = vld [vmem:[%s8644_s12 + $0x454] sm:$0xf] }
  0x60   : > { %331 = vst [vmem:[%s8640_s30 + $0x460] sm:$0xf] %v330_v12  ;;  %v334_v14 = vld [vmem:[%s8644_s12 + $0x458] sm:$0xf]  ;;  %v336_v15 = vld [vmem:[%s8644_s12 + $0x45c] sm:$0xf] }
  0x61   : > { %333 = vst [vmem:[%s8640_s30 + $0x468] sm:$0xf] %v332_v13  ;;  %335 = vst [vmem:[%s8640_s30 + $0x470] sm:$0xf] %v334_v14  ;;  %v338_v16 = vld [vmem:[%s8644_s12 + $0x480] sm:$0xf] }
  0x62   : > { %337 = vst [vmem:[%s8640_s30 + $0x478] sm:$0xf] %v336_v15  ;;  %v340_v17 = vld [vmem:[%s8644_s12 + $0x484] sm:$0xf]  ;;  %v342_v18 = vld [vmem:[%s8644_s12 + $0x488] sm:$0xf] }
  0x63   : > { %339 = vst [vmem:[%s8640_s30 + $0x480] sm:$0xf] %v338_v16  ;;  %341 = vst [vmem:[%s8640_s30 + $0x488] sm:$0xf] %v340_v17  ;;  %v344_v19 = vld [vmem:[%s8644_s12 + $0x48c] sm:$0xf] }
  0x64   : > { %343 = vst [vmem:[%s8640_s30 + $0x490] sm:$0xf] %v342_v18  ;;  %v346_v20 = vld [vmem:[%s8644_s12 + $0x490] sm:$0xf]  ;;  %v348_v21 = vld [vmem:[%s8644_s12 + $0x494] sm:$0xf] }
  0x65   : > { %345 = vst [vmem:[%s8640_s30 + $0x498] sm:$0xf] %v344_v19  ;;  %347 = vst [vmem:[%s8640_s30 + $0x4a0] sm:$0xf] %v346_v20  ;;  %v350_v22 = vld [vmem:[%s8644_s12 + $0x498] sm:$0xf] }
  0x66   : > { %349 = vst [vmem:[%s8640_s30 + $0x4a8] sm:$0xf] %v348_v21  ;;  %v352_v23 = vld [vmem:[%s8644_s12 + $0x49c] sm:$0xf]  ;;  %v354_v24 = vld [vmem:[%s8644_s12 + $0x4c0] sm:$0xf] }
  0x67   : > { %351 = vst [vmem:[%s8640_s30 + $0x4b0] sm:$0xf] %v350_v22  ;;  %353 = vst [vmem:[%s8640_s30 + $0x4b8] sm:$0xf] %v352_v23  ;;  %v356_v25 = vld [vmem:[%s8644_s12 + $0x4c4] sm:$0xf] }
  0x68   : > { %355 = vst [vmem:[%s8640_s30 + $0x4c0] sm:$0xf] %v354_v24  ;;  %v358_v26 = vld [vmem:[%s8644_s12 + $0x4c8] sm:$0xf]  ;;  %v360_v27 = vld [vmem:[%s8644_s12 + $0x4cc] sm:$0xf] }
  0x69   : > { %357 = vst [vmem:[%s8640_s30 + $0x4c8] sm:$0xf] %v356_v25  ;;  %359 = vst [vmem:[%s8640_s30 + $0x4d0] sm:$0xf] %v358_v26  ;;  %v362_v28 = vld [vmem:[%s8644_s12 + $0x4d0] sm:$0xf] }
  0x6a   : > { %361 = vst [vmem:[%s8640_s30 + $0x4d8] sm:$0xf] %v360_v27  ;;  %v364_v29 = vld [vmem:[%s8644_s12 + $0x4d4] sm:$0xf]  ;;  %v366_v30 = vld [vmem:[%s8644_s12 + $0x4d8] sm:$0xf] }
  0x6b   : > { %363 = vst [vmem:[%s8640_s30 + $0x4e0] sm:$0xf] %v362_v28  ;;  %365 = vst [vmem:[%s8640_s30 + $0x4e8] sm:$0xf] %v364_v29  ;;  %v368_v31 = vld [vmem:[%s8644_s12 + $0x4dc] sm:$0xf] }
  0x6c   : > { %367 = vst [vmem:[%s8640_s30 + $0x4f0] sm:$0xf] %v366_v30  ;;  %v370_v32 = vld [vmem:[%s8644_s12 + $0x500] sm:$0xf]  ;;  %v372_v33 = vld [vmem:[%s8644_s12 + $0x504] sm:$0xf] }
  0x6d   : > { %369 = vst [vmem:[%s8640_s30 + $0x4f8] sm:$0xf] %v368_v31  ;;  %371 = vst [vmem:[%s8640_s30 + $0x500] sm:$0xf] %v370_v32  ;;  %v374_v34 = vld [vmem:[%s8644_s12 + $0x508] sm:$0xf] }
  0x6e   : > { %373 = vst [vmem:[%s8640_s30 + $0x508] sm:$0xf] %v372_v33  ;;  %v376_v35 = vld [vmem:[%s8644_s12 + $0x50c] sm:$0xf]  ;;  %v378_v36 = vld [vmem:[%s8644_s12 + $0x510] sm:$0xf] }
  0x6f   : > { %375 = vst [vmem:[%s8640_s30 + $0x510] sm:$0xf] %v374_v34  ;;  %377 = vst [vmem:[%s8640_s30 + $0x518] sm:$0xf] %v376_v35  ;;  %v380_v37 = vld [vmem:[%s8644_s12 + $0x514] sm:$0xf] }
  0x70   : > { %379 = vst [vmem:[%s8640_s30 + $0x520] sm:$0xf] %v378_v36  ;;  %v382_v38 = vld [vmem:[%s8644_s12 + $0x518] sm:$0xf]  ;;  %v384_v39 = vld [vmem:[%s8644_s12 + $0x51c] sm:$0xf] }
  0x71   : > { %381 = vst [vmem:[%s8640_s30 + $0x528] sm:$0xf] %v380_v37  ;;  %383 = vst [vmem:[%s8640_s30 + $0x530] sm:$0xf] %v382_v38  ;;  %v386_v40 = vld [vmem:[%s8644_s12 + $0x540] sm:$0xf] }
  0x72   : > { %385 = vst [vmem:[%s8640_s30 + $0x538] sm:$0xf] %v384_v39  ;;  %v388_v41 = vld [vmem:[%s8644_s12 + $0x544] sm:$0xf]  ;;  %v390_v42 = vld [vmem:[%s8644_s12 + $0x548] sm:$0xf] }
  0x73   : > { %387 = vst [vmem:[%s8640_s30 + $0x540] sm:$0xf] %v386_v40  ;;  %389 = vst [vmem:[%s8640_s30 + $0x548] sm:$0xf] %v388_v41  ;;  %v392_v43 = vld [vmem:[%s8644_s12 + $0x54c] sm:$0xf] }
  0x74   : > { %391 = vst [vmem:[%s8640_s30 + $0x550] sm:$0xf] %v390_v42  ;;  %v394_v44 = vld [vmem:[%s8644_s12 + $0x550] sm:$0xf]  ;;  %v396_v45 = vld [vmem:[%s8644_s12 + $0x554] sm:$0xf] }
  0x75   : > { %393 = vst [vmem:[%s8640_s30 + $0x558] sm:$0xf] %v392_v43  ;;  %395 = vst [vmem:[%s8640_s30 + $0x560] sm:$0xf] %v394_v44  ;;  %v398_v46 = vld [vmem:[%s8644_s12 + $0x558] sm:$0xf] }
  0x76   : > { %397 = vst [vmem:[%s8640_s30 + $0x568] sm:$0xf] %v396_v45  ;;  %v400_v47 = vld [vmem:[%s8644_s12 + $0x55c] sm:$0xf]  ;;  %v402_v48 = vld [vmem:[%s8644_s12 + $0x580] sm:$0xf] }
  0x77   : > { %399 = vst [vmem:[%s8640_s30 + $0x570] sm:$0xf] %v398_v46  ;;  %401 = vst [vmem:[%s8640_s30 + $0x578] sm:$0xf] %v400_v47  ;;  %v404_v49 = vld [vmem:[%s8644_s12 + $0x584] sm:$0xf] }
  0x78   : > { %403 = vst [vmem:[%s8640_s30 + $0x580] sm:$0xf] %v402_v48  ;;  %v406_v50 = vld [vmem:[%s8644_s12 + $0x588] sm:$0xf]  ;;  %v408_v51 = vld [vmem:[%s8644_s12 + $0x58c] sm:$0xf] }
  0x79   : > { %405 = vst [vmem:[%s8640_s30 + $0x588] sm:$0xf] %v404_v49  ;;  %407 = vst [vmem:[%s8640_s30 + $0x590] sm:$0xf] %v406_v50  ;;  %v410_v52 = vld [vmem:[%s8644_s12 + $0x590] sm:$0xf] }
  0x7a   : > { %409 = vst [vmem:[%s8640_s30 + $0x598] sm:$0xf] %v408_v51  ;;  %v412_v53 = vld [vmem:[%s8644_s12 + $0x594] sm:$0xf]  ;;  %v414_v54 = vld [vmem:[%s8644_s12 + $0x598] sm:$0xf] }
  0x7b   : > { %411 = vst [vmem:[%s8640_s30 + $0x5a0] sm:$0xf] %v410_v52  ;;  %413 = vst [vmem:[%s8640_s30 + $0x5a8] sm:$0xf] %v412_v53  ;;  %v416_v55 = vld [vmem:[%s8644_s12 + $0x59c] sm:$0xf] }
  0x7c   : > { %415 = vst [vmem:[%s8640_s30 + $0x5b0] sm:$0xf] %v414_v54  ;;  %v418_v56 = vld [vmem:[%s8644_s12 + $0x5c0] sm:$0xf]  ;;  %v420_v57 = vld [vmem:[%s8644_s12 + $0x5c4] sm:$0xf] }
  0x7d   : > { %417 = vst [vmem:[%s8640_s30 + $0x5b8] sm:$0xf] %v416_v55  ;;  %419 = vst [vmem:[%s8640_s30 + $0x5c0] sm:$0xf] %v418_v56  ;;  %v422_v58 = vld [vmem:[%s8644_s12 + $0x5c8] sm:$0xf] }
  0x7e   : > { %421 = vst [vmem:[%s8640_s30 + $0x5c8] sm:$0xf] %v420_v57  ;;  %v424_v59 = vld [vmem:[%s8644_s12 + $0x5cc] sm:$0xf]  ;;  %v426_v60 = vld [vmem:[%s8644_s12 + $0x5d0] sm:$0xf] }
  0x7f   : > { %423 = vst [vmem:[%s8640_s30 + $0x5d0] sm:$0xf] %v422_v58  ;;  %425 = vst [vmem:[%s8640_s30 + $0x5d8] sm:$0xf] %v424_v59  ;;  %v428_v61 = vld [vmem:[%s8644_s12 + $0x5d4] sm:$0xf] }
  0x80   : > { %427 = vst [vmem:[%s8640_s30 + $0x5e0] sm:$0xf] %v426_v60  ;;  %v430_v62 = vld [vmem:[%s8644_s12 + $0x5d8] sm:$0xf]  ;;  %v432_v63 = vld [vmem:[%s8644_s12 + $0x5dc] sm:$0xf] }
  0x81   : > { %429 = vst [vmem:[%s8640_s30 + $0x5e8] sm:$0xf] %v428_v61  ;;  %431 = vst [vmem:[%s8640_s30 + $0x5f0] sm:$0xf] %v430_v62  ;;  %v434_v0 = vld [vmem:[%s8644_s12 + $0x600] sm:$0xf] }
  0x82   : > { %433 = vst [vmem:[%s8640_s30 + $0x5f8] sm:$0xf] %v432_v63  ;;  %v436_v1 = vld [vmem:[%s8644_s12 + $0x604] sm:$0xf]  ;;  %v438_v2 = vld [vmem:[%s8644_s12 + $0x608] sm:$0xf] }
  0x83   : > { %435 = vst [vmem:[%s8640_s30 + $0x600] sm:$0xf] %v434_v0  ;;  %437 = vst [vmem:[%s8640_s30 + $0x608] sm:$0xf] %v436_v1  ;;  %v440_v3 = vld [vmem:[%s8644_s12 + $0x60c] sm:$0xf] }
  0x84   : > { %439 = vst [vmem:[%s8640_s30 + $0x610] sm:$0xf] %v438_v2  ;;  %v442_v4 = vld [vmem:[%s8644_s12 + $0x610] sm:$0xf]  ;;  %v444_v5 = vld [vmem:[%s8644_s12 + $0x614] sm:$0xf] }
  0x85   : > { %441 = vst [vmem:[%s8640_s30 + $0x618] sm:$0xf] %v440_v3  ;;  %443 = vst [vmem:[%s8640_s30 + $0x620] sm:$0xf] %v442_v4  ;;  %v446_v6 = vld [vmem:[%s8644_s12 + $0x618] sm:$0xf] }
  0x86   : > { %445 = vst [vmem:[%s8640_s30 + $0x628] sm:$0xf] %v444_v5  ;;  %v448_v7 = vld [vmem:[%s8644_s12 + $0x61c] sm:$0xf]  ;;  %v450_v8 = vld [vmem:[%s8644_s12 + $0x640] sm:$0xf] }
  0x87   : > { %447 = vst [vmem:[%s8640_s30 + $0x630] sm:$0xf] %v446_v6  ;;  %449 = vst [vmem:[%s8640_s30 + $0x638] sm:$0xf] %v448_v7  ;;  %v452_v9 = vld [vmem:[%s8644_s12 + $0x644] sm:$0xf] }
  0x88   : > { %451 = vst [vmem:[%s8640_s30 + $0x640] sm:$0xf] %v450_v8  ;;  %v454_v10 = vld [vmem:[%s8644_s12 + $0x648] sm:$0xf]  ;;  %v456_v11 = vld [vmem:[%s8644_s12 + $0x64c] sm:$0xf] }
  0x89   : > { %453 = vst [vmem:[%s8640_s30 + $0x648] sm:$0xf] %v452_v9  ;;  %455 = vst [vmem:[%s8640_s30 + $0x650] sm:$0xf] %v454_v10  ;;  %v458_v12 = vld [vmem:[%s8644_s12 + $0x650] sm:$0xf] }
  0x8a   : > { %457 = vst [vmem:[%s8640_s30 + $0x658] sm:$0xf] %v456_v11  ;;  %v460_v13 = vld [vmem:[%s8644_s12 + $0x654] sm:$0xf]  ;;  %v462_v14 = vld [vmem:[%s8644_s12 + $0x658] sm:$0xf] }
  0x8b   : > { %459 = vst [vmem:[%s8640_s30 + $0x660] sm:$0xf] %v458_v12  ;;  %461 = vst [vmem:[%s8640_s30 + $0x668] sm:$0xf] %v460_v13  ;;  %v464_v15 = vld [vmem:[%s8644_s12 + $0x65c] sm:$0xf] }
  0x8c   : > { %463 = vst [vmem:[%s8640_s30 + $0x670] sm:$0xf] %v462_v14  ;;  %v466_v16 = vld [vmem:[%s8644_s12 + $0x680] sm:$0xf]  ;;  %v468_v17 = vld [vmem:[%s8644_s12 + $0x684] sm:$0xf] }
  0x8d   : > { %465 = vst [vmem:[%s8640_s30 + $0x678] sm:$0xf] %v464_v15  ;;  %467 = vst [vmem:[%s8640_s30 + $0x680] sm:$0xf] %v466_v16  ;;  %v470_v18 = vld [vmem:[%s8644_s12 + $0x688] sm:$0xf] }
  0x8e   : > { %469 = vst [vmem:[%s8640_s30 + $0x688] sm:$0xf] %v468_v17  ;;  %v472_v19 = vld [vmem:[%s8644_s12 + $0x68c] sm:$0xf]  ;;  %v474_v20 = vld [vmem:[%s8644_s12 + $0x690] sm:$0xf] }
  0x8f   : > { %471 = vst [vmem:[%s8640_s30 + $0x690] sm:$0xf] %v470_v18  ;;  %473 = vst [vmem:[%s8640_s30 + $0x698] sm:$0xf] %v472_v19  ;;  %v476_v21 = vld [vmem:[%s8644_s12 + $0x694] sm:$0xf] }
  0x90   : > { %475 = vst [vmem:[%s8640_s30 + $0x6a0] sm:$0xf] %v474_v20  ;;  %v478_v22 = vld [vmem:[%s8644_s12 + $0x698] sm:$0xf]  ;;  %v480_v23 = vld [vmem:[%s8644_s12 + $0x69c] sm:$0xf] }
  0x91   : > { %477 = vst [vmem:[%s8640_s30 + $0x6a8] sm:$0xf] %v476_v21  ;;  %479 = vst [vmem:[%s8640_s30 + $0x6b0] sm:$0xf] %v478_v22  ;;  %v482_v24 = vld [vmem:[%s8644_s12 + $0x6c0] sm:$0xf] }
  0x92   : > { %481 = vst [vmem:[%s8640_s30 + $0x6b8] sm:$0xf] %v480_v23  ;;  %v484_v25 = vld [vmem:[%s8644_s12 + $0x6c4] sm:$0xf]  ;;  %v486_v26 = vld [vmem:[%s8644_s12 + $0x6c8] sm:$0xf] }
  0x93   : > { %483 = vst [vmem:[%s8640_s30 + $0x6c0] sm:$0xf] %v482_v24  ;;  %485 = vst [vmem:[%s8640_s30 + $0x6c8] sm:$0xf] %v484_v25  ;;  %v488_v27 = vld [vmem:[%s8644_s12 + $0x6cc] sm:$0xf] }
  0x94   : > { %487 = vst [vmem:[%s8640_s30 + $0x6d0] sm:$0xf] %v486_v26  ;;  %v490_v28 = vld [vmem:[%s8644_s12 + $0x6d0] sm:$0xf]  ;;  %v492_v29 = vld [vmem:[%s8644_s12 + $0x6d4] sm:$0xf] }
  0x95   : > { %489 = vst [vmem:[%s8640_s30 + $0x6d8] sm:$0xf] %v488_v27  ;;  %491 = vst [vmem:[%s8640_s30 + $0x6e0] sm:$0xf] %v490_v28  ;;  %v494_v30 = vld [vmem:[%s8644_s12 + $0x6d8] sm:$0xf] }
  0x96   : > { %493 = vst [vmem:[%s8640_s30 + $0x6e8] sm:$0xf] %v492_v29  ;;  %v496_v31 = vld [vmem:[%s8644_s12 + $0x6dc] sm:$0xf]  ;;  %v498_v32 = vld [vmem:[%s8644_s12 + $0x700] sm:$0xf] }
  0x97   : > { %495 = vst [vmem:[%s8640_s30 + $0x6f0] sm:$0xf] %v494_v30  ;;  %497 = vst [vmem:[%s8640_s30 + $0x6f8] sm:$0xf] %v496_v31  ;;  %v500_v33 = vld [vmem:[%s8644_s12 + $0x704] sm:$0xf] }
  0x98   : > { %499 = vst [vmem:[%s8640_s30 + $0x700] sm:$0xf] %v498_v32  ;;  %v502_v34 = vld [vmem:[%s8644_s12 + $0x708] sm:$0xf]  ;;  %v504_v35 = vld [vmem:[%s8644_s12 + $0x70c] sm:$0xf] }
  0x99   : > { %501 = vst [vmem:[%s8640_s30 + $0x708] sm:$0xf] %v500_v33  ;;  %503 = vst [vmem:[%s8640_s30 + $0x710] sm:$0xf] %v502_v34  ;;  %v506_v36 = vld [vmem:[%s8644_s12 + $0x710] sm:$0xf] }
  0x9a   : > { %505 = vst [vmem:[%s8640_s30 + $0x718] sm:$0xf] %v504_v35  ;;  %v508_v37 = vld [vmem:[%s8644_s12 + $0x714] sm:$0xf]  ;;  %v510_v38 = vld [vmem:[%s8644_s12 + $0x718] sm:$0xf] }
  0x9b   : > { %507 = vst [vmem:[%s8640_s30 + $0x720] sm:$0xf] %v506_v36  ;;  %509 = vst [vmem:[%s8640_s30 + $0x728] sm:$0xf] %v508_v37  ;;  %v512_v39 = vld [vmem:[%s8644_s12 + $0x71c] sm:$0xf] }
  0x9c   : > { %511 = vst [vmem:[%s8640_s30 + $0x730] sm:$0xf] %v510_v38  ;;  %v514_v40 = vld [vmem:[%s8644_s12 + $0x740] sm:$0xf]  ;;  %v516_v41 = vld [vmem:[%s8644_s12 + $0x744] sm:$0xf] }
  0x9d   : > { %513 = vst [vmem:[%s8640_s30 + $0x738] sm:$0xf] %v512_v39  ;;  %515 = vst [vmem:[%s8640_s30 + $0x740] sm:$0xf] %v514_v40  ;;  %v518_v42 = vld [vmem:[%s8644_s12 + $0x748] sm:$0xf] }
  0x9e   : > { %517 = vst [vmem:[%s8640_s30 + $0x748] sm:$0xf] %v516_v41  ;;  %v520_v43 = vld [vmem:[%s8644_s12 + $0x74c] sm:$0xf]  ;;  %v522_v44 = vld [vmem:[%s8644_s12 + $0x750] sm:$0xf] }
  0x9f   : > { %519 = vst [vmem:[%s8640_s30 + $0x750] sm:$0xf] %v518_v42  ;;  %521 = vst [vmem:[%s8640_s30 + $0x758] sm:$0xf] %v520_v43  ;;  %v524_v45 = vld [vmem:[%s8644_s12 + $0x754] sm:$0xf] }
  0xa0   : > { %523 = vst [vmem:[%s8640_s30 + $0x760] sm:$0xf] %v522_v44  ;;  %v526_v46 = vld [vmem:[%s8644_s12 + $0x758] sm:$0xf]  ;;  %v528_v47 = vld [vmem:[%s8644_s12 + $0x75c] sm:$0xf] }
  0xa1   : > { %525 = vst [vmem:[%s8640_s30 + $0x768] sm:$0xf] %v524_v45  ;;  %527 = vst [vmem:[%s8640_s30 + $0x770] sm:$0xf] %v526_v46  ;;  %v530_v48 = vld [vmem:[%s8644_s12 + $0x780] sm:$0xf] }
  0xa2   : > { %529 = vst [vmem:[%s8640_s30 + $0x778] sm:$0xf] %v528_v47  ;;  %v532_v49 = vld [vmem:[%s8644_s12 + $0x784] sm:$0xf]  ;;  %v534_v50 = vld [vmem:[%s8644_s12 + $0x788] sm:$0xf] }
  0xa3   : > { %531 = vst [vmem:[%s8640_s30 + $0x780] sm:$0xf] %v530_v48  ;;  %533 = vst [vmem:[%s8640_s30 + $0x788] sm:$0xf] %v532_v49  ;;  %v536_v51 = vld [vmem:[%s8644_s12 + $0x78c] sm:$0xf] }
  0xa4   : > { %535 = vst [vmem:[%s8640_s30 + $0x790] sm:$0xf] %v534_v50  ;;  %v538_v52 = vld [vmem:[%s8644_s12 + $0x790] sm:$0xf]  ;;  %v540_v53 = vld [vmem:[%s8644_s12 + $0x794] sm:$0xf] }
  0xa5   : > { %537 = vst [vmem:[%s8640_s30 + $0x798] sm:$0xf] %v536_v51  ;;  %539 = vst [vmem:[%s8640_s30 + $0x7a0] sm:$0xf] %v538_v52  ;;  %v542_v54 = vld [vmem:[%s8644_s12 + $0x798] sm:$0xf] }
  0xa6   : > { %541 = vst [vmem:[%s8640_s30 + $0x7a8] sm:$0xf] %v540_v53  ;;  %v544_v55 = vld [vmem:[%s8644_s12 + $0x79c] sm:$0xf]  ;;  %v546_v56 = vld [vmem:[%s8644_s12 + $0x7c0] sm:$0xf] }
  0xa7   : > { %543 = vst [vmem:[%s8640_s30 + $0x7b0] sm:$0xf] %v542_v54  ;;  %545 = vst [vmem:[%s8640_s30 + $0x7b8] sm:$0xf] %v544_v55  ;;  %v548_v57 = vld [vmem:[%s8644_s12 + $0x7c4] sm:$0xf] }
  0xa8   : > { %547 = vst [vmem:[%s8640_s30 + $0x7c0] sm:$0xf] %v546_v56  ;;  %v550_v58 = vld [vmem:[%s8644_s12 + $0x7c8] sm:$0xf]  ;;  %v552_v59 = vld [vmem:[%s8644_s12 + $0x7cc] sm:$0xf] }
  0xa9   : > { %549 = vst [vmem:[%s8640_s30 + $0x7c8] sm:$0xf] %v548_v57  ;;  %551 = vst [vmem:[%s8640_s30 + $0x7d0] sm:$0xf] %v550_v58  ;;  %v554_v60 = vld [vmem:[%s8644_s12 + $0x7d0] sm:$0xf] }
  0xaa   : > { %553 = vst [vmem:[%s8640_s30 + $0x7d8] sm:$0xf] %v552_v59  ;;  %v556_v61 = vld [vmem:[%s8644_s12 + $0x7d4] sm:$0xf]  ;;  %v558_v62 = vld [vmem:[%s8644_s12 + $0x7d8] sm:$0xf] }
  0xab   : > { %555 = vst [vmem:[%s8640_s30 + $0x7e0] sm:$0xf] %v554_v60  ;;  %557 = vst [vmem:[%s8640_s30 + $0x7e8] sm:$0xf] %v556_v61  ;;  %v560_v63 = vld [vmem:[%s8644_s12 + $0x7dc] sm:$0xf] }
  0xac   : > { %559 = vst [vmem:[%s8640_s30 + $0x7f0] sm:$0xf] %v558_v62  ;;  %v562_v0 = vld [vmem:[%s8644_s12 + $0x800] sm:$0xf]  ;;  %v564_v1 = vld [vmem:[%s8644_s12 + $0x804] sm:$0xf] }
  0xad   : > { %561 = vst [vmem:[%s8640_s30 + $0x7f8] sm:$0xf] %v560_v63  ;;  %563 = vst [vmem:[%s8640_s30 + $0x800] sm:$0xf] %v562_v0  ;;  %v566_v2 = vld [vmem:[%s8644_s12 + $0x808] sm:$0xf] }
  0xae   : > { %565 = vst [vmem:[%s8640_s30 + $0x808] sm:$0xf] %v564_v1  ;;  %v568_v3 = vld [vmem:[%s8644_s12 + $0x80c] sm:$0xf]  ;;  %v570_v4 = vld [vmem:[%s8644_s12 + $0x810] sm:$0xf] }
  0xaf   : > { %567 = vst [vmem:[%s8640_s30 + $0x810] sm:$0xf] %v566_v2  ;;  %569 = vst [vmem:[%s8640_s30 + $0x818] sm:$0xf] %v568_v3  ;;  %v572_v5 = vld [vmem:[%s8644_s12 + $0x814] sm:$0xf] }
  0xb0   : > { %571 = vst [vmem:[%s8640_s30 + $0x820] sm:$0xf] %v570_v4  ;;  %v574_v6 = vld [vmem:[%s8644_s12 + $0x818] sm:$0xf]  ;;  %v576_v7 = vld [vmem:[%s8644_s12 + $0x81c] sm:$0xf] }
  0xb1   : > { %573 = vst [vmem:[%s8640_s30 + $0x828] sm:$0xf] %v572_v5  ;;  %575 = vst [vmem:[%s8640_s30 + $0x830] sm:$0xf] %v574_v6  ;;  %v578_v8 = vld [vmem:[%s8644_s12 + $0x840] sm:$0xf] }
  0xb2   : > { %577 = vst [vmem:[%s8640_s30 + $0x838] sm:$0xf] %v576_v7  ;;  %v580_v9 = vld [vmem:[%s8644_s12 + $0x844] sm:$0xf]  ;;  %v582_v10 = vld [vmem:[%s8644_s12 + $0x848] sm:$0xf] }
  0xb3   : > { %579 = vst [vmem:[%s8640_s30 + $0x840] sm:$0xf] %v578_v8  ;;  %581 = vst [vmem:[%s8640_s30 + $0x848] sm:$0xf] %v580_v9  ;;  %v584_v11 = vld [vmem:[%s8644_s12 + $0x84c] sm:$0xf] }
  0xb4   : > { %583 = vst [vmem:[%s8640_s30 + $0x850] sm:$0xf] %v582_v10  ;;  %v586_v12 = vld [vmem:[%s8644_s12 + $0x850] sm:$0xf]  ;;  %v588_v13 = vld [vmem:[%s8644_s12 + $0x854] sm:$0xf] }
  0xb5   : > { %585 = vst [vmem:[%s8640_s30 + $0x858] sm:$0xf] %v584_v11  ;;  %587 = vst [vmem:[%s8640_s30 + $0x860] sm:$0xf] %v586_v12  ;;  %v590_v14 = vld [vmem:[%s8644_s12 + $0x858] sm:$0xf] }
  0xb6   : > { %589 = vst [vmem:[%s8640_s30 + $0x868] sm:$0xf] %v588_v13  ;;  %v592_v15 = vld [vmem:[%s8644_s12 + $0x85c] sm:$0xf]  ;;  %v594_v16 = vld [vmem:[%s8644_s12 + $0x880] sm:$0xf] }
  0xb7   : > { %591 = vst [vmem:[%s8640_s30 + $0x870] sm:$0xf] %v590_v14  ;;  %593 = vst [vmem:[%s8640_s30 + $0x878] sm:$0xf] %v592_v15  ;;  %v596_v17 = vld [vmem:[%s8644_s12 + $0x884] sm:$0xf] }
  0xb8   : > { %595 = vst [vmem:[%s8640_s30 + $0x880] sm:$0xf] %v594_v16  ;;  %v598_v18 = vld [vmem:[%s8644_s12 + $0x888] sm:$0xf]  ;;  %v600_v19 = vld [vmem:[%s8644_s12 + $0x88c] sm:$0xf] }
  0xb9   : > { %597 = vst [vmem:[%s8640_s30 + $0x888] sm:$0xf] %v596_v17  ;;  %599 = vst [vmem:[%s8640_s30 + $0x890] sm:$0xf] %v598_v18  ;;  %v602_v20 = vld [vmem:[%s8644_s12 + $0x890] sm:$0xf] }
  0xba   : > { %601 = vst [vmem:[%s8640_s30 + $0x898] sm:$0xf] %v600_v19  ;;  %v604_v21 = vld [vmem:[%s8644_s12 + $0x894] sm:$0xf]  ;;  %v606_v22 = vld [vmem:[%s8644_s12 + $0x898] sm:$0xf] }
  0xbb   : > { %603 = vst [vmem:[%s8640_s30 + $0x8a0] sm:$0xf] %v602_v20  ;;  %605 = vst [vmem:[%s8640_s30 + $0x8a8] sm:$0xf] %v604_v21  ;;  %v608_v23 = vld [vmem:[%s8644_s12 + $0x89c] sm:$0xf] }
  0xbc   : > { %607 = vst [vmem:[%s8640_s30 + $0x8b0] sm:$0xf] %v606_v22  ;;  %v610_v24 = vld [vmem:[%s8644_s12 + $0x8c0] sm:$0xf]  ;;  %v612_v25 = vld [vmem:[%s8644_s12 + $0x8c4] sm:$0xf] }
  0xbd   : > { %609 = vst [vmem:[%s8640_s30 + $0x8b8] sm:$0xf] %v608_v23  ;;  %611 = vst [vmem:[%s8640_s30 + $0x8c0] sm:$0xf] %v610_v24  ;;  %v614_v26 = vld [vmem:[%s8644_s12 + $0x8c8] sm:$0xf] }
  0xbe   : > { %613 = vst [vmem:[%s8640_s30 + $0x8c8] sm:$0xf] %v612_v25  ;;  %v616_v27 = vld [vmem:[%s8644_s12 + $0x8cc] sm:$0xf]  ;;  %v618_v28 = vld [vmem:[%s8644_s12 + $0x8d0] sm:$0xf] }
  0xbf   : > { %615 = vst [vmem:[%s8640_s30 + $0x8d0] sm:$0xf] %v614_v26  ;;  %617 = vst [vmem:[%s8640_s30 + $0x8d8] sm:$0xf] %v616_v27  ;;  %v620_v29 = vld [vmem:[%s8644_s12 + $0x8d4] sm:$0xf] }
  0xc0   : > { %619 = vst [vmem:[%s8640_s30 + $0x8e0] sm:$0xf] %v618_v28  ;;  %v622_v30 = vld [vmem:[%s8644_s12 + $0x8d8] sm:$0xf]  ;;  %v624_v31 = vld [vmem:[%s8644_s12 + $0x8dc] sm:$0xf] }
  0xc1   : > { %621 = vst [vmem:[%s8640_s30 + $0x8e8] sm:$0xf] %v620_v29  ;;  %623 = vst [vmem:[%s8640_s30 + $0x8f0] sm:$0xf] %v622_v30  ;;  %v626_v32 = vld [vmem:[%s8644_s12 + $0x900] sm:$0xf] }
  0xc2   : > { %625 = vst [vmem:[%s8640_s30 + $0x8f8] sm:$0xf] %v624_v31  ;;  %v628_v33 = vld [vmem:[%s8644_s12 + $0x904] sm:$0xf]  ;;  %v630_v34 = vld [vmem:[%s8644_s12 + $0x908] sm:$0xf] }
  0xc3   : > { %627 = vst [vmem:[%s8640_s30 + $0x900] sm:$0xf] %v626_v32  ;;  %629 = vst [vmem:[%s8640_s30 + $0x908] sm:$0xf] %v628_v33  ;;  %v632_v35 = vld [vmem:[%s8644_s12 + $0x90c] sm:$0xf] }
  0xc4   : > { %631 = vst [vmem:[%s8640_s30 + $0x910] sm:$0xf] %v630_v34  ;;  %v634_v36 = vld [vmem:[%s8644_s12 + $0x910] sm:$0xf]  ;;  %v636_v37 = vld [vmem:[%s8644_s12 + $0x914] sm:$0xf] }
  0xc5   : > { %633 = vst [vmem:[%s8640_s30 + $0x918] sm:$0xf] %v632_v35  ;;  %635 = vst [vmem:[%s8640_s30 + $0x920] sm:$0xf] %v634_v36  ;;  %v638_v38 = vld [vmem:[%s8644_s12 + $0x918] sm:$0xf] }
  0xc6   : > { %637 = vst [vmem:[%s8640_s30 + $0x928] sm:$0xf] %v636_v37  ;;  %v640_v39 = vld [vmem:[%s8644_s12 + $0x91c] sm:$0xf]  ;;  %v642_v40 = vld [vmem:[%s8644_s12 + $0x940] sm:$0xf] }
  0xc7   : > { %639 = vst [vmem:[%s8640_s30 + $0x930] sm:$0xf] %v638_v38  ;;  %641 = vst [vmem:[%s8640_s30 + $0x938] sm:$0xf] %v640_v39  ;;  %v644_v41 = vld [vmem:[%s8644_s12 + $0x944] sm:$0xf] }
  0xc8   : > { %643 = vst [vmem:[%s8640_s30 + $0x940] sm:$0xf] %v642_v40  ;;  %v646_v42 = vld [vmem:[%s8644_s12 + $0x948] sm:$0xf]  ;;  %v648_v43 = vld [vmem:[%s8644_s12 + $0x94c] sm:$0xf] }
  0xc9   : > { %645 = vst [vmem:[%s8640_s30 + $0x948] sm:$0xf] %v644_v41  ;;  %647 = vst [vmem:[%s8640_s30 + $0x950] sm:$0xf] %v646_v42  ;;  %v650_v44 = vld [vmem:[%s8644_s12 + $0x950] sm:$0xf] }
  0xca   : > { %649 = vst [vmem:[%s8640_s30 + $0x958] sm:$0xf] %v648_v43  ;;  %v652_v45 = vld [vmem:[%s8644_s12 + $0x954] sm:$0xf]  ;;  %v654_v46 = vld [vmem:[%s8644_s12 + $0x958] sm:$0xf] }
  0xcb   : > { %651 = vst [vmem:[%s8640_s30 + $0x960] sm:$0xf] %v650_v44  ;;  %653 = vst [vmem:[%s8640_s30 + $0x968] sm:$0xf] %v652_v45  ;;  %v656_v47 = vld [vmem:[%s8644_s12 + $0x95c] sm:$0xf] }
  0xcc   : > { %655 = vst [vmem:[%s8640_s30 + $0x970] sm:$0xf] %v654_v46  ;;  %v658_v48 = vld [vmem:[%s8644_s12 + $0x980] sm:$0xf]  ;;  %v660_v49 = vld [vmem:[%s8644_s12 + $0x984] sm:$0xf] }
  0xcd   : > { %657 = vst [vmem:[%s8640_s30 + $0x978] sm:$0xf] %v656_v47  ;;  %659 = vst [vmem:[%s8640_s30 + $0x980] sm:$0xf] %v658_v48  ;;  %v662_v50 = vld [vmem:[%s8644_s12 + $0x988] sm:$0xf] }
  0xce   : > { %661 = vst [vmem:[%s8640_s30 + $0x988] sm:$0xf] %v660_v49  ;;  %v664_v51 = vld [vmem:[%s8644_s12 + $0x98c] sm:$0xf]  ;;  %v666_v52 = vld [vmem:[%s8644_s12 + $0x990] sm:$0xf] }
  0xcf   : > { %663 = vst [vmem:[%s8640_s30 + $0x990] sm:$0xf] %v662_v50  ;;  %665 = vst [vmem:[%s8640_s30 + $0x998] sm:$0xf] %v664_v51  ;;  %v668_v53 = vld [vmem:[%s8644_s12 + $0x994] sm:$0xf] }
  0xd0   : > { %667 = vst [vmem:[%s8640_s30 + $0x9a0] sm:$0xf] %v666_v52  ;;  %v670_v54 = vld [vmem:[%s8644_s12 + $0x998] sm:$0xf]  ;;  %v672_v55 = vld [vmem:[%s8644_s12 + $0x99c] sm:$0xf] }
  0xd1   : > { %669 = vst [vmem:[%s8640_s30 + $0x9a8] sm:$0xf] %v668_v53  ;;  %671 = vst [vmem:[%s8640_s30 + $0x9b0] sm:$0xf] %v670_v54  ;;  %v674_v56 = vld [vmem:[%s8644_s12 + $0x9c0] sm:$0xf] }
  0xd2   : > { %673 = vst [vmem:[%s8640_s30 + $0x9b8] sm:$0xf] %v672_v55  ;;  %v676_v57 = vld [vmem:[%s8644_s12 + $0x9c4] sm:$0xf]  ;;  %v678_v58 = vld [vmem:[%s8644_s12 + $0x9c8] sm:$0xf] }
  0xd3   : > { %675 = vst [vmem:[%s8640_s30 + $0x9c0] sm:$0xf] %v674_v56  ;;  %677 = vst [vmem:[%s8640_s30 + $0x9c8] sm:$0xf] %v676_v57  ;;  %v680_v59 = vld [vmem:[%s8644_s12 + $0x9cc] sm:$0xf] }
  0xd4   : > { %679 = vst [vmem:[%s8640_s30 + $0x9d0] sm:$0xf] %v678_v58  ;;  %v682_v60 = vld [vmem:[%s8644_s12 + $0x9d0] sm:$0xf]  ;;  %v684_v61 = vld [vmem:[%s8644_s12 + $0x9d4] sm:$0xf] }
  0xd5   : > { %681 = vst [vmem:[%s8640_s30 + $0x9d8] sm:$0xf] %v680_v59  ;;  %683 = vst [vmem:[%s8640_s30 + $0x9e0] sm:$0xf] %v682_v60  ;;  %v686_v62 = vld [vmem:[%s8644_s12 + $0x9d8] sm:$0xf] }
  0xd6   : > { %685 = vst [vmem:[%s8640_s30 + $0x9e8] sm:$0xf] %v684_v61  ;;  %v688_v63 = vld [vmem:[%s8644_s12 + $0x9dc] sm:$0xf]  ;;  %v690_v0 = vld [vmem:[%s8644_s12 + $0xa00] sm:$0xf] }
  0xd7   : > { %687 = vst [vmem:[%s8640_s30 + $0x9f0] sm:$0xf] %v686_v62  ;;  %689 = vst [vmem:[%s8640_s30 + $0x9f8] sm:$0xf] %v688_v63  ;;  %v692_v1 = vld [vmem:[%s8644_s12 + $0xa04] sm:$0xf] }
  0xd8   : > { %691 = vst [vmem:[%s8640_s30 + $0xa00] sm:$0xf] %v690_v0  ;;  %v694_v2 = vld [vmem:[%s8644_s12 + $0xa08] sm:$0xf]  ;;  %v696_v3 = vld [vmem:[%s8644_s12 + $0xa0c] sm:$0xf] }
  0xd9   : > { %693 = vst [vmem:[%s8640_s30 + $0xa08] sm:$0xf] %v692_v1  ;;  %695 = vst [vmem:[%s8640_s30 + $0xa10] sm:$0xf] %v694_v2  ;;  %v698_v4 = vld [vmem:[%s8644_s12 + $0xa10] sm:$0xf] }
  0xda   : > { %697 = vst [vmem:[%s8640_s30 + $0xa18] sm:$0xf] %v696_v3  ;;  %v700_v5 = vld [vmem:[%s8644_s12 + $0xa14] sm:$0xf]  ;;  %v702_v6 = vld [vmem:[%s8644_s12 + $0xa18] sm:$0xf] }
  0xdb   : > { %699 = vst [vmem:[%s8640_s30 + $0xa20] sm:$0xf] %v698_v4  ;;  %701 = vst [vmem:[%s8640_s30 + $0xa28] sm:$0xf] %v700_v5  ;;  %v704_v7 = vld [vmem:[%s8644_s12 + $0xa1c] sm:$0xf] }
  0xdc   : > { %703 = vst [vmem:[%s8640_s30 + $0xa30] sm:$0xf] %v702_v6  ;;  %v706_v8 = vld [vmem:[%s8644_s12 + $0xa40] sm:$0xf]  ;;  %v708_v9 = vld [vmem:[%s8644_s12 + $0xa44] sm:$0xf] }
  0xdd   : > { %705 = vst [vmem:[%s8640_s30 + $0xa38] sm:$0xf] %v704_v7  ;;  %707 = vst [vmem:[%s8640_s30 + $0xa40] sm:$0xf] %v706_v8  ;;  %v710_v10 = vld [vmem:[%s8644_s12 + $0xa48] sm:$0xf] }
  0xde   : > { %709 = vst [vmem:[%s8640_s30 + $0xa48] sm:$0xf] %v708_v9  ;;  %v712_v11 = vld [vmem:[%s8644_s12 + $0xa4c] sm:$0xf]  ;;  %v714_v12 = vld [vmem:[%s8644_s12 + $0xa50] sm:$0xf] }
  0xdf   : > { %711 = vst [vmem:[%s8640_s30 + $0xa50] sm:$0xf] %v710_v10  ;;  %713 = vst [vmem:[%s8640_s30 + $0xa58] sm:$0xf] %v712_v11  ;;  %v716_v13 = vld [vmem:[%s8644_s12 + $0xa54] sm:$0xf] }
  0xe0   : > { %715 = vst [vmem:[%s8640_s30 + $0xa60] sm:$0xf] %v714_v12  ;;  %v718_v14 = vld [vmem:[%s8644_s12 + $0xa58] sm:$0xf]  ;;  %v720_v15 = vld [vmem:[%s8644_s12 + $0xa5c] sm:$0xf] }
  0xe1   : > { %717 = vst [vmem:[%s8640_s30 + $0xa68] sm:$0xf] %v716_v13  ;;  %719 = vst [vmem:[%s8640_s30 + $0xa70] sm:$0xf] %v718_v14  ;;  %v722_v16 = vld [vmem:[%s8644_s12 + $0xa80] sm:$0xf] }
  0xe2   : > { %721 = vst [vmem:[%s8640_s30 + $0xa78] sm:$0xf] %v720_v15  ;;  %v724_v17 = vld [vmem:[%s8644_s12 + $0xa84] sm:$0xf]  ;;  %v726_v18 = vld [vmem:[%s8644_s12 + $0xa88] sm:$0xf] }
  0xe3   : > { %723 = vst [vmem:[%s8640_s30 + $0xa80] sm:$0xf] %v722_v16  ;;  %725 = vst [vmem:[%s8640_s30 + $0xa88] sm:$0xf] %v724_v17  ;;  %v728_v19 = vld [vmem:[%s8644_s12 + $0xa8c] sm:$0xf] }
  0xe4   : > { %727 = vst [vmem:[%s8640_s30 + $0xa90] sm:$0xf] %v726_v18  ;;  %v730_v20 = vld [vmem:[%s8644_s12 + $0xa90] sm:$0xf]  ;;  %v732_v21 = vld [vmem:[%s8644_s12 + $0xa94] sm:$0xf] }
  0xe5   : > { %729 = vst [vmem:[%s8640_s30 + $0xa98] sm:$0xf] %v728_v19  ;;  %731 = vst [vmem:[%s8640_s30 + $0xaa0] sm:$0xf] %v730_v20  ;;  %v734_v22 = vld [vmem:[%s8644_s12 + $0xa98] sm:$0xf] }
  0xe6   : > { %733 = vst [vmem:[%s8640_s30 + $0xaa8] sm:$0xf] %v732_v21  ;;  %v736_v23 = vld [vmem:[%s8644_s12 + $0xa9c] sm:$0xf]  ;;  %v738_v24 = vld [vmem:[%s8644_s12 + $0xac0] sm:$0xf] }
  0xe7   : > { %735 = vst [vmem:[%s8640_s30 + $0xab0] sm:$0xf] %v734_v22  ;;  %737 = vst [vmem:[%s8640_s30 + $0xab8] sm:$0xf] %v736_v23  ;;  %v740_v25 = vld [vmem:[%s8644_s12 + $0xac4] sm:$0xf] }
  0xe8   : > { %739 = vst [vmem:[%s8640_s30 + $0xac0] sm:$0xf] %v738_v24  ;;  %v742_v26 = vld [vmem:[%s8644_s12 + $0xac8] sm:$0xf]  ;;  %v744_v27 = vld [vmem:[%s8644_s12 + $0xacc] sm:$0xf] }
  0xe9   : > { %741 = vst [vmem:[%s8640_s30 + $0xac8] sm:$0xf] %v740_v25  ;;  %743 = vst [vmem:[%s8640_s30 + $0xad0] sm:$0xf] %v742_v26  ;;  %v746_v28 = vld [vmem:[%s8644_s12 + $0xad0] sm:$0xf] }
  0xea   : > { %745 = vst [vmem:[%s8640_s30 + $0xad8] sm:$0xf] %v744_v27  ;;  %v748_v29 = vld [vmem:[%s8644_s12 + $0xad4] sm:$0xf]  ;;  %v750_v30 = vld [vmem:[%s8644_s12 + $0xad8] sm:$0xf] }
  0xeb   : > { %747 = vst [vmem:[%s8640_s30 + $0xae0] sm:$0xf] %v746_v28  ;;  %749 = vst [vmem:[%s8640_s30 + $0xae8] sm:$0xf] %v748_v29  ;;  %v752_v31 = vld [vmem:[%s8644_s12 + $0xadc] sm:$0xf] }
  0xec   : > { %751 = vst [vmem:[%s8640_s30 + $0xaf0] sm:$0xf] %v750_v30  ;;  %v754_v32 = vld [vmem:[%s8644_s12 + $0xb00] sm:$0xf]  ;;  %v756_v33 = vld [vmem:[%s8644_s12 + $0xb04] sm:$0xf] }
  0xed   : > { %753 = vst [vmem:[%s8640_s30 + $0xaf8] sm:$0xf] %v752_v31  ;;  %755 = vst [vmem:[%s8640_s30 + $0xb00] sm:$0xf] %v754_v32  ;;  %v758_v34 = vld [vmem:[%s8644_s12 + $0xb08] sm:$0xf] }
  0xee   : > { %757 = vst [vmem:[%s8640_s30 + $0xb08] sm:$0xf] %v756_v33  ;;  %v760_v35 = vld [vmem:[%s8644_s12 + $0xb0c] sm:$0xf]  ;;  %v762_v36 = vld [vmem:[%s8644_s12 + $0xb10] sm:$0xf] }
  0xef   : > { %759 = vst [vmem:[%s8640_s30 + $0xb10] sm:$0xf] %v758_v34  ;;  %761 = vst [vmem:[%s8640_s30 + $0xb18] sm:$0xf] %v760_v35  ;;  %v764_v37 = vld [vmem:[%s8644_s12 + $0xb14] sm:$0xf] }
  0xf0   : > { %763 = vst [vmem:[%s8640_s30 + $0xb20] sm:$0xf] %v762_v36  ;;  %v766_v38 = vld [vmem:[%s8644_s12 + $0xb18] sm:$0xf]  ;;  %v768_v39 = vld [vmem:[%s8644_s12 + $0xb1c] sm:$0xf] }
  0xf1   : > { %765 = vst [vmem:[%s8640_s30 + $0xb28] sm:$0xf] %v764_v37  ;;  %767 = vst [vmem:[%s8640_s30 + $0xb30] sm:$0xf] %v766_v38  ;;  %v770_v40 = vld [vmem:[%s8644_s12 + $0xb40] sm:$0xf] }
  0xf2   : > { %769 = vst [vmem:[%s8640_s30 + $0xb38] sm:$0xf] %v768_v39  ;;  %v772_v41 = vld [vmem:[%s8644_s12 + $0xb44] sm:$0xf]  ;;  %v774_v42 = vld [vmem:[%s8644_s12 + $0xb48] sm:$0xf] }
  0xf3   : > { %771 = vst [vmem:[%s8640_s30 + $0xb40] sm:$0xf] %v770_v40  ;;  %773 = vst [vmem:[%s8640_s30 + $0xb48] sm:$0xf] %v772_v41  ;;  %v776_v43 = vld [vmem:[%s8644_s12 + $0xb4c] sm:$0xf] }
  0xf4   : > { %775 = vst [vmem:[%s8640_s30 + $0xb50] sm:$0xf] %v774_v42  ;;  %v778_v44 = vld [vmem:[%s8644_s12 + $0xb50] sm:$0xf]  ;;  %v780_v45 = vld [vmem:[%s8644_s12 + $0xb54] sm:$0xf] }
  0xf5   : > { %777 = vst [vmem:[%s8640_s30 + $0xb58] sm:$0xf] %v776_v43  ;;  %779 = vst [vmem:[%s8640_s30 + $0xb60] sm:$0xf] %v778_v44  ;;  %v782_v46 = vld [vmem:[%s8644_s12 + $0xb58] sm:$0xf] }
  0xf6   : > { %781 = vst [vmem:[%s8640_s30 + $0xb68] sm:$0xf] %v780_v45  ;;  %v784_v47 = vld [vmem:[%s8644_s12 + $0xb5c] sm:$0xf]  ;;  %v786_v48 = vld [vmem:[%s8644_s12 + $0xb80] sm:$0xf] }
  0xf7   : > { %783 = vst [vmem:[%s8640_s30 + $0xb70] sm:$0xf] %v782_v46  ;;  %785 = vst [vmem:[%s8640_s30 + $0xb78] sm:$0xf] %v784_v47  ;;  %v788_v49 = vld [vmem:[%s8644_s12 + $0xb84] sm:$0xf] }
  0xf8   : > { %787 = vst [vmem:[%s8640_s30 + $0xb80] sm:$0xf] %v786_v48  ;;  %v790_v50 = vld [vmem:[%s8644_s12 + $0xb88] sm:$0xf]  ;;  %v792_v51 = vld [vmem:[%s8644_s12 + $0xb8c] sm:$0xf] }
  0xf9   : > { %789 = vst [vmem:[%s8640_s30 + $0xb88] sm:$0xf] %v788_v49  ;;  %791 = vst [vmem:[%s8640_s30 + $0xb90] sm:$0xf] %v790_v50  ;;  %v794_v52 = vld [vmem:[%s8644_s12 + $0xb90] sm:$0xf] }
  0xfa   : > { %793 = vst [vmem:[%s8640_s30 + $0xb98] sm:$0xf] %v792_v51  ;;  %v796_v53 = vld [vmem:[%s8644_s12 + $0xb94] sm:$0xf]  ;;  %v798_v54 = vld [vmem:[%s8644_s12 + $0xb98] sm:$0xf] }
  0xfb   : > { %795 = vst [vmem:[%s8640_s30 + $0xba0] sm:$0xf] %v794_v52  ;;  %797 = vst [vmem:[%s8640_s30 + $0xba8] sm:$0xf] %v796_v53  ;;  %v800_v55 = vld [vmem:[%s8644_s12 + $0xb9c] sm:$0xf] }
  0xfc   : > { %799 = vst [vmem:[%s8640_s30 + $0xbb0] sm:$0xf] %v798_v54  ;;  %v802_v56 = vld [vmem:[%s8644_s12 + $0xbc0] sm:$0xf]  ;;  %v804_v57 = vld [vmem:[%s8644_s12 + $0xbc4] sm:$0xf] }
  0xfd   : > { %801 = vst [vmem:[%s8640_s30 + $0xbb8] sm:$0xf] %v800_v55  ;;  %803 = vst [vmem:[%s8640_s30 + $0xbc0] sm:$0xf] %v802_v56  ;;  %v806_v58 = vld [vmem:[%s8644_s12 + $0xbc8] sm:$0xf] }
  0xfe   : > { %805 = vst [vmem:[%s8640_s30 + $0xbc8] sm:$0xf] %v804_v57  ;;  %v808_v59 = vld [vmem:[%s8644_s12 + $0xbcc] sm:$0xf]  ;;  %v810_v60 = vld [vmem:[%s8644_s12 + $0xbd0] sm:$0xf] }
  0xff   : > { %807 = vst [vmem:[%s8640_s30 + $0xbd0] sm:$0xf] %v806_v58  ;;  %809 = vst [vmem:[%s8640_s30 + $0xbd8] sm:$0xf] %v808_v59  ;;  %v812_v61 = vld [vmem:[%s8644_s12 + $0xbd4] sm:$0xf] }
 0x100   : > { %811 = vst [vmem:[%s8640_s30 + $0xbe0] sm:$0xf] %v810_v60  ;;  %v814_v62 = vld [vmem:[%s8644_s12 + $0xbd8] sm:$0xf]  ;;  %v816_v63 = vld [vmem:[%s8644_s12 + $0xbdc] sm:$0xf] }
 0x101   : > { %813 = vst [vmem:[%s8640_s30 + $0xbe8] sm:$0xf] %v812_v61  ;;  %815 = vst [vmem:[%s8640_s30 + $0xbf0] sm:$0xf] %v814_v62  ;;  %v818_v0 = vld [vmem:[%s8644_s12 + $0xc00] sm:$0xf] }
 0x102   : > { %817 = vst [vmem:[%s8640_s30 + $0xbf8] sm:$0xf] %v816_v63  ;;  %v820_v1 = vld [vmem:[%s8644_s12 + $0xc04] sm:$0xf]  ;;  %v822_v2 = vld [vmem:[%s8644_s12 + $0xc08] sm:$0xf] }
 0x103   : > { %819 = vst [vmem:[%s8640_s30 + $0xc00] sm:$0xf] %v818_v0  ;;  %821 = vst [vmem:[%s8640_s30 + $0xc08] sm:$0xf] %v820_v1  ;;  %v824_v3 = vld [vmem:[%s8644_s12 + $0xc0c] sm:$0xf] }
 0x104   : > { %823 = vst [vmem:[%s8640_s30 + $0xc10] sm:$0xf] %v822_v2  ;;  %v826_v4 = vld [vmem:[%s8644_s12 + $0xc10] sm:$0xf]  ;;  %v828_v5 = vld [vmem:[%s8644_s12 + $0xc14] sm:$0xf] }
 0x105   : > { %825 = vst [vmem:[%s8640_s30 + $0xc18] sm:$0xf] %v824_v3  ;;  %827 = vst [vmem:[%s8640_s30 + $0xc20] sm:$0xf] %v826_v4  ;;  %v830_v6 = vld [vmem:[%s8644_s12 + $0xc18] sm:$0xf] }
 0x106   : > { %829 = vst [vmem:[%s8640_s30 + $0xc28] sm:$0xf] %v828_v5  ;;  %v832_v7 = vld [vmem:[%s8644_s12 + $0xc1c] sm:$0xf]  ;;  %v834_v8 = vld [vmem:[%s8644_s12 + $0xc40] sm:$0xf] }
 0x107   : > { %831 = vst [vmem:[%s8640_s30 + $0xc30] sm:$0xf] %v830_v6  ;;  %833 = vst [vmem:[%s8640_s30 + $0xc38] sm:$0xf] %v832_v7  ;;  %v836_v9 = vld [vmem:[%s8644_s12 + $0xc44] sm:$0xf] }
 0x108   : > { %835 = vst [vmem:[%s8640_s30 + $0xc40] sm:$0xf] %v834_v8  ;;  %v838_v10 = vld [vmem:[%s8644_s12 + $0xc48] sm:$0xf]  ;;  %v840_v11 = vld [vmem:[%s8644_s12 + $0xc4c] sm:$0xf] }
 0x109   : > { %837 = vst [vmem:[%s8640_s30 + $0xc48] sm:$0xf] %v836_v9  ;;  %839 = vst [vmem:[%s8640_s30 + $0xc50] sm:$0xf] %v838_v10  ;;  %v842_v12 = vld [vmem:[%s8644_s12 + $0xc50] sm:$0xf] }
 0x10a   : > { %841 = vst [vmem:[%s8640_s30 + $0xc58] sm:$0xf] %v840_v11  ;;  %v844_v13 = vld [vmem:[%s8644_s12 + $0xc54] sm:$0xf]  ;;  %v846_v14 = vld [vmem:[%s8644_s12 + $0xc58] sm:$0xf] }
 0x10b   : > { %843 = vst [vmem:[%s8640_s30 + $0xc60] sm:$0xf] %v842_v12  ;;  %845 = vst [vmem:[%s8640_s30 + $0xc68] sm:$0xf] %v844_v13  ;;  %v848_v15 = vld [vmem:[%s8644_s12 + $0xc5c] sm:$0xf] }
 0x10c   : > { %847 = vst [vmem:[%s8640_s30 + $0xc70] sm:$0xf] %v846_v14  ;;  %v850_v16 = vld [vmem:[%s8644_s12 + $0xc80] sm:$0xf]  ;;  %v852_v17 = vld [vmem:[%s8644_s12 + $0xc84] sm:$0xf] }
 0x10d   : > { %849 = vst [vmem:[%s8640_s30 + $0xc78] sm:$0xf] %v848_v15  ;;  %851 = vst [vmem:[%s8640_s30 + $0xc80] sm:$0xf] %v850_v16  ;;  %v854_v18 = vld [vmem:[%s8644_s12 + $0xc88] sm:$0xf] }
 0x10e   : > { %853 = vst [vmem:[%s8640_s30 + $0xc88] sm:$0xf] %v852_v17  ;;  %v856_v19 = vld [vmem:[%s8644_s12 + $0xc8c] sm:$0xf]  ;;  %v858_v20 = vld [vmem:[%s8644_s12 + $0xc90] sm:$0xf] }
 0x10f   : > { %855 = vst [vmem:[%s8640_s30 + $0xc90] sm:$0xf] %v854_v18  ;;  %857 = vst [vmem:[%s8640_s30 + $0xc98] sm:$0xf] %v856_v19  ;;  %v860_v21 = vld [vmem:[%s8644_s12 + $0xc94] sm:$0xf] }
 0x110   : > { %859 = vst [vmem:[%s8640_s30 + $0xca0] sm:$0xf] %v858_v20  ;;  %v862_v22 = vld [vmem:[%s8644_s12 + $0xc98] sm:$0xf]  ;;  %v864_v23 = vld [vmem:[%s8644_s12 + $0xc9c] sm:$0xf] }
 0x111   : > { %861 = vst [vmem:[%s8640_s30 + $0xca8] sm:$0xf] %v860_v21  ;;  %863 = vst [vmem:[%s8640_s30 + $0xcb0] sm:$0xf] %v862_v22  ;;  %v866_v24 = vld [vmem:[%s8644_s12 + $0xcc0] sm:$0xf] }
 0x112   : > { %865 = vst [vmem:[%s8640_s30 + $0xcb8] sm:$0xf] %v864_v23  ;;  %v868_v25 = vld [vmem:[%s8644_s12 + $0xcc4] sm:$0xf]  ;;  %v870_v26 = vld [vmem:[%s8644_s12 + $0xcc8] sm:$0xf] }
 0x113   : > { %867 = vst [vmem:[%s8640_s30 + $0xcc0] sm:$0xf] %v866_v24  ;;  %869 = vst [vmem:[%s8640_s30 + $0xcc8] sm:$0xf] %v868_v25  ;;  %v872_v27 = vld [vmem:[%s8644_s12 + $0xccc] sm:$0xf] }
 0x114   : > { %871 = vst [vmem:[%s8640_s30 + $0xcd0] sm:$0xf] %v870_v26  ;;  %v874_v28 = vld [vmem:[%s8644_s12 + $0xcd0] sm:$0xf]  ;;  %v876_v29 = vld [vmem:[%s8644_s12 + $0xcd4] sm:$0xf] }
 0x115   : > { %873 = vst [vmem:[%s8640_s30 + $0xcd8] sm:$0xf] %v872_v27  ;;  %875 = vst [vmem:[%s8640_s30 + $0xce0] sm:$0xf] %v874_v28  ;;  %v878_v30 = vld [vmem:[%s8644_s12 + $0xcd8] sm:$0xf] }
 0x116   : > { %877 = vst [vmem:[%s8640_s30 + $0xce8] sm:$0xf] %v876_v29  ;;  %v880_v31 = vld [vmem:[%s8644_s12 + $0xcdc] sm:$0xf]  ;;  %v882_v32 = vld [vmem:[%s8644_s12 + $0xd00] sm:$0xf] }
 0x117   : > { %879 = vst [vmem:[%s8640_s30 + $0xcf0] sm:$0xf] %v878_v30  ;;  %881 = vst [vmem:[%s8640_s30 + $0xcf8] sm:$0xf] %v880_v31  ;;  %v884_v33 = vld [vmem:[%s8644_s12 + $0xd04] sm:$0xf] }
 0x118   : > { %883 = vst [vmem:[%s8640_s30 + $0xd00] sm:$0xf] %v882_v32  ;;  %v886_v34 = vld [vmem:[%s8644_s12 + $0xd08] sm:$0xf]  ;;  %v888_v35 = vld [vmem:[%s8644_s12 + $0xd0c] sm:$0xf] }
 0x119   : > { %885 = vst [vmem:[%s8640_s30 + $0xd08] sm:$0xf] %v884_v33  ;;  %887 = vst [vmem:[%s8640_s30 + $0xd10] sm:$0xf] %v886_v34  ;;  %v890_v36 = vld [vmem:[%s8644_s12 + $0xd10] sm:$0xf] }
 0x11a   : > { %889 = vst [vmem:[%s8640_s30 + $0xd18] sm:$0xf] %v888_v35  ;;  %v892_v37 = vld [vmem:[%s8644_s12 + $0xd14] sm:$0xf]  ;;  %v894_v38 = vld [vmem:[%s8644_s12 + $0xd18] sm:$0xf] }
 0x11b   : > { %891 = vst [vmem:[%s8640_s30 + $0xd20] sm:$0xf] %v890_v36  ;;  %893 = vst [vmem:[%s8640_s30 + $0xd28] sm:$0xf] %v892_v37  ;;  %v896_v39 = vld [vmem:[%s8644_s12 + $0xd1c] sm:$0xf] }
 0x11c   : > { %895 = vst [vmem:[%s8640_s30 + $0xd30] sm:$0xf] %v894_v38  ;;  %v898_v40 = vld [vmem:[%s8644_s12 + $0xd40] sm:$0xf]  ;;  %v900_v41 = vld [vmem:[%s8644_s12 + $0xd44] sm:$0xf] }
 0x11d   : > { %897 = vst [vmem:[%s8640_s30 + $0xd38] sm:$0xf] %v896_v39  ;;  %899 = vst [vmem:[%s8640_s30 + $0xd40] sm:$0xf] %v898_v40  ;;  %v902_v42 = vld [vmem:[%s8644_s12 + $0xd48] sm:$0xf] }
 0x11e   : > { %901 = vst [vmem:[%s8640_s30 + $0xd48] sm:$0xf] %v900_v41  ;;  %v904_v43 = vld [vmem:[%s8644_s12 + $0xd4c] sm:$0xf]  ;;  %v906_v44 = vld [vmem:[%s8644_s12 + $0xd50] sm:$0xf] }
 0x11f   : > { %903 = vst [vmem:[%s8640_s30 + $0xd50] sm:$0xf] %v902_v42  ;;  %905 = vst [vmem:[%s8640_s30 + $0xd58] sm:$0xf] %v904_v43  ;;  %v908_v45 = vld [vmem:[%s8644_s12 + $0xd54] sm:$0xf] }
 0x120   : > { %907 = vst [vmem:[%s8640_s30 + $0xd60] sm:$0xf] %v906_v44  ;;  %v910_v46 = vld [vmem:[%s8644_s12 + $0xd58] sm:$0xf]  ;;  %v912_v47 = vld [vmem:[%s8644_s12 + $0xd5c] sm:$0xf] }
 0x121   : > { %909 = vst [vmem:[%s8640_s30 + $0xd68] sm:$0xf] %v908_v45  ;;  %911 = vst [vmem:[%s8640_s30 + $0xd70] sm:$0xf] %v910_v46  ;;  %v914_v48 = vld [vmem:[%s8644_s12 + $0xd80] sm:$0xf] }
 0x122   : > { %913 = vst [vmem:[%s8640_s30 + $0xd78] sm:$0xf] %v912_v47  ;;  %v916_v49 = vld [vmem:[%s8644_s12 + $0xd84] sm:$0xf]  ;;  %v918_v50 = vld [vmem:[%s8644_s12 + $0xd88] sm:$0xf] }
 0x123   : > { %915 = vst [vmem:[%s8640_s30 + $0xd80] sm:$0xf] %v914_v48  ;;  %917 = vst [vmem:[%s8640_s30 + $0xd88] sm:$0xf] %v916_v49  ;;  %v920_v51 = vld [vmem:[%s8644_s12 + $0xd8c] sm:$0xf] }
 0x124   : > { %919 = vst [vmem:[%s8640_s30 + $0xd90] sm:$0xf] %v918_v50  ;;  %v922_v52 = vld [vmem:[%s8644_s12 + $0xd90] sm:$0xf]  ;;  %v924_v53 = vld [vmem:[%s8644_s12 + $0xd94] sm:$0xf] }
 0x125   : > { %921 = vst [vmem:[%s8640_s30 + $0xd98] sm:$0xf] %v920_v51  ;;  %923 = vst [vmem:[%s8640_s30 + $0xda0] sm:$0xf] %v922_v52  ;;  %v926_v54 = vld [vmem:[%s8644_s12 + $0xd98] sm:$0xf] }
 0x126   : > { %925 = vst [vmem:[%s8640_s30 + $0xda8] sm:$0xf] %v924_v53  ;;  %v928_v55 = vld [vmem:[%s8644_s12 + $0xd9c] sm:$0xf]  ;;  %v930_v56 = vld [vmem:[%s8644_s12 + $0xdc0] sm:$0xf] }
 0x127   : > { %927 = vst [vmem:[%s8640_s30 + $0xdb0] sm:$0xf] %v926_v54  ;;  %929 = vst [vmem:[%s8640_s30 + $0xdb8] sm:$0xf] %v928_v55  ;;  %v932_v57 = vld [vmem:[%s8644_s12 + $0xdc4] sm:$0xf] }
 0x128   : > { %931 = vst [vmem:[%s8640_s30 + $0xdc0] sm:$0xf] %v930_v56  ;;  %v934_v58 = vld [vmem:[%s8644_s12 + $0xdc8] sm:$0xf]  ;;  %v936_v59 = vld [vmem:[%s8644_s12 + $0xdcc] sm:$0xf] }
 0x129   : > { %933 = vst [vmem:[%s8640_s30 + $0xdc8] sm:$0xf] %v932_v57  ;;  %935 = vst [vmem:[%s8640_s30 + $0xdd0] sm:$0xf] %v934_v58  ;;  %v938_v60 = vld [vmem:[%s8644_s12 + $0xdd0] sm:$0xf] }
 0x12a   : > { %937 = vst [vmem:[%s8640_s30 + $0xdd8] sm:$0xf] %v936_v59  ;;  %v940_v61 = vld [vmem:[%s8644_s12 + $0xdd4] sm:$0xf]  ;;  %v942_v62 = vld [vmem:[%s8644_s12 + $0xdd8] sm:$0xf] }
 0x12b   : > { %939 = vst [vmem:[%s8640_s30 + $0xde0] sm:$0xf] %v938_v60  ;;  %941 = vst [vmem:[%s8640_s30 + $0xde8] sm:$0xf] %v940_v61  ;;  %v944_v63 = vld [vmem:[%s8644_s12 + $0xddc] sm:$0xf] }
 0x12c   : > { %943 = vst [vmem:[%s8640_s30 + $0xdf0] sm:$0xf] %v942_v62  ;;  %v946_v0 = vld [vmem:[%s8644_s12 + $0xe00] sm:$0xf]  ;;  %v948_v1 = vld [vmem:[%s8644_s12 + $0xe04] sm:$0xf] }
 0x12d   : > { %945 = vst [vmem:[%s8640_s30 + $0xdf8] sm:$0xf] %v944_v63  ;;  %947 = vst [vmem:[%s8640_s30 + $0xe00] sm:$0xf] %v946_v0  ;;  %v950_v2 = vld [vmem:[%s8644_s12 + $0xe08] sm:$0xf] }
 0x12e   : > { %949 = vst [vmem:[%s8640_s30 + $0xe08] sm:$0xf] %v948_v1  ;;  %v952_v3 = vld [vmem:[%s8644_s12 + $0xe0c] sm:$0xf]  ;;  %v954_v4 = vld [vmem:[%s8644_s12 + $0xe10] sm:$0xf] }
 0x12f   : > { %951 = vst [vmem:[%s8640_s30 + $0xe10] sm:$0xf] %v950_v2  ;;  %953 = vst [vmem:[%s8640_s30 + $0xe18] sm:$0xf] %v952_v3  ;;  %v956_v5 = vld [vmem:[%s8644_s12 + $0xe14] sm:$0xf] }
 0x130   : > { %955 = vst [vmem:[%s8640_s30 + $0xe20] sm:$0xf] %v954_v4  ;;  %v958_v6 = vld [vmem:[%s8644_s12 + $0xe18] sm:$0xf]  ;;  %v960_v7 = vld [vmem:[%s8644_s12 + $0xe1c] sm:$0xf] }
 0x131   : > { %957 = vst [vmem:[%s8640_s30 + $0xe28] sm:$0xf] %v956_v5  ;;  %959 = vst [vmem:[%s8640_s30 + $0xe30] sm:$0xf] %v958_v6  ;;  %v962_v8 = vld [vmem:[%s8644_s12 + $0xe40] sm:$0xf] }
 0x132   : > { %961 = vst [vmem:[%s8640_s30 + $0xe38] sm:$0xf] %v960_v7  ;;  %v964_v9 = vld [vmem:[%s8644_s12 + $0xe44] sm:$0xf]  ;;  %v966_v10 = vld [vmem:[%s8644_s12 + $0xe48] sm:$0xf] }
 0x133   : > { %963 = vst [vmem:[%s8640_s30 + $0xe40] sm:$0xf] %v962_v8  ;;  %965 = vst [vmem:[%s8640_s30 + $0xe48] sm:$0xf] %v964_v9  ;;  %v968_v11 = vld [vmem:[%s8644_s12 + $0xe4c] sm:$0xf] }
 0x134   : > { %967 = vst [vmem:[%s8640_s30 + $0xe50] sm:$0xf] %v966_v10  ;;  %v970_v12 = vld [vmem:[%s8644_s12 + $0xe50] sm:$0xf]  ;;  %v972_v13 = vld [vmem:[%s8644_s12 + $0xe54] sm:$0xf] }
 0x135   : > { %969 = vst [vmem:[%s8640_s30 + $0xe58] sm:$0xf] %v968_v11  ;;  %971 = vst [vmem:[%s8640_s30 + $0xe60] sm:$0xf] %v970_v12  ;;  %v974_v14 = vld [vmem:[%s8644_s12 + $0xe58] sm:$0xf] }
 0x136   : > { %973 = vst [vmem:[%s8640_s30 + $0xe68] sm:$0xf] %v972_v13  ;;  %v976_v15 = vld [vmem:[%s8644_s12 + $0xe5c] sm:$0xf]  ;;  %v978_v16 = vld [vmem:[%s8644_s12 + $0xe80] sm:$0xf] }
 0x137   : > { %975 = vst [vmem:[%s8640_s30 + $0xe70] sm:$0xf] %v974_v14  ;;  %977 = vst [vmem:[%s8640_s30 + $0xe78] sm:$0xf] %v976_v15  ;;  %v980_v17 = vld [vmem:[%s8644_s12 + $0xe84] sm:$0xf] }
 0x138   : > { %979 = vst [vmem:[%s8640_s30 + $0xe80] sm:$0xf] %v978_v16  ;;  %v982_v18 = vld [vmem:[%s8644_s12 + $0xe88] sm:$0xf]  ;;  %v984_v19 = vld [vmem:[%s8644_s12 + $0xe8c] sm:$0xf] }
 0x139   : > { %981 = vst [vmem:[%s8640_s30 + $0xe88] sm:$0xf] %v980_v17  ;;  %983 = vst [vmem:[%s8640_s30 + $0xe90] sm:$0xf] %v982_v18  ;;  %v986_v20 = vld [vmem:[%s8644_s12 + $0xe90] sm:$0xf] }
 0x13a   : > { %985 = vst [vmem:[%s8640_s30 + $0xe98] sm:$0xf] %v984_v19  ;;  %v988_v21 = vld [vmem:[%s8644_s12 + $0xe94] sm:$0xf]  ;;  %v990_v22 = vld [vmem:[%s8644_s12 + $0xe98] sm:$0xf] }
 0x13b   : > { %987 = vst [vmem:[%s8640_s30 + $0xea0] sm:$0xf] %v986_v20  ;;  %989 = vst [vmem:[%s8640_s30 + $0xea8] sm:$0xf] %v988_v21  ;;  %v992_v23 = vld [vmem:[%s8644_s12 + $0xe9c] sm:$0xf] }
 0x13c   : > { %991 = vst [vmem:[%s8640_s30 + $0xeb0] sm:$0xf] %v990_v22  ;;  %v994_v24 = vld [vmem:[%s8644_s12 + $0xec0] sm:$0xf]  ;;  %v996_v25 = vld [vmem:[%s8644_s12 + $0xec4] sm:$0xf] }
 0x13d   : > { %993 = vst [vmem:[%s8640_s30 + $0xeb8] sm:$0xf] %v992_v23  ;;  %995 = vst [vmem:[%s8640_s30 + $0xec0] sm:$0xf] %v994_v24  ;;  %v998_v26 = vld [vmem:[%s8644_s12 + $0xec8] sm:$0xf] }
 0x13e   : > { %997 = vst [vmem:[%s8640_s30 + $0xec8] sm:$0xf] %v996_v25  ;;  %v1000_v27 = vld [vmem:[%s8644_s12 + $0xecc] sm:$0xf]  ;;  %v1002_v28 = vld [vmem:[%s8644_s12 + $0xed0] sm:$0xf] }
 0x13f   : > { %999 = vst [vmem:[%s8640_s30 + $0xed0] sm:$0xf] %v998_v26  ;;  %1001 = vst [vmem:[%s8640_s30 + $0xed8] sm:$0xf] %v1000_v27  ;;  %v1004_v29 = vld [vmem:[%s8644_s12 + $0xed4] sm:$0xf] }
 0x140   : > { %1003 = vst [vmem:[%s8640_s30 + $0xee0] sm:$0xf] %v1002_v28  ;;  %v1006_v30 = vld [vmem:[%s8644_s12 + $0xed8] sm:$0xf]  ;;  %v1008_v31 = vld [vmem:[%s8644_s12 + $0xedc] sm:$0xf] }
 0x141   : > { %1005 = vst [vmem:[%s8640_s30 + $0xee8] sm:$0xf] %v1004_v29  ;;  %1007 = vst [vmem:[%s8640_s30 + $0xef0] sm:$0xf] %v1006_v30  ;;  %v1010_v32 = vld [vmem:[%s8644_s12 + $0xf00] sm:$0xf] }
 0x142   : > { %1009 = vst [vmem:[%s8640_s30 + $0xef8] sm:$0xf] %v1008_v31  ;;  %v1012_v33 = vld [vmem:[%s8644_s12 + $0xf04] sm:$0xf]  ;;  %v1014_v34 = vld [vmem:[%s8644_s12 + $0xf08] sm:$0xf] }
 0x143   : > { %1011 = vst [vmem:[%s8640_s30 + $0xf00] sm:$0xf] %v1010_v32  ;;  %1013 = vst [vmem:[%s8640_s30 + $0xf08] sm:$0xf] %v1012_v33  ;;  %v1016_v35 = vld [vmem:[%s8644_s12 + $0xf0c] sm:$0xf] }
 0x144   : > { %1015 = vst [vmem:[%s8640_s30 + $0xf10] sm:$0xf] %v1014_v34  ;;  %v1018_v36 = vld [vmem:[%s8644_s12 + $0xf10] sm:$0xf]  ;;  %v1020_v37 = vld [vmem:[%s8644_s12 + $0xf14] sm:$0xf] }
 0x145   : > { %1017 = vst [vmem:[%s8640_s30 + $0xf18] sm:$0xf] %v1016_v35  ;;  %1019 = vst [vmem:[%s8640_s30 + $0xf20] sm:$0xf] %v1018_v36  ;;  %v1022_v38 = vld [vmem:[%s8644_s12 + $0xf18] sm:$0xf] }
 0x146   : > { %1021 = vst [vmem:[%s8640_s30 + $0xf28] sm:$0xf] %v1020_v37  ;;  %v1024_v39 = vld [vmem:[%s8644_s12 + $0xf1c] sm:$0xf]  ;;  %v1026_v40 = vld [vmem:[%s8644_s12 + $0xf40] sm:$0xf] }
 0x147   : > { %1023 = vst [vmem:[%s8640_s30 + $0xf30] sm:$0xf] %v1022_v38  ;;  %1025 = vst [vmem:[%s8640_s30 + $0xf38] sm:$0xf] %v1024_v39  ;;  %v1028_v41 = vld [vmem:[%s8644_s12 + $0xf44] sm:$0xf] }
 0x148   : > { %1027 = vst [vmem:[%s8640_s30 + $0xf40] sm:$0xf] %v1026_v40  ;;  %v1030_v42 = vld [vmem:[%s8644_s12 + $0xf48] sm:$0xf]  ;;  %v1032_v43 = vld [vmem:[%s8644_s12 + $0xf4c] sm:$0xf] }
 0x149   : > { %1029 = vst [vmem:[%s8640_s30 + $0xf48] sm:$0xf] %v1028_v41  ;;  %1031 = vst [vmem:[%s8640_s30 + $0xf50] sm:$0xf] %v1030_v42  ;;  %v1034_v44 = vld [vmem:[%s8644_s12 + $0xf50] sm:$0xf] }
 0x14a   : > { %1033 = vst [vmem:[%s8640_s30 + $0xf58] sm:$0xf] %v1032_v43  ;;  %v1036_v45 = vld [vmem:[%s8644_s12 + $0xf54] sm:$0xf]  ;;  %v1038_v46 = vld [vmem:[%s8644_s12 + $0xf58] sm:$0xf] }
 0x14b   : > { %1035 = vst [vmem:[%s8640_s30 + $0xf60] sm:$0xf] %v1034_v44  ;;  %1037 = vst [vmem:[%s8640_s30 + $0xf68] sm:$0xf] %v1036_v45  ;;  %v1040_v47 = vld [vmem:[%s8644_s12 + $0xf5c] sm:$0xf] }
 0x14c   : > { %1039 = vst [vmem:[%s8640_s30 + $0xf70] sm:$0xf] %v1038_v46  ;;  %v1042_v48 = vld [vmem:[%s8644_s12 + $0xf80] sm:$0xf]  ;;  %v1044_v49 = vld [vmem:[%s8644_s12 + $0xf84] sm:$0xf] }
 0x14d   : > { %1041 = vst [vmem:[%s8640_s30 + $0xf78] sm:$0xf] %v1040_v47  ;;  %1043 = vst [vmem:[%s8640_s30 + $0xf80] sm:$0xf] %v1042_v48  ;;  %v1046_v50 = vld [vmem:[%s8644_s12 + $0xf88] sm:$0xf] }
 0x14e   : > { %1045 = vst [vmem:[%s8640_s30 + $0xf88] sm:$0xf] %v1044_v49  ;;  %v1048_v51 = vld [vmem:[%s8644_s12 + $0xf8c] sm:$0xf]  ;;  %v1050_v52 = vld [vmem:[%s8644_s12 + $0xf90] sm:$0xf] }
 0x14f   : > { %1047 = vst [vmem:[%s8640_s30 + $0xf90] sm:$0xf] %v1046_v50  ;;  %1049 = vst [vmem:[%s8640_s30 + $0xf98] sm:$0xf] %v1048_v51  ;;  %v1052_v53 = vld [vmem:[%s8644_s12 + $0xf94] sm:$0xf] }
 0x150   : > { %1051 = vst [vmem:[%s8640_s30 + $0xfa0] sm:$0xf] %v1050_v52  ;;  %v1054_v54 = vld [vmem:[%s8644_s12 + $0xf98] sm:$0xf]  ;;  %v1056_v55 = vld [vmem:[%s8644_s12 + $0xf9c] sm:$0xf] }
 0x151   : > { %1053 = vst [vmem:[%s8640_s30 + $0xfa8] sm:$0xf] %v1052_v53  ;;  %1055 = vst [vmem:[%s8640_s30 + $0xfb0] sm:$0xf] %v1054_v54  ;;  %v1058_v56 = vld [vmem:[%s8644_s12 + $0xfc0] sm:$0xf] }
 0x152   : > { %1057 = vst [vmem:[%s8640_s30 + $0xfb8] sm:$0xf] %v1056_v55  ;;  %v1060_v57 = vld [vmem:[%s8644_s12 + $0xfc4] sm:$0xf]  ;;  %v1062_v58 = vld [vmem:[%s8644_s12 + $0xfc8] sm:$0xf] }
 0x153   : > { %1059 = vst [vmem:[%s8640_s30 + $0xfc0] sm:$0xf] %v1058_v56  ;;  %1061 = vst [vmem:[%s8640_s30 + $0xfc8] sm:$0xf] %v1060_v57  ;;  %v1064_v59 = vld [vmem:[%s8644_s12 + $0xfcc] sm:$0xf] }
 0x154   : > { %1063 = vst [vmem:[%s8640_s30 + $0xfd0] sm:$0xf] %v1062_v58  ;;  %v1066_v60 = vld [vmem:[%s8644_s12 + $0xfd0] sm:$0xf]  ;;  %v1068_v61 = vld [vmem:[%s8644_s12 + $0xfd4] sm:$0xf] }
 0x155   : > { %1065 = vst [vmem:[%s8640_s30 + $0xfd8] sm:$0xf] %v1064_v59  ;;  %1067 = vst [vmem:[%s8640_s30 + $0xfe0] sm:$0xf] %v1066_v60  ;;  %v1070_v62 = vld [vmem:[%s8644_s12 + $0xfd8] sm:$0xf] }
 0x156   : > { %1069 = vst [vmem:[%s8640_s30 + $0xfe8] sm:$0xf] %v1068_v61  ;;  %v1072_v63 = vld [vmem:[%s8644_s12 + $0xfdc] sm:$0xf]  ;;  %1071 = vst [vmem:[%s8640_s30 + $0xff0] sm:$0xf] %v1070_v62 }
 0x157   : > { %1073 = vst [vmem:[%s8640_s30 + $0xff8] sm:$0xf] %v1072_v63  ;;  %p1075_p0 = scmp.ge.s32.totalorder %s1074_s15, 2  ;;  %s46_s14 = sadd.s32 1, %s8652_s14  }
 0x158   : > { %p43_p1 = scmp.ge.s32.totalorder %s46_s14, 2  }
 0x159   : > { %s11178_s15 = smov (%p1075_p0, %s1074_s15), 0 }
 0x15a   : > { %s8029_s16 = sshll.u32 %s11178_s15, 5  ;;  %s8030_s17 = sshll.u32 %s11178_s15, 2 }
 0x15b   : > { %s1079_s12 = scalar_lea.vmem %s11114_s5, %s8029_s16   ;;  %s1080_s30 = scalar_lea.vmem [#allocation5], %s8030_s17  }
 0x15c   : > { %s11120_s13 = smov %s11178_s15  ;;  %45 = sbr.rel (!%p43_p1) target bundleno = 2 (0x2), region = 246 }
 0x163   :  { %4250 = vsyncadd [#allocation7], 65536  ;;  %v9779_v0 = vld [vmem:[%s11116_s7] sm:$0xff]  ;;  %v9784_v1 = vld [vmem:[%s11116_s7 + $0x8] sm:$0xff] }
 0x164   :  { %v9789_v2 = vld [vmem:[%s11116_s7 + $0x10] sm:$0xff]  ;;  %v9794_v3 = vld [vmem:[%s11116_s7 + $0x18] sm:$0xff]  ;;  %v9799_v4 = vld [vmem:[%s11116_s7 + $0x20] sm:$0xff] }
 0x165   :  { %v9804_v5 = vld [vmem:[%s11116_s7 + $0x28] sm:$0xff]  ;;  %v9809_v6 = vld [vmem:[%s11116_s7 + $0x30] sm:$0xff]  ;;  %v9814_v7 = vld [vmem:[%s11116_s7 + $0x38] sm:$0xff] }
 0x166   :  { %v9819_v8 = vld [vmem:[%s11116_s7 + $0x40] sm:$0xff]  ;;  %v9824_v9 = vld [vmem:[%s11116_s7 + $0x48] sm:$0xff]  ;;  %v9829_v10 = vld [vmem:[%s11116_s7 + $0x50] sm:$0xff] }
 0x167   :  { %v9834_v11 = vld [vmem:[%s11116_s7 + $0x58] sm:$0xff]  ;;  %v9839_v12 = vld [vmem:[%s11116_s7 + $0x60] sm:$0xff]  ;;  %v9844_v13 = vld [vmem:[%s11116_s7 + $0x68] sm:$0xff] }
 0x168   :  { %v9849_v14 = vld [vmem:[%s11116_s7 + $0x70] sm:$0xff]  ;;  %v9854_v15 = vld [vmem:[%s11116_s7 + $0x78] sm:$0xff]  ;;  %v9859_v16 = vld [vmem:[%s11116_s7 + $0x80] sm:$0xff] }
 0x169   :  { %v9864_v17 = vld [vmem:[%s11116_s7 + $0x88] sm:$0xff]  ;;  %v9869_v18 = vld [vmem:[%s11116_s7 + $0x90] sm:$0xff]  ;;  %v9874_v19 = vld [vmem:[%s11116_s7 + $0x98] sm:$0xff] }
 0x16a   :  { %v9879_v20 = vld [vmem:[%s11116_s7 + $0xa0] sm:$0xff]  ;;  %v9884_v21 = vld [vmem:[%s11116_s7 + $0xa8] sm:$0xff]  ;;  %v9889_v22 = vld [vmem:[%s11116_s7 + $0xb0] sm:$0xff] }
 0x16b   :  { %v9894_v23 = vld [vmem:[%s11116_s7 + $0xb8] sm:$0xff]  ;;  %v9899_v24 = vld [vmem:[%s11116_s7 + $0xc0] sm:$0xff]  ;;  %v9904_v25 = vld [vmem:[%s11116_s7 + $0xc8] sm:$0xff] }
 0x16c   :  { %v9909_v26 = vld [vmem:[%s11116_s7 + $0xd0] sm:$0xff]  ;;  %v9914_v27 = vld [vmem:[%s11116_s7 + $0xd8] sm:$0xff]  ;;  %v9919_v28 = vld [vmem:[%s11116_s7 + $0xe0] sm:$0xff] }
 0x16d   :  { %v9924_v29 = vld [vmem:[%s11116_s7 + $0xe8] sm:$0xff]  ;;  %v9929_v30 = vld [vmem:[%s11116_s7 + $0xf0] sm:$0xff]  ;;  %v9934_v31 = vld [vmem:[%s11116_s7 + $0xf8] sm:$0xff] }
 0x16e   :  { %v9939_v32 = vld [vmem:[%s11116_s7 + $0x100] sm:$0xff]  ;;  %v9944_v33 = vld [vmem:[%s11116_s7 + $0x108] sm:$0xff]  ;;  %v9949_v34 = vld [vmem:[%s11116_s7 + $0x110] sm:$0xff] }
 0x16f   :  { %11121 = vst [vmem:[#allocation15_spill] sm:$0xff] %v9949_v34  ;;  %v9954_v35 = vld [vmem:[%s11116_s7 + $0x118] sm:$0xff]  ;;  %v9959_v36 = vld [vmem:[%s11116_s7 + $0x120] sm:$0xff]  ;;  %v9964_v37 = vld [vmem:[%s11116_s7 + $0x128] sm:$0xff] }
 0x170   :  { %11122 = vst [vmem:[#allocation16_spill] sm:$0xff] %v9954_v35  ;;  %11123 = vst [vmem:[#allocation17_spill] sm:$0xff] %v9959_v36  ;;  %v9969_v38 = vld [vmem:[%s11116_s7 + $0x130] sm:$0xff]  ;;  %v9974_v39 = vld [vmem:[%s11116_s7 + $0x138] sm:$0xff] }
 0x171   :  { %11124 = vst [vmem:[#allocation18_spill] sm:$0xff] %v9964_v37  ;;  %11125 = vst [vmem:[#allocation19_spill] sm:$0xff] %v9969_v38  ;;  %v9979_v40 = vld [vmem:[%s11116_s7 + $0x140] sm:$0xff]  ;;  %v9984_v41 = vld [vmem:[%s11116_s7 + $0x148] sm:$0xff] }
 0x172   :  { %11126 = vst [vmem:[#allocation20_spill] sm:$0xff] %v9974_v39  ;;  %v9989_v42 = vld [vmem:[%s11116_s7 + $0x150] sm:$0xff]  ;;  %v9994_v43 = vld [vmem:[%s11116_s7 + $0x158] sm:$0xff]  ;;  %v9999_v44 = vld [vmem:[%s11116_s7 + $0x160] sm:$0xff] }
 0x173   :  { %11127 = vst [vmem:[#allocation21_spill] sm:$0xff] %v9989_v42  ;;  %11128 = vst [vmem:[#allocation22_spill] sm:$0xff] %v9994_v43  ;;  %v10004_v45 = vld [vmem:[%s11116_s7 + $0x168] sm:$0xff]  ;;  %v10009_v46 = vld [vmem:[%s11116_s7 + $0x170] sm:$0xff] }
 0x174   :  { %11129 = vst [vmem:[#allocation23_spill] sm:$0xff] %v9999_v44  ;;  %11130 = vst [vmem:[#allocation24_spill] sm:$0xff] %v10004_v45  ;;  %v10014_v47 = vld [vmem:[%s11116_s7 + $0x178] sm:$0xff]  ;;  %v10019_v48 = vld [vmem:[%s11116_s7 + $0x180] sm:$0xff] }
 0x175   :  { %11131 = vst [vmem:[#allocation25_spill] sm:$0xff] %v10009_v46  ;;  %11132 = vst [vmem:[#allocation26_spill] sm:$0xff] %v10014_v47  ;;  %v10024_v49 = vld [vmem:[%s11116_s7 + $0x188] sm:$0xff]  ;;  %v10029_v50 = vld [vmem:[%s11116_s7 + $0x190] sm:$0xff] }
 0x176   :  { %11133 = vst [vmem:[#allocation27_spill] sm:$0xff] %v10024_v49  ;;  %11134 = vst [vmem:[#allocation28_spill] sm:$0xff] %v10029_v50  ;;  %v10034_v51 = vld [vmem:[%s11116_s7 + $0x198] sm:$0xff]  ;;  %v10039_v52 = vld [vmem:[%s11116_s7 + $0x1a0] sm:$0xff] }
 0x177   :  { %11135 = vst [vmem:[#allocation29_spill] sm:$0xff] %v10034_v51  ;;  %11136 = vst [vmem:[#allocation30_spill] sm:$0xff] %v10039_v52  ;;  %v10044_v53 = vld [vmem:[%s11116_s7 + $0x1a8] sm:$0xff]  ;;  %v10049_v54 = vld [vmem:[%s11116_s7 + $0x1b0] sm:$0xff] }
 0x178   :  { %11137 = vst [vmem:[#allocation31_spill] sm:$0xff] %v10044_v53  ;;  %11138 = vst [vmem:[#allocation32_spill] sm:$0xff] %v10049_v54  ;;  %v10054_v55 = vld [vmem:[%s11116_s7 + $0x1b8] sm:$0xff]  ;;  %v10059_v56 = vld [vmem:[%s11116_s7 + $0x1c0] sm:$0xff] }
 0x179   :  { %11139 = vst [vmem:[#allocation33_spill] sm:$0xff] %v10054_v55  ;;  %v10064_v57 = vld [vmem:[%s11116_s7 + $0x1c8] sm:$0xff]  ;;  %v10069_v58 = vld [vmem:[%s11116_s7 + $0x1d0] sm:$0xff]  ;;  %v10074_v59 = vld [vmem:[%s11116_s7 + $0x1d8] sm:$0xff] }
 0x17a   :  { %11140 = vst [vmem:[#allocation34_spill] sm:$0xff] %v10069_v58  ;;  %11141 = vst [vmem:[#allocation35_spill] sm:$0xff] %v10074_v59  ;;  %v10079_v60 = vld [vmem:[%s11116_s7 + $0x1e0] sm:$0xff]  ;;  %v10084_v61 = vld [vmem:[%s11116_s7 + $0x1e8] sm:$0xff] }
 0x17b   :  { %11142 = vst [vmem:[#allocation36_spill] sm:$0xff] %v10079_v60  ;;  %11143 = vst [vmem:[#allocation37_spill] sm:$0xff] %v10084_v61  ;;  %v10089_v62 = vld [vmem:[%s11116_s7 + $0x1f0] sm:$0xff]  ;;  %v10094_v63 = vld [vmem:[%s11116_s7 + $0x1f8] sm:$0xff] }
 0x17c   :  { %11144 = vst [vmem:[#allocation38_spill] sm:$0xff] %v10089_v62  ;;  %11145 = vst [vmem:[#allocation39_spill] sm:$0xff] %v10094_v63 }
 0x17d   :  { %4419 = vsyncadd [#allocation7 + $0x1], 8192  ;;  %v4484_v55 = vld [vmem:[%s11110_s1] sm:$0xff]  ;;  %v4485_v39 = vld [vmem:[%s11110_s1 + $0x8] sm:$0xff]  ;;  %vm4496_vm0 = vcmask 293888   ;;  %vm4689_vm1 = vcmask 1043456  }
 0x17e   :  { %v8434_v47 = vpack.c.bf16 %v4485_v39, %v4484_v55  ;;  %v4486_v54 = vld [vmem:[%s11110_s1 + $0x10] sm:$0xff]  ;;  %v4487_v38 = vld [vmem:[%s11110_s1 + $0x18] sm:$0xff]  ;;  %v4420_v62 = vld [vmem:[%s11109_s0] sm:$0xff]  ;;  %vm5207_vm2 = vcmask 588800   ;;  %vm5142_vm3 = vcmask 64512   ;;  %vm5270_vm4 = vcmask 63488  }
 0x17f   :  { %v8438_v63 = vpack.c.bf16 %v4487_v38, %v4486_v54  ;;  %8303 = vmatprep.mubr.msk.f32.mxu0 %vm4496_vm0, %v4420_v62  ;;  %v4488_v39 = vld [vmem:[%s11110_s1 + $0x20] sm:$0xf]  ;;  %v4421_v38 = vld [vmem:[%s11109_s0 + $0x8] sm:$0xff]  ;;  %v4422_v54 = vld [vmem:[%s11109_s0 + $0x10] sm:$0xff]  ;;  %s8657_s12 = smov 40   ;;  %s8658_s13 = smov 8  }
 0x180   :  { %8435 = vmatprep.subr.bf16.mxu0 %v8434_v47  ;;  %v4424_v55 = vld [vmem:[%s11109_s0 + $0x20] sm:$0xff]  ;;  %v4425_v62 = vld [vmem:[%s11109_s0 + $0x28] sm:$0xff]  ;;  %s8659_s14 = smov 16   ;;  %s8660_s15 = smov 48   ;;  %vm5230_vm5 = vcmask 260288   ;;  %vm5237_vm6 = vcmask 326912   ;;  %vm10624_vm13 = vmpackc.low %vm5207_vm2, %vm5207_vm2 }
 0x181   :  { %8437 = vmatpush3.bf16.msra.mxu0 %v8434_v47  ;;  %v4423_v47 = vld [vmem:[%s11109_s0 + $0x18] sm:$0xff]  ;;  %s8661_s16 = smov 56   ;;  %s8662_s17 = smov 64   ;;  %vm5244_vm7 = vcmask 392512   ;;  %vm5277_vm8 = vcmask 130112   ;;  %vm5284_vm9 = vcmask 195712  }
 0x182   :  { %8439 = vmatprep.subr.bf16.mxu0 %v8438_v63  ;;  %vm5252_vm10 = vcmask 457088   ;;  %vm5260_vm11 = vcmask 523712   ;;  %vm5267_vm12 = vcmask 589312   ;;  %vm6229_vm14 = vcmask 516096  }
 0x183   :  { %vm6244_vm15 = vcmask 1040896  }
 0x185   :  { %8441 = vmatpush3.bf16.msra.mxu0 %v8438_v63  ;;  %v4426_v63 = vld [vmem:[%s11109_s0 + $0x30] sm:$0xff] }
 0x186   :  { %8301 = vmatprep.subr.msk.mxu0 %vm4689_vm1, %v4488_v39 }
 0x189   :  { %8302 = vmatpush3.msk.msra.mxu0 %vm4689_vm1, %v4488_v39  ;;  %v4427_v39 = vld [vmem:[%s11109_s0 + $0x38] sm:$0xff] }
 0x18a   :  { %8304 = vmatmul.mubr.msk.f32.vlgmr.msra.gmra.mrb[0].mxu0 %vm4496_vm0, %v4421_v38  ;;  %v4428_v38 = vld [vmem:[%s11109_s0 + $0x40] sm:$0xff] }
 0x18b   :  { %8306 = vmatprep.mubr.msk.f32.mxu0 %vm4496_vm0, %v4422_v54  ;;  %v4429_v54 = vld [vmem:[%s11109_s0 + $0x48] sm:$0xff] }
 0x18e   :  { %8307 = vmatmul.mubr.msk.f32.gmra.mrb[2].mxu0 %vm4496_vm0, %v4423_v47  ;;  %v4430_v47 = vld [vmem:[%s11109_s0 + $0x50] sm:$0xff] }
 0x18f   :  { %8309 = vmatprep.mubr.msk.f32.mxu0 %vm4496_vm0, %v4424_v55  ;;  %v4431_v55 = vld [vmem:[%s11109_s0 + $0x58] sm:$0xff] }
 0x192   :  { %8310 = vmatmul.mubr.msk.f32.gmra.mrb[4].mxu0 %vm4496_vm0, %v4425_v62  ;;  %v4432_v62 = vld [vmem:[%s11109_s0 + $0x60] sm:$0xff] }
 0x193   :  { %8312 = vmatprep.mubr.msk.f32.mxu0 %vm4496_vm0, %v4426_v63  ;;  %v4433_v63 = vld [vmem:[%s11109_s0 + $0x68] sm:$0xff] }
 0x196   :  { %8313 = vmatmul.mubr.msk.f32.gmra.mrb[6].mxu0 %vm4496_vm0, %v4427_v39  ;;  %v4434_v39 = vld [vmem:[%s11109_s0 + $0x70] sm:$0xff] }
 0x197   :  { %8315 = vmatprep.mubr.msk.f32.mxu0 %vm4496_vm0, %v4428_v38  ;;  %v4435_v38 = vld [vmem:[%s11109_s0 + $0x78] sm:$0xff] }
 0x19a   :  { %8316 = vmatmul.mubr.msk.f32.gmra.mrb[8].mxu0 %vm4496_vm0, %v4429_v54  ;;  %v4436_v54 = vld [vmem:[%s11109_s0 + $0x80] sm:$0xff] }
 0x19b   :  { %8318 = vmatprep.mubr.msk.f32.mxu0 %vm4496_vm0, %v4430_v47  ;;  %v4437_v47 = vld [vmem:[%s11109_s0 + $0x88] sm:$0xff] }
 0x19e   :  { %8319 = vmatmul.mubr.msk.f32.gmra.mrb[10].mxu0 %vm4496_vm0, %v4431_v55  ;;  %v4438_v55 = vld [vmem:[%s11109_s0 + $0x90] sm:$0xff] }
 0x19f   :  { %8321 = vmatprep.mubr.msk.f32.mxu0 %vm4496_vm0, %v4432_v62  ;;  %v4439_v62 = vld [vmem:[%s11109_s0 + $0x98] sm:$0xff] }
 0x1a2   :  { %8322 = vmatmul.mubr.msk.f32.gmra.mrb[12].mxu0 %vm4496_vm0, %v4433_v63  ;;  %v4440_v63 = vld [vmem:[%s11109_s0 + $0xa0] sm:$0xff] }
 0x1a3   :  { %8324 = vmatprep.mubr.msk.f32.mxu0 %vm4496_vm0, %v4434_v39  ;;  %v4441_v39 = vld [vmem:[%s11109_s0 + $0xa8] sm:$0xff] }
 0x1a6   :  { %8325 = vmatmul.mubr.msk.f32.gmra.mrb[14].mxu0 %vm4496_vm0, %v4435_v38  ;;  %v4442_v38 = vld [vmem:[%s11109_s0 + $0xb0] sm:$0xff] }
 0x1a7   :  { %8327 = vmatprep.mubr.msk.f32.mxu0 %vm4496_vm0, %v4436_v54  ;;  %v4443_v54 = vld [vmem:[%s11109_s0 + $0xb8] sm:$0xff] }
 0x1aa   :  { %8328 = vmatmul.mubr.msk.f32.gmra.mrb[16].mxu0 %vm4496_vm0, %v4437_v47  ;;  %v4444_v47 = vld [vmem:[%s11109_s0 + $0xc0] sm:$0xff] }
 0x1ab   :  { %8330 = vmatprep.mubr.msk.f32.mxu0 %vm4496_vm0, %v4438_v55  ;;  %v4445_v55 = vld [vmem:[%s11109_s0 + $0xc8] sm:$0xff] }
 0x1ae   :  { %8331 = vmatmul.mubr.msk.f32.gmra.mrb[18].mxu0 %vm4496_vm0, %v4439_v62  ;;  %v4446_v62 = vld [vmem:[%s11109_s0 + $0xd0] sm:$0xff] }
 0x1af   :  { %8333 = vmatprep.mubr.msk.f32.mxu0 %vm4496_vm0, %v4440_v63  ;;  %v4447_v63 = vld [vmem:[%s11109_s0 + $0xd8] sm:$0xff] }
 0x1b2   :  { %8334 = vmatmul.mubr.msk.f32.gmra.mrb[20].mxu0 %vm4496_vm0, %v4441_v39  ;;  %v4448_v39 = vld [vmem:[%s11109_s0 + $0xe0] sm:$0xff] }
 0x1b3   :  { %8336 = vmatprep.mubr.msk.f32.mxu0 %vm4496_vm0, %v4442_v38  ;;  %v4449_v38 = vld [vmem:[%s11109_s0 + $0xe8] sm:$0xff] }
 0x1b6   :  { %8337 = vmatmul.mubr.msk.f32.gmra.mrb[22].mxu0 %vm4496_vm0, %v4443_v54  ;;  %v4450_v54 = vld [vmem:[%s11109_s0 + $0xf0] sm:$0xff] }
 0x1b7   :  { %8339 = vmatprep.mubr.msk.f32.mxu0 %vm4496_vm0, %v4444_v47  ;;  %v4451_v47 = vld [vmem:[%s11109_s0 + $0xf8] sm:$0xff] }
 0x1ba   :  { %8340 = vmatmul.mubr.msk.f32.gmra.mrb[24].mxu0 %vm4496_vm0, %v4445_v55  ;;  %v4452_v55 = vld [vmem:[%s11109_s0 + $0x100] sm:$0xff] }
 0x1bb   :  { %8342 = vmatprep.mubr.msk.f32.mxu0 %vm4496_vm0, %v4446_v62  ;;  %v4453_v62 = vld [vmem:[%s11109_s0 + $0x108] sm:$0xff] }
 0x1be   :  { %8343 = vmatmul.mubr.msk.f32.gmra.mrb[26].mxu0 %vm4496_vm0, %v4447_v63  ;;  %v4454_v63 = vld [vmem:[%s11109_s0 + $0x110] sm:$0xff] }
 0x1bf   :  { %8345 = vmatprep.mubr.msk.f32.mxu0 %vm4496_vm0, %v4448_v39  ;;  %v4455_v39 = vld [vmem:[%s11109_s0 + $0x118] sm:$0xff] }
 0x1c2   :  { %8346 = vmatmul.mubr.msk.f32.gmra.mrb[28].mxu0 %vm4496_vm0, %v4449_v38  ;;  %v4456_v38 = vld [vmem:[%s11109_s0 + $0x120] sm:$0xff] }
 0x1c3   :  { %8348 = vmatprep.mubr.msk.f32.mxu0 %vm4496_vm0, %v4450_v54  ;;  %v4457_v54 = vld [vmem:[%s11109_s0 + $0x128] sm:$0xff] }
 0x1c6   :  { %8349 = vmatmul.mubr.msk.f32.gmra.mrb[30].mxu0 %vm4496_vm0, %v4451_v47  ;;  %v4458_v47 = vld [vmem:[%s11109_s0 + $0x130] sm:$0xff] }
 0x1c7   :  { %8351 = vmatprep.mubr.msk.f32.mxu0 %vm4496_vm0, %v4452_v55  ;;  %v4459_v55 = vld [vmem:[%s11109_s0 + $0x138] sm:$0xff] }
 0x1ca   :  { %8352 = vmatmul.mubr.msk.f32.gmra.mrb[32].mxu0 %vm4496_vm0, %v4453_v62  ;;  %v4460_v62 = vld [vmem:[%s11109_s0 + $0x140] sm:$0xff] }
 0x1cb   :  { %8354 = vmatprep.mubr.msk.f32.mxu0 %vm4496_vm0, %v4454_v63  ;;  %v4461_v63 = vld [vmem:[%s11109_s0 + $0x148] sm:$0xff] }
 0x1ce   :  { %8355 = vmatmul.mubr.msk.f32.gmra.mrb[34].mxu0 %vm4496_vm0, %v4455_v39  ;;  %v4462_v39 = vld [vmem:[%s11109_s0 + $0x150] sm:$0xff] }
 0x1cf   :  { %8357 = vmatprep.mubr.msk.f32.mxu0 %vm4496_vm0, %v4456_v38  ;;  %v4463_v38 = vld [vmem:[%s11109_s0 + $0x158] sm:$0xff] }
 0x1d2   :  { %8358 = vmatmul.mubr.msk.f32.gmra.mrb[36].mxu0 %vm4496_vm0, %v4457_v54  ;;  %v4464_v54 = vld [vmem:[%s11109_s0 + $0x160] sm:$0xff] }
 0x1d3   :  { %8360 = vmatprep.mubr.msk.f32.mxu0 %vm4496_vm0, %v4458_v47  ;;  %v4465_v47 = vld [vmem:[%s11109_s0 + $0x168] sm:$0xff] }
 0x1d6   :  { %8361 = vmatmul.mubr.msk.f32.gmra.mrb[38].mxu0 %vm4496_vm0, %v4459_v55  ;;  %v4466_v55 = vld [vmem:[%s11109_s0 + $0x170] sm:$0xff] }
 0x1d7   :  { %8363 = vmatprep.mubr.msk.f32.mxu0 %vm4496_vm0, %v4460_v62  ;;  %v4467_v62 = vld [vmem:[%s11109_s0 + $0x178] sm:$0xff] }
 0x1da   :  { %8364 = vmatmul.mubr.msk.f32.gmra.mrb[40].mxu0 %vm4496_vm0, %v4461_v63  ;;  %v4468_v63 = vld [vmem:[%s11109_s0 + $0x180] sm:$0xff] }
 0x1db   :  { %8366 = vmatprep.mubr.msk.f32.mxu0 %vm4496_vm0, %v4462_v39  ;;  %v4469_v39 = vld [vmem:[%s11109_s0 + $0x188] sm:$0xff] }
 0x1de   :  { %8367 = vmatmul.mubr.msk.f32.gmra.mrb[42].mxu0 %vm4496_vm0, %v4463_v38  ;;  %v4470_v38 = vld [vmem:[%s11109_s0 + $0x190] sm:$0xff] }
 0x1df   :  { %8369 = vmatprep.mubr.msk.f32.mxu0 %vm4496_vm0, %v4464_v54  ;;  %v4471_v54 = vld [vmem:[%s11109_s0 + $0x198] sm:$0xff] }
 0x1e2   :  { %8370 = vmatmul.mubr.msk.f32.gmra.mrb[44].mxu0 %vm4496_vm0, %v4465_v47  ;;  %v4472_v47 = vld [vmem:[%s11109_s0 + $0x1a0] sm:$0xff] }
 0x1e3   :  { %8372 = vmatprep.mubr.msk.f32.mxu0 %vm4496_vm0, %v4466_v55  ;;  %v4473_v55 = vld [vmem:[%s11109_s0 + $0x1a8] sm:$0xff] }
 0x1e6   :  { %8373 = vmatmul.mubr.msk.f32.gmra.mrb[46].mxu0 %vm4496_vm0, %v4467_v62  ;;  %v4474_v62 = vld [vmem:[%s11109_s0 + $0x1b0] sm:$0xff] }
 0x1e7   :  { %8375 = vmatprep.mubr.msk.f32.mxu0 %vm4496_vm0, %v4468_v63  ;;  %v8654_v63 = vmov 0.0  }
 0x1e8   :  { %5208 = vst.msk [vmem:[#allocation3] sm:$0xff] %vm5207_vm2, %v8654_v63  ;;  %5209 = vst.msk [vmem:[#allocation3 + $0x8] sm:$0xff] %vm5207_vm2, %v8654_v63 }
 0x1e9   :  { %5210 = vst.msk [vmem:[#allocation3 + $0x10] sm:$0xff] %vm5207_vm2, %v8654_v63  ;;  %5211 = vst.msk [vmem:[#allocation3 + $0x18] sm:$0xff] %vm5207_vm2, %v8654_v63 }
 0x1ea   :  { %8376 = vmatmul.mubr.msk.f32.gmra.mrb[48].mxu0 %vm4496_vm0, %v4469_v39  ;;  %5212 = vst.msk [vmem:[#allocation3 + $0x20] sm:$0xff] %vm5207_vm2, %v8654_v63  ;;  %5213 = vst.msk [vmem:[#allocation3 + $0x28] sm:$0xff] %vm5207_vm2, %v8654_v63  ;;  %v4475_v39 = vld [vmem:[%s11109_s0 + $0x1b8] sm:$0xff] }
 0x1eb   :  { %8378 = vmatprep.mubr.msk.f32.mxu0 %vm4496_vm0, %v4470_v38  ;;  %5214 = vst.msk [vmem:[#allocation3 + $0x30] sm:$0xff] %vm5207_vm2, %v8654_v63  ;;  %5215 = vst.msk [vmem:[#allocation3 + $0x38] sm:$0xff] %vm5207_vm2, %v8654_v63  ;;  %v4476_v38 = vld [vmem:[%s11109_s0 + $0x1c0] sm:$0xff] }
 0x1ec   :  { %5216 = vst.msk [vmem:[#allocation3 + $0x40] sm:$0xff] %vm5207_vm2, %v8654_v63  ;;  %5217 = vst.msk [vmem:[#allocation3 + $0x48] sm:$0xff] %vm5207_vm2, %v8654_v63 }
 0x1ed   :  { %5218 = vst.msk [vmem:[#allocation3 + $0x50] sm:$0xff] %vm5207_vm2, %v8654_v63  ;;  %5219 = vst.msk [vmem:[#allocation3 + $0x58] sm:$0xff] %vm5207_vm2, %v8654_v63 }
 0x1ee   :  { %8379 = vmatmul.mubr.msk.f32.gmra.mrb[50].mxu0 %vm4496_vm0, %v4471_v54  ;;  %5220 = vst.msk [vmem:[#allocation3 + $0x60] sm:$0xff] %vm5207_vm2, %v8654_v63  ;;  %5221 = vst.msk [vmem:[#allocation3 + $0x68] sm:$0xff] %vm5207_vm2, %v8654_v63  ;;  %v4477_v54 = vld [vmem:[%s11109_s0 + $0x1c8] sm:$0xff] }
 0x1ef   :  { %8381 = vmatprep.mubr.msk.f32.mxu0 %vm4496_vm0, %v4472_v47  ;;  %5222 = vst.msk [vmem:[#allocation3 + $0x70] sm:$0xff] %vm5207_vm2, %v8654_v63  ;;  %5223 = vst.msk [vmem:[#allocation3 + $0x78] sm:$0xff] %vm5207_vm2, %v8654_v63  ;;  %v4478_v47 = vld [vmem:[%s11109_s0 + $0x1d0] sm:$0xff]  ;;  %v4481_v63 = vld [vmem:[%s11109_s0 + $0x1e8] sm:$0xff] }
 0x1f2   :  { %8382 = vmatmul.mubr.msk.f32.gmra.mrb[52].mxu0 %vm4496_vm0, %v4473_v55  ;;  %v4479_v55 = vld [vmem:[%s11109_s0 + $0x1d8] sm:$0xff] }
 0x1f3   :  { %8384 = vmatprep.mubr.msk.f32.mxu0 %vm4496_vm0, %v4474_v62  ;;  %v4480_v62 = vld [vmem:[%s11109_s0 + $0x1e0] sm:$0xff] }
 0x1f6   :  { %8385 = vmatmul.mubr.msk.f32.gmra.mrb[54].mxu0 %vm4496_vm0, %v4475_v39  ;;  %v4482_v39 = vld [vmem:[%s11109_s0 + $0x1f0] sm:$0xff] }
 0x1f7   :  { %8387 = vmatprep.mubr.msk.f32.mxu0 %vm4496_vm0, %v4476_v38  ;;  %v4483_v38 = vld [vmem:[%s11109_s0 + $0x1f8] sm:$0xff]  ;;  %s8655_s0 = smov 32  }
 0x1fa   :  { %8388 = vmatmul.mubr.msk.f32.gmra.mrb[56].mxu0 %vm4496_vm0, %v4477_v54  ;;  %v10386_v54 = vld [vmem:[%s11111_s2] ss:$0 sm:$0xff]  ;;  %s8656_s2 = smov 24  }
 0x1fb   :  { %8390 = vmatprep.mubr.msk.f32.mxu0 %vm4496_vm0, %v4478_v47 }
 0x1fe   :  { %8391 = vmatmul.mubr.msk.f32.gmra.mrb[58].mxu0 %vm4496_vm0, %v4479_v55 }
 0x1ff   :  { %8393 = vmatprep.mubr.msk.f32.mxu0 %vm4496_vm0, %v4480_v62 }
 0x202   :  { %8394 = vmatmul.mubr.msk.f32.gmra.mrb[60].mxu0 %vm4496_vm0, %v4481_v63 }
 0x203   :  { %8396 = vmatprep.mubr.msk.f32.mxu0 %vm4496_vm0, %v4482_v39 }
 0x206   :  { %8397 = vmatmul.mubr.msk.f32.gmra.mrb[62].mxu0 %vm4496_vm0, %v4483_v38 }
 0x25d   :  { %v8305_v47 = vpop.f32.mrb[0].mxu0 }
 0x25e   :  { %v4765_v55 = vadd.f32 %v8305_v47, %v10386_v54  ;;  %v4759_v62 = vpop.f32.mrb[1].mxu0 }
 0x25f   :  { %v4760_v63 = vadd.f32 %v10386_v54, %v4759_v62 }
 0x260   :  { %v5079_v46 = vmax.f32 %v4765_v55, 0.0 }
 0x261   :  { %v5078_v39 = vmax.f32 %v4760_v63, 0.0  ;;  %v8308_v53 = vpop.f32.mrb[2].mxu0 }
 0x262   :  { %5144 = vst.msk [vmem:[#allocation2 + $0x8] sm:$0xff] %vm5142_vm3, %v5079_v46  ;;  %v4775_v37 = vadd.f32 %v8308_v53, %v10386_v54  ;;  %v4769_v38 = vpop.f32.mrb[3].mxu0 }
 0x263   :  { %5143 = vst.msk [vmem:[#allocation2] sm:$0xff] %vm5142_vm3, %v5078_v39  ;;  %v4770_v61 = vadd.f32 %v10386_v54, %v4769_v38 }
 0x264   :  { %v5081_v45 = vmax.f32 %v4775_v37, 0.0 }
 0x265   :  { %v5080_v52 = vmax.f32 %v4770_v61, 0.0  ;;  %v8311_v36 = vpop.f32.mrb[4].mxu0 }
 0x266   :  { %5146 = vst.msk [vmem:[#allocation2 + $0x18] sm:$0xff] %vm5142_vm3, %v5081_v45  ;;  %v4785_v47 = vadd.f32 %v8311_v36, %v10386_v54  ;;  %v4779_v62 = vpop.f32.mrb[5].mxu0 }
 0x267   :  { %5145 = vst.msk [vmem:[#allocation2 + $0x10] sm:$0xff] %vm5142_vm3, %v5080_v52  ;;  %v4780_v55 = vadd.f32 %v10386_v54, %v4779_v62 }
 0x268   :  { %v5083_v46 = vmax.f32 %v4785_v47, 0.0 }
 0x269   :  { %v5082_v63 = vmax.f32 %v4780_v55, 0.0  ;;  %v8314_v53 = vpop.f32.mrb[6].mxu0 }
 0x26a   :  { %5148 = vst.msk [vmem:[#allocation2 + $0x28] sm:$0xff] %vm5142_vm3, %v5083_v46  ;;  %v5232_v39 = vld [vmem:[#allocation2] ss:$2 sm:$0xff]  ;;  %v5225_v60 = vld [vmem:[#allocation2 + $0x1] ss:$2 sm:$0x7f]  ;;  %v4795_v37 = vadd.f32 %v8314_v53, %v10386_v54 }
 0x26b   :  { %v4789_v61 = vpop.f32.mrb[7].mxu0  ;;  %5147 = vst.msk [vmem:[#allocation2 + $0x20] sm:$0xff] %vm5142_vm3, %v5082_v63  ;;  %5234 = vrot.lane.b32.xlu0 %v5232_v39, %s8655_s0  ;;  %5227 = vrot.lane.b32.xlu1 %v5225_v60, %s8656_s2  ;;  %v5239_v47 = vld [vmem:[#allocation2 + $0x1] ss:$2 sm:$0xff] }
 0x26c   :  { %v4790_v36 = vadd.f32 %v10386_v54, %v4789_v61  ;;  %v5085_v45 = vmax.f32 %v4795_v37, 0.0 }
 0x26d   :  { %v8317_v38 = vpop.f32.mrb[8].mxu0 }
 0x26e   :  { %v5084_v52 = vmax.f32 %v4790_v36, 0.0  ;;  %5150 = vst.msk [vmem:[#allocation2 + $0x38] sm:$0xff] %vm5142_vm3, %v5085_v45  ;;  %v4805_v62 = vadd.f32 %v8317_v38, %v10386_v54  ;;  %v4799_v55 = vpop.f32.mrb[9].mxu0  ;;  %v5269_v63 = vld [vmem:[#allocation2 + $0x11] ss:$2 sm:$0x7f] }
 0x26f   :  { %5241 = vrot.lane.b32.xlu0 %v5239_v47, %s8657_s12  ;;  %v4800_v46 = vadd.f32 %v10386_v54, %v4799_v55  ;;  %5271 = vst.msk [vmem:[#allocation3 + $0x9] sm:$0x7f] %vm5270_vm4, %v5269_v63  ;;  %v5272_v37 = vld [vmem:[#allocation2 + $0x10] ss:$2 sm:$0xff]  ;;  %v5279_v55 = vld [vmem:[#allocation2 + $0x11] ss:$2 sm:$0xff] }
 0x270   :  { %5149 = vst.msk [vmem:[#allocation2 + $0x30] sm:$0xff] %vm5142_vm3, %v5084_v52  ;;  %v5087_v60 = vmax.f32 %v4805_v62, 0.0 }
 0x271   :  { %v5086_v53 = vmax.f32 %v4800_v46, 0.0  ;;  %v8320_v39 = vpop.f32.mrb[10].mxu0 }
 0x272   :  { %v5287_v61 = vld [vmem:[#allocation2 + $0x21] ss:$2 sm:$0x7f]  ;;  %5152 = vst.msk [vmem:[#allocation2 + $0x48] sm:$0xff] %vm5142_vm3, %v5087_v60  ;;  %v4815_v36 = vadd.f32 %v8320_v39, %v10386_v54  ;;  %v4809_v45 = vpop.f32.mrb[11].mxu0 }
 0x273   :  { %5274 = vrot.lane.b32.xlu0 %v5272_v37, %s8658_s13  ;;  %5289 = vrot.lane.b32.xlu1 %v5287_v61, %s8656_s2  ;;  %5151 = vst.msk [vmem:[#allocation2 + $0x40] sm:$0xff] %vm5142_vm3, %v5086_v53  ;;  %v4810_v52 = vadd.f32 %v10386_v54, %v4809_v45  ;;  %v5294_v46 = vld [vmem:[#allocation2 + $0x20] ss:$2 sm:$0xff]  ;;  %v5247_v45 = vld [vmem:[#allocation2 + $0x11] ss:$2 sm:$0x7f] }
 0x274   :  { %v5089_v38 = vmax.f32 %v4815_v36, 0.0 }
 0x275   :  { %v5088_v47 = vmax.f32 %v4810_v52, 0.0  ;;  %v8323_v62 = vpop.f32.mrb[12].mxu0  ;;  %v5300_v52 = vld [vmem:[#allocation2 + $0x21] ss:$2 sm:$0xff] }
 0x276   :  { %5154 = vst.msk [vmem:[#allocation2 + $0x58] sm:$0xff] %vm5142_vm3, %v5089_v38  ;;  %v4825_v60 = vadd.f32 %v8323_v62, %v10386_v54  ;;  %v4819_v63 = vpop.f32.mrb[13].mxu0 }
 0x277   :  { %5281 = vrot.lane.b32.xlu0 %v5279_v55, %s8659_s14  ;;  %5296 = vrot.lane.b32.xlu1 %v5294_v46, %s8655_s0  ;;  %5153 = vst.msk [vmem:[#allocation2 + $0x50] sm:$0xff] %vm5142_vm3, %v5088_v47  ;;  %v4820_v53 = vadd.f32 %v10386_v54, %v4819_v63  ;;  %v5326_v37 = vld [vmem:[#allocation2 + $0x31] ss:$2 sm:$0x7f] }
 0x278   :  { %v5091_v39 = vmax.f32 %v4825_v60, 0.0  ;;  %5327 = vst.msk [vmem:[#allocation3 + $0x11] sm:$0x7f] %vm5270_vm4, %v5326_v37  ;;  %v5307_v55 = vld [vmem:[#allocation2 + $0x31] ss:$2 sm:$0x7f] }
 0x279   :  { %v5090_v61 = vmax.f32 %v4820_v53, 0.0  ;;  %v8326_v36 = vpop.f32.mrb[14].mxu0  ;;  %v5255_v53 = vld [vmem:[#allocation2 + $0x10] ss:$2 sm:$0xff] }
 0x27a   :  { %5156 = vst.msk [vmem:[#allocation2 + $0x68] sm:$0xff] %vm5142_vm3, %v5091_v39  ;;  %v4835_v38 = vadd.f32 %v8326_v36, %v10386_v54  ;;  %v4829_v62 = vpop.f32.mrb[15].mxu0 }
 0x27b   :  { %5249 = vrot.lane.b32.xlu0 %v5247_v45, %s8660_s15  ;;  %5302 = vrot.lane.b32.xlu1 %v5300_v52, %s8657_s12  ;;  %5155 = vst.msk [vmem:[#allocation2 + $0x60] sm:$0xff] %vm5142_vm3, %v5090_v61  ;;  %v4830_v47 = vadd.f32 %v10386_v54, %v4829_v62  ;;  %v5262_v62 = vld [vmem:[#allocation2 + $0x11] ss:$2 sm:$0xff] }
 0x27c   :  { %v5093_v46 = vmax.f32 %v4835_v38, 0.0 }
 0x27d   :  { %v5092_v60 = vmax.f32 %v4830_v47, 0.0  ;;  %v8329_v63 = vpop.f32.mrb[16].mxu0  ;;  %v5314_v47 = vld [vmem:[#allocation2 + $0x30] ss:$2 sm:$0xff] }
 0x27e   :  { %5158 = vst.msk [vmem:[#allocation2 + $0x78] sm:$0xff] %vm5142_vm3, %v5093_v46  ;;  %v4845_v39 = vadd.f32 %v8329_v63, %v10386_v54  ;;  %v4839_v37 = vpop.f32.mrb[17].mxu0  ;;  %v5380_v45 = vld [vmem:[#allocation2 + $0x51] ss:$2 sm:$0x7f] }
 0x27f   :  { %5257 = vrot.lane.b32.xlu0 %v5255_v53, %s8661_s16  ;;  %5309 = vrot.lane.b32.xlu1 %v5307_v55, %s8660_s15  ;;  %5157 = vst.msk [vmem:[#allocation2 + $0x70] sm:$0xff] %vm5142_vm3, %v5092_v60  ;;  %v4840_v61 = vadd.f32 %v10386_v54, %v4839_v37  ;;  %v5328_v37 = vld [vmem:[#allocation2 + $0x30] ss:$2 sm:$0xff] }
 0x280   :  { %v5095_v36 = vmax.f32 %v4845_v39, 0.0  ;;  %5381 = vst.msk [vmem:[#allocation3 + $0x19] sm:$0x7f] %vm5270_vm4, %v5380_v45 }
 0x281   :  { %v5094_v52 = vmax.f32 %v4840_v61, 0.0  ;;  %v8332_v38 = vpop.f32.mrb[18].mxu0  ;;  %v5320_v61 = vld [vmem:[#allocation2 + $0x31] ss:$2 sm:$0xff] }
 0x282   :  { %5160 = vst.msk [vmem:[#allocation2 + $0x88] sm:$0xff] %vm5142_vm3, %v5095_v36  ;;  %v4855_v46 = vadd.f32 %v8332_v38, %v10386_v54  ;;  %v4849_v63 = vpop.f32.mrb[19].mxu0  ;;  %v5382_v38 = vld [vmem:[#allocation2 + $0x50] ss:$2 sm:$0xff] }
 0x283   :  { %5264 = vrot.lane.b32.xlu0 %v5262_v62, %s8662_s17  ;;  %5316 = vrot.lane.b32.xlu1 %v5314_v47, %s8661_s16  ;;  %5159 = vst.msk [vmem:[#allocation2 + $0x80] sm:$0xff] %vm5142_vm3, %v5094_v52  ;;  %v4850_v55 = vadd.f32 %v10386_v54, %v4849_v63 }
 0x284   :  { %v5097_v60 = vmax.f32 %v4855_v46, 0.0 }
 0x285   :  { %v5096_v53 = vmax.f32 %v4850_v55, 0.0  ;;  %v8335_v39 = vpop.f32.mrb[20].mxu0  ;;  %v5334_v55 = vld [vmem:[#allocation2 + $0x31] ss:$2 sm:$0xff] }
 0x286   :  { %5162 = vst.msk [vmem:[#allocation2 + $0x98] sm:$0xff] %vm5142_vm3, %v5097_v60  ;;  %v4865_v36 = vadd.f32 %v8335_v39, %v10386_v54  ;;  %v4859_v45 = vpop.f32.mrb[21].mxu0  ;;  %v5434_v47 = vld [vmem:[#allocation2 + $0x71] ss:$2 sm:$0x7f] }
 0x287   :  { %5330 = vrot.lane.b32.xlu0 %v5328_v37, %s8658_s13  ;;  %5322 = vrot.lane.b32.xlu1 %v5320_v61, %s8662_s17  ;;  %5161 = vst.msk [vmem:[#allocation2 + $0x90] sm:$0xff] %vm5142_vm3, %v5096_v53  ;;  %v4860_v52 = vadd.f32 %v10386_v54, %v4859_v45  ;;  %v5341_v45 = vld [vmem:[#allocation2 + $0x41] ss:$2 sm:$0x7f] }
 0x288   :  { %v5099_v62 = vmax.f32 %v4865_v36, 0.0  ;;  %5435 = vst.msk [vmem:[#allocation3 + $0x21] sm:$0x7f] %vm5270_vm4, %v5434_v47 }
 0x289   :  { %v5098_v46 = vmax.f32 %v4860_v52, 0.0  ;;  %v8338_v63 = vpop.f32.mrb[22].mxu0  ;;  %v5388_v52 = vld [vmem:[#allocation2 + $0x51] ss:$2 sm:$0xff] }
 0x28a   :  { %5164 = vst.msk [vmem:[#allocation2 + $0xa8] sm:$0xff] %vm5142_vm3, %v5099_v62  ;;  %v4875_v60 = vadd.f32 %v8338_v63, %v10386_v54  ;;  %v4869_v39 = vpop.f32.mrb[23].mxu0  ;;  %v5395_v63 = vld [vmem:[#allocation2 + $0x61] ss:$2 sm:$0x7f] }
 0x28b   :  { %5336 = vrot.lane.b32.xlu0 %v5334_v55, %s8659_s14  ;;  %5384 = vrot.lane.b32.xlu1 %v5382_v38, %s8658_s13  ;;  %5163 = vst.msk [vmem:[#allocation2 + $0xa0] sm:$0xff] %vm5142_vm3, %v5098_v46  ;;  %v4870_v53 = vadd.f32 %v10386_v54, %v4869_v39 }
 0x28c   :  { %v5101_v37 = vmax.f32 %v4875_v60, 0.0 }
 0x28d   :  { %v5100_v61 = vmax.f32 %v4870_v53, 0.0  ;;  %v8341_v36 = vpop.f32.mrb[24].mxu0  ;;  %v5348_v53 = vld [vmem:[#allocation2 + $0x40] ss:$2 sm:$0xff] }
 0x28e   :  { %5166 = vst.msk [vmem:[#allocation2 + $0xb8] sm:$0xff] %vm5142_vm3, %v5101_v37  ;;  %v4885_v62 = vadd.f32 %v8341_v36, %v10386_v54  ;;  %v4879_v47 = vpop.f32.mrb[25].mxu0  ;;  %v5488_v55 = vld [vmem:[#allocation2 + $0x91] ss:$2 sm:$0x7f] }
 0x28f   :  { %5343 = vrot.lane.b32.xlu0 %v5341_v45, %s8656_s2  ;;  %5390 = vrot.lane.b32.xlu1 %v5388_v52, %s8659_s14  ;;  %5165 = vst.msk [vmem:[#allocation2 + $0xb0] sm:$0xff] %vm5142_vm3, %v5100_v61  ;;  %v4880_v38 = vadd.f32 %v10386_v54, %v4879_v47  ;;  %v5354_v47 = vld [vmem:[#allocation2 + $0x41] ss:$2 sm:$0xff] }
 0x290   :  { %v5103_v46 = vmax.f32 %v4885_v62, 0.0  ;;  %5489 = vst.msk [vmem:[#allocation3 + $0x29] sm:$0x7f] %vm5270_vm4, %v5488_v55 }
 0x291   :  { %v5102_v60 = vmax.f32 %v4880_v38, 0.0  ;;  %v8344_v39 = vpop.f32.mrb[26].mxu0  ;;  %v5402_v38 = vld [vmem:[#allocation2 + $0x60] ss:$2 sm:$0xff] }
 0x292   :  { %5168 = vst.msk [vmem:[#allocation2 + $0xc8] sm:$0xff] %vm5142_vm3, %v5103_v46  ;;  %v4895_v37 = vadd.f32 %v8344_v39, %v10386_v54  ;;  %v4889_v36 = vpop.f32.mrb[27].mxu0 }
 0x293   :  { %5350 = vrot.lane.b32.xlu0 %v5348_v53, %s8655_s0  ;;  %5397 = vrot.lane.b32.xlu1 %v5395_v63, %s8656_s2  ;;  %5167 = vst.msk [vmem:[#allocation2 + $0xc0] sm:$0xff] %vm5142_vm3, %v5102_v60  ;;  %v4890_v61 = vadd.f32 %v10386_v54, %v4889_v36  ;;  %v5361_v36 = vld [vmem:[#allocation2 + $0x51] ss:$2 sm:$0x7f] }
 0x294   :  { %v5105_v45 = vmax.f32 %v4895_v37, 0.0 }
 0x295   :  { %v5104_v52 = vmax.f32 %v4890_v61, 0.0  ;;  %v8347_v62 = vpop.f32.mrb[28].mxu0  ;;  %v5408_v61 = vld [vmem:[#allocation2 + $0x61] ss:$2 sm:$0xff] }
 0x296   :  { %5170 = vst.msk [vmem:[#allocation2 + $0xd8] sm:$0xff] %vm5142_vm3, %v5105_v45  ;;  %v4905_v46 = vadd.f32 %v8347_v62, %v10386_v54  ;;  %v4899_v55 = vpop.f32.mrb[29].mxu0  ;;  %v5542_v39 = vld [vmem:[#allocation2 + $0xb1] ss:$2 sm:$0x7f] }
 0x297   :  { %5356 = vrot.lane.b32.xlu0 %v5354_v47, %s8657_s12  ;;  %5404 = vrot.lane.b32.xlu1 %v5402_v38, %s8655_s0  ;;  %5169 = vst.msk [vmem:[#allocation2 + $0xd0] sm:$0xff] %vm5142_vm3, %v5104_v52  ;;  %v4900_v63 = vadd.f32 %v10386_v54, %v4899_v55  ;;  %v5415_v47 = vld [vmem:[#allocation2 + $0x71] ss:$2 sm:$0x7f] }
 0x298   :  { %v5107_v60 = vmax.f32 %v4905_v46, 0.0  ;;  %5543 = vst.msk [vmem:[#allocation3 + $0x31] sm:$0x7f] %vm5270_vm4, %v5542_v39 }
 0x299   :  { %v5106_v53 = vmax.f32 %v4900_v63, 0.0  ;;  %v8350_v37 = vpop.f32.mrb[30].mxu0  ;;  %v5368_v63 = vld [vmem:[#allocation2 + $0x50] ss:$2 sm:$0xff] }
 0x29a   :  { %5172 = vst.msk [vmem:[#allocation2 + $0xe8] sm:$0xff] %vm5142_vm3, %v5107_v60  ;;  %v4915_v45 = vadd.f32 %v8350_v37, %v10386_v54  ;;  %v4909_v62 = vpop.f32.mrb[31].mxu0 }
 0x29b   :  { %5363 = vrot.lane.b32.xlu0 %v5361_v36, %s8660_s15  ;;  %5410 = vrot.lane.b32.xlu1 %v5408_v61, %s8657_s12  ;;  %5171 = vst.msk [vmem:[#allocation2 + $0xe0] sm:$0xff] %vm5142_vm3, %v5106_v53  ;;  %v4910_v52 = vadd.f32 %v10386_v54, %v4909_v62  ;;  %v5374_v62 = vld [vmem:[#allocation2 + $0x51] ss:$2 sm:$0xff] }
 0x29c   :  { %v5109_v38 = vmax.f32 %v4915_v45, 0.0 }
 0x29d   :  { %v5108_v46 = vmax.f32 %v4910_v52, 0.0  ;;  %v8353_v55 = vpop.f32.mrb[32].mxu0  ;;  %v5422_v52 = vld [vmem:[#allocation2 + $0x70] ss:$2 sm:$0xff] }
 0x29e   :  { %5174 = vst.msk [vmem:[#allocation2 + $0xf8] sm:$0xff] %vm5142_vm3, %v5109_v38  ;;  %v4925_v60 = vadd.f32 %v8353_v55, %v10386_v54  ;;  %v4919_v39 = vpop.f32.mrb[33].mxu0  ;;  %v5596_v36 = vld [vmem:[#allocation2 + $0xd1] ss:$2 sm:$0x7f] }
 0x29f   :  { %5370 = vrot.lane.b32.xlu0 %v5368_v63, %s8661_s16  ;;  %5417 = vrot.lane.b32.xlu1 %v5415_v47, %s8660_s15  ;;  %5173 = vst.msk [vmem:[#allocation2 + $0xf0] sm:$0xff] %vm5142_vm3, %v5108_v46  ;;  %v4920_v53 = vadd.f32 %v10386_v54, %v4919_v39  ;;  %v5436_v39 = vld [vmem:[#allocation2 + $0x70] ss:$2 sm:$0xff] }
 0x2a0   :  { %v5111_v37 = vmax.f32 %v4925_v60, 0.0  ;;  %5597 = vst.msk [vmem:[#allocation3 + $0x39] sm:$0x7f] %vm5270_vm4, %v5596_v36 }
 0x2a1   :  { %v5110_v61 = vmax.f32 %v4920_v53, 0.0  ;;  %v8356_v45 = vpop.f32.mrb[34].mxu0  ;;  %v5428_v53 = vld [vmem:[#allocation2 + $0x71] ss:$2 sm:$0xff] }
 0x2a2   :  { %5176 = vst.msk [vmem:[#allocation2 + $0x108] sm:$0xff] %vm5142_vm3, %v5111_v37  ;;  %v4935_v38 = vadd.f32 %v8356_v45, %v10386_v54  ;;  %v4929_v55 = vpop.f32.mrb[35].mxu0  ;;  %v5490_v45 = vld [vmem:[#allocation2 + $0x90] ss:$2 sm:$0xff] }
 0x2a3   :  { %5376 = vrot.lane.b32.xlu0 %v5374_v62, %s8662_s17  ;;  %5424 = vrot.lane.b32.xlu1 %v5422_v52, %s8661_s16  ;;  %5175 = vst.msk [vmem:[#allocation2 + $0x100] sm:$0xff] %vm5142_vm3, %v5110_v61  ;;  %v4930_v47 = vadd.f32 %v10386_v54, %v4929_v55  ;;  %v5442_v55 = vld [vmem:[#allocation2 + $0x71] ss:$2 sm:$0xff] }
 0x2a4   :  { %v5113_v46 = vmax.f32 %v4935_v38, 0.0 }
 0x2a5   :  { %v5112_v63 = vmax.f32 %v4930_v47, 0.0  ;;  %v8359_v60 = vpop.f32.mrb[36].mxu0 }
 0x2a6   :  { %5178 = vst.msk [vmem:[#allocation2 + $0x118] sm:$0xff] %vm5142_vm3, %v5113_v46  ;;  %v4945_v37 = vadd.f32 %v8359_v60, %v10386_v54  ;;  %v4939_v36 = vpop.f32.mrb[37].mxu0 }
 0x2a7   :  { %5438 = vrot.lane.b32.xlu0 %v5436_v39, %s8658_s13  ;;  %5430 = vrot.lane.b32.xlu1 %v5428_v53, %s8662_s17  ;;  %5177 = vst.msk [vmem:[#allocation2 + $0x110] sm:$0xff] %vm5142_vm3, %v5112_v63  ;;  %v4940_v61 = vadd.f32 %v10386_v54, %v4939_v36  ;;  %v5496_v36 = vld [vmem:[#allocation2 + $0x91] ss:$2 sm:$0xff] }
 0x2a8   :  { %v5115_v62 = vmax.f32 %v4945_v37, 0.0  ;;  %v5449_v37 = vld [vmem:[#allocation2 + $0x81] ss:$2 sm:$0x7f] }
 0x2a9   :  { %v5114_v52 = vmax.f32 %v4940_v61, 0.0  ;;  %v8362_v38 = vpop.f32.mrb[38].mxu0 }
 0x2aa   :  { %5180 = vst.msk [vmem:[#allocation2 + $0x128] sm:$0xff] %vm5142_vm3, %v5115_v62  ;;  %v4955_v47 = vadd.f32 %v8362_v38, %v10386_v54  ;;  %v4949_v46 = vpop.f32.mrb[39].mxu0  ;;  %v5503_v38 = vld [vmem:[#allocation2 + $0xa1] ss:$2 sm:$0x7f] }
 0x2ab   :  { %5444 = vrot.lane.b32.xlu0 %v5442_v55, %s8659_s14  ;;  %5492 = vrot.lane.b32.xlu1 %v5490_v45, %s8658_s13  ;;  %5179 = vst.msk [vmem:[#allocation2 + $0x120] sm:$0xff] %vm5142_vm3, %v5114_v52  ;;  %v4950_v63 = vadd.f32 %v10386_v54, %v4949_v46 }
 0x2ac   :  { %v5117_v60 = vmax.f32 %v4955_v47, 0.0 }
 0x2ad   :  { %v5116_v39 = vmax.f32 %v4950_v63, 0.0  ;;  %v8365_v53 = vpop.f32.mrb[40].mxu0  ;;  %v5456_v63 = vld [vmem:[#allocation2 + $0x80] ss:$2 sm:$0xff] }
 0x2ae   :  { %5182 = vst.msk [vmem:[#allocation2 + $0x138] sm:$0xff] %vm5142_vm3, %v5117_v60  ;;  %v4965_v61 = vadd.f32 %v8365_v53, %v10386_v54  ;;  %v4959_v62 = vpop.f32.mrb[41].mxu0  ;;  %v5690_v55 = vld [vmem:[#allocation2 + $0x111] ss:$2 sm:$0x7f] }
 0x2af   :  { %5451 = vrot.lane.b32.xlu0 %v5449_v37, %s8656_s2  ;;  %5498 = vrot.lane.b32.xlu1 %v5496_v36, %s8659_s14  ;;  %5181 = vst.msk [vmem:[#allocation2 + $0x130] sm:$0xff] %vm5142_vm3, %v5116_v39  ;;  %v4960_v45 = vadd.f32 %v10386_v54, %v4959_v62  ;;  %v5462_v62 = vld [vmem:[#allocation2 + $0x81] ss:$2 sm:$0xff] }
 0x2b0   :  { %v5119_v52 = vmax.f32 %v4965_v61, 0.0  ;;  %5691 = vst.msk [vmem:[#allocation3 + $0x49] sm:$0x7f] %vm5270_vm4, %v5690_v55 }
 0x2b1   :  { %v5118_v47 = vmax.f32 %v4960_v45, 0.0  ;;  %v8368_v46 = vpop.f32.mrb[42].mxu0  ;;  %v5510_v45 = vld [vmem:[#allocation2 + $0xa0] ss:$2 sm:$0xff] }
 0x2b2   :  { %5184 = vst.msk [vmem:[#allocation2 + $0x148] sm:$0xff] %vm5142_vm3, %v5119_v52  ;;  %v4975_v60 = vadd.f32 %v8368_v46, %v10386_v54  ;;  %v4969_v53 = vpop.f32.mrb[43].mxu0 }
 0x2b3   :  { %5458 = vrot.lane.b32.xlu0 %v5456_v63, %s8655_s0  ;;  %5505 = vrot.lane.b32.xlu1 %v5503_v38, %s8656_s2  ;;  %5183 = vst.msk [vmem:[#allocation2 + $0x140] sm:$0xff] %vm5142_vm3, %v5118_v47  ;;  %v4970_v39 = vadd.f32 %v10386_v54, %v4969_v53  ;;  %v5469_v53 = vld [vmem:[#allocation2 + $0x91] ss:$2 sm:$0x7f] }
 0x2b4   :  { %v5121_v37 = vmax.f32 %v4975_v60, 0.0 }
 0x2b5   :  { %v5120_v36 = vmax.f32 %v4970_v39, 0.0  ;;  %v8371_v61 = vpop.f32.mrb[44].mxu0  ;;  %v5516_v39 = vld [vmem:[#allocation2 + $0xa1] ss:$2 sm:$0xff] }
 0x2b6   :  { %5186 = vst.msk [vmem:[#allocation2 + $0x158] sm:$0xff] %vm5142_vm3, %v5121_v37  ;;  %v4985_v52 = vadd.f32 %v8371_v61, %v10386_v54  ;;  %v4979_v55 = vpop.f32.mrb[45].mxu0  ;;  %v5744_v46 = vld [vmem:[#allocation2 + $0x131] ss:$2 sm:$0x7f] }
 0x2b7   :  { %5464 = vrot.lane.b32.xlu0 %v5462_v62, %s8657_s12  ;;  %5512 = vrot.lane.b32.xlu1 %v5510_v45, %s8655_s0  ;;  %5185 = vst.msk [vmem:[#allocation2 + $0x150] sm:$0xff] %vm5142_vm3, %v5120_v36  ;;  %v4980_v38 = vadd.f32 %v10386_v54, %v4979_v55  ;;  %v5523_v62 = vld [vmem:[#allocation2 + $0xb1] ss:$2 sm:$0x7f] }
 0x2b8   :  { %v5123_v47 = vmax.f32 %v4985_v52, 0.0  ;;  %5745 = vst.msk [vmem:[#allocation3 + $0x51] sm:$0x7f] %vm5270_vm4, %v5744_v46 }
 0x2b9   :  { %v5122_v63 = vmax.f32 %v4980_v38, 0.0  ;;  %v8374_v60 = vpop.f32.mrb[46].mxu0  ;;  %v5476_v38 = vld [vmem:[#allocation2 + $0x90] ss:$2 sm:$0xff] }
 0x2ba   :  { %5188 = vst.msk [vmem:[#allocation2 + $0x168] sm:$0xff] %vm5142_vm3, %v5123_v47  ;;  %v4995_v37 = vadd.f32 %v8374_v60, %v10386_v54  ;;  %v4989_v61 = vpop.f32.mrb[47].mxu0 }
 0x2bb   :  { %5471 = vrot.lane.b32.xlu0 %v5469_v53, %s8660_s15  ;;  %5518 = vrot.lane.b32.xlu1 %v5516_v39, %s8657_s12  ;;  %5187 = vst.msk [vmem:[#allocation2 + $0x160] sm:$0xff] %vm5142_vm3, %v5122_v63  ;;  %v4990_v36 = vadd.f32 %v10386_v54, %v4989_v61  ;;  %v5482_v61 = vld [vmem:[#allocation2 + $0x91] ss:$2 sm:$0xff] }
 0x2bc   :  { %v5125_v45 = vmax.f32 %v4995_v37, 0.0 }
 0x2bd   :  { %v5124_v52 = vmax.f32 %v4990_v36, 0.0  ;;  %v8377_v55 = vpop.f32.mrb[48].mxu0  ;;  %v5530_v36 = vld [vmem:[#allocation2 + $0xb0] ss:$2 sm:$0xff] }
 0x2be   :  { %5190 = vst.msk [vmem:[#allocation2 + $0x178] sm:$0xff] %vm5142_vm3, %v5125_v45  ;;  %v5005_v47 = vadd.f32 %v8377_v55, %v10386_v54  ;;  %v4999_v46 = vpop.f32.mrb[49].mxu0  ;;  %v5798_v53 = vld [vmem:[#allocation2 + $0x151] ss:$2 sm:$0x7f] }
 0x2bf   :  { %5478 = vrot.lane.b32.xlu0 %v5476_v38, %s8661_s16  ;;  %5525 = vrot.lane.b32.xlu1 %v5523_v62, %s8660_s15  ;;  %5189 = vst.msk [vmem:[#allocation2 + $0x170] sm:$0xff] %vm5142_vm3, %v5124_v52  ;;  %v5000_v63 = vadd.f32 %v10386_v54, %v4999_v46  ;;  %v5544_v46 = vld [vmem:[#allocation2 + $0xb0] ss:$2 sm:$0xff] }
 0x2c0   :  { %v5127_v60 = vmax.f32 %v5005_v47, 0.0  ;;  %5799 = vst.msk [vmem:[#allocation3 + $0x59] sm:$0x7f] %vm5270_vm4, %v5798_v53 }
 0x2c1   :  { %v5126_v39 = vmax.f32 %v5000_v63, 0.0  ;;  %v8380_v37 = vpop.f32.mrb[50].mxu0  ;;  %v5536_v63 = vld [vmem:[#allocation2 + $0xb1] ss:$2 sm:$0xff] }
 0x2c2   :  { %5192 = vst.msk [vmem:[#allocation2 + $0x188] sm:$0xff] %vm5142_vm3, %v5127_v60  ;;  %v5015_v45 = vadd.f32 %v8380_v37, %v10386_v54  ;;  %v5009_v55 = vpop.f32.mrb[51].mxu0  ;;  %v5598_v37 = vld [vmem:[#allocation2 + $0xd0] ss:$2 sm:$0xff] }
 0x2c3   :  { %5484 = vrot.lane.b32.xlu0 %v5482_v61, %s8662_s17  ;;  %5532 = vrot.lane.b32.xlu1 %v5530_v36, %s8661_s16  ;;  %5191 = vst.msk [vmem:[#allocation2 + $0x180] sm:$0xff] %vm5142_vm3, %v5126_v39  ;;  %v5010_v62 = vadd.f32 %v10386_v54, %v5009_v55 }
 0x2c4   :  { %v5129_v52 = vmax.f32 %v5015_v45, 0.0 }
 0x2c5   :  { %v5128_v38 = vmax.f32 %v5010_v62, 0.0  ;;  %v8383_v47 = vpop.f32.mrb[52].mxu0  ;;  %v5550_v62 = vld [vmem:[#allocation2 + $0xb1] ss:$2 sm:$0xff] }
 0x2c6   :  { %5194 = vst.msk [vmem:[#allocation2 + $0x198] sm:$0xff] %vm5142_vm3, %v5129_v52  ;;  %v5025_v60 = vadd.f32 %v8383_v47, %v10386_v54  ;;  %v5019_v53 = vpop.f32.mrb[53].mxu0  ;;  %v5852_v36 = vld [vmem:[#allocation2 + $0x171] ss:$2 sm:$0x7f] }
 0x2c7   :  { %5546 = vrot.lane.b32.xlu0 %v5544_v46, %s8658_s13  ;;  %5538 = vrot.lane.b32.xlu1 %v5536_v63, %s8662_s17  ;;  %5193 = vst.msk [vmem:[#allocation2 + $0x190] sm:$0xff] %vm5142_vm3, %v5128_v38  ;;  %v5020_v39 = vadd.f32 %v10386_v54, %v5019_v53  ;;  %v5557_v53 = vld [vmem:[#allocation2 + $0xc1] ss:$2 sm:$0x7f] }
 0x2c8   :  { %v5131_v61 = vmax.f32 %v5025_v60, 0.0  ;;  %5853 = vst.msk [vmem:[#allocation3 + $0x61] sm:$0x7f] %vm5270_vm4, %v5852_v36 }
 0x2c9   :  { %v5130_v45 = vmax.f32 %v5020_v39, 0.0  ;;  %v8386_v55 = vpop.f32.mrb[54].mxu0  ;;  %v5604_v39 = vld [vmem:[#allocation2 + $0xd1] ss:$2 sm:$0xff] }
 0x2ca   :  { %5196 = vst.msk [vmem:[#allocation2 + $0x1a8] sm:$0xff] %vm5142_vm3, %v5131_v61  ;;  %v5035_v52 = vadd.f32 %v8386_v55, %v10386_v54  ;;  %v5029_v47 = vpop.f32.mrb[55].mxu0  ;;  %v5611_v55 = vld [vmem:[#allocation2 + $0xe1] ss:$2 sm:$0x7f] }
 0x2cb   :  { %5552 = vrot.lane.b32.xlu0 %v5550_v62, %s8659_s14  ;;  %5600 = vrot.lane.b32.xlu1 %v5598_v37, %s8658_s13  ;;  %5195 = vst.msk [vmem:[#allocation2 + $0x1a0] sm:$0xff] %vm5142_vm3, %v5130_v45  ;;  %v5030_v38 = vadd.f32 %v10386_v54, %v5029_v47 }
 0x2cc   :  { %v5133_v46 = vmax.f32 %v5035_v52, 0.0 }
 0x2cd   :  { %v5132_v63 = vmax.f32 %v5030_v38, 0.0  ;;  %v8389_v60 = vpop.f32.mrb[56].mxu0  ;;  %v5564_v38 = vld [vmem:[#allocation2 + $0xc0] ss:$2 sm:$0xff] }
 0x2ce   :  { %5198 = vst.msk [vmem:[#allocation2 + $0x1b8] sm:$0xff] %vm5142_vm3, %v5133_v46  ;;  %v5045_v61 = vadd.f32 %v8389_v60, %v10386_v54  ;;  %v5039_v36 = vpop.f32.mrb[57].mxu0  ;;  %v5906_v62 = vld [vmem:[#allocation2 + $0x191] ss:$2 sm:$0x7f] }
 0x2cf   :  { %5559 = vrot.lane.b32.xlu0 %v5557_v53, %s8656_s2  ;;  %5606 = vrot.lane.b32.xlu1 %v5604_v39, %s8659_s14  ;;  %5197 = vst.msk [vmem:[#allocation2 + $0x1b0] sm:$0xff] %vm5142_vm3, %v5132_v63  ;;  %v5040_v37 = vadd.f32 %v10386_v54, %v5039_v36  ;;  %v5570_v36 = vld [vmem:[#allocation2 + $0xc1] ss:$2 sm:$0xff] }
 0x2d0   :  { %v5135_v45 = vmax.f32 %v5045_v61, 0.0  ;;  %5907 = vst.msk [vmem:[#allocation3 + $0x69] sm:$0x7f] %vm5270_vm4, %v5906_v62 }
 0x2d1   :  { %v5134_v52 = vmax.f32 %v5040_v37, 0.0  ;;  %v8392_v47 = vpop.f32.mrb[58].mxu0  ;;  %v5618_v37 = vld [vmem:[#allocation2 + $0xe0] ss:$2 sm:$0xff] }
 0x2d2   :  { %5200 = vst.msk [vmem:[#allocation2 + $0x1c8] sm:$0xff] %vm5142_vm3, %v5135_v45  ;;  %v5055_v46 = vadd.f32 %v8392_v47, %v10386_v54  ;;  %v5049_v60 = vpop.f32.mrb[59].mxu0 }
 0x2d3   :  { %5566 = vrot.lane.b32.xlu0 %v5564_v38, %s8655_s0  ;;  %5613 = vrot.lane.b32.xlu1 %v5611_v55, %s8656_s2  ;;  %5199 = vst.msk [vmem:[#allocation2 + $0x1c0] sm:$0xff] %vm5142_vm3, %v5134_v52  ;;  %v5050_v63 = vadd.f32 %v10386_v54, %v5049_v60  ;;  %v5577_v60 = vld [vmem:[#allocation2 + $0xd1] ss:$2 sm:$0x7f] }
 0x2d4   :  { %v5137_v53 = vmax.f32 %v5055_v46, 0.0 }
 0x2d5   :  { %v5136_v39 = vmax.f32 %v5050_v63, 0.0  ;;  %v8395_v61 = vpop.f32.mrb[60].mxu0  ;;  %v5624_v63 = vld [vmem:[#allocation2 + $0xe1] ss:$2 sm:$0xff] }
 0x2d6   :  { %5202 = vst.msk [vmem:[#allocation2 + $0x1d8] sm:$0xff] %vm5142_vm3, %v5137_v53  ;;  %v5065_v45 = vadd.f32 %v8395_v61, %v10386_v54  ;;  %v5059_v62 = vpop.f32.mrb[61].mxu0  ;;  %v5960_v47 = vld [vmem:[#allocation2 + $0x1b1] ss:$2 sm:$0x7f] }
 0x2d7   :  { %5572 = vrot.lane.b32.xlu0 %v5570_v36, %s8657_s12  ;;  %5620 = vrot.lane.b32.xlu1 %v5618_v37, %s8655_s0  ;;  %5201 = vst.msk [vmem:[#allocation2 + $0x1d0] sm:$0xff] %vm5142_vm3, %v5136_v39  ;;  %v5060_v55 = vadd.f32 %v10386_v54, %v5059_v62  ;;  %v5631_v36 = vld [vmem:[#allocation2 + $0xf1] ss:$2 sm:$0x7f] }
 0x2d8   :  { %v5139_v52 = vmax.f32 %v5065_v45, 0.0  ;;  %5961 = vst.msk [vmem:[#allocation3 + $0x71] sm:$0x7f] %vm5270_vm4, %v5960_v47 }
 0x2d9   :  { %v5138_v38 = vmax.f32 %v5060_v55, 0.0  ;;  %v8398_v46 = vpop.f32.mrb[62].mxu0 }
 0x2da   :  { %5204 = vst.msk [vmem:[#allocation2 + $0x1e8] sm:$0xff] %vm5142_vm3, %v5139_v52  ;;  %v5075_v53 = vadd.f32 %v8398_v46, %v10386_v54  ;;  %v5069_v61 = vpop.f32.mrb[63].mxu0  ;;  %v5584_v52 = vld [vmem:[#allocation2 + $0xd0] ss:$2 sm:$0xff] }
 0x2db   :  { %5579 = vrot.lane.b32.xlu0 %v5577_v60, %s8660_s15  ;;  %5626 = vrot.lane.b32.xlu1 %v5624_v63, %s8657_s12  ;;  %5203 = vst.msk [vmem:[#allocation2 + $0x1e0] sm:$0xff] %vm5142_vm3, %v5138_v38  ;;  %v5070_v39 = vadd.f32 %v10386_v54, %v5069_v61  ;;  %v5590_v38 = vld [vmem:[#allocation2 + $0xd1] ss:$2 sm:$0xff]  ;;  %v5638_v46 = vld [vmem:[#allocation2 + $0xf0] ss:$2 sm:$0xff] }
 0x2dc   :  { %v5141_v37 = vmax.f32 %v5075_v53, 0.0  ;;  %v5651_v60 = vld [vmem:[#allocation2 + $0x101] ss:$2 sm:$0x7f]  ;;  %v5644_v61 = vld [vmem:[#allocation2 + $0xf1] ss:$2 sm:$0xff] }
 0x2dd   :  { %v5235_v45 = vpop.permute.xlu0 %5234  ;;  %v5228_v62 = vpop.permute.xlu1 %5227  ;;  %v5140_v55 = vmax.f32 %v5070_v39, 0.0  ;;  %v5698_v39 = vld [vmem:[#allocation2 + $0x111] ss:$2 sm:$0xff] }
 0x2de   :  { %5231 = vst.msk [vmem:[#allocation3 + $0x1] sm:$0x7f] %vm5230_vm5, %v5228_v62  ;;  %v6014_v54 = vld [vmem:[#allocation2 + $0x1d1] ss:$2 sm:$0x7f] }
 0x2df   :  { %5206 = vst.msk [vmem:[#allocation2 + $0x1f8] sm:$0xff] %vm5142_vm3, %v5141_v37  ;;  %5586 = vrot.lane.b32.xlu0 %v5584_v52, %s8661_s16  ;;  %5633 = vrot.lane.b32.xlu1 %v5631_v36, %s8660_s15  ;;  %5205 = vst.msk [vmem:[#allocation2 + $0x1f0] sm:$0xff] %vm5142_vm3, %v5140_v55  ;;  %v5705_v62 = vld [vmem:[#allocation2 + $0x121] ss:$2 sm:$0x7f] }
 0x2e0   :  { %5238 = vst.msk [vmem:[#allocation3] sm:$0xff] %vm5237_vm6, %v5235_v45  ;;  %v5658_v45 = vld [vmem:[#allocation2 + $0x100] ss:$2 sm:$0xff] }
 0x2e1   :  { %v5242_v47 = vpop.permute.xlu0 %5241  ;;  %6015 = vst.msk [vmem:[#allocation3 + $0x79] sm:$0x7f] %vm5270_vm4, %v6014_v54  ;;  %v5664_v54 = vld [vmem:[#allocation2 + $0x101] ss:$2 sm:$0xff] }
 0x2e2   :  { %5245 = vst.msk [vmem:[#allocation3] sm:$0xff] %vm5244_vm7, %v5242_v47 }
 0x2e3   :  { %5592 = vrot.lane.b32.xlu0 %v5590_v38, %s8662_s17  ;;  %5640 = vrot.lane.b32.xlu1 %v5638_v46, %s8661_s16  ;;  %v5692_v46 = vld [vmem:[#allocation2 + $0x110] ss:$2 sm:$0xff] }
 0x2e5   :  { %v5275_v63 = vpop.permute.xlu0 %5274  ;;  %v5290_v53 = vpop.permute.xlu1 %5289 }
 0x2e6   :  { %5278 = vst.msk [vmem:[#allocation3 + $0x8] sm:$0xff] %vm5277_vm8, %v5275_v63 }
 0x2e7   :  { %5653 = vrot.lane.b32.xlu0 %v5651_v60, %s8656_s2  ;;  %5646 = vrot.lane.b32.xlu1 %v5644_v61, %s8662_s17  ;;  %v5712_v60 = vld [vmem:[#allocation2 + $0x120] ss:$2 sm:$0xff]  ;;  %v5671_v61 = vld [vmem:[#allocation2 + $0x111] ss:$2 sm:$0x7f] }
 0x2e9   :  { %v5282_v36 = vpop.permute.xlu0 %5281  ;;  %v5297_v37 = vpop.permute.xlu1 %5296 }
 0x2ea   :  { %5285 = vst.msk [vmem:[#allocation3 + $0x8] sm:$0xff] %vm5284_vm9, %v5282_v36  ;;  %v5725_v36 = vld [vmem:[#allocation2 + $0x131] ss:$2 sm:$0x7f] }
 0x2eb   :  { %5292 = vst.msk [vmem:[#allocation3 + $0x9] sm:$0x7f] %vm5230_vm5, %v5290_v53  ;;  %5660 = vrot.lane.b32.xlu0 %v5658_v45, %s8655_s0  ;;  %5700 = vrot.lane.b32.xlu1 %v5698_v39, %s8659_s14  ;;  %v5718_v39 = vld [vmem:[#allocation2 + $0x121] ss:$2 sm:$0xff] }
 0x2ec   :  { %5299 = vst.msk [vmem:[#allocation3 + $0x8] sm:$0xff] %vm5237_vm6, %v5297_v37 }
 0x2ed   :  { %v5250_v55 = vpop.permute.xlu0 %5249  ;;  %v5303_v52 = vpop.permute.xlu1 %5302 }
 0x2ee   :  { %5253 = vst.msk [vmem:[#allocation3 + $0x1] sm:$0x7f] %vm5252_vm10, %v5250_v55 }
 0x2ef   :  { %5305 = vst.msk [vmem:[#allocation3 + $0x8] sm:$0xff] %vm5244_vm7, %v5303_v52  ;;  %5666 = vrot.lane.b32.xlu0 %v5664_v54, %s8657_s12  ;;  %5707 = vrot.lane.b32.xlu1 %v5705_v62, %s8656_s2  ;;  %v5678_v62 = vld [vmem:[#allocation2 + $0x110] ss:$2 sm:$0xff]  ;;  %v5684_v54 = vld [vmem:[#allocation2 + $0x111] ss:$2 sm:$0xff] }
 0x2f1   :  { %v5258_v47 = vpop.permute.xlu0 %5257  ;;  %v5310_v38 = vpop.permute.xlu1 %5309 }
 0x2f2   :  { %5261 = vst.msk [vmem:[#allocation3] sm:$0xff] %vm5260_vm11, %v5258_v47  ;;  %v5732_v47 = vld [vmem:[#allocation2 + $0x130] ss:$2 sm:$0xff] }
 0x2f3   :  { %5312 = vst.msk [vmem:[#allocation3 + $0x9] sm:$0x7f] %vm5252_vm10, %v5310_v38  ;;  %5694 = vrot.lane.b32.xlu0 %v5692_v46, %s8658_s13  ;;  %5714 = vrot.lane.b32.xlu1 %v5712_v60, %s8655_s0 }
 0x2f5   :  { %v5265_v63 = vpop.permute.xlu0 %5264  ;;  %v5317_v53 = vpop.permute.xlu1 %5316 }
 0x2f6   :  { %5268 = vst.msk [vmem:[#allocation3] sm:$0xff] %vm5267_vm12, %v5265_v63 }
 0x2f7   :  { %5319 = vst.msk [vmem:[#allocation3 + $0x8] sm:$0xff] %vm5260_vm11, %v5317_v53  ;;  %5673 = vrot.lane.b32.xlu0 %v5671_v61, %s8660_s15  ;;  %5720 = vrot.lane.b32.xlu1 %v5718_v39, %s8657_s12  ;;  %v5746_v61 = vld [vmem:[#allocation2 + $0x130] ss:$2 sm:$0xff]  ;;  %v5738_v39 = vld [vmem:[#allocation2 + $0x131] ss:$2 sm:$0xff] }
 0x2f9   :  { %v5331_v37 = vpop.permute.xlu0 %5330  ;;  %v5323_v45 = vpop.permute.xlu1 %5322 }
 0x2fa   :  { %5333 = vst.msk [vmem:[#allocation3 + $0x10] sm:$0xff] %vm5277_vm8, %v5331_v37  ;;  %v5800_v37 = vld [vmem:[#allocation2 + $0x150] ss:$2 sm:$0xff] }
 0x2fb   :  { %5325 = vst.msk [vmem:[#allocation3 + $0x8] sm:$0xff] %vm5267_vm12, %v5323_v45  ;;  %5680 = vrot.lane.b32.xlu0 %v5678_v62, %s8661_s16  ;;  %5727 = vrot.lane.b32.xlu1 %v5725_v36, %s8660_s15 }
 0x2fd   :  { %v5337_v55 = vpop.permute.xlu0 %5336  ;;  %v5385_v52 = vpop.permute.xlu1 %5384  ;;  %v6070_v60 = vld [vmem:[#allocation3] sm:$0xff] }
 0x2fe   :  { %5339 = vst.msk [vmem:[#allocation3 + $0x10] sm:$0xff] %vm5284_vm9, %v5337_v55  ;;  %v5752_v55 = vld [vmem:[#allocation2 + $0x131] ss:$2 sm:$0xff] }
 0x2ff   :  { %5387 = vst.msk [vmem:[#allocation3 + $0x18] sm:$0xff] %vm5277_vm8, %v5385_v52  ;;  %5686 = vrot.lane.b32.xlu0 %v5684_v54, %s8662_s17  ;;  %5734 = vrot.lane.b32.xlu1 %v5732_v47, %s8661_s16  ;;  %v5759_v47 = vld [vmem:[#allocation2 + $0x141] ss:$2 sm:$0x7f] }
 0x301   :  { %v5344_v38 = vpop.permute.xlu0 %5343  ;;  %v5391_v46 = vpop.permute.xlu1 %5390 }
 0x302   :  { %v6071_v63 = vld [vmem:[#allocation3 + $0x8] sm:$0xff]  ;;  %5346 = vst.msk [vmem:[#allocation3 + $0x11] sm:$0x7f] %vm5230_vm5, %v5344_v38  ;;  %v5806_v38 = vld [vmem:[#allocation2 + $0x151] ss:$2 sm:$0xff] }
 0x303   :  { %5393 = vst.msk [vmem:[#allocation3 + $0x18] sm:$0xff] %vm5284_vm9, %v5391_v46  ;;  %v8442_v36 = vpack.c.bf16 %v6071_v63, %v6070_v60  ;;  %5748 = vrot.lane.b32.xlu0 %v5746_v61, %s8658_s13  ;;  %5740 = vrot.lane.b32.xlu1 %v5738_v39, %s8662_s17  ;;  %v5813_v46 = vld [vmem:[#allocation2 + $0x161] ss:$2 sm:$0x7f]  ;;  %v5766_v61 = vld [vmem:[#allocation2 + $0x140] ss:$2 sm:$0xff] }
 0x305   :  { %8444 = vmatprep.subr.msk.bf16.mxu1 %vm10624_vm13, %v8442_v36  ;;  %v5351_v45 = vpop.permute.xlu0 %5350  ;;  %v5398_v62 = vpop.permute.xlu1 %5397 }
 0x306   :  { %8447 = vmatpush3.bf16.xpose.msk.msra.mxu1 %vm10624_vm13, %v8442_v36  ;;  %5353 = vst.msk [vmem:[#allocation3 + $0x10] sm:$0xff] %vm5237_vm6, %v5351_v45  ;;  %v5820_v45 = vld [vmem:[#allocation2 + $0x160] ss:$2 sm:$0xff] }
 0x307   :  { %5400 = vst.msk [vmem:[#allocation3 + $0x19] sm:$0x7f] %vm5230_vm5, %v5398_v62  ;;  %5754 = vrot.lane.b32.xlu0 %v5752_v55, %s8659_s14  ;;  %5802 = vrot.lane.b32.xlu1 %v5800_v37, %s8658_s13  ;;  %v5772_v37 = vld [vmem:[#allocation2 + $0x141] ss:$2 sm:$0xff] }
 0x309   :  { %v5357_v52 = vpop.permute.xlu0 %5356  ;;  %v5405_v54 = vpop.permute.xlu1 %5404 }
 0x30a   :  { %5359 = vst.msk [vmem:[#allocation3 + $0x10] sm:$0xff] %vm5244_vm7, %v5357_v52  ;;  %v5779_v52 = vld [vmem:[#allocation2 + $0x151] ss:$2 sm:$0x7f] }
 0x30b   :  { %5407 = vst.msk [vmem:[#allocation3 + $0x18] sm:$0xff] %vm5237_vm6, %v5405_v54  ;;  %5761 = vrot.lane.b32.xlu0 %v5759_v47, %s8656_s2  ;;  %5808 = vrot.lane.b32.xlu1 %v5806_v38, %s8659_s14  ;;  %v5826_v54 = vld [vmem:[#allocation2 + $0x161] ss:$2 sm:$0xff]  ;;  %v5833_v47 = vld [vmem:[#allocation2 + $0x171] ss:$2 sm:$0x7f] }
 0x30d   :  { %v5364_v60 = vpop.permute.xlu0 %5363  ;;  %v5411_v63 = vpop.permute.xlu1 %5410 }
 0x30e   :  { %5366 = vst.msk [vmem:[#allocation3 + $0x11] sm:$0x7f] %vm5252_vm10, %v5364_v60  ;;  %v5786_v60 = vld [vmem:[#allocation2 + $0x150] ss:$2 sm:$0xff] }
 0x30f   :  { %5413 = vst.msk [vmem:[#allocation3 + $0x18] sm:$0xff] %vm5244_vm7, %v5411_v63  ;;  %5768 = vrot.lane.b32.xlu0 %v5766_v61, %s8655_s0  ;;  %5815 = vrot.lane.b32.xlu1 %v5813_v46, %s8656_s2 }
 0x311   :  { %v5371_v39 = vpop.permute.xlu0 %5370  ;;  %v5418_v36 = vpop.permute.xlu1 %5417 }
 0x312   :  { %5373 = vst.msk [vmem:[#allocation3 + $0x10] sm:$0xff] %vm5260_vm11, %v5371_v39  ;;  %v5792_v39 = vld [vmem:[#allocation2 + $0x151] ss:$2 sm:$0xff] }
 0x313   :  { %5420 = vst.msk [vmem:[#allocation3 + $0x19] sm:$0x7f] %vm5252_vm10, %v5418_v36  ;;  %5774 = vrot.lane.b32.xlu0 %v5772_v37, %s8657_s12  ;;  %5822 = vrot.lane.b32.xlu1 %v5820_v45, %s8655_s0  ;;  %v5840_v36 = vld [vmem:[#allocation2 + $0x170] ss:$2 sm:$0xff] }
 0x315   :  { %v5377_v62 = vpop.permute.xlu0 %5376  ;;  %v5425_v55 = vpop.permute.xlu1 %5424 }
 0x316   :  { %5379 = vst.msk [vmem:[#allocation3 + $0x10] sm:$0xff] %vm5267_vm12, %v5377_v62 }
 0x317   :  { %5427 = vst.msk [vmem:[#allocation3 + $0x18] sm:$0xff] %vm5260_vm11, %v5425_v55  ;;  %5781 = vrot.lane.b32.xlu0 %v5779_v52, %s8660_s15  ;;  %5828 = vrot.lane.b32.xlu1 %v5826_v54, %s8657_s12  ;;  %v5854_v52 = vld [vmem:[#allocation2 + $0x170] ss:$2 sm:$0xff]  ;;  %v5846_v54 = vld [vmem:[#allocation2 + $0x171] ss:$2 sm:$0xff] }
 0x319   :  { %v5439_v38 = vpop.permute.xlu0 %5438  ;;  %v5431_v46 = vpop.permute.xlu1 %5430 }
 0x31a   :  { %5441 = vst.msk [vmem:[#allocation3 + $0x20] sm:$0xff] %vm5277_vm8, %v5439_v38  ;;  %v5908_v38 = vld [vmem:[#allocation2 + $0x190] ss:$2 sm:$0xff] }
 0x31b   :  { %5433 = vst.msk [vmem:[#allocation3 + $0x18] sm:$0xff] %vm5267_vm12, %v5431_v46  ;;  %5788 = vrot.lane.b32.xlu0 %v5786_v60, %s8661_s16  ;;  %5835 = vrot.lane.b32.xlu1 %v5833_v47, %s8660_s15 }
 0x31d   :  { %v5445_v63 = vpop.permute.xlu0 %5444  ;;  %v5493_v61 = vpop.permute.xlu1 %5492  ;;  %v6072_v62 = vld [vmem:[#allocation3 + $0x10] sm:$0xff] }
 0x31e   :  { %5447 = vst.msk [vmem:[#allocation3 + $0x20] sm:$0xff] %vm5284_vm9, %v5445_v63  ;;  %v5860_v63 = vld [vmem:[#allocation2 + $0x171] ss:$2 sm:$0xff] }
 0x31f   :  { %5495 = vst.msk [vmem:[#allocation3 + $0x28] sm:$0xff] %vm5277_vm8, %v5493_v61  ;;  %5794 = vrot.lane.b32.xlu0 %v5792_v39, %s8662_s17  ;;  %5842 = vrot.lane.b32.xlu1 %v5840_v36, %s8661_s16  ;;  %v5867_v36 = vld [vmem:[#allocation2 + $0x181] ss:$2 sm:$0x7f] }
 0x321   :  { %v5452_v37 = vpop.permute.xlu0 %5451  ;;  %v5499_v45 = vpop.permute.xlu1 %5498 }
 0x322   :  { %v6073_v55 = vld [vmem:[#allocation3 + $0x18] sm:$0xff]  ;;  %5454 = vst.msk [vmem:[#allocation3 + $0x21] sm:$0x7f] %vm5230_vm5, %v5452_v37 }
 0x323   :  { %5501 = vst.msk [vmem:[#allocation3 + $0x28] sm:$0xff] %vm5284_vm9, %v5499_v45  ;;  %v8448_v47 = vpack.c.bf16 %v6073_v55, %v6072_v62  ;;  %5856 = vrot.lane.b32.xlu0 %v5854_v52, %s8658_s13  ;;  %5848 = vrot.lane.b32.xlu1 %v5846_v54, %s8662_s17  ;;  %v5914_v37 = vld [vmem:[#allocation2 + $0x191] ss:$2 sm:$0xff]  ;;  %v5921_v45 = vld [vmem:[#allocation2 + $0x1a1] ss:$2 sm:$0x7f] }
 0x324   :  { %v5874_v52 = vld [vmem:[#allocation2 + $0x180] ss:$2 sm:$0xff] }
 0x325   :  { %8450 = vmatprep.subr.msk.bf16.mxu1 %vm10624_vm13, %v8448_v47  ;;  %v5459_v46 = vpop.permute.xlu0 %5458  ;;  %v5506_v60 = vpop.permute.xlu1 %5505 }
 0x326   :  { %8453 = vmatpush3.bf16.xpose.msk.msra.mxu1 %vm10624_vm13, %v8448_v47  ;;  %5461 = vst.msk [vmem:[#allocation3 + $0x20] sm:$0xff] %vm5237_vm6, %v5459_v46  ;;  %v5928_v46 = vld [vmem:[#allocation2 + $0x1a0] ss:$2 sm:$0xff] }
 0x327   :  { %5508 = vst.msk [vmem:[#allocation3 + $0x29] sm:$0x7f] %vm5230_vm5, %v5506_v60  ;;  %5862 = vrot.lane.b32.xlu0 %v5860_v63, %s8659_s14  ;;  %5910 = vrot.lane.b32.xlu1 %v5908_v38, %s8658_s13  ;;  %v5880_v38 = vld [vmem:[#allocation2 + $0x181] ss:$2 sm:$0xff] }
 0x329   :  { %v5465_v61 = vpop.permute.xlu0 %5464  ;;  %v5513_v39 = vpop.permute.xlu1 %5512 }
 0x32a   :  { %5467 = vst.msk [vmem:[#allocation3 + $0x20] sm:$0xff] %vm5244_vm7, %v5465_v61  ;;  %v5887_v61 = vld [vmem:[#allocation2 + $0x191] ss:$2 sm:$0x7f] }
 0x32b   :  { %5515 = vst.msk [vmem:[#allocation3 + $0x28] sm:$0xff] %vm5237_vm6, %v5513_v39  ;;  %5869 = vrot.lane.b32.xlu0 %v5867_v36, %s8656_s2  ;;  %5916 = vrot.lane.b32.xlu1 %v5914_v37, %s8659_s14  ;;  %v5934_v39 = vld [vmem:[#allocation2 + $0x1a1] ss:$2 sm:$0xff]  ;;  %v5941_v36 = vld [vmem:[#allocation2 + $0x1b1] ss:$2 sm:$0x7f] }
 0x32d   :  { %v5472_v62 = vpop.permute.xlu0 %5471  ;;  %v5519_v55 = vpop.permute.xlu1 %5518 }
 0x32e   :  { %5474 = vst.msk [vmem:[#allocation3 + $0x21] sm:$0x7f] %vm5252_vm10, %v5472_v62  ;;  %v5894_v62 = vld [vmem:[#allocation2 + $0x190] ss:$2 sm:$0xff] }
 0x32f   :  { %5521 = vst.msk [vmem:[#allocation3 + $0x28] sm:$0xff] %vm5244_vm7, %v5519_v55  ;;  %5876 = vrot.lane.b32.xlu0 %v5874_v52, %s8655_s0  ;;  %5923 = vrot.lane.b32.xlu1 %v5921_v45, %s8656_s2 }
 0x331   :  { %v5479_v54 = vpop.permute.xlu0 %5478  ;;  %v5526_v47 = vpop.permute.xlu1 %5525 }
 0x332   :  { %5481 = vst.msk [vmem:[#allocation3 + $0x20] sm:$0xff] %vm5260_vm11, %v5479_v54  ;;  %v5900_v54 = vld [vmem:[#allocation2 + $0x191] ss:$2 sm:$0xff] }
 0x333   :  { %5528 = vst.msk [vmem:[#allocation3 + $0x29] sm:$0x7f] %vm5252_vm10, %v5526_v47  ;;  %5882 = vrot.lane.b32.xlu0 %v5880_v38, %s8657_s12  ;;  %5930 = vrot.lane.b32.xlu1 %v5928_v46, %s8655_s0  ;;  %v5948_v47 = vld [vmem:[#allocation2 + $0x1b0] ss:$2 sm:$0xff] }
 0x335   :  { %v5485_v60 = vpop.permute.xlu0 %5484  ;;  %v5533_v63 = vpop.permute.xlu1 %5532 }
 0x336   :  { %5487 = vst.msk [vmem:[#allocation3 + $0x20] sm:$0xff] %vm5267_vm12, %v5485_v60 }
 0x337   :  { %5535 = vst.msk [vmem:[#allocation3 + $0x28] sm:$0xff] %vm5260_vm11, %v5533_v63  ;;  %5889 = vrot.lane.b32.xlu0 %v5887_v61, %s8660_s15  ;;  %5936 = vrot.lane.b32.xlu1 %v5934_v39, %s8657_s12  ;;  %v5962_v61 = vld [vmem:[#allocation2 + $0x1b0] ss:$2 sm:$0xff]  ;;  %v5954_v39 = vld [vmem:[#allocation2 + $0x1b1] ss:$2 sm:$0xff] }
 0x339   :  { %v5547_v37 = vpop.permute.xlu0 %5546  ;;  %v5539_v45 = vpop.permute.xlu1 %5538 }
 0x33a   :  { %5549 = vst.msk [vmem:[#allocation3 + $0x30] sm:$0xff] %vm5277_vm8, %v5547_v37  ;;  %v6016_v37 = vld [vmem:[#allocation2 + $0x1d0] ss:$2 sm:$0xff] }
 0x33b   :  { %5541 = vst.msk [vmem:[#allocation3 + $0x28] sm:$0xff] %vm5267_vm12, %v5539_v45  ;;  %5896 = vrot.lane.b32.xlu0 %v5894_v62, %s8661_s16  ;;  %5943 = vrot.lane.b32.xlu1 %v5941_v36, %s8660_s15 }
 0x33d   :  { %v5553_v55 = vpop.permute.xlu0 %5552  ;;  %v5601_v52 = vpop.permute.xlu1 %5600  ;;  %v6074_v60 = vld [vmem:[#allocation3 + $0x20] sm:$0xff] }
 0x33e   :  { %5555 = vst.msk [vmem:[#allocation3 + $0x30] sm:$0xff] %vm5284_vm9, %v5553_v55  ;;  %v5968_v55 = vld [vmem:[#allocation2 + $0x1b1] ss:$2 sm:$0xff] }
 0x33f   :  { %5603 = vst.msk [vmem:[#allocation3 + $0x38] sm:$0xff] %vm5277_vm8, %v5601_v52  ;;  %5902 = vrot.lane.b32.xlu0 %v5900_v54, %s8662_s17  ;;  %5950 = vrot.lane.b32.xlu1 %v5948_v47, %s8661_s16  ;;  %v5975_v47 = vld [vmem:[#allocation2 + $0x1c1] ss:$2 sm:$0x7f] }
 0x341   :  { %v5560_v38 = vpop.permute.xlu0 %5559  ;;  %v5607_v46 = vpop.permute.xlu1 %5606 }
 0x342   :  { %v6075_v63 = vld [vmem:[#allocation3 + $0x28] sm:$0xff]  ;;  %5562 = vst.msk [vmem:[#allocation3 + $0x31] sm:$0x7f] %vm5230_vm5, %v5560_v38  ;;  %v6022_v38 = vld [vmem:[#allocation2 + $0x1d1] ss:$2 sm:$0xff] }
 0x343   :  { %5609 = vst.msk [vmem:[#allocation3 + $0x38] sm:$0xff] %vm5284_vm9, %v5607_v46  ;;  %v8454_v36 = vpack.c.bf16 %v6075_v63, %v6074_v60  ;;  %5964 = vrot.lane.b32.xlu0 %v5962_v61, %s8658_s13  ;;  %5956 = vrot.lane.b32.xlu1 %v5954_v39, %s8662_s17  ;;  %v6029_v46 = vld [vmem:[#allocation2 + $0x1e1] ss:$2 sm:$0x7f]  ;;  %v5982_v61 = vld [vmem:[#allocation2 + $0x1c0] ss:$2 sm:$0xff] }
 0x345   :  { %8456 = vmatprep.subr.msk.bf16.mxu1 %vm10624_vm13, %v8454_v36  ;;  %v5567_v45 = vpop.permute.xlu0 %5566  ;;  %v5614_v62 = vpop.permute.xlu1 %5613 }
 0x346   :  { %8459 = vmatpush3.bf16.xpose.msk.msra.mxu1 %vm10624_vm13, %v8454_v36  ;;  %5569 = vst.msk [vmem:[#allocation3 + $0x30] sm:$0xff] %vm5237_vm6, %v5567_v45  ;;  %v6036_v45 = vld [vmem:[#allocation2 + $0x1e0] ss:$2 sm:$0xff] }
 0x347   :  { %5616 = vst.msk [vmem:[#allocation3 + $0x39] sm:$0x7f] %vm5230_vm5, %v5614_v62  ;;  %5970 = vrot.lane.b32.xlu0 %v5968_v55, %s8659_s14  ;;  %6018 = vrot.lane.b32.xlu1 %v6016_v37, %s8658_s13  ;;  %v5988_v37 = vld [vmem:[#allocation2 + $0x1c1] ss:$2 sm:$0xff] }
 0x349   :  { %v5573_v52 = vpop.permute.xlu0 %5572  ;;  %v5621_v54 = vpop.permute.xlu1 %5620 }
 0x34a   :  { %5575 = vst.msk [vmem:[#allocation3 + $0x30] sm:$0xff] %vm5244_vm7, %v5573_v52  ;;  %v5995_v52 = vld [vmem:[#allocation2 + $0x1d1] ss:$2 sm:$0x7f] }
 0x34b   :  { %5623 = vst.msk [vmem:[#allocation3 + $0x38] sm:$0xff] %vm5237_vm6, %v5621_v54  ;;  %5977 = vrot.lane.b32.xlu0 %v5975_v47, %s8656_s2  ;;  %6024 = vrot.lane.b32.xlu1 %v6022_v38, %s8659_s14  ;;  %v6042_v54 = vld [vmem:[#allocation2 + $0x1e1] ss:$2 sm:$0xff]  ;;  %v6049_v47 = vld [vmem:[#allocation2 + $0x1f1] ss:$2 sm:$0x7f] }
 0x34d   :  { %v5580_v60 = vpop.permute.xlu0 %5579  ;;  %v5627_v63 = vpop.permute.xlu1 %5626 }
 0x34e   :  { %5582 = vst.msk [vmem:[#allocation3 + $0x31] sm:$0x7f] %vm5252_vm10, %v5580_v60  ;;  %v6002_v60 = vld [vmem:[#allocation2 + $0x1d0] ss:$2 sm:$0xff] }
 0x34f   :  { %5629 = vst.msk [vmem:[#allocation3 + $0x38] sm:$0xff] %vm5244_vm7, %v5627_v63  ;;  %5984 = vrot.lane.b32.xlu0 %v5982_v61, %s8655_s0  ;;  %6031 = vrot.lane.b32.xlu1 %v6029_v46, %s8656_s2 }
 0x351   :  { %v5587_v39 = vpop.permute.xlu0 %5586  ;;  %v5634_v36 = vpop.permute.xlu1 %5633 }
 0x352   :  { %5589 = vst.msk [vmem:[#allocation3 + $0x30] sm:$0xff] %vm5260_vm11, %v5587_v39  ;;  %v6008_v39 = vld [vmem:[#allocation2 + $0x1d1] ss:$2 sm:$0xff] }
 0x353   :  { %5636 = vst.msk [vmem:[#allocation3 + $0x39] sm:$0x7f] %vm5252_vm10, %v5634_v36  ;;  %5990 = vrot.lane.b32.xlu0 %v5988_v37, %s8657_s12  ;;  %6038 = vrot.lane.b32.xlu1 %v6036_v45, %s8655_s0  ;;  %v6056_v36 = vld [vmem:[#allocation2 + $0x1f0] ss:$2 sm:$0xff] }
 0x355   :  { %v5593_v62 = vpop.permute.xlu0 %5592  ;;  %v5641_v55 = vpop.permute.xlu1 %5640 }
 0x356   :  { %5595 = vst.msk [vmem:[#allocation3 + $0x30] sm:$0xff] %vm5267_vm12, %v5593_v62 }
 0x357   :  { %5643 = vst.msk [vmem:[#allocation3 + $0x38] sm:$0xff] %vm5260_vm11, %v5641_v55  ;;  %5997 = vrot.lane.b32.xlu0 %v5995_v52, %s8660_s15  ;;  %6044 = vrot.lane.b32.xlu1 %v6042_v54, %s8657_s12  ;;  %v6068_v52 = vld [vmem:[%s11112_s3] sm:$0xff]  ;;  %v6062_v54 = vld [vmem:[#allocation2 + $0x1f1] ss:$2 sm:$0xff] }
 0x358   :  { %8431 = vmatprep.mubr.msk.f32.mxu1 %vm5207_vm2, %v6068_v52 }
 0x359   :  { %v5654_v38 = vpop.permute.xlu0 %5653  ;;  %v5647_v46 = vpop.permute.xlu1 %5646 }
 0x35a   :  { %5656 = vst.msk [vmem:[#allocation3 + $0x41] sm:$0x7f] %vm5230_vm5, %v5654_v38 }
 0x35b   :  { %5649 = vst.msk [vmem:[#allocation3 + $0x38] sm:$0xff] %vm5267_vm12, %v5647_v46  ;;  %6004 = vrot.lane.b32.xlu0 %v6002_v60, %s8661_s16  ;;  %6051 = vrot.lane.b32.xlu1 %v6049_v47, %s8660_s15  ;;  %v6087_v60 = vld [vmem:[%s11113_s4 + $0x8] sm:$0xff] }
 0x35d   :  { %v5661_v63 = vpop.permute.xlu0 %5660  ;;  %v5701_v61 = vpop.permute.xlu1 %5700  ;;  %v6076_v62 = vld [vmem:[#allocation3 + $0x30] sm:$0xff] }
 0x35e   :  { %5663 = vst.msk [vmem:[#allocation3 + $0x40] sm:$0xff] %vm5237_vm6, %v5661_v63  ;;  %v6086_v63 = vld [vmem:[%s11113_s4] sm:$0xff] }
 0x35f   :  { %6010 = vrot.lane.b32.xlu0 %v6008_v39, %s8662_s17  ;;  %6058 = vrot.lane.b32.xlu1 %v6056_v36, %s8661_s16 }
 0x361   :  { %v5667_v37 = vpop.permute.xlu0 %5666  ;;  %v5708_v45 = vpop.permute.xlu1 %5707 }
 0x362   :  { %v6077_v55 = vld [vmem:[#allocation3 + $0x38] sm:$0xff]  ;;  %5669 = vst.msk [vmem:[#allocation3 + $0x40] sm:$0xff] %vm5244_vm7, %v5667_v37  ;;  %v8663_v37 = vmov 0  }
 0x363   :  { %v8460_v47 = vpack.c.bf16 %v6077_v55, %v6076_v62  ;;  %6064 = vrot.lane.b32.xlu1 %v6062_v54, %s8662_s17  ;;  %8590 = vset.pattern.permute.xlu0 %v8663_v37 }
 0x364   :  { %8591 = vset.pattern.permute.xlu1 %v8663_v37  ;;  %6090 = vperm.xlu0 %8590, %v6086_v63  }
 0x365   :  { %8462 = vmatprep.subr.msk.bf16.mxu1 %vm10624_vm13, %v8460_v47  ;;  %v5695_v38 = vpop.permute.xlu0 %5694  ;;  %v5715_v46 = vpop.permute.xlu1 %5714 }
 0x366   :  { %8465 = vmatpush3.bf16.xpose.msk.msra.mxu1 %vm10624_vm13, %v8460_v47  ;;  %5697 = vst.msk [vmem:[#allocation3 + $0x48] sm:$0xff] %vm5277_vm8, %v5695_v38 }
 0x367   :  { %5703 = vst.msk [vmem:[#allocation3 + $0x48] sm:$0xff] %vm5284_vm9, %v5701_v61  ;;  %6095 = vperm.xlu1 %8591, %v6087_v60  }
 0x368   :  { %5710 = vst.msk [vmem:[#allocation3 + $0x49] sm:$0x7f] %vm5230_vm5, %v5708_v45 }
 0x369   :  { %5717 = vst.msk [vmem:[#allocation3 + $0x48] sm:$0xff] %vm5237_vm6, %v5715_v46  ;;  %v5674_v39 = vpop.permute.xlu0 %5673  ;;  %v5721_v36 = vpop.permute.xlu1 %5720 }
 0x36a   :  { %5676 = vst.msk [vmem:[#allocation3 + $0x41] sm:$0x7f] %vm5252_vm10, %v5674_v39 }
 0x36b   :  { %5723 = vst.msk [vmem:[#allocation3 + $0x48] sm:$0xff] %vm5244_vm7, %v5721_v36 }
 0x36d   :  { %v5681_v61 = vpop.permute.xlu0 %5680  ;;  %v5728_v45 = vpop.permute.xlu1 %5727 }
 0x36e   :  { %5683 = vst.msk [vmem:[#allocation3 + $0x40] sm:$0xff] %vm5260_vm11, %v5681_v61 }
 0x36f   :  { %5730 = vst.msk [vmem:[#allocation3 + $0x49] sm:$0x7f] %vm5252_vm10, %v5728_v45 }
 0x371   :  { %v5687_v62 = vpop.permute.xlu0 %5686  ;;  %v5735_v55 = vpop.permute.xlu1 %5734 }
 0x372   :  { %5689 = vst.msk [vmem:[#allocation3 + $0x40] sm:$0xff] %vm5267_vm12, %v5687_v62 }
 0x373   :  { %5737 = vst.msk [vmem:[#allocation3 + $0x48] sm:$0xff] %vm5260_vm11, %v5735_v55 }
 0x375   :  { %v5749_v52 = vpop.permute.xlu0 %5748  ;;  %v5741_v54 = vpop.permute.xlu1 %5740 }
 0x376   :  { %5751 = vst.msk [vmem:[#allocation3 + $0x50] sm:$0xff] %vm5277_vm8, %v5749_v52 }
 0x377   :  { %5743 = vst.msk [vmem:[#allocation3 + $0x48] sm:$0xff] %vm5267_vm12, %v5741_v54 }
 0x379   :  { %v5755_v47 = vpop.permute.xlu0 %5754  ;;  %v5803_v38 = vpop.permute.xlu1 %5802  ;;  %v6078_v63 = vld [vmem:[#allocation3 + $0x40] sm:$0xff] }
 0x37a   :  { %5757 = vst.msk [vmem:[#allocation3 + $0x50] sm:$0xff] %vm5284_vm9, %v5755_v47 }
 0x37b   :  { %5805 = vst.msk [vmem:[#allocation3 + $0x58] sm:$0xff] %vm5277_vm8, %v5803_v38 }
 0x37d   :  { %v5762_v46 = vpop.permute.xlu0 %5761  ;;  %v5809_v60 = vpop.permute.xlu1 %5808 }
 0x37e   :  { %v6079_v39 = vld [vmem:[#allocation3 + $0x48] sm:$0xff]  ;;  %5764 = vst.msk [vmem:[#allocation3 + $0x51] sm:$0x7f] %vm5230_vm5, %v5762_v46 }
 0x37f   :  { %5811 = vst.msk [vmem:[#allocation3 + $0x58] sm:$0xff] %vm5284_vm9, %v5809_v60  ;;  %v8466_v36 = vpack.c.bf16 %v6079_v39, %v6078_v63 }
 0x381   :  { %8468 = vmatprep.subr.msk.bf16.mxu1 %vm10624_vm13, %v8466_v36  ;;  %v5769_v37 = vpop.permute.xlu0 %5768  ;;  %v5816_v61 = vpop.permute.xlu1 %5815 }
 0x382   :  { %8471 = vmatpush3.bf16.xpose.msk.msra.mxu1 %vm10624_vm13, %v8466_v36  ;;  %5771 = vst.msk [vmem:[#allocation3 + $0x50] sm:$0xff] %vm5237_vm6, %v5769_v37 }
 0x383   :  { %5818 = vst.msk [vmem:[#allocation3 + $0x59] sm:$0x7f] %vm5230_vm5, %v5816_v61 }
 0x385   :  { %v5775_v45 = vpop.permute.xlu0 %5774  ;;  %v5823_v62 = vpop.permute.xlu1 %5822 }
 0x386   :  { %5777 = vst.msk [vmem:[#allocation3 + $0x50] sm:$0xff] %vm5244_vm7, %v5775_v45 }
 0x387   :  { %5825 = vst.msk [vmem:[#allocation3 + $0x58] sm:$0xff] %vm5237_vm6, %v5823_v62 }
 0x389   :  { %v5782_v55 = vpop.permute.xlu0 %5781  ;;  %v5829_v52 = vpop.permute.xlu1 %5828 }
 0x38a   :  { %5784 = vst.msk [vmem:[#allocation3 + $0x51] sm:$0x7f] %vm5252_vm10, %v5782_v55 }
 0x38b   :  { %5831 = vst.msk [vmem:[#allocation3 + $0x58] sm:$0xff] %vm5244_vm7, %v5829_v52 }
 0x38d   :  { %v5789_v54 = vpop.permute.xlu0 %5788  ;;  %v5836_v47 = vpop.permute.xlu1 %5835 }
 0x38e   :  { %5791 = vst.msk [vmem:[#allocation3 + $0x50] sm:$0xff] %vm5260_vm11, %v5789_v54 }
 0x38f   :  { %5838 = vst.msk [vmem:[#allocation3 + $0x59] sm:$0x7f] %vm5252_vm10, %v5836_v47 }
 0x391   :  { %v5795_v38 = vpop.permute.xlu0 %5794  ;;  %v5843_v46 = vpop.permute.xlu1 %5842 }
 0x392   :  { %5797 = vst.msk [vmem:[#allocation3 + $0x50] sm:$0xff] %vm5267_vm12, %v5795_v38 }
 0x393   :  { %5845 = vst.msk [vmem:[#allocation3 + $0x58] sm:$0xff] %vm5260_vm11, %v5843_v46 }
 0x395   :  { %v5857_v60 = vpop.permute.xlu0 %5856  ;;  %v5849_v63 = vpop.permute.xlu1 %5848 }
 0x396   :  { %5859 = vst.msk [vmem:[#allocation3 + $0x60] sm:$0xff] %vm5277_vm8, %v5857_v60 }
 0x397   :  { %5851 = vst.msk [vmem:[#allocation3 + $0x58] sm:$0xff] %vm5267_vm12, %v5849_v63 }
 0x399   :  { %v5863_v39 = vpop.permute.xlu0 %5862  ;;  %v5911_v36 = vpop.permute.xlu1 %5910  ;;  %v6080_v45 = vld [vmem:[#allocation3 + $0x50] sm:$0xff] }
 0x39a   :  { %5865 = vst.msk [vmem:[#allocation3 + $0x60] sm:$0xff] %vm5284_vm9, %v5863_v39 }
 0x39b   :  { %5913 = vst.msk [vmem:[#allocation3 + $0x68] sm:$0xff] %vm5277_vm8, %v5911_v36 }
 0x39d   :  { %v5870_v37 = vpop.permute.xlu0 %5869  ;;  %v5917_v61 = vpop.permute.xlu1 %5916 }
 0x39e   :  { %v6081_v62 = vld [vmem:[#allocation3 + $0x58] sm:$0xff]  ;;  %5872 = vst.msk [vmem:[#allocation3 + $0x61] sm:$0x7f] %vm5230_vm5, %v5870_v37 }
 0x39f   :  { %5919 = vst.msk [vmem:[#allocation3 + $0x68] sm:$0xff] %vm5284_vm9, %v5917_v61  ;;  %v8472_v55 = vpack.c.bf16 %v6081_v62, %v6080_v45 }
 0x3a1   :  { %8474 = vmatprep.subr.msk.bf16.mxu1 %vm10624_vm13, %v8472_v55  ;;  %v5877_v52 = vpop.permute.xlu0 %5876  ;;  %v5924_v54 = vpop.permute.xlu1 %5923 }
 0x3a2   :  { %8477 = vmatpush3.bf16.xpose.msk.msra.mxu1 %vm10624_vm13, %v8472_v55  ;;  %5879 = vst.msk [vmem:[#allocation3 + $0x60] sm:$0xff] %vm5237_vm6, %v5877_v52 }
 0x3a3   :  { %5926 = vst.msk [vmem:[#allocation3 + $0x69] sm:$0x7f] %vm5230_vm5, %v5924_v54 }
 0x3a5   :  { %v5883_v47 = vpop.permute.xlu0 %5882  ;;  %v5931_v38 = vpop.permute.xlu1 %5930 }
 0x3a6   :  { %5885 = vst.msk [vmem:[#allocation3 + $0x60] sm:$0xff] %vm5244_vm7, %v5883_v47 }
 0x3a7   :  { %5933 = vst.msk [vmem:[#allocation3 + $0x68] sm:$0xff] %vm5237_vm6, %v5931_v38 }
 0x3a9   :  { %v5890_v46 = vpop.permute.xlu0 %5889  ;;  %v5937_v60 = vpop.permute.xlu1 %5936 }
 0x3aa   :  { %5892 = vst.msk [vmem:[#allocation3 + $0x61] sm:$0x7f] %vm5252_vm10, %v5890_v46 }
 0x3ab   :  { %5939 = vst.msk [vmem:[#allocation3 + $0x68] sm:$0xff] %vm5244_vm7, %v5937_v60 }
 0x3ad   :  { %v5897_v63 = vpop.permute.xlu0 %5896  ;;  %v5944_v39 = vpop.permute.xlu1 %5943 }
 0x3ae   :  { %5899 = vst.msk [vmem:[#allocation3 + $0x60] sm:$0xff] %vm5260_vm11, %v5897_v63 }
 0x3af   :  { %5946 = vst.msk [vmem:[#allocation3 + $0x69] sm:$0x7f] %vm5252_vm10, %v5944_v39 }
 0x3b1   :  { %v5903_v36 = vpop.permute.xlu0 %5902  ;;  %v5951_v37 = vpop.permute.xlu1 %5950 }
 0x3b2   :  { %5905 = vst.msk [vmem:[#allocation3 + $0x60] sm:$0xff] %vm5267_vm12, %v5903_v36 }
 0x3b3   :  { %5953 = vst.msk [vmem:[#allocation3 + $0x68] sm:$0xff] %vm5260_vm11, %v5951_v37 }
 0x3b5   :  { %v5965_v61 = vpop.permute.xlu0 %5964  ;;  %v5957_v45 = vpop.permute.xlu1 %5956 }
 0x3b6   :  { %5967 = vst.msk [vmem:[#allocation3 + $0x70] sm:$0xff] %vm5277_vm8, %v5965_v61 }
 0x3b7   :  { %5959 = vst.msk [vmem:[#allocation3 + $0x68] sm:$0xff] %vm5267_vm12, %v5957_v45 }
 0x3b9   :  { %v5971_v62 = vpop.permute.xlu0 %5970  ;;  %v6019_v55 = vpop.permute.xlu1 %6018  ;;  %v6082_v47 = vld [vmem:[#allocation3 + $0x60] sm:$0xff] }
 0x3ba   :  { %5973 = vst.msk [vmem:[#allocation3 + $0x70] sm:$0xff] %vm5284_vm9, %v5971_v62 }
 0x3bb   :  { %6021 = vst.msk [vmem:[#allocation3 + $0x78] sm:$0xff] %vm5277_vm8, %v6019_v55 }
 0x3bd   :  { %v5978_v52 = vpop.permute.xlu0 %5977  ;;  %v6025_v54 = vpop.permute.xlu1 %6024 }
 0x3be   :  { %v6083_v38 = vld [vmem:[#allocation3 + $0x68] sm:$0xff]  ;;  %5980 = vst.msk [vmem:[#allocation3 + $0x71] sm:$0x7f] %vm5230_vm5, %v5978_v52 }
 0x3bf   :  { %6027 = vst.msk [vmem:[#allocation3 + $0x78] sm:$0xff] %vm5284_vm9, %v6025_v54  ;;  %v8478_v46 = vpack.c.bf16 %v6083_v38, %v6082_v47 }
 0x3c1   :  { %8480 = vmatprep.subr.msk.bf16.mxu1 %vm10624_vm13, %v8478_v46  ;;  %v5985_v60 = vpop.permute.xlu0 %5984  ;;  %v6032_v63 = vpop.permute.xlu1 %6031 }
 0x3c2   :  { %8483 = vmatpush3.bf16.xpose.msk.msra.mxu1 %vm10624_vm13, %v8478_v46  ;;  %5987 = vst.msk [vmem:[#allocation3 + $0x70] sm:$0xff] %vm5237_vm6, %v5985_v60  ;;  %v6069_v60 = vld [vmem:[%s11112_s3 + $0x8] sm:$0xff] }
 0x3c3   :  { %6034 = vst.msk [vmem:[#allocation3 + $0x79] sm:$0x7f] %vm5230_vm5, %v6032_v63  ;;  %v8664_v63 = vmov 1983009808  }
 0x3c5   :  { %v5991_v39 = vpop.permute.xlu0 %5990  ;;  %v6039_v36 = vpop.permute.xlu1 %6038 }
 0x3c6   :  { %5993 = vst.msk [vmem:[#allocation3 + $0x70] sm:$0xff] %vm5244_vm7, %v5991_v39  ;;  %v6233_v39 = vunpack.c.l.s4 %v8664_v63 }
 0x3c7   :  { %6041 = vst.msk [vmem:[#allocation3 + $0x78] sm:$0xff] %vm5237_vm6, %v6039_v36  ;;  %v6235_v36 = vlaneseq }
 0x3c9   :  { %v5998_v37 = vpop.permute.xlu0 %5997  ;;  %v6045_v61 = vpop.permute.xlu1 %6044 }
 0x3ca   :  { %6000 = vst.msk [vmem:[#allocation3 + $0x71] sm:$0x7f] %vm5252_vm10, %v5998_v37  ;;  %v6234_v37 = vunpack.c.0.s8 %v6233_v39 }
 0x3cb   :  { %6047 = vst.msk [vmem:[#allocation3 + $0x78] sm:$0xff] %vm5244_vm7, %v6045_v61  ;;  %v10830_v61 = vshrl.u32 %v6235_v36, 7 }
 0x3cd   :  { %v6005_v45 = vpop.permute.xlu0 %6004  ;;  %v6052_v62 = vpop.permute.xlu1 %6051 }
 0x3ce   :  { %6007 = vst.msk [vmem:[#allocation3 + $0x70] sm:$0xff] %vm5260_vm11, %v6005_v45 }
 0x3cf   :  { %6054 = vst.msk [vmem:[#allocation3 + $0x79] sm:$0x7f] %vm5252_vm10, %v6052_v62 }
 0x3d1   :  { %v6011_v55 = vpop.permute.xlu0 %6010  ;;  %v6059_v52 = vpop.permute.xlu1 %6058 }
 0x3d2   :  { %6013 = vst.msk [vmem:[#allocation3 + $0x70] sm:$0xff] %vm5267_vm12, %v6011_v55 }
 0x3d3   :  { %6061 = vst.msk [vmem:[#allocation3 + $0x78] sm:$0xff] %vm5260_vm11, %v6059_v52  ;;  %v10833_v52 = vsub.s32 %v6234_v37, %v10830_v61 }
 0x3d5   :  { %v6065_v54 = vpop.permute.xlu1 %6064 }
 0x3d6   :  { %6067 = vst.msk [vmem:[#allocation3 + $0x78] sm:$0xff] %vm5267_vm12, %v6065_v54 }
 0x3d9   :  { %v6084_v47 = vld [vmem:[#allocation3 + $0x70] sm:$0xff] }
 0x3dd   :  { %v6085_v38 = vld [vmem:[#allocation3 + $0x78] sm:$0xff] }
 0x3de   :  { %v8484_v46 = vpack.c.bf16 %v6085_v38, %v6084_v47 }
 0x3e0   :  { %8486 = vmatprep.subr.msk.bf16.mxu1 %vm10624_vm13, %v8484_v46 }
 0x3e1   :  { %8489 = vmatpush3.bf16.xpose.msk.msra.mxu1 %vm10624_vm13, %v8484_v46 }
 0x3e3   :  { %v6091_v62 = vpop.permute.xlu0 %6090 }
 0x3e6   :  { %v6096_v45 = vpop.permute.xlu1 %6095 }
 0x3e8   :  { %8432 = vmatmul.mubr.msk.f32.vlgmr.msra.gmra.mrb[0].mxu1 %vm5207_vm2, %v6069_v60 }
 0x4bb   :  { %v8433_v55 = vpop.f32.mrb[0].mxu1 }
 0x4bc   :  { %v6224_v53 = vadd.f32 %v8433_v55, %v6096_v45  ;;  %v6218_v54 = vpop.f32.mrb[1].mxu1 }
 0x4bd   :  { %v6219_v47 = vadd.f32 %v6218_v54, %v6091_v62 }
 0x4be   :  { %v6228_v38 = vmax.f32 %v6224_v53, 0.0 }
 0x4bf   :  { %v6227_v46 = vmax.f32 %v6219_v47, 0.0 }
 0x4c0   :  { %v6288_v60 = vrot.slane %v6228_v38, %v10833_v52  ;;  %v6304_v44 = vcombine.high %v6228_v38, %v6228_v38  ;;  %6280 = vst.msk [vmem:[#allocation4 + $0x8] sm:$0x1] %vm6229_vm14, %v6228_v38 }
 0x4c1   :  { %v6238_v63 = vrot.slane %v6227_v46, %v10833_v52  ;;  %v6255_v39 = vcombine.high %v6227_v46, %v6227_v46  ;;  %6230 = vst.msk [vmem:[#allocation4] sm:$0x1] %vm6229_vm14, %v6227_v46 }
 0x4c2   :  { %6353 = vrot.lane.b32.xlu1 %v6288_v60, %s8662_s17  ;;  %v6295_v36 = vcombine.high %v6288_v60, %v6288_v60  ;;  %v6311_v37 = vrot.slane %v6304_v44, %v10833_v52  ;;  %v6289_v44 = vrot.slane %v6288_v60, 7 }
 0x4c3   :  { %v6246_v45 = vcombine.high %v6238_v63, %v6238_v63  ;;  %v6262_v62 = vrot.slane %v6255_v39, %v10833_v52  ;;  %v6239_v38 = vrot.slane %v6238_v63, 7 }
 0x4c4   :  { %6359 = vrot.lane.b32.xlu0 %v6295_v36, %s8662_s17  ;;  %v6320_v55 = vcombine.high %v6311_v37, %v6311_v37  ;;  %6297 = vst.msk [vmem:[#allocation4 + $0xa] sm:$0x1] %vm6229_vm14, %v6295_v36  ;;  %6313 = vst.msk [vmem:[#allocation4 + $0xc] sm:$0x1] %vm6229_vm14, %v6311_v37  ;;  %v6298_v54 = vrot.slane %v6295_v36, 7  ;;  %v6290_v47 = vrot.slane %v6289_v44, 2 }
 0x4c5   :  { %v6271_v53 = vcombine.high %v6262_v62, %v6262_v62  ;;  %6248 = vst.msk [vmem:[#allocation4 + $0x2] sm:$0x1] %vm6229_vm14, %v6246_v45  ;;  %6264 = vst.msk [vmem:[#allocation4 + $0x4] sm:$0x1] %vm6229_vm14, %v6262_v62  ;;  %v6249_v39 = vrot.slane %v6246_v45, 7  ;;  %v6240_v51 = vrot.slane %v6239_v38, 2 }
 0x4c6   :  { %6329 = vrot.lane.b32.xlu1 %v6238_v63, %s8662_s17  ;;  %6322 = vst.msk [vmem:[#allocation4 + $0xe] sm:$0x1] %vm6229_vm14, %v6320_v55  ;;  %v6299_v46 = vrot.slane %v6298_v54, 2  ;;  %v6265_v35 = vrot.slane %v6262_v62, 7  ;;  %v6314_v36 = vrot.slane %v6311_v37, 7  ;;  %v6323_v63 = vrot.slane %v6320_v55, 7 }
 0x4c7   :  { %6273 = vst.msk [vmem:[#allocation4 + $0x6] sm:$0x1] %vm6229_vm14, %v6271_v53  ;;  %v6250_v59 = vrot.slane %v6249_v39, 2  ;;  %v6274_v43 = vrot.slane %v6271_v53, 7 }
 0x4c8   :  { %6335 = vrot.lane.b32.xlu0 %v6246_v45, %s8662_s17  ;;  %v6266_v60 = vrot.slane %v6265_v35, 2  ;;  %v6315_v54 = vrot.slane %v6314_v36, 2  ;;  %v6324_v45 = vrot.slane %v6323_v63, 2 }
 0x4c9   :  { %v6275_v44 = vrot.slane %v6274_v43, 2 }
 0x4ca   :  { %6365 = vrot.lane.b32.xlu1 %v6311_v37, %s8662_s17 }
 0x4cc   :  { %6371 = vrot.lane.b32.xlu0 %v6320_v55, %s8662_s17 }
 0x4ce   :  { %6341 = vrot.lane.b32.xlu1 %v6262_v62, %s8662_s17 }
 0x4d0   :  { %6347 = vrot.lane.b32.xlu0 %v6271_v53, %s8662_s17 }
 0x4d2   :  { %6291 = vrot.lane.b32.xlu1 %v6290_v47, %s8662_s17 }
 0x4d4   :  { %6300 = vrot.lane.b32.xlu0 %v6299_v46, %s8662_s17 }
 0x4d6   :  { %6241 = vrot.lane.b32.xlu1 %v6240_v51, %s8662_s17 }
 0x4d8   :  { %6251 = vrot.lane.b32.xlu0 %v6250_v59, %s8662_s17 }
 0x4da   :  { %6267 = vrot.lane.b32.xlu1 %v6266_v60, %s8662_s17 }
 0x4dc   :  { %6276 = vrot.lane.b32.xlu0 %v6275_v44, %s8662_s17 }
 0x4de   :  { %6316 = vrot.lane.b32.xlu1 %v6315_v54, %s8662_s17 }
 0x4e0   :  { %6325 = vrot.lane.b32.xlu0 %v6324_v45, %s8662_s17 }
 0x534   :  { %v6354_v62 = vpop.permute.xlu1 %6353 }
 0x535   :  { %6356 = vst.msk [vmem:[#allocation4 + $0x9] sm:$0x1] %vm6229_vm14, %v6354_v62 }
 0x536   :  { %6358 = vst.msk [vmem:[#allocation4 + $0x9] sm:$0x1] %vm6244_vm15, %v6290_v47  ;;  %v6360_v35 = vpop.permute.xlu0 %6359 }
 0x537   :  { %6362 = vst.msk [vmem:[#allocation4 + $0xb] sm:$0x1] %vm6229_vm14, %v6360_v35 }
 0x538   :  { %6364 = vst.msk [vmem:[#allocation4 + $0xb] sm:$0x1] %vm6244_vm15, %v6299_v46  ;;  %v6330_v43 = vpop.permute.xlu1 %6329 }
 0x539   :  { %6332 = vst.msk [vmem:[#allocation4 + $0x1] sm:$0x1] %vm6229_vm14, %v6330_v43 }
 0x53a   :  { %6334 = vst.msk [vmem:[#allocation4 + $0x1] sm:$0x1] %vm6244_vm15, %v6240_v51  ;;  %v6336_v37 = vpop.permute.xlu0 %6335 }
 0x53b   :  { %6338 = vst.msk [vmem:[#allocation4 + $0x3] sm:$0x1] %vm6229_vm14, %v6336_v37 }
 0x53c   :  { %6340 = vst.msk [vmem:[#allocation4 + $0x3] sm:$0x1] %vm6244_vm15, %v6250_v59  ;;  %v6366_v55 = vpop.permute.xlu1 %6365 }
 0x53d   :  { %6368 = vst.msk [vmem:[#allocation4 + $0xd] sm:$0x1] %vm6229_vm14, %v6366_v55 }
 0x53e   :  { %6370 = vst.msk [vmem:[#allocation4 + $0xd] sm:$0x1] %vm6244_vm15, %v6315_v54  ;;  %v6372_v53 = vpop.permute.xlu0 %6371 }
 0x53f   :  { %6374 = vst.msk [vmem:[#allocation4 + $0xf] sm:$0x1] %vm6229_vm14, %v6372_v53 }
 0x540   :  { %6376 = vst.msk [vmem:[#allocation4 + $0xf] sm:$0x1] %vm6244_vm15, %v6324_v45  ;;  %v6342_v47 = vpop.permute.xlu1 %6341 }
 0x541   :  { %6344 = vst.msk [vmem:[#allocation4 + $0x5] sm:$0x1] %vm6229_vm14, %v6342_v47 }
 0x542   :  { %6346 = vst.msk [vmem:[#allocation4 + $0x5] sm:$0x1] %vm6244_vm15, %v6266_v60  ;;  %v6348_v51 = vpop.permute.xlu0 %6347 }
 0x543   :  { %6350 = vst.msk [vmem:[#allocation4 + $0x7] sm:$0x1] %vm6229_vm14, %v6348_v51 }
 0x544   :  { %6352 = vst.msk [vmem:[#allocation4 + $0x7] sm:$0x1] %vm6244_vm15, %v6275_v44  ;;  %v6292_v59 = vpop.permute.xlu1 %6291 }
 0x545   :  { %6294 = vst.msk [vmem:[#allocation4 + $0x8] sm:$0x1] %vm6244_vm15, %v6292_v59 }
 0x546   :  { %v6301_v38 = vpop.permute.xlu0 %6300 }
 0x547   :  { %6303 = vst.msk [vmem:[#allocation4 + $0xa] sm:$0x1] %vm6244_vm15, %v6301_v38 }
 0x548   :  { %v6242_v46 = vpop.permute.xlu1 %6241 }
 0x549   :  { %6245 = vst.msk [vmem:[#allocation4] sm:$0x1] %vm6244_vm15, %v6242_v46 }
 0x54a   :  { %v6252_v39 = vpop.permute.xlu0 %6251 }
 0x54b   :  { %6254 = vst.msk [vmem:[#allocation4 + $0x2] sm:$0x1] %vm6244_vm15, %v6252_v39 }
 0x54c   :  { %v6268_v36 = vpop.permute.xlu1 %6267 }
 0x54d   :  { %6270 = vst.msk [vmem:[#allocation4 + $0x4] sm:$0x1] %vm6244_vm15, %v6268_v36 }
 0x54e   :  { %v6277_v60 = vpop.permute.xlu0 %6276 }
 0x54f   :  { %6279 = vst.msk [vmem:[#allocation4 + $0x6] sm:$0x1] %vm6244_vm15, %v6277_v60 }
 0x550   :  { %v6317_v63 = vpop.permute.xlu1 %6316 }
 0x551   :  { %6319 = vst.msk [vmem:[#allocation4 + $0xc] sm:$0x1] %vm6244_vm15, %v6317_v63 }
 0x552   :  { %v6326_v44 = vpop.permute.xlu0 %6325 }
 0x553   :  { %6328 = vst.msk [vmem:[#allocation4 + $0xe] sm:$0x1] %vm6244_vm15, %v6326_v44 }
 0x554   :  { %8632 = dma.done.wait [#allocation7], 65536 }
 0x555   :  { %8633 = vsyncadd [#allocation7], 4294901760  ;;  %v6436_v54 = vld [vmem:[#allocation5 + $0x8] sm:$0xff]  ;;  %v6438_v45 = vld [vmem:[#allocation5 + $0x18] sm:$0xff] }
 0x556   :  { %v6435_v62 = vld [vmem:[#allocation5] sm:$0xff]  ;;  %6989 = vmatprep.subr.bf16.mxu1 %v6436_v54  ;;  %7153 = vmatprep.subr.bf16.mxu0 %v6438_v45  ;;  %v6437_v35 = vld [vmem:[#allocation5 + $0x10] sm:$0xff]  ;;  %v6444_v43 = vld [vmem:[#allocation5 + $0x48] sm:$0xff] }
 0x557   :  { %v6446_v37 = vld [vmem:[#allocation5 + $0x58] sm:$0xff]  ;;  %6990 = vmatpush1.bf16.msra.mxu1 %v6435_v62  ;;  %7154 = vmatpush1.bf16.msra.mxu0 %v6437_v35  ;;  %v6443_v55 = vld [vmem:[#allocation5 + $0x40] sm:$0xff]  ;;  %v6445_v53 = vld [vmem:[#allocation5 + $0x50] sm:$0xff] }
 0x558   :  { %6991 = vmatprep.subr.bf16.mxu1 %v6444_v43  ;;  %7155 = vmatprep.subr.bf16.mxu0 %v6446_v37  ;;  %v6452_v47 = vld [vmem:[#allocation5 + $0x88] sm:$0xff]  ;;  %v6454_v51 = vld [vmem:[#allocation5 + $0x98] sm:$0xff]  ;;  %v6451_v59 = vld [vmem:[#allocation5 + $0x80] sm:$0xff] }
 0x559   :  { %v6453_v38 = vld [vmem:[#allocation5 + $0x90] sm:$0xff]  ;;  %v6460_v46 = vld [vmem:[#allocation5 + $0xc8] sm:$0xff]  ;;  %v6462_v39 = vld [vmem:[#allocation5 + $0xd8] sm:$0xff] }
 0x55a   :  { %v6459_v36 = vld [vmem:[#allocation5 + $0xc0] sm:$0xff]  ;;  %v6461_v60 = vld [vmem:[#allocation5 + $0xd0] sm:$0xff]  ;;  %v6468_v63 = vld [vmem:[#allocation5 + $0x108] sm:$0xff] }
 0x55b   :  { %6992 = vmatpush1.bf16.msra.mxu1 %v6443_v55  ;;  %7156 = vmatpush1.bf16.msra.mxu0 %v6445_v53  ;;  %v6470_v44 = vld [vmem:[#allocation5 + $0x118] sm:$0xff]  ;;  %v6467_v54 = vld [vmem:[#allocation5 + $0x100] sm:$0xff]  ;;  %v6469_v45 = vld [vmem:[#allocation5 + $0x110] sm:$0xff] }
 0x55c   :  { %6993 = vmatprep.subr.bf16.mxu1 %v6452_v47  ;;  %7157 = vmatprep.subr.bf16.mxu0 %v6454_v51  ;;  %v6476_v62 = vld [vmem:[#allocation5 + $0x148] sm:$0xff]  ;;  %v6478_v35 = vld [vmem:[#allocation5 + $0x158] sm:$0xff]  ;;  %v6475_v43 = vld [vmem:[#allocation5 + $0x140] sm:$0xff] }
 0x55d   :  { %v6477_v37 = vld [vmem:[#allocation5 + $0x150] sm:$0xff]  ;;  %v6484_v55 = vld [vmem:[#allocation5 + $0x188] sm:$0xff]  ;;  %v6486_v53 = vld [vmem:[#allocation5 + $0x198] sm:$0xff] }
 0x55e   :  { %v10887_v47 = vld [vmem:[#allocation4] sm:$0xff]  ;;  %v6718_v50 = vld [vmem:[#allocation5 + $0x8d8] sm:$0xff] }
 0x55f   :  { %6994 = vmatpush1.bf16.msra.mxu1 %v6451_v59  ;;  %7158 = vmatpush1.bf16.msra.mxu0 %v6453_v38  ;;  %v10891_v51 = vrot.slane %v10887_v47, %v10833_v52  ;;  %v6483_v59 = vld [vmem:[#allocation5 + $0x180] sm:$0xff]  ;;  %v6485_v38 = vld [vmem:[#allocation5 + $0x190] sm:$0xff]  ;;  %v6822_v58 = vld [vmem:[#allocation5 + $0xc18] sm:$0xff] }
 0x560   :  { %6995 = vmatprep.subr.bf16.mxu1 %v6460_v46  ;;  %7159 = vmatprep.subr.bf16.mxu0 %v6462_v39  ;;  %v6492_v46 = vld [vmem:[#allocation5 + $0x1c8] sm:$0xff]  ;;  %v6494_v39 = vld [vmem:[#allocation5 + $0x1d8] sm:$0xff] }
 0x563   :  { %6996 = vmatpush1.bf16.msra.mxu1 %v6459_v36  ;;  %7160 = vmatpush1.bf16.msra.mxu0 %v6461_v60  ;;  %v6400_v36 = vcombine.high %v10891_v51, %v10891_v51 }
 0x564   :  { %6997 = vmatprep.subr.bf16.mxu1 %v6468_v63  ;;  %7161 = vmatprep.subr.bf16.mxu0 %v6470_v44  ;;  %v6491_v63 = vld [vmem:[#allocation5 + $0x1c0] sm:$0xff]  ;;  %v6493_v44 = vld [vmem:[#allocation5 + $0x1d0] sm:$0xff] }
 0x565   :  { %v10895_v60 = vpack.c.bf16 %v6400_v36, %v6400_v36  ;;  %v6524_v36 = vld [vmem:[#allocation5 + $0x2c8] sm:$0xff] }
 0x567   :  { %6998 = vmatpush1.bf16.msra.mxu1 %v6467_v54  ;;  %7162 = vmatpush1.bf16.msra.mxu0 %v6469_v45  ;;  %v6500_v54 = vld [vmem:[#allocation5 + $0x208] sm:$0xff]  ;;  %v6502_v45 = vld [vmem:[#allocation5 + $0x218] sm:$0xff] }
 0x568   :  { %6999 = vmatprep.subr.bf16.mxu1 %v6476_v62  ;;  %7163 = vmatprep.subr.bf16.mxu0 %v6478_v35  ;;  %v6499_v62 = vld [vmem:[#allocation5 + $0x200] sm:$0xff]  ;;  %v6501_v35 = vld [vmem:[#allocation5 + $0x210] sm:$0xff] }
 0x569   :  { %7021 = vmatprep.mubr.bf16.mxu1 %v10895_v60  ;;  %7185 = vmatprep.mubr.bf16.mxu0 %v10895_v60 }
 0x56b   :  { %7000 = vmatpush1.bf16.msra.mxu1 %v6475_v43  ;;  %7164 = vmatpush1.bf16.msra.mxu0 %v6477_v37  ;;  %v6508_v43 = vld [vmem:[#allocation5 + $0x248] sm:$0xff]  ;;  %v6510_v37 = vld [vmem:[#allocation5 + $0x258] sm:$0xff] }
 0x56c   :  { %7001 = vmatprep.subr.bf16.mxu1 %v6484_v55  ;;  %7165 = vmatprep.subr.bf16.mxu0 %v6486_v53  ;;  %v6507_v55 = vld [vmem:[#allocation5 + $0x240] sm:$0xff]  ;;  %v6509_v53 = vld [vmem:[#allocation5 + $0x250] sm:$0xff] }
 0x56f   :  { %7002 = vmatpush1.bf16.msra.mxu1 %v6483_v59  ;;  %7166 = vmatpush1.bf16.msra.mxu0 %v6485_v38  ;;  %v6516_v59 = vld [vmem:[#allocation5 + $0x288] sm:$0xff]  ;;  %v6518_v38 = vld [vmem:[#allocation5 + $0x298] sm:$0xff] }
 0x570   :  { %7003 = vmatprep.subr.bf16.mxu1 %v6492_v46  ;;  %7167 = vmatprep.subr.bf16.mxu0 %v6494_v39  ;;  %v6515_v46 = vld [vmem:[#allocation5 + $0x280] sm:$0xff]  ;;  %v6517_v39 = vld [vmem:[#allocation5 + $0x290] sm:$0xff] }
 0x573   :  { %7004 = vmatpush1.bf16.msra.mxu1 %v6491_v63  ;;  %7168 = vmatpush1.bf16.msra.mxu0 %v6493_v44  ;;  %v6526_v63 = vld [vmem:[#allocation5 + $0x2d8] sm:$0xff]  ;;  %v6523_v44 = vld [vmem:[#allocation5 + $0x2c0] sm:$0xff] }
 0x574   :  { %7005 = vmatprep.subr.bf16.mxu1 %v6500_v54  ;;  %7169 = vmatprep.subr.bf16.mxu0 %v6502_v45  ;;  %v6525_v54 = vld [vmem:[#allocation5 + $0x2d0] sm:$0xff]  ;;  %v6532_v45 = vld [vmem:[#allocation5 + $0x308] sm:$0xff] }
 0x577   :  { %7006 = vmatpush1.bf16.msra.mxu1 %v6499_v62  ;;  %7170 = vmatpush1.bf16.msra.mxu0 %v6501_v35  ;;  %v6534_v62 = vld [vmem:[#allocation5 + $0x318] sm:$0xff]  ;;  %v6531_v35 = vld [vmem:[#allocation5 + $0x300] sm:$0xff] }
 0x578   :  { %7007 = vmatprep.subr.bf16.mxu1 %v6508_v43  ;;  %7171 = vmatprep.subr.bf16.mxu0 %v6510_v37  ;;  %v6533_v43 = vld [vmem:[#allocation5 + $0x310] sm:$0xff]  ;;  %v6540_v37 = vld [vmem:[#allocation5 + $0x348] sm:$0xff] }
 0x57b   :  { %7008 = vmatpush1.bf16.msra.mxu1 %v6507_v55  ;;  %7172 = vmatpush1.bf16.msra.mxu0 %v6509_v53  ;;  %v6542_v55 = vld [vmem:[#allocation5 + $0x358] sm:$0xff]  ;;  %v6539_v53 = vld [vmem:[#allocation5 + $0x340] sm:$0xff] }
 0x57c   :  { %7009 = vmatprep.subr.bf16.mxu1 %v6516_v59  ;;  %7173 = vmatprep.subr.bf16.mxu0 %v6518_v38  ;;  %v6541_v59 = vld [vmem:[#allocation5 + $0x350] sm:$0xff]  ;;  %v6548_v38 = vld [vmem:[#allocation5 + $0x388] sm:$0xff] }
 0x57f   :  { %7010 = vmatpush1.bf16.msra.mxu1 %v6515_v46  ;;  %7174 = vmatpush1.bf16.msra.mxu0 %v6517_v39  ;;  %v6550_v46 = vld [vmem:[#allocation5 + $0x398] sm:$0xff]  ;;  %v6385_v39 = vcombine.high %v10887_v47, %v10887_v47 }
 0x580   :  { %7011 = vmatprep.subr.bf16.mxu1 %v6524_v36  ;;  %7175 = vmatprep.subr.bf16.mxu0 %v6526_v63  ;;  %v6547_v36 = vld [vmem:[#allocation5 + $0x380] sm:$0xff]  ;;  %v6549_v63 = vld [vmem:[#allocation5 + $0x390] sm:$0xff] }
 0x583   :  { %7012 = vmatpush1.bf16.msra.mxu1 %v6523_v44  ;;  %7176 = vmatpush1.bf16.msra.mxu0 %v6525_v54  ;;  %v6556_v44 = vld [vmem:[#allocation5 + $0x3c8] sm:$0xff]  ;;  %v6558_v54 = vld [vmem:[#allocation5 + $0x3d8] sm:$0xff] }
 0x584   :  { %7013 = vmatprep.subr.bf16.mxu1 %v6532_v45  ;;  %7177 = vmatprep.subr.bf16.mxu0 %v6534_v62  ;;  %v10902_v45 = vrot.slane %v6385_v39, %v10833_v52  ;;  %v6555_v62 = vld [vmem:[#allocation5 + $0x3c0] sm:$0xff] }
 0x586   :  { %v6401_v47 = vcombine.high %v10902_v45, %v10902_v45 }
 0x587   :  { %7014 = vmatpush1.bf16.msra.mxu1 %v6531_v35  ;;  %7178 = vmatpush1.bf16.msra.mxu0 %v6533_v43  ;;  %v6557_v35 = vld [vmem:[#allocation5 + $0x3d0] sm:$0xff]  ;;  %v6564_v43 = vld [vmem:[#allocation5 + $0x408] sm:$0xff] }
 0x588   :  { %7015 = vmatprep.subr.bf16.mxu1 %v6540_v37  ;;  %7179 = vmatprep.subr.bf16.mxu0 %v6542_v55  ;;  %v6566_v37 = vld [vmem:[#allocation5 + $0x418] sm:$0xff]  ;;  %v10908_v55 = vpack.c.bf16 %v10891_v51, %v10891_v51  ;;  %v10910_v39 = vpack.c.bf16 %v6401_v47, %v6401_v47  ;;  %v6571_v51 = vld [vmem:[#allocation5 + $0x440] sm:$0xff]  ;;  %v6589_v47 = vld [vmem:[#allocation5 + $0x4d0] sm:$0xff] }
 0x58b   :  { %7016 = vmatpush1.bf16.msra.mxu1 %v6539_v53  ;;  %7180 = vmatpush1.bf16.msra.mxu0 %v6541_v59  ;;  %v6563_v53 = vld [vmem:[#allocation5 + $0x400] sm:$0xff]  ;;  %v6565_v59 = vld [vmem:[#allocation5 + $0x410] sm:$0xff] }
 0x58c   :  { %7017 = vmatprep.subr.bf16.mxu1 %v6548_v38  ;;  %7181 = vmatprep.subr.bf16.mxu0 %v6550_v46  ;;  %v6572_v38 = vld [vmem:[#allocation5 + $0x448] sm:$0xff]  ;;  %v6574_v46 = vld [vmem:[#allocation5 + $0x458] sm:$0xff] }
 0x58f   :  { %7018 = vmatpush1.bf16.msra.mxu1 %v6547_v36  ;;  %7182 = vmatpush1.bf16.msra.mxu0 %v6549_v63  ;;  %v6573_v36 = vld [vmem:[#allocation5 + $0x450] sm:$0xff]  ;;  %v6580_v63 = vld [vmem:[#allocation5 + $0x488] sm:$0xff] }
 0x590   :  { %7019 = vmatprep.subr.bf16.mxu1 %v6556_v44  ;;  %7183 = vmatprep.subr.bf16.mxu0 %v6558_v54  ;;  %v6582_v44 = vld [vmem:[#allocation5 + $0x498] sm:$0xff]  ;;  %v6579_v54 = vld [vmem:[#allocation5 + $0x480] sm:$0xff] }
 0x593   :  { %7020 = vmatpush1.bf16.msra.mxu1 %v6555_v62  ;;  %7184 = vmatpush1.bf16.msra.mxu0 %v6557_v35  ;;  %v6581_v62 = vld [vmem:[#allocation5 + $0x490] sm:$0xff]  ;;  %v6588_v35 = vld [vmem:[#allocation5 + $0x4c8] sm:$0xff] }
 0x594   :  { %7030 = vmatprep.subr.bf16.mxu1 %v6564_v43  ;;  %7194 = vmatprep.subr.bf16.mxu0 %v6566_v37  ;;  %v6590_v43 = vld [vmem:[#allocation5 + $0x4d8] sm:$0xff]  ;;  %v6587_v37 = vld [vmem:[#allocation5 + $0x4c0] sm:$0xff] }
 0x596   :  { %7022 = vmatmul.mubr.bf16.vlgmr.msra.gmra.mrb[4].mxu1 %v10908_v55  ;;  %7186 = vmatmul.mubr.bf16.vlgmr.msra.gmra.mrb[64].mxu0 %v10908_v55 }
 0x597   :  { %7031 = vmatpush1.bf16.msra.mxu1 %v6563_v53  ;;  %7195 = vmatpush1.bf16.msra.mxu0 %v6565_v59  ;;  %v6596_v53 = vld [vmem:[#allocation5 + $0x508] sm:$0xff]  ;;  %v6598_v59 = vld [vmem:[#allocation5 + $0x518] sm:$0xff] }
 0x598   :  { %7032 = vmatprep.subr.bf16.mxu1 %v6572_v38  ;;  %7196 = vmatprep.subr.bf16.mxu0 %v6574_v46  ;;  %v6595_v38 = vld [vmem:[#allocation5 + $0x500] sm:$0xff]  ;;  %v6597_v46 = vld [vmem:[#allocation5 + $0x510] sm:$0xff] }
 0x599   :  { %7062 = vmatprep.mubr.bf16.mxu1 %v10910_v39  ;;  %7226 = vmatprep.mubr.bf16.mxu0 %v10910_v39 }
 0x59b   :  { %7033 = vmatpush1.bf16.msra.mxu1 %v6571_v51  ;;  %7197 = vmatpush1.bf16.msra.mxu0 %v6573_v36  ;;  %v6604_v51 = vld [vmem:[#allocation5 + $0x548] sm:$0xff]  ;;  %v6606_v36 = vld [vmem:[#allocation5 + $0x558] sm:$0xff] }
 0x59c   :  { %7034 = vmatprep.subr.bf16.mxu1 %v6580_v63  ;;  %7198 = vmatprep.subr.bf16.mxu0 %v6582_v44  ;;  %v6603_v63 = vld [vmem:[#allocation5 + $0x540] sm:$0xff]  ;;  %v6605_v44 = vld [vmem:[#allocation5 + $0x550] sm:$0xff] }
 0x59f   :  { %7035 = vmatpush1.bf16.msra.mxu1 %v6579_v54  ;;  %7199 = vmatpush1.bf16.msra.mxu0 %v6581_v62  ;;  %v6612_v54 = vld [vmem:[#allocation5 + $0x588] sm:$0xff]  ;;  %v6614_v62 = vld [vmem:[#allocation5 + $0x598] sm:$0xff] }
 0x5a0   :  { %7036 = vmatprep.subr.bf16.mxu1 %v6588_v35  ;;  %7200 = vmatprep.subr.bf16.mxu0 %v6590_v43  ;;  %v6611_v35 = vld [vmem:[#allocation5 + $0x580] sm:$0xff]  ;;  %v6613_v43 = vld [vmem:[#allocation5 + $0x590] sm:$0xff] }
 0x5a3   :  { %7037 = vmatpush1.bf16.msra.mxu1 %v6587_v37  ;;  %7201 = vmatpush1.bf16.msra.mxu0 %v6589_v47  ;;  %v6620_v37 = vld [vmem:[#allocation5 + $0x5c8] sm:$0xff]  ;;  %v6622_v47 = vld [vmem:[#allocation5 + $0x5d8] sm:$0xff] }
 0x5a4   :  { %7038 = vmatprep.subr.bf16.mxu1 %v6596_v53  ;;  %7202 = vmatprep.subr.bf16.mxu0 %v6598_v59  ;;  %v6619_v53 = vld [vmem:[#allocation5 + $0x5c0] sm:$0xff]  ;;  %v6621_v59 = vld [vmem:[#allocation5 + $0x5d0] sm:$0xff] }
 0x5a7   :  { %7039 = vmatpush1.bf16.msra.mxu1 %v6595_v38  ;;  %7203 = vmatpush1.bf16.msra.mxu0 %v6597_v46  ;;  %v6628_v38 = vld [vmem:[#allocation5 + $0x608] sm:$0xff]  ;;  %v6630_v46 = vld [vmem:[#allocation5 + $0x618] sm:$0xff] }
 0x5a8   :  { %7040 = vmatprep.subr.bf16.mxu1 %v6604_v51  ;;  %7204 = vmatprep.subr.bf16.mxu0 %v6606_v36  ;;  %v6627_v51 = vld [vmem:[#allocation5 + $0x600] sm:$0xff]  ;;  %v6629_v36 = vld [vmem:[#allocation5 + $0x610] sm:$0xff] }
 0x5ab   :  { %7041 = vmatpush1.bf16.msra.mxu1 %v6603_v63  ;;  %7205 = vmatpush1.bf16.msra.mxu0 %v6605_v44  ;;  %v6636_v63 = vld [vmem:[#allocation5 + $0x648] sm:$0xff]  ;;  %v6638_v44 = vld [vmem:[#allocation5 + $0x658] sm:$0xff] }
 0x5ac   :  { %7042 = vmatprep.subr.bf16.mxu1 %v6612_v54  ;;  %7206 = vmatprep.subr.bf16.mxu0 %v6614_v62  ;;  %v6635_v54 = vld [vmem:[#allocation5 + $0x640] sm:$0xff]  ;;  %v6637_v62 = vld [vmem:[#allocation5 + $0x650] sm:$0xff] }
 0x5af   :  { %7043 = vmatpush1.bf16.msra.mxu1 %v6611_v35  ;;  %7207 = vmatpush1.bf16.msra.mxu0 %v6613_v43  ;;  %v6644_v35 = vld [vmem:[#allocation5 + $0x688] sm:$0xff]  ;;  %v6646_v43 = vld [vmem:[#allocation5 + $0x698] sm:$0xff] }
 0x5b0   :  { %7044 = vmatprep.subr.bf16.mxu1 %v6620_v37  ;;  %7208 = vmatprep.subr.bf16.mxu0 %v6622_v47  ;;  %v6643_v37 = vld [vmem:[#allocation5 + $0x680] sm:$0xff]  ;;  %v6645_v47 = vld [vmem:[#allocation5 + $0x690] sm:$0xff] }
 0x5b3   :  { %7045 = vmatpush1.bf16.msra.mxu1 %v6619_v53  ;;  %7209 = vmatpush1.bf16.msra.mxu0 %v6621_v59  ;;  %v6652_v53 = vld [vmem:[#allocation5 + $0x6c8] sm:$0xff]  ;;  %v6654_v59 = vld [vmem:[#allocation5 + $0x6d8] sm:$0xff] }
 0x5b4   :  { %7046 = vmatprep.subr.bf16.mxu1 %v6628_v38  ;;  %7210 = vmatprep.subr.bf16.mxu0 %v6630_v46  ;;  %v6651_v38 = vld [vmem:[#allocation5 + $0x6c0] sm:$0xff]  ;;  %v6653_v46 = vld [vmem:[#allocation5 + $0x6d0] sm:$0xff] }
 0x5b7   :  { %7047 = vmatpush1.bf16.msra.mxu1 %v6627_v51  ;;  %7211 = vmatpush1.bf16.msra.mxu0 %v6629_v36  ;;  %v6660_v51 = vld [vmem:[#allocation5 + $0x708] sm:$0xff]  ;;  %v6662_v36 = vld [vmem:[#allocation5 + $0x718] sm:$0xff] }
 0x5b8   :  { %7048 = vmatprep.subr.bf16.mxu1 %v6636_v63  ;;  %7212 = vmatprep.subr.bf16.mxu0 %v6638_v44  ;;  %v6659_v63 = vld [vmem:[#allocation5 + $0x700] sm:$0xff]  ;;  %v6661_v44 = vld [vmem:[#allocation5 + $0x710] sm:$0xff] }
 0x5bb   :  { %7049 = vmatpush1.bf16.msra.mxu1 %v6635_v54  ;;  %7213 = vmatpush1.bf16.msra.mxu0 %v6637_v62  ;;  %v6668_v54 = vld [vmem:[#allocation5 + $0x748] sm:$0xff]  ;;  %v6670_v62 = vld [vmem:[#allocation5 + $0x758] sm:$0xff] }
 0x5bc   :  { %7050 = vmatprep.subr.bf16.mxu1 %v6644_v35  ;;  %7214 = vmatprep.subr.bf16.mxu0 %v6646_v43  ;;  %v6667_v35 = vld [vmem:[#allocation5 + $0x740] sm:$0xff]  ;;  %v6669_v43 = vld [vmem:[#allocation5 + $0x750] sm:$0xff] }
 0x5bf   :  { %7051 = vmatpush1.bf16.msra.mxu1 %v6643_v37  ;;  %7215 = vmatpush1.bf16.msra.mxu0 %v6645_v47  ;;  %v6676_v37 = vld [vmem:[#allocation5 + $0x788] sm:$0xff]  ;;  %v6678_v47 = vld [vmem:[#allocation5 + $0x798] sm:$0xff] }
 0x5c0   :  { %7052 = vmatprep.subr.bf16.mxu1 %v6652_v53  ;;  %7216 = vmatprep.subr.bf16.mxu0 %v6654_v59  ;;  %v10916_v53 = vld [vmem:[#allocation4 + $0x8] sm:$0xff]  ;;  %v6675_v59 = vld [vmem:[#allocation5 + $0x780] sm:$0xff] }
 0x5c1   :  { %v6402_v34 = vcombine.high %v10916_v53, %v10916_v53 }
 0x5c3   :  { %7053 = vmatpush1.bf16.msra.mxu1 %v6651_v38  ;;  %7217 = vmatpush1.bf16.msra.mxu0 %v6653_v46  ;;  %v6677_v38 = vld [vmem:[#allocation5 + $0x790] sm:$0xff]  ;;  %v6684_v46 = vld [vmem:[#allocation5 + $0x7c8] sm:$0xff] }
 0x5c4   :  { %7054 = vmatprep.subr.bf16.mxu1 %v6660_v51  ;;  %7218 = vmatprep.subr.bf16.mxu0 %v6662_v36  ;;  %v6686_v51 = vld [vmem:[#allocation5 + $0x7d8] sm:$0xff]  ;;  %v10920_v36 = vrot.slane %v10916_v53, %v10833_v52 }
 0x5c7   :  { %7055 = vmatpush1.bf16.msra.mxu1 %v6659_v63  ;;  %7219 = vmatpush1.bf16.msra.mxu0 %v6661_v44  ;;  %v6683_v63 = vld [vmem:[#allocation5 + $0x7c0] sm:$0xff]  ;;  %v6685_v44 = vld [vmem:[#allocation5 + $0x7d0] sm:$0xff] }
 0x5c8   :  { %7056 = vmatprep.subr.bf16.mxu1 %v6668_v54  ;;  %7220 = vmatprep.subr.bf16.mxu0 %v6670_v62  ;;  %v6692_v54 = vld [vmem:[#allocation5 + $0x808] sm:$0xff]  ;;  %v6694_v62 = vld [vmem:[#allocation5 + $0x818] sm:$0xff] }
 0x5cb   :  { %7057 = vmatpush1.bf16.msra.mxu1 %v6667_v35  ;;  %7221 = vmatpush1.bf16.msra.mxu0 %v6669_v43  ;;  %v6417_v35 = vcombine.high %v10920_v36, %v10920_v36  ;;  %v10926_v43 = vpack.c.bf16 %v10902_v45, %v10902_v45  ;;  %v6699_v45 = vld [vmem:[#allocation5 + $0x840] sm:$0xff] }
 0x5cc   :  { %7058 = vmatprep.subr.bf16.mxu1 %v6676_v37  ;;  %7222 = vmatprep.subr.bf16.mxu0 %v6678_v47  ;;  %v6691_v37 = vld [vmem:[#allocation5 + $0x800] sm:$0xff]  ;;  %v6693_v47 = vld [vmem:[#allocation5 + $0x810] sm:$0xff] }
 0x5cf   :  { %7059 = vmatpush1.bf16.msra.mxu1 %v6675_v59  ;;  %7223 = vmatpush1.bf16.msra.mxu0 %v6677_v38  ;;  %v6700_v59 = vld [vmem:[#allocation5 + $0x848] sm:$0xff]  ;;  %v6702_v38 = vld [vmem:[#allocation5 + $0x858] sm:$0xff] }
 0x5d0   :  { %7060 = vmatprep.subr.bf16.mxu1 %v6684_v46  ;;  %7224 = vmatprep.subr.bf16.mxu0 %v6686_v51  ;;  %v10928_v46 = vpack.c.bf16 %v6417_v35, %v6417_v35  ;;  %v6701_v51 = vld [vmem:[#allocation5 + $0x850] sm:$0xff]  ;;  %v6716_v35 = vld [vmem:[#allocation5 + $0x8c8] sm:$0xff] }
 0x5d3   :  { %7061 = vmatpush1.bf16.msra.mxu1 %v6683_v63  ;;  %7225 = vmatpush1.bf16.msra.mxu0 %v6685_v44  ;;  %v6708_v63 = vld [vmem:[#allocation5 + $0x888] sm:$0xff]  ;;  %v6710_v44 = vld [vmem:[#allocation5 + $0x898] sm:$0xff] }
 0x5d4   :  { %7071 = vmatprep.subr.bf16.mxu1 %v6692_v54  ;;  %7235 = vmatprep.subr.bf16.mxu0 %v6694_v62  ;;  %v6707_v54 = vld [vmem:[#allocation5 + $0x880] sm:$0xff]  ;;  %v6709_v62 = vld [vmem:[#allocation5 + $0x890] sm:$0xff] }
 0x5d6   :  { %7063 = vmatmul.mubr.bf16.vlgmr.msra.gmra.mrb[4].mxu1 %v10926_v43  ;;  %7227 = vmatmul.mubr.bf16.vlgmr.msra.gmra.mrb[64].mxu0 %v10926_v43 }
 0x5d7   :  { %7072 = vmatpush1.bf16.msra.mxu1 %v6691_v37  ;;  %7236 = vmatpush1.bf16.msra.mxu0 %v6693_v47  ;;  %v6715_v37 = vld [vmem:[#allocation5 + $0x8c0] sm:$0xff]  ;;  %v6717_v47 = vld [vmem:[#allocation5 + $0x8d0] sm:$0xff] }
 0x5d8   :  { %7073 = vmatprep.subr.bf16.mxu1 %v6700_v59  ;;  %7237 = vmatprep.subr.bf16.mxu0 %v6702_v38  ;;  %v6724_v59 = vld [vmem:[#allocation5 + $0x908] sm:$0xff]  ;;  %v6726_v38 = vld [vmem:[#allocation5 + $0x918] sm:$0xff] }
 0x5d9   :  { %7103 = vmatprep.mubr.bf16.mxu1 %v10928_v46  ;;  %7267 = vmatprep.mubr.bf16.mxu0 %v10928_v46 }
 0x5db   :  { %7074 = vmatpush1.bf16.msra.mxu1 %v6699_v45  ;;  %7238 = vmatpush1.bf16.msra.mxu0 %v6701_v51  ;;  %v6723_v45 = vld [vmem:[#allocation5 + $0x900] sm:$0xff]  ;;  %v6725_v51 = vld [vmem:[#allocation5 + $0x910] sm:$0xff] }
 0x5dc   :  { %7075 = vmatprep.subr.bf16.mxu1 %v6708_v63  ;;  %7239 = vmatprep.subr.bf16.mxu0 %v6710_v44  ;;  %v6732_v63 = vld [vmem:[#allocation5 + $0x948] sm:$0xff]  ;;  %v6734_v44 = vld [vmem:[#allocation5 + $0x958] sm:$0xff] }
 0x5df   :  { %7076 = vmatpush1.bf16.msra.mxu1 %v6707_v54  ;;  %7240 = vmatpush1.bf16.msra.mxu0 %v6709_v62  ;;  %v6731_v54 = vld [vmem:[#allocation5 + $0x940] sm:$0xff]  ;;  %v6733_v62 = vld [vmem:[#allocation5 + $0x950] sm:$0xff] }
 0x5e0   :  { %7077 = vmatprep.subr.bf16.mxu1 %v6716_v35  ;;  %7241 = vmatprep.subr.bf16.mxu0 %v6718_v50  ;;  %v6740_v35 = vld [vmem:[#allocation5 + $0x988] sm:$0xff]  ;;  %v6742_v50 = vld [vmem:[#allocation5 + $0x998] sm:$0xff] }
 0x5e3   :  { %7078 = vmatpush1.bf16.msra.mxu1 %v6715_v37  ;;  %7242 = vmatpush1.bf16.msra.mxu0 %v6717_v47  ;;  %v6739_v37 = vld [vmem:[#allocation5 + $0x980] sm:$0xff]  ;;  %v6741_v47 = vld [vmem:[#allocation5 + $0x990] sm:$0xff] }
 0x5e4   :  { %7079 = vmatprep.subr.bf16.mxu1 %v6724_v59  ;;  %7243 = vmatprep.subr.bf16.mxu0 %v6726_v38  ;;  %v6748_v59 = vld [vmem:[#allocation5 + $0x9c8] sm:$0xff]  ;;  %v6750_v38 = vld [vmem:[#allocation5 + $0x9d8] sm:$0xff] }
 0x5e7   :  { %7080 = vmatpush1.bf16.msra.mxu1 %v6723_v45  ;;  %7244 = vmatpush1.bf16.msra.mxu0 %v6725_v51  ;;  %v6747_v45 = vld [vmem:[#allocation5 + $0x9c0] sm:$0xff]  ;;  %v6749_v51 = vld [vmem:[#allocation5 + $0x9d0] sm:$0xff] }
 0x5e8   :  { %7081 = vmatprep.subr.bf16.mxu1 %v6732_v63  ;;  %7245 = vmatprep.subr.bf16.mxu0 %v6734_v44  ;;  %v6756_v63 = vld [vmem:[#allocation5 + $0xa08] sm:$0xff]  ;;  %v6758_v44 = vld [vmem:[#allocation5 + $0xa18] sm:$0xff] }
 0x5eb   :  { %7082 = vmatpush1.bf16.msra.mxu1 %v6731_v54  ;;  %7246 = vmatpush1.bf16.msra.mxu0 %v6733_v62  ;;  %v6755_v54 = vld [vmem:[#allocation5 + $0xa00] sm:$0xff]  ;;  %v6757_v62 = vld [vmem:[#allocation5 + $0xa10] sm:$0xff] }
 0x5ec   :  { %7083 = vmatprep.subr.bf16.mxu1 %v6740_v35  ;;  %7247 = vmatprep.subr.bf16.mxu0 %v6742_v50  ;;  %v6764_v35 = vld [vmem:[#allocation5 + $0xa48] sm:$0xff]  ;;  %v6766_v50 = vld [vmem:[#allocation5 + $0xa58] sm:$0xff] }
 0x5ef   :  { %7084 = vmatpush1.bf16.msra.mxu1 %v6739_v37  ;;  %7248 = vmatpush1.bf16.msra.mxu0 %v6741_v47  ;;  %v6763_v37 = vld [vmem:[#allocation5 + $0xa40] sm:$0xff]  ;;  %v6765_v47 = vld [vmem:[#allocation5 + $0xa50] sm:$0xff] }
 0x5f0   :  { %7085 = vmatprep.subr.bf16.mxu1 %v6748_v59  ;;  %7249 = vmatprep.subr.bf16.mxu0 %v6750_v38  ;;  %v6772_v59 = vld [vmem:[#allocation5 + $0xa88] sm:$0xff]  ;;  %v6774_v38 = vld [vmem:[#allocation5 + $0xa98] sm:$0xff] }
 0x5f3   :  { %7086 = vmatpush1.bf16.msra.mxu1 %v6747_v45  ;;  %7250 = vmatpush1.bf16.msra.mxu0 %v6749_v51  ;;  %v6771_v45 = vld [vmem:[#allocation5 + $0xa80] sm:$0xff]  ;;  %v6773_v51 = vld [vmem:[#allocation5 + $0xa90] sm:$0xff] }
 0x5f4   :  { %7087 = vmatprep.subr.bf16.mxu1 %v6756_v63  ;;  %7251 = vmatprep.subr.bf16.mxu0 %v6758_v44  ;;  %v6780_v63 = vld [vmem:[#allocation5 + $0xac8] sm:$0xff]  ;;  %v6782_v44 = vld [vmem:[#allocation5 + $0xad8] sm:$0xff] }
 0x5f7   :  { %7088 = vmatpush1.bf16.msra.mxu1 %v6755_v54  ;;  %7252 = vmatpush1.bf16.msra.mxu0 %v6757_v62  ;;  %v6779_v54 = vld [vmem:[#allocation5 + $0xac0] sm:$0xff]  ;;  %v6781_v62 = vld [vmem:[#allocation5 + $0xad0] sm:$0xff] }
 0x5f8   :  { %7089 = vmatprep.subr.bf16.mxu1 %v6764_v35  ;;  %7253 = vmatprep.subr.bf16.mxu0 %v6766_v50  ;;  %v6788_v35 = vld [vmem:[#allocation5 + $0xb08] sm:$0xff]  ;;  %v6790_v50 = vld [vmem:[#allocation5 + $0xb18] sm:$0xff] }
 0x5fb   :  { %7090 = vmatpush1.bf16.msra.mxu1 %v6763_v37  ;;  %7254 = vmatpush1.bf16.msra.mxu0 %v6765_v47  ;;  %v6787_v37 = vld [vmem:[#allocation5 + $0xb00] sm:$0xff]  ;;  %v6789_v47 = vld [vmem:[#allocation5 + $0xb10] sm:$0xff] }
 0x5fc   :  { %7091 = vmatprep.subr.bf16.mxu1 %v6772_v59  ;;  %7255 = vmatprep.subr.bf16.mxu0 %v6774_v38  ;;  %v6796_v59 = vld [vmem:[#allocation5 + $0xb48] sm:$0xff]  ;;  %v6798_v38 = vld [vmem:[#allocation5 + $0xb58] sm:$0xff] }
 0x5ff   :  { %7092 = vmatpush1.bf16.msra.mxu1 %v6771_v45  ;;  %7256 = vmatpush1.bf16.msra.mxu0 %v6773_v51  ;;  %v6795_v45 = vld [vmem:[#allocation5 + $0xb40] sm:$0xff]  ;;  %v6797_v51 = vld [vmem:[#allocation5 + $0xb50] sm:$0xff] }
 0x600   :  { %7093 = vmatprep.subr.bf16.mxu1 %v6780_v63  ;;  %7257 = vmatprep.subr.bf16.mxu0 %v6782_v44  ;;  %v6804_v63 = vld [vmem:[#allocation5 + $0xb88] sm:$0xff]  ;;  %v6806_v44 = vld [vmem:[#allocation5 + $0xb98] sm:$0xff] }
 0x603   :  { %7094 = vmatpush1.bf16.msra.mxu1 %v6779_v54  ;;  %7258 = vmatpush1.bf16.msra.mxu0 %v6781_v62  ;;  %v6803_v54 = vld [vmem:[#allocation5 + $0xb80] sm:$0xff]  ;;  %v6805_v62 = vld [vmem:[#allocation5 + $0xb90] sm:$0xff] }
 0x604   :  { %7095 = vmatprep.subr.bf16.mxu1 %v6788_v35  ;;  %7259 = vmatprep.subr.bf16.mxu0 %v6790_v50  ;;  %v6812_v35 = vld [vmem:[#allocation5 + $0xbc8] sm:$0xff]  ;;  %v6814_v50 = vld [vmem:[#allocation5 + $0xbd8] sm:$0xff] }
 0x607   :  { %7096 = vmatpush1.bf16.msra.mxu1 %v6787_v37  ;;  %7260 = vmatpush1.bf16.msra.mxu0 %v6789_v47  ;;  %v10937_v37 = vrot.slane %v6402_v34, %v10833_v52  ;;  %v6811_v47 = vld [vmem:[#allocation5 + $0xbc0] sm:$0xff]  ;;  %v6821_v52 = vld [vmem:[#allocation5 + $0xc10] sm:$0xff] }
 0x608   :  { %7097 = vmatprep.subr.bf16.mxu1 %v6796_v59  ;;  %7261 = vmatprep.subr.bf16.mxu0 %v6798_v38  ;;  %v6813_v59 = vld [vmem:[#allocation5 + $0xbd0] sm:$0xff]  ;;  %v6820_v38 = vld [vmem:[#allocation5 + $0xc08] sm:$0xff]  ;;  %v6819_v34 = vld [vmem:[#allocation5 + $0xc00] sm:$0xff] }
 0x609   :  { %v6418_v53 = vcombine.high %v10937_v37, %v10937_v37 }
 0x60b   :  { %7098 = vmatpush1.bf16.msra.mxu1 %v6795_v45  ;;  %7262 = vmatpush1.bf16.msra.mxu0 %v6797_v51  ;;  %v10943_v45 = vpack.c.bf16 %v10920_v36, %v10920_v36  ;;  %v6828_v51 = vld [vmem:[#allocation5 + $0xc48] sm:$0xff]  ;;  %v6827_v36 = vld [vmem:[#allocation5 + $0xc40] sm:$0xff] }
 0x60c   :  { %7099 = vmatprep.subr.bf16.mxu1 %v6804_v63  ;;  %7263 = vmatprep.subr.bf16.mxu0 %v6806_v44  ;;  %v6830_v63 = vld [vmem:[#allocation5 + $0xc58] sm:$0xff]  ;;  %v10945_v44 = vpack.c.bf16 %v6418_v53, %v6418_v53  ;;  %v6845_v53 = vld [vmem:[#allocation5 + $0xcd0] sm:$0xff] }
 0x60f   :  { %7100 = vmatpush1.bf16.msra.mxu1 %v6803_v54  ;;  %7264 = vmatpush1.bf16.msra.mxu0 %v6805_v62  ;;  %v6829_v54 = vld [vmem:[#allocation5 + $0xc50] sm:$0xff]  ;;  %v6836_v62 = vld [vmem:[#allocation5 + $0xc88] sm:$0xff] }
 0x610   :  { %7101 = vmatprep.subr.bf16.mxu1 %v6812_v35  ;;  %7265 = vmatprep.subr.bf16.mxu0 %v6814_v50  ;;  %v6838_v35 = vld [vmem:[#allocation5 + $0xc98] sm:$0xff]  ;;  %v6837_v50 = vld [vmem:[#allocation5 + $0xc90] sm:$0xff] }
 0x613   :  { %7102 = vmatpush1.bf16.msra.mxu1 %v6811_v47  ;;  %7266 = vmatpush1.bf16.msra.mxu0 %v6813_v59  ;;  %v6844_v47 = vld [vmem:[#allocation5 + $0xcc8] sm:$0xff]  ;;  %v6846_v59 = vld [vmem:[#allocation5 + $0xcd8] sm:$0xff] }
 0x614   :  { %7112 = vmatprep.subr.bf16.mxu1 %v6820_v38  ;;  %7276 = vmatprep.subr.bf16.mxu0 %v6822_v58  ;;  %v6835_v58 = vld [vmem:[#allocation5 + $0xc80] sm:$0xff] }
 0x615   :  { %v6843_v38 = vld [vmem:[#allocation5 + $0xcc0] sm:$0xff] }
 0x616   :  { %7104 = vmatmul.mubr.bf16.vlgmr.msra.gmra.mrb[4].mxu1 %v10943_v45  ;;  %7268 = vmatmul.mubr.bf16.vlgmr.msra.gmra.mrb[64].mxu0 %v10943_v45 }
 0x617   :  { %7113 = vmatpush1.bf16.msra.mxu1 %v6819_v34  ;;  %7277 = vmatpush1.bf16.msra.mxu0 %v6821_v52  ;;  %v6852_v34 = vld [vmem:[#allocation5 + $0xd08] sm:$0xff]  ;;  %v6854_v52 = vld [vmem:[#allocation5 + $0xd18] sm:$0xff] }
 0x618   :  { %7114 = vmatprep.subr.bf16.mxu1 %v6828_v51  ;;  %7278 = vmatprep.subr.bf16.mxu0 %v6830_v63  ;;  %v6851_v51 = vld [vmem:[#allocation5 + $0xd00] sm:$0xff]  ;;  %v6853_v63 = vld [vmem:[#allocation5 + $0xd10] sm:$0xff] }
 0x619   :  { %7144 = vmatprep.mubr.bf16.mxu1 %v10945_v44  ;;  %7308 = vmatprep.mubr.bf16.mxu0 %v10945_v44 }
 0x61b   :  { %7115 = vmatpush1.bf16.msra.mxu1 %v6827_v36  ;;  %7279 = vmatpush1.bf16.msra.mxu0 %v6829_v54  ;;  %v6860_v36 = vld [vmem:[#allocation5 + $0xd48] sm:$0xff]  ;;  %v6862_v54 = vld [vmem:[#allocation5 + $0xd58] sm:$0xff] }
 0x61c   :  { %7116 = vmatprep.subr.bf16.mxu1 %v6836_v62  ;;  %7280 = vmatprep.subr.bf16.mxu0 %v6838_v35  ;;  %v6859_v62 = vld [vmem:[#allocation5 + $0xd40] sm:$0xff]  ;;  %v6861_v35 = vld [vmem:[#allocation5 + $0xd50] sm:$0xff] }
 0x61f   :  { %7117 = vmatpush1.bf16.msra.mxu1 %v6835_v58  ;;  %7281 = vmatpush1.bf16.msra.mxu0 %v6837_v50  ;;  %v6868_v58 = vld [vmem:[#allocation5 + $0xd88] sm:$0xff]  ;;  %v6870_v50 = vld [vmem:[#allocation5 + $0xd98] sm:$0xff] }
 0x620   :  { %7118 = vmatprep.subr.bf16.mxu1 %v6844_v47  ;;  %7282 = vmatprep.subr.bf16.mxu0 %v6846_v59  ;;  %v6867_v47 = vld [vmem:[#allocation5 + $0xd80] sm:$0xff]  ;;  %v6869_v59 = vld [vmem:[#allocation5 + $0xd90] sm:$0xff] }
 0x623   :  { %7119 = vmatpush1.bf16.msra.mxu1 %v6843_v38  ;;  %7283 = vmatpush1.bf16.msra.mxu0 %v6845_v53  ;;  %v6876_v38 = vld [vmem:[#allocation5 + $0xdc8] sm:$0xff]  ;;  %v6878_v53 = vld [vmem:[#allocation5 + $0xdd8] sm:$0xff] }
 0x624   :  { %7120 = vmatprep.subr.bf16.mxu1 %v6852_v34  ;;  %7284 = vmatprep.subr.bf16.mxu0 %v6854_v52  ;;  %v6875_v34 = vld [vmem:[#allocation5 + $0xdc0] sm:$0xff]  ;;  %v6877_v52 = vld [vmem:[#allocation5 + $0xdd0] sm:$0xff] }
 0x627   :  { %7121 = vmatpush1.bf16.msra.mxu1 %v6851_v51  ;;  %7285 = vmatpush1.bf16.msra.mxu0 %v6853_v63  ;;  %v6884_v51 = vld [vmem:[#allocation5 + $0xe08] sm:$0xff]  ;;  %v6886_v63 = vld [vmem:[#allocation5 + $0xe18] sm:$0xff] }
 0x628   :  { %7122 = vmatprep.subr.bf16.mxu1 %v6860_v36  ;;  %7286 = vmatprep.subr.bf16.mxu0 %v6862_v54  ;;  %v6883_v36 = vld [vmem:[#allocation5 + $0xe00] sm:$0xff]  ;;  %v6885_v54 = vld [vmem:[#allocation5 + $0xe10] sm:$0xff] }
 0x62b   :  { %7123 = vmatpush1.bf16.msra.mxu1 %v6859_v62  ;;  %7287 = vmatpush1.bf16.msra.mxu0 %v6861_v35  ;;  %v6892_v62 = vld [vmem:[#allocation5 + $0xe48] sm:$0xff]  ;;  %v6894_v35 = vld [vmem:[#allocation5 + $0xe58] sm:$0xff] }
 0x62c   :  { %7124 = vmatprep.subr.bf16.mxu1 %v6868_v58  ;;  %7288 = vmatprep.subr.bf16.mxu0 %v6870_v50  ;;  %v6891_v58 = vld [vmem:[#allocation5 + $0xe40] sm:$0xff]  ;;  %v6893_v50 = vld [vmem:[#allocation5 + $0xe50] sm:$0xff] }
 0x62f   :  { %7125 = vmatpush1.bf16.msra.mxu1 %v6867_v47  ;;  %7289 = vmatpush1.bf16.msra.mxu0 %v6869_v59  ;;  %v6900_v47 = vld [vmem:[#allocation5 + $0xe88] sm:$0xff]  ;;  %v6902_v59 = vld [vmem:[#allocation5 + $0xe98] sm:$0xff] }
 0x630   :  { %7126 = vmatprep.subr.bf16.mxu1 %v6876_v38  ;;  %7290 = vmatprep.subr.bf16.mxu0 %v6878_v53  ;;  %v6899_v38 = vld [vmem:[#allocation5 + $0xe80] sm:$0xff]  ;;  %v6901_v53 = vld [vmem:[#allocation5 + $0xe90] sm:$0xff] }
 0x633   :  { %7127 = vmatpush1.bf16.msra.mxu1 %v6875_v34  ;;  %7291 = vmatpush1.bf16.msra.mxu0 %v6877_v52  ;;  %v6908_v34 = vld [vmem:[#allocation5 + $0xec8] sm:$0xff]  ;;  %v6910_v52 = vld [vmem:[#allocation5 + $0xed8] sm:$0xff] }
 0x634   :  { %7128 = vmatprep.subr.bf16.mxu1 %v6884_v51  ;;  %7292 = vmatprep.subr.bf16.mxu0 %v6886_v63  ;;  %v6907_v51 = vld [vmem:[#allocation5 + $0xec0] sm:$0xff]  ;;  %v6909_v63 = vld [vmem:[#allocation5 + $0xed0] sm:$0xff] }
 0x637   :  { %7129 = vmatpush1.bf16.msra.mxu1 %v6883_v36  ;;  %7293 = vmatpush1.bf16.msra.mxu0 %v6885_v54  ;;  %v6916_v36 = vld [vmem:[#allocation5 + $0xf08] sm:$0xff]  ;;  %v6918_v54 = vld [vmem:[#allocation5 + $0xf18] sm:$0xff] }
 0x638   :  { %7130 = vmatprep.subr.bf16.mxu1 %v6892_v62  ;;  %7294 = vmatprep.subr.bf16.mxu0 %v6894_v35  ;;  %v6915_v62 = vld [vmem:[#allocation5 + $0xf00] sm:$0xff]  ;;  %v6917_v35 = vld [vmem:[#allocation5 + $0xf10] sm:$0xff] }
 0x63b   :  { %7131 = vmatpush1.bf16.msra.mxu1 %v6891_v58  ;;  %7295 = vmatpush1.bf16.msra.mxu0 %v6893_v50  ;;  %v6924_v58 = vld [vmem:[#allocation5 + $0xf48] sm:$0xff]  ;;  %v6926_v50 = vld [vmem:[#allocation5 + $0xf58] sm:$0xff] }
 0x63c   :  { %7132 = vmatprep.subr.bf16.mxu1 %v6900_v47  ;;  %7296 = vmatprep.subr.bf16.mxu0 %v6902_v59  ;;  %v6923_v47 = vld [vmem:[#allocation5 + $0xf40] sm:$0xff]  ;;  %v6925_v59 = vld [vmem:[#allocation5 + $0xf50] sm:$0xff] }
 0x63f   :  { %7133 = vmatpush1.bf16.msra.mxu1 %v6899_v38  ;;  %7297 = vmatpush1.bf16.msra.mxu0 %v6901_v53  ;;  %v6932_v38 = vld [vmem:[#allocation5 + $0xf88] sm:$0xff]  ;;  %v6934_v53 = vld [vmem:[#allocation5 + $0xf98] sm:$0xff] }
 0x640   :  { %7134 = vmatprep.subr.bf16.mxu1 %v6908_v34  ;;  %7298 = vmatprep.subr.bf16.mxu0 %v6910_v52  ;;  %v6931_v34 = vld [vmem:[#allocation5 + $0xf80] sm:$0xff]  ;;  %v6933_v52 = vld [vmem:[#allocation5 + $0xf90] sm:$0xff] }
 0x643   :  { %7135 = vmatpush1.bf16.msra.mxu1 %v6907_v51  ;;  %7299 = vmatpush1.bf16.msra.mxu0 %v6909_v63  ;;  %v6940_v51 = vld [vmem:[#allocation5 + $0xfc8] sm:$0xff]  ;;  %v6942_v63 = vld [vmem:[#allocation5 + $0xfd8] sm:$0xff] }
 0x644   :  { %7136 = vmatprep.subr.bf16.mxu1 %v6916_v36  ;;  %7300 = vmatprep.subr.bf16.mxu0 %v6918_v54  ;;  %v6939_v36 = vld [vmem:[#allocation5 + $0xfc0] sm:$0xff]  ;;  %v6941_v54 = vld [vmem:[#allocation5 + $0xfd0] sm:$0xff] }
 0x647   :  { %7137 = vmatpush1.bf16.msra.mxu1 %v6915_v62  ;;  %7301 = vmatpush1.bf16.msra.mxu0 %v6917_v35  ;;  %v6440_v62 = vld [vmem:[#allocation5 + $0x28] sm:$0xff]  ;;  %v6442_v35 = vld [vmem:[#allocation5 + $0x38] sm:$0xff] }
 0x648   :  { %7138 = vmatprep.subr.bf16.mxu1 %v6924_v58  ;;  %7302 = vmatprep.subr.bf16.mxu0 %v6926_v50  ;;  %v10953_v58 = vpack.c.bf16 %v10937_v37, %v10937_v37  ;;  %v6439_v50 = vld [vmem:[#allocation5 + $0x20] sm:$0xff]  ;;  %v6456_v37 = vld [vmem:[#allocation5 + $0xa8] sm:$0xff] }
 0x64b   :  { %7139 = vmatpush1.bf16.msra.mxu1 %v6923_v47  ;;  %7303 = vmatpush1.bf16.msra.mxu0 %v6925_v59  ;;  %v6441_v47 = vld [vmem:[#allocation5 + $0x30] sm:$0xff]  ;;  %v6448_v59 = vld [vmem:[#allocation5 + $0x68] sm:$0xff] }
 0x64c   :  { %7140 = vmatprep.subr.bf16.mxu1 %v6932_v38  ;;  %7304 = vmatprep.subr.bf16.mxu0 %v6934_v53  ;;  %v6450_v38 = vld [vmem:[#allocation5 + $0x78] sm:$0xff]  ;;  %v6447_v53 = vld [vmem:[#allocation5 + $0x60] sm:$0xff] }
 0x64f   :  { %7141 = vmatpush1.bf16.msra.mxu1 %v6931_v34  ;;  %7305 = vmatpush1.bf16.msra.mxu0 %v6933_v52  ;;  %v6449_v34 = vld [vmem:[#allocation5 + $0x70] sm:$0xff]  ;;  %v6458_v52 = vld [vmem:[#allocation5 + $0xb8] sm:$0xff] }
 0x650   :  { %7142 = vmatprep.subr.bf16.mxu1 %v6940_v51  ;;  %7306 = vmatprep.subr.bf16.mxu0 %v6942_v63  ;;  %v6455_v51 = vld [vmem:[#allocation5 + $0xa0] sm:$0xff]  ;;  %v6457_v63 = vld [vmem:[#allocation5 + $0xb0] sm:$0xff] }
 0x653   :  { %7143 = vmatpush1.bf16.msra.mxu1 %v6939_v36  ;;  %7307 = vmatpush1.bf16.msra.mxu0 %v6941_v54  ;;  %v6464_v36 = vld [vmem:[#allocation5 + $0xe8] sm:$0xff]  ;;  %v6466_v54 = vld [vmem:[#allocation5 + $0xf8] sm:$0xff] }
 0x654   :  { %7317 = vmatprep.subr.bf16.mxu1 %v6440_v62  ;;  %7481 = vmatprep.subr.bf16.mxu0 %v6442_v35  ;;  %v6463_v62 = vld [vmem:[#allocation5 + $0xe0] sm:$0xff]  ;;  %v6465_v35 = vld [vmem:[#allocation5 + $0xf0] sm:$0xff] }
 0x656   :  { %7145 = vmatmul.mubr.bf16.vlgmr.msra.gmra.mrb[4].mxu1 %v10953_v58  ;;  %7309 = vmatmul.mubr.bf16.vlgmr.msra.gmra.mrb[64].mxu0 %v10953_v58 }
 0x657   :  { %7318 = vmatpush1.bf16.msra.mxu1 %v6439_v50  ;;  %7482 = vmatpush1.bf16.msra.mxu0 %v6441_v47  ;;  %v6472_v50 = vld [vmem:[#allocation5 + $0x128] sm:$0xff]  ;;  %v6474_v47 = vld [vmem:[#allocation5 + $0x138] sm:$0xff] }
 0x658   :  { %7319 = vmatprep.subr.bf16.mxu1 %v6448_v59  ;;  %7483 = vmatprep.subr.bf16.mxu0 %v6450_v38  ;;  %v6473_v59 = vld [vmem:[#allocation5 + $0x130] sm:$0xff]  ;;  %v6480_v38 = vld [vmem:[#allocation5 + $0x168] sm:$0xff] }
 0x659   :  { %7349 = vmatprep.mubr.bf16.mxu1 %v10895_v60  ;;  %7513 = vmatprep.mubr.bf16.mxu0 %v10895_v60  ;;  %v6471_v60 = vld [vmem:[#allocation5 + $0x120] sm:$0xff] }
 0x65b   :  { %7320 = vmatpush1.bf16.msra.mxu1 %v6447_v53  ;;  %7484 = vmatpush1.bf16.msra.mxu0 %v6449_v34  ;;  %v6482_v53 = vld [vmem:[#allocation5 + $0x178] sm:$0xff]  ;;  %v6479_v34 = vld [vmem:[#allocation5 + $0x160] sm:$0xff] }
 0x65c   :  { %7321 = vmatprep.subr.bf16.mxu1 %v6456_v37  ;;  %7485 = vmatprep.subr.bf16.mxu0 %v6458_v52  ;;  %v6481_v37 = vld [vmem:[#allocation5 + $0x170] sm:$0xff]  ;;  %v6488_v52 = vld [vmem:[#allocation5 + $0x1a8] sm:$0xff] }
 0x65f   :  { %7322 = vmatpush1.bf16.msra.mxu1 %v6455_v51  ;;  %7486 = vmatpush1.bf16.msra.mxu0 %v6457_v63  ;;  %v6490_v51 = vld [vmem:[#allocation5 + $0x1b8] sm:$0xff]  ;;  %v6487_v63 = vld [vmem:[#allocation5 + $0x1a0] sm:$0xff] }
 0x660   :  { %7323 = vmatprep.subr.bf16.mxu1 %v6464_v36  ;;  %7487 = vmatprep.subr.bf16.mxu0 %v6466_v54  ;;  %v6489_v36 = vld [vmem:[#allocation5 + $0x1b0] sm:$0xff]  ;;  %v6496_v54 = vld [vmem:[#allocation5 + $0x1e8] sm:$0xff] }
 0x663   :  { %7324 = vmatpush1.bf16.msra.mxu1 %v6463_v62  ;;  %7488 = vmatpush1.bf16.msra.mxu0 %v6465_v35  ;;  %v6498_v62 = vld [vmem:[#allocation5 + $0x1f8] sm:$0xff]  ;;  %v6495_v35 = vld [vmem:[#allocation5 + $0x1e0] sm:$0xff] }
 0x664   :  { %7325 = vmatprep.subr.bf16.mxu1 %v6472_v50  ;;  %7489 = vmatprep.subr.bf16.mxu0 %v6474_v47  ;;  %v6497_v50 = vld [vmem:[#allocation5 + $0x1f0] sm:$0xff]  ;;  %v6504_v47 = vld [vmem:[#allocation5 + $0x228] sm:$0xff] }
 0x667   :  { %7326 = vmatpush1.bf16.msra.mxu1 %v6471_v60  ;;  %7490 = vmatpush1.bf16.msra.mxu0 %v6473_v59  ;;  %v6506_v60 = vld [vmem:[#allocation5 + $0x238] sm:$0xff]  ;;  %v6503_v59 = vld [vmem:[#allocation5 + $0x220] sm:$0xff] }
 0x668   :  { %7327 = vmatprep.subr.bf16.mxu1 %v6480_v38  ;;  %7491 = vmatprep.subr.bf16.mxu0 %v6482_v53  ;;  %v6505_v38 = vld [vmem:[#allocation5 + $0x230] sm:$0xff]  ;;  %v6512_v53 = vld [vmem:[#allocation5 + $0x268] sm:$0xff] }
 0x66b   :  { %7328 = vmatpush1.bf16.msra.mxu1 %v6479_v34  ;;  %7492 = vmatpush1.bf16.msra.mxu0 %v6481_v37  ;;  %v6514_v34 = vld [vmem:[#allocation5 + $0x278] sm:$0xff]  ;;  %v6511_v37 = vld [vmem:[#allocation5 + $0x260] sm:$0xff] }
 0x66c   :  { %7329 = vmatprep.subr.bf16.mxu1 %v6488_v52  ;;  %7493 = vmatprep.subr.bf16.mxu0 %v6490_v51  ;;  %v6513_v52 = vld [vmem:[#allocation5 + $0x270] sm:$0xff]  ;;  %v6520_v51 = vld [vmem:[#allocation5 + $0x2a8] sm:$0xff] }
 0x66f   :  { %7330 = vmatpush1.bf16.msra.mxu1 %v6487_v63  ;;  %7494 = vmatpush1.bf16.msra.mxu0 %v6489_v36  ;;  %v6522_v63 = vld [vmem:[#allocation5 + $0x2b8] sm:$0xff]  ;;  %v6519_v36 = vld [vmem:[#allocation5 + $0x2a0] sm:$0xff] }
 0x670   :  { %7331 = vmatprep.subr.bf16.mxu1 %v6496_v54  ;;  %7495 = vmatprep.subr.bf16.mxu0 %v6498_v62  ;;  %v6521_v54 = vld [vmem:[#allocation5 + $0x2b0] sm:$0xff]  ;;  %v6528_v62 = vld [vmem:[#allocation5 + $0x2e8] sm:$0xff] }
 0x673   :  { %7332 = vmatpush1.bf16.msra.mxu1 %v6495_v35  ;;  %7496 = vmatpush1.bf16.msra.mxu0 %v6497_v50  ;;  %v6530_v35 = vld [vmem:[#allocation5 + $0x2f8] sm:$0xff]  ;;  %v6527_v50 = vld [vmem:[#allocation5 + $0x2e0] sm:$0xff] }
 0x674   :  { %7333 = vmatprep.subr.bf16.mxu1 %v6504_v47  ;;  %7497 = vmatprep.subr.bf16.mxu0 %v6506_v60  ;;  %v6529_v47 = vld [vmem:[#allocation5 + $0x2f0] sm:$0xff]  ;;  %v6536_v60 = vld [vmem:[#allocation5 + $0x328] sm:$0xff] }
 0x677   :  { %7334 = vmatpush1.bf16.msra.mxu1 %v6503_v59  ;;  %7498 = vmatpush1.bf16.msra.mxu0 %v6505_v38  ;;  %v6538_v59 = vld [vmem:[#allocation5 + $0x338] sm:$0xff]  ;;  %v6535_v38 = vld [vmem:[#allocation5 + $0x320] sm:$0xff] }
 0x678   :  { %7335 = vmatprep.subr.bf16.mxu1 %v6512_v53  ;;  %7499 = vmatprep.subr.bf16.mxu0 %v6514_v34  ;;  %v6537_v53 = vld [vmem:[#allocation5 + $0x330] sm:$0xff]  ;;  %v6544_v34 = vld [vmem:[#allocation5 + $0x368] sm:$0xff] }
 0x67b   :  { %7336 = vmatpush1.bf16.msra.mxu1 %v6511_v37  ;;  %7500 = vmatpush1.bf16.msra.mxu0 %v6513_v52  ;;  %v6546_v37 = vld [vmem:[#allocation5 + $0x378] sm:$0xff]  ;;  %v6543_v52 = vld [vmem:[#allocation5 + $0x360] sm:$0xff] }
 0x67c   :  { %7337 = vmatprep.subr.bf16.mxu1 %v6520_v51  ;;  %7501 = vmatprep.subr.bf16.mxu0 %v6522_v63  ;;  %v6545_v51 = vld [vmem:[#allocation5 + $0x370] sm:$0xff]  ;;  %v6552_v63 = vld [vmem:[#allocation5 + $0x3a8] sm:$0xff] }
 0x67f   :  { %7338 = vmatpush1.bf16.msra.mxu1 %v6519_v36  ;;  %7502 = vmatpush1.bf16.msra.mxu0 %v6521_v54  ;;  %v6554_v36 = vld [vmem:[#allocation5 + $0x3b8] sm:$0xff]  ;;  %v6551_v54 = vld [vmem:[#allocation5 + $0x3a0] sm:$0xff] }
 0x680   :  { %7339 = vmatprep.subr.bf16.mxu1 %v6528_v62  ;;  %7503 = vmatprep.subr.bf16.mxu0 %v6530_v35  ;;  %v6553_v62 = vld [vmem:[#allocation5 + $0x3b0] sm:$0xff]  ;;  %v6560_v35 = vld [vmem:[#allocation5 + $0x3e8] sm:$0xff] }
 0x683   :  { %7340 = vmatpush1.bf16.msra.mxu1 %v6527_v50  ;;  %7504 = vmatpush1.bf16.msra.mxu0 %v6529_v47  ;;  %v6562_v50 = vld [vmem:[#allocation5 + $0x3f8] sm:$0xff]  ;;  %v6559_v47 = vld [vmem:[#allocation5 + $0x3e0] sm:$0xff] }
 0x684   :  { %7341 = vmatprep.subr.bf16.mxu1 %v6536_v60  ;;  %7505 = vmatprep.subr.bf16.mxu0 %v6538_v59  ;;  %v6561_v60 = vld [vmem:[#allocation5 + $0x3f0] sm:$0xff]  ;;  %v6568_v59 = vld [vmem:[#allocation5 + $0x428] sm:$0xff] }
 0x687   :  { %7342 = vmatpush1.bf16.msra.mxu1 %v6535_v38  ;;  %7506 = vmatpush1.bf16.msra.mxu0 %v6537_v53  ;;  %v6570_v38 = vld [vmem:[#allocation5 + $0x438] sm:$0xff]  ;;  %v6567_v53 = vld [vmem:[#allocation5 + $0x420] sm:$0xff] }
 0x688   :  { %7343 = vmatprep.subr.bf16.mxu1 %v6544_v34  ;;  %7507 = vmatprep.subr.bf16.mxu0 %v6546_v37  ;;  %v6569_v34 = vld [vmem:[#allocation5 + $0x430] sm:$0xff]  ;;  %v6576_v37 = vld [vmem:[#allocation5 + $0x468] sm:$0xff] }
 0x68b   :  { %7344 = vmatpush1.bf16.msra.mxu1 %v6543_v52  ;;  %7508 = vmatpush1.bf16.msra.mxu0 %v6545_v51  ;;  %v6578_v52 = vld [vmem:[#allocation5 + $0x478] sm:$0xff]  ;;  %v6575_v51 = vld [vmem:[#allocation5 + $0x460] sm:$0xff] }
 0x68c   :  { %7345 = vmatprep.subr.bf16.mxu1 %v6552_v63  ;;  %7509 = vmatprep.subr.bf16.mxu0 %v6554_v36  ;;  %v6577_v63 = vld [vmem:[#allocation5 + $0x470] sm:$0xff]  ;;  %v6584_v36 = vld [vmem:[#allocation5 + $0x4a8] sm:$0xff] }
 0x68f   :  { %7346 = vmatpush1.bf16.msra.mxu1 %v6551_v54  ;;  %7510 = vmatpush1.bf16.msra.mxu0 %v6553_v62  ;;  %v6586_v54 = vld [vmem:[#allocation5 + $0x4b8] sm:$0xff]  ;;  %v6583_v62 = vld [vmem:[#allocation5 + $0x4a0] sm:$0xff] }
 0x690   :  { %7347 = vmatprep.subr.bf16.mxu1 %v6560_v35  ;;  %7511 = vmatprep.subr.bf16.mxu0 %v6562_v50  ;;  %v6585_v35 = vld [vmem:[#allocation5 + $0x4b0] sm:$0xff]  ;;  %v6592_v50 = vld [vmem:[#allocation5 + $0x4e8] sm:$0xff] }
 0x693   :  { %7348 = vmatpush1.bf16.msra.mxu1 %v6559_v47  ;;  %7512 = vmatpush1.bf16.msra.mxu0 %v6561_v60  ;;  %v6591_v47 = vld [vmem:[#allocation5 + $0x4e0] sm:$0xff]  ;;  %v6593_v60 = vld [vmem:[#allocation5 + $0x4f0] sm:$0xff] }
 0x694   :  { %7358 = vmatprep.subr.bf16.mxu1 %v6568_v59  ;;  %7522 = vmatprep.subr.bf16.mxu0 %v6570_v38  ;;  %v6600_v59 = vld [vmem:[#allocation5 + $0x528] sm:$0xff]  ;;  %v6602_v38 = vld [vmem:[#allocation5 + $0x538] sm:$0xff] }
 0x696   :  { %7350 = vmatmul.mubr.bf16.vlgmr.msra.gmra.mrb[8].mxu1 %v10908_v55  ;;  %7514 = vmatmul.mubr.bf16.vlgmr.msra.gmra.mrb[68].mxu0 %v10908_v55  ;;  %v6594_v55 = vld [vmem:[#allocation5 + $0x4f8] sm:$0xff] }
 0x697   :  { %7359 = vmatpush1.bf16.msra.mxu1 %v6567_v53  ;;  %7523 = vmatpush1.bf16.msra.mxu0 %v6569_v34  ;;  %v6601_v53 = vld [vmem:[#allocation5 + $0x530] sm:$0xff]  ;;  %v6608_v34 = vld [vmem:[#allocation5 + $0x568] sm:$0xff] }
 0x698   :  { %7360 = vmatprep.subr.bf16.mxu1 %v6576_v37  ;;  %7524 = vmatprep.subr.bf16.mxu0 %v6578_v52  ;;  %v6610_v37 = vld [vmem:[#allocation5 + $0x578] sm:$0xff]  ;;  %v6607_v52 = vld [vmem:[#allocation5 + $0x560] sm:$0xff] }
 0x699   :  { %7390 = vmatprep.mubr.bf16.mxu1 %v10910_v39  ;;  %7554 = vmatprep.mubr.bf16.mxu0 %v10910_v39  ;;  %v6599_v39 = vld [vmem:[#allocation5 + $0x520] sm:$0xff] }
 0x69b   :  { %7361 = vmatpush1.bf16.msra.mxu1 %v6575_v51  ;;  %7525 = vmatpush1.bf16.msra.mxu0 %v6577_v63  ;;  %v6609_v51 = vld [vmem:[#allocation5 + $0x570] sm:$0xff]  ;;  %v6616_v63 = vld [vmem:[#allocation5 + $0x5a8] sm:$0xff] }
 0x69c   :  { %7362 = vmatprep.subr.bf16.mxu1 %v6584_v36  ;;  %7526 = vmatprep.subr.bf16.mxu0 %v6586_v54  ;;  %v6618_v36 = vld [vmem:[#allocation5 + $0x5b8] sm:$0xff]  ;;  %v6615_v54 = vld [vmem:[#allocation5 + $0x5a0] sm:$0xff] }
 0x69f   :  { %7363 = vmatpush1.bf16.msra.mxu1 %v6583_v62  ;;  %7527 = vmatpush1.bf16.msra.mxu0 %v6585_v35  ;;  %v6617_v62 = vld [vmem:[#allocation5 + $0x5b0] sm:$0xff]  ;;  %v6624_v35 = vld [vmem:[#allocation5 + $0x5e8] sm:$0xff] }
 0x6a0   :  { %7364 = vmatprep.subr.bf16.mxu1 %v6592_v50  ;;  %7528 = vmatprep.subr.bf16.mxu0 %v6594_v55  ;;  %v6626_v50 = vld [vmem:[#allocation5 + $0x5f8] sm:$0xff]  ;;  %v6623_v55 = vld [vmem:[#allocation5 + $0x5e0] sm:$0xff] }
 0x6a3   :  { %7365 = vmatpush1.bf16.msra.mxu1 %v6591_v47  ;;  %7529 = vmatpush1.bf16.msra.mxu0 %v6593_v60  ;;  %v6625_v47 = vld [vmem:[#allocation5 + $0x5f0] sm:$0xff]  ;;  %v6632_v60 = vld [vmem:[#allocation5 + $0x628] sm:$0xff] }
 0x6a4   :  { %7366 = vmatprep.subr.bf16.mxu1 %v6600_v59  ;;  %7530 = vmatprep.subr.bf16.mxu0 %v6602_v38  ;;  %v6634_v59 = vld [vmem:[#allocation5 + $0x638] sm:$0xff]  ;;  %v6631_v38 = vld [vmem:[#allocation5 + $0x620] sm:$0xff] }
 0x6a7   :  { %7367 = vmatpush1.bf16.msra.mxu1 %v6599_v39  ;;  %7531 = vmatpush1.bf16.msra.mxu0 %v6601_v53  ;;  %v6633_v39 = vld [vmem:[#allocation5 + $0x630] sm:$0xff]  ;;  %v6640_v53 = vld [vmem:[#allocation5 + $0x668] sm:$0xff] }
 0x6a8   :  { %7368 = vmatprep.subr.bf16.mxu1 %v6608_v34  ;;  %7532 = vmatprep.subr.bf16.mxu0 %v6610_v37  ;;  %v6642_v34 = vld [vmem:[#allocation5 + $0x678] sm:$0xff]  ;;  %v6639_v37 = vld [vmem:[#allocation5 + $0x660] sm:$0xff] }
 0x6ab   :  { %7369 = vmatpush1.bf16.msra.mxu1 %v6607_v52  ;;  %7533 = vmatpush1.bf16.msra.mxu0 %v6609_v51  ;;  %v6641_v52 = vld [vmem:[#allocation5 + $0x670] sm:$0xff]  ;;  %v6648_v51 = vld [vmem:[#allocation5 + $0x6a8] sm:$0xff] }
 0x6ac   :  { %7370 = vmatprep.subr.bf16.mxu1 %v6616_v63  ;;  %7534 = vmatprep.subr.bf16.mxu0 %v6618_v36  ;;  %v6650_v63 = vld [vmem:[#allocation5 + $0x6b8] sm:$0xff]  ;;  %v6647_v36 = vld [vmem:[#allocation5 + $0x6a0] sm:$0xff] }
 0x6af   :  { %7371 = vmatpush1.bf16.msra.mxu1 %v6615_v54  ;;  %7535 = vmatpush1.bf16.msra.mxu0 %v6617_v62  ;;  %v6649_v54 = vld [vmem:[#allocation5 + $0x6b0] sm:$0xff]  ;;  %v6656_v62 = vld [vmem:[#allocation5 + $0x6e8] sm:$0xff] }
 0x6b0   :  { %7372 = vmatprep.subr.bf16.mxu1 %v6624_v35  ;;  %7536 = vmatprep.subr.bf16.mxu0 %v6626_v50  ;;  %v6658_v35 = vld [vmem:[#allocation5 + $0x6f8] sm:$0xff]  ;;  %v6655_v50 = vld [vmem:[#allocation5 + $0x6e0] sm:$0xff] }
 0x6b3   :  { %7373 = vmatpush1.bf16.msra.mxu1 %v6623_v55  ;;  %7537 = vmatpush1.bf16.msra.mxu0 %v6625_v47  ;;  %v6657_v55 = vld [vmem:[#allocation5 + $0x6f0] sm:$0xff]  ;;  %v6664_v47 = vld [vmem:[#allocation5 + $0x728] sm:$0xff] }
 0x6b4   :  { %7374 = vmatprep.subr.bf16.mxu1 %v6632_v60  ;;  %7538 = vmatprep.subr.bf16.mxu0 %v6634_v59  ;;  %v6666_v60 = vld [vmem:[#allocation5 + $0x738] sm:$0xff]  ;;  %v6663_v59 = vld [vmem:[#allocation5 + $0x720] sm:$0xff] }
 0x6b7   :  { %7375 = vmatpush1.bf16.msra.mxu1 %v6631_v38  ;;  %7539 = vmatpush1.bf16.msra.mxu0 %v6633_v39  ;;  %v6665_v38 = vld [vmem:[#allocation5 + $0x730] sm:$0xff]  ;;  %v6672_v39 = vld [vmem:[#allocation5 + $0x768] sm:$0xff] }
 0x6b8   :  { %7376 = vmatprep.subr.bf16.mxu1 %v6640_v53  ;;  %7540 = vmatprep.subr.bf16.mxu0 %v6642_v34  ;;  %v6674_v53 = vld [vmem:[#allocation5 + $0x778] sm:$0xff]  ;;  %v6671_v34 = vld [vmem:[#allocation5 + $0x760] sm:$0xff] }
 0x6bb   :  { %7377 = vmatpush1.bf16.msra.mxu1 %v6639_v37  ;;  %7541 = vmatpush1.bf16.msra.mxu0 %v6641_v52  ;;  %v6673_v37 = vld [vmem:[#allocation5 + $0x770] sm:$0xff]  ;;  %v6680_v52 = vld [vmem:[#allocation5 + $0x7a8] sm:$0xff] }
 0x6bc   :  { %7378 = vmatprep.subr.bf16.mxu1 %v6648_v51  ;;  %7542 = vmatprep.subr.bf16.mxu0 %v6650_v63  ;;  %v6682_v51 = vld [vmem:[#allocation5 + $0x7b8] sm:$0xff]  ;;  %v6679_v63 = vld [vmem:[#allocation5 + $0x7a0] sm:$0xff] }
 0x6bf   :  { %7379 = vmatpush1.bf16.msra.mxu1 %v6647_v36  ;;  %7543 = vmatpush1.bf16.msra.mxu0 %v6649_v54  ;;  %v6681_v36 = vld [vmem:[#allocation5 + $0x7b0] sm:$0xff]  ;;  %v6688_v54 = vld [vmem:[#allocation5 + $0x7e8] sm:$0xff] }
 0x6c0   :  { %7380 = vmatprep.subr.bf16.mxu1 %v6656_v62  ;;  %7544 = vmatprep.subr.bf16.mxu0 %v6658_v35  ;;  %v6690_v62 = vld [vmem:[#allocation5 + $0x7f8] sm:$0xff]  ;;  %v6687_v35 = vld [vmem:[#allocation5 + $0x7e0] sm:$0xff] }
 0x6c3   :  { %7381 = vmatpush1.bf16.msra.mxu1 %v6655_v50  ;;  %7545 = vmatpush1.bf16.msra.mxu0 %v6657_v55  ;;  %v6689_v50 = vld [vmem:[#allocation5 + $0x7f0] sm:$0xff]  ;;  %v6696_v55 = vld [vmem:[#allocation5 + $0x828] sm:$0xff] }
 0x6c4   :  { %7382 = vmatprep.subr.bf16.mxu1 %v6664_v47  ;;  %7546 = vmatprep.subr.bf16.mxu0 %v6666_v60  ;;  %v6698_v47 = vld [vmem:[#allocation5 + $0x838] sm:$0xff]  ;;  %v6695_v60 = vld [vmem:[#allocation5 + $0x820] sm:$0xff] }
 0x6c7   :  { %7383 = vmatpush1.bf16.msra.mxu1 %v6663_v59  ;;  %7547 = vmatpush1.bf16.msra.mxu0 %v6665_v38  ;;  %v6697_v59 = vld [vmem:[#allocation5 + $0x830] sm:$0xff]  ;;  %v6704_v38 = vld [vmem:[#allocation5 + $0x868] sm:$0xff] }
 0x6c8   :  { %7384 = vmatprep.subr.bf16.mxu1 %v6672_v39  ;;  %7548 = vmatprep.subr.bf16.mxu0 %v6674_v53  ;;  %v6706_v39 = vld [vmem:[#allocation5 + $0x878] sm:$0xff]  ;;  %v6703_v53 = vld [vmem:[#allocation5 + $0x860] sm:$0xff] }
 0x6cb   :  { %7385 = vmatpush1.bf16.msra.mxu1 %v6671_v34  ;;  %7549 = vmatpush1.bf16.msra.mxu0 %v6673_v37  ;;  %v6705_v34 = vld [vmem:[#allocation5 + $0x870] sm:$0xff]  ;;  %v6712_v37 = vld [vmem:[#allocation5 + $0x8a8] sm:$0xff] }
 0x6cc   :  { %7386 = vmatprep.subr.bf16.mxu1 %v6680_v52  ;;  %7550 = vmatprep.subr.bf16.mxu0 %v6682_v51  ;;  %v6714_v52 = vld [vmem:[#allocation5 + $0x8b8] sm:$0xff]  ;;  %v6711_v51 = vld [vmem:[#allocation5 + $0x8a0] sm:$0xff] }
 0x6cf   :  { %7387 = vmatpush1.bf16.msra.mxu1 %v6679_v63  ;;  %7551 = vmatpush1.bf16.msra.mxu0 %v6681_v36  ;;  %v6713_v63 = vld [vmem:[#allocation5 + $0x8b0] sm:$0xff]  ;;  %v6720_v36 = vld [vmem:[#allocation5 + $0x8e8] sm:$0xff] }
 0x6d0   :  { %7388 = vmatprep.subr.bf16.mxu1 %v6688_v54  ;;  %7552 = vmatprep.subr.bf16.mxu0 %v6690_v62  ;;  %v6719_v54 = vld [vmem:[#allocation5 + $0x8e0] sm:$0xff]  ;;  %v6721_v62 = vld [vmem:[#allocation5 + $0x8f0] sm:$0xff] }
 0x6d3   :  { %7389 = vmatpush1.bf16.msra.mxu1 %v6687_v35  ;;  %7553 = vmatpush1.bf16.msra.mxu0 %v6689_v50  ;;  %v6728_v35 = vld [vmem:[#allocation5 + $0x928] sm:$0xff]  ;;  %v6730_v50 = vld [vmem:[#allocation5 + $0x938] sm:$0xff] }
 0x6d4   :  { %7399 = vmatprep.subr.bf16.mxu1 %v6696_v55  ;;  %7563 = vmatprep.subr.bf16.mxu0 %v6698_v47  ;;  %v6729_v55 = vld [vmem:[#allocation5 + $0x930] sm:$0xff]  ;;  %v6736_v47 = vld [vmem:[#allocation5 + $0x968] sm:$0xff] }
 0x6d6   :  { %7391 = vmatmul.mubr.bf16.vlgmr.msra.gmra.mrb[8].mxu1 %v10926_v43  ;;  %7555 = vmatmul.mubr.bf16.vlgmr.msra.gmra.mrb[68].mxu0 %v10926_v43  ;;  %v6722_v43 = vld [vmem:[#allocation5 + $0x8f8] sm:$0xff] }
 0x6d7   :  { %7400 = vmatpush1.bf16.msra.mxu1 %v6695_v60  ;;  %7564 = vmatpush1.bf16.msra.mxu0 %v6697_v59  ;;  %v6738_v60 = vld [vmem:[#allocation5 + $0x978] sm:$0xff]  ;;  %v6735_v59 = vld [vmem:[#allocation5 + $0x960] sm:$0xff] }
 0x6d8   :  { %7401 = vmatprep.subr.bf16.mxu1 %v6704_v38  ;;  %7565 = vmatprep.subr.bf16.mxu0 %v6706_v39  ;;  %v6737_v38 = vld [vmem:[#allocation5 + $0x970] sm:$0xff]  ;;  %v6744_v39 = vld [vmem:[#allocation5 + $0x9a8] sm:$0xff] }
 0x6d9   :  { %7431 = vmatprep.mubr.bf16.mxu1 %v10928_v46  ;;  %7595 = vmatprep.mubr.bf16.mxu0 %v10928_v46  ;;  %v6727_v46 = vld [vmem:[#allocation5 + $0x920] sm:$0xff] }
 0x6db   :  { %7402 = vmatpush1.bf16.msra.mxu1 %v6703_v53  ;;  %7566 = vmatpush1.bf16.msra.mxu0 %v6705_v34  ;;  %v6746_v53 = vld [vmem:[#allocation5 + $0x9b8] sm:$0xff]  ;;  %v6743_v34 = vld [vmem:[#allocation5 + $0x9a0] sm:$0xff] }
 0x6dc   :  { %7403 = vmatprep.subr.bf16.mxu1 %v6712_v37  ;;  %7567 = vmatprep.subr.bf16.mxu0 %v6714_v52  ;;  %v6745_v37 = vld [vmem:[#allocation5 + $0x9b0] sm:$0xff]  ;;  %v6752_v52 = vld [vmem:[#allocation5 + $0x9e8] sm:$0xff] }
 0x6df   :  { %7404 = vmatpush1.bf16.msra.mxu1 %v6711_v51  ;;  %7568 = vmatpush1.bf16.msra.mxu0 %v6713_v63  ;;  %v6754_v51 = vld [vmem:[#allocation5 + $0x9f8] sm:$0xff]  ;;  %v6751_v63 = vld [vmem:[#allocation5 + $0x9e0] sm:$0xff] }
 0x6e0   :  { %7405 = vmatprep.subr.bf16.mxu1 %v6720_v36  ;;  %7569 = vmatprep.subr.bf16.mxu0 %v6722_v43  ;;  %v6753_v36 = vld [vmem:[#allocation5 + $0x9f0] sm:$0xff]  ;;  %v6760_v43 = vld [vmem:[#allocation5 + $0xa28] sm:$0xff] }
 0x6e3   :  { %7406 = vmatpush1.bf16.msra.mxu1 %v6719_v54  ;;  %7570 = vmatpush1.bf16.msra.mxu0 %v6721_v62  ;;  %v6762_v54 = vld [vmem:[#allocation5 + $0xa38] sm:$0xff]  ;;  %v6759_v62 = vld [vmem:[#allocation5 + $0xa20] sm:$0xff] }
 0x6e4   :  { %7407 = vmatprep.subr.bf16.mxu1 %v6728_v35  ;;  %7571 = vmatprep.subr.bf16.mxu0 %v6730_v50  ;;  %v6761_v35 = vld [vmem:[#allocation5 + $0xa30] sm:$0xff]  ;;  %v6768_v50 = vld [vmem:[#allocation5 + $0xa68] sm:$0xff] }
 0x6e7   :  { %7408 = vmatpush1.bf16.msra.mxu1 %v6727_v46  ;;  %7572 = vmatpush1.bf16.msra.mxu0 %v6729_v55  ;;  %v6770_v46 = vld [vmem:[#allocation5 + $0xa78] sm:$0xff]  ;;  %v6767_v55 = vld [vmem:[#allocation5 + $0xa60] sm:$0xff] }
 0x6e8   :  { %7409 = vmatprep.subr.bf16.mxu1 %v6736_v47  ;;  %7573 = vmatprep.subr.bf16.mxu0 %v6738_v60  ;;  %v6769_v47 = vld [vmem:[#allocation5 + $0xa70] sm:$0xff]  ;;  %v6776_v60 = vld [vmem:[#allocation5 + $0xaa8] sm:$0xff] }
 0x6eb   :  { %7410 = vmatpush1.bf16.msra.mxu1 %v6735_v59  ;;  %7574 = vmatpush1.bf16.msra.mxu0 %v6737_v38  ;;  %v6778_v59 = vld [vmem:[#allocation5 + $0xab8] sm:$0xff]  ;;  %v6775_v38 = vld [vmem:[#allocation5 + $0xaa0] sm:$0xff] }
 0x6ec   :  { %7411 = vmatprep.subr.bf16.mxu1 %v6744_v39  ;;  %7575 = vmatprep.subr.bf16.mxu0 %v6746_v53  ;;  %v6777_v39 = vld [vmem:[#allocation5 + $0xab0] sm:$0xff]  ;;  %v6784_v53 = vld [vmem:[#allocation5 + $0xae8] sm:$0xff] }
 0x6ef   :  { %7412 = vmatpush1.bf16.msra.mxu1 %v6743_v34  ;;  %7576 = vmatpush1.bf16.msra.mxu0 %v6745_v37  ;;  %v6786_v34 = vld [vmem:[#allocation5 + $0xaf8] sm:$0xff]  ;;  %v6783_v37 = vld [vmem:[#allocation5 + $0xae0] sm:$0xff] }
 0x6f0   :  { %7413 = vmatprep.subr.bf16.mxu1 %v6752_v52  ;;  %7577 = vmatprep.subr.bf16.mxu0 %v6754_v51  ;;  %v6785_v52 = vld [vmem:[#allocation5 + $0xaf0] sm:$0xff]  ;;  %v6792_v51 = vld [vmem:[#allocation5 + $0xb28] sm:$0xff] }
 0x6f3   :  { %7414 = vmatpush1.bf16.msra.mxu1 %v6751_v63  ;;  %7578 = vmatpush1.bf16.msra.mxu0 %v6753_v36  ;;  %v6794_v63 = vld [vmem:[#allocation5 + $0xb38] sm:$0xff]  ;;  %v6791_v36 = vld [vmem:[#allocation5 + $0xb20] sm:$0xff] }
 0x6f4   :  { %7415 = vmatprep.subr.bf16.mxu1 %v6760_v43  ;;  %7579 = vmatprep.subr.bf16.mxu0 %v6762_v54  ;;  %v6793_v43 = vld [vmem:[#allocation5 + $0xb30] sm:$0xff]  ;;  %v6800_v54 = vld [vmem:[#allocation5 + $0xb68] sm:$0xff] }
 0x6f7   :  { %7416 = vmatpush1.bf16.msra.mxu1 %v6759_v62  ;;  %7580 = vmatpush1.bf16.msra.mxu0 %v6761_v35  ;;  %v6802_v62 = vld [vmem:[#allocation5 + $0xb78] sm:$0xff]  ;;  %v6799_v35 = vld [vmem:[#allocation5 + $0xb60] sm:$0xff] }
 0x6f8   :  { %7417 = vmatprep.subr.bf16.mxu1 %v6768_v50  ;;  %7581 = vmatprep.subr.bf16.mxu0 %v6770_v46  ;;  %v6801_v50 = vld [vmem:[#allocation5 + $0xb70] sm:$0xff]  ;;  %v6808_v46 = vld [vmem:[#allocation5 + $0xba8] sm:$0xff] }
 0x6fb   :  { %7418 = vmatpush1.bf16.msra.mxu1 %v6767_v55  ;;  %7582 = vmatpush1.bf16.msra.mxu0 %v6769_v47  ;;  %v6810_v55 = vld [vmem:[#allocation5 + $0xbb8] sm:$0xff]  ;;  %v6807_v47 = vld [vmem:[#allocation5 + $0xba0] sm:$0xff] }
 0x6fc   :  { %7419 = vmatprep.subr.bf16.mxu1 %v6776_v60  ;;  %7583 = vmatprep.subr.bf16.mxu0 %v6778_v59  ;;  %v6809_v60 = vld [vmem:[#allocation5 + $0xbb0] sm:$0xff]  ;;  %v6816_v59 = vld [vmem:[#allocation5 + $0xbe8] sm:$0xff] }
 0x6ff   :  { %7420 = vmatpush1.bf16.msra.mxu1 %v6775_v38  ;;  %7584 = vmatpush1.bf16.msra.mxu0 %v6777_v39  ;;  %v6818_v38 = vld [vmem:[#allocation5 + $0xbf8] sm:$0xff]  ;;  %v6815_v39 = vld [vmem:[#allocation5 + $0xbe0] sm:$0xff] }
 0x700   :  { %7421 = vmatprep.subr.bf16.mxu1 %v6784_v53  ;;  %7585 = vmatprep.subr.bf16.mxu0 %v6786_v34  ;;  %v6817_v53 = vld [vmem:[#allocation5 + $0xbf0] sm:$0xff]  ;;  %v6824_v34 = vld [vmem:[#allocation5 + $0xc28] sm:$0xff] }
 0x703   :  { %7422 = vmatpush1.bf16.msra.mxu1 %v6783_v37  ;;  %7586 = vmatpush1.bf16.msra.mxu0 %v6785_v52  ;;  %v6826_v37 = vld [vmem:[#allocation5 + $0xc38] sm:$0xff]  ;;  %v6823_v52 = vld [vmem:[#allocation5 + $0xc20] sm:$0xff] }
 0x704   :  { %7423 = vmatprep.subr.bf16.mxu1 %v6792_v51  ;;  %7587 = vmatprep.subr.bf16.mxu0 %v6794_v63  ;;  %v6825_v51 = vld [vmem:[#allocation5 + $0xc30] sm:$0xff]  ;;  %v6832_v63 = vld [vmem:[#allocation5 + $0xc68] sm:$0xff] }
 0x707   :  { %7424 = vmatpush1.bf16.msra.mxu1 %v6791_v36  ;;  %7588 = vmatpush1.bf16.msra.mxu0 %v6793_v43  ;;  %v6834_v36 = vld [vmem:[#allocation5 + $0xc78] sm:$0xff]  ;;  %v6831_v43 = vld [vmem:[#allocation5 + $0xc60] sm:$0xff] }
 0x708   :  { %7425 = vmatprep.subr.bf16.mxu1 %v6800_v54  ;;  %7589 = vmatprep.subr.bf16.mxu0 %v6802_v62  ;;  %v6833_v54 = vld [vmem:[#allocation5 + $0xc70] sm:$0xff]  ;;  %v6840_v62 = vld [vmem:[#allocation5 + $0xca8] sm:$0xff] }
 0x70b   :  { %7426 = vmatpush1.bf16.msra.mxu1 %v6799_v35  ;;  %7590 = vmatpush1.bf16.msra.mxu0 %v6801_v50  ;;  %v6842_v35 = vld [vmem:[#allocation5 + $0xcb8] sm:$0xff]  ;;  %v6839_v50 = vld [vmem:[#allocation5 + $0xca0] sm:$0xff] }
 0x70c   :  { %7427 = vmatprep.subr.bf16.mxu1 %v6808_v46  ;;  %7591 = vmatprep.subr.bf16.mxu0 %v6810_v55  ;;  %v6841_v46 = vld [vmem:[#allocation5 + $0xcb0] sm:$0xff]  ;;  %v6848_v55 = vld [vmem:[#allocation5 + $0xce8] sm:$0xff] }
 0x70f   :  { %7428 = vmatpush1.bf16.msra.mxu1 %v6807_v47  ;;  %7592 = vmatpush1.bf16.msra.mxu0 %v6809_v60  ;;  %v6847_v47 = vld [vmem:[#allocation5 + $0xce0] sm:$0xff]  ;;  %v6849_v60 = vld [vmem:[#allocation5 + $0xcf0] sm:$0xff] }
 0x710   :  { %7429 = vmatprep.subr.bf16.mxu1 %v6816_v59  ;;  %7593 = vmatprep.subr.bf16.mxu0 %v6818_v38  ;;  %v6856_v59 = vld [vmem:[#allocation5 + $0xd28] sm:$0xff]  ;;  %v6858_v38 = vld [vmem:[#allocation5 + $0xd38] sm:$0xff] }
 0x713   :  { %7430 = vmatpush1.bf16.msra.mxu1 %v6815_v39  ;;  %7594 = vmatpush1.bf16.msra.mxu0 %v6817_v53  ;;  %v6951_v39 = vsub.s32 0, %v10830_v61  ;;  %v10976_v53 = vld [vmem:[%s11115_s6] sm:$0xff] }
 0x714   :  { %7440 = vmatprep.subr.bf16.mxu1 %v6824_v34  ;;  %7604 = vmatprep.subr.bf16.mxu0 %v6826_v37  ;;  %v6955_v34 = vsub.s32 1, %v10830_v61  ;;  %v6963_v37 = vsub.s32 3, %v10830_v61 }
 0x716   :  { %7432 = vmatmul.mubr.bf16.vlgmr.msra.gmra.mrb[8].mxu1 %v10943_v45  ;;  %7596 = vmatmul.mubr.bf16.vlgmr.msra.gmra.mrb[68].mxu0 %v10943_v45  ;;  %v6850_v45 = vld [vmem:[#allocation5 + $0xcf8] sm:$0xff] }
 0x717   :  { %7441 = vmatpush1.bf16.msra.mxu1 %v6823_v52  ;;  %7605 = vmatpush1.bf16.msra.mxu0 %v6825_v51  ;;  %v6855_v52 = vld [vmem:[#allocation5 + $0xd20] sm:$0xff]  ;;  %v6857_v51 = vld [vmem:[#allocation5 + $0xd30] sm:$0xff] }
 0x718   :  { %7442 = vmatprep.subr.bf16.mxu1 %v6832_v63  ;;  %7606 = vmatprep.subr.bf16.mxu0 %v6834_v36  ;;  %v6864_v63 = vld [vmem:[#allocation5 + $0xd68] sm:$0xff]  ;;  %v6866_v36 = vld [vmem:[#allocation5 + $0xd78] sm:$0xff] }
 0x719   :  { %7472 = vmatprep.mubr.bf16.mxu1 %v10945_v44  ;;  %7636 = vmatprep.mubr.bf16.mxu0 %v10945_v44  ;;  %v6959_v44 = vsub.s32 2, %v10830_v61 }
 0x71b   :  { %7443 = vmatpush1.bf16.msra.mxu1 %v6831_v43  ;;  %7607 = vmatpush1.bf16.msra.mxu0 %v6833_v54  ;;  %v6952_v43 = vrot.slane %v10976_v53, %v6951_v39  ;;  %v6960_v54 = vrot.slane %v10976_v53, %v6959_v44 }
 0x71c   :  { %7444 = vmatprep.subr.bf16.mxu1 %v6840_v62  ;;  %7608 = vmatprep.subr.bf16.mxu0 %v6842_v35  ;;  %v6956_v62 = vrot.slane %v10976_v53, %v6955_v34  ;;  %v6964_v35 = vrot.slane %v10976_v53, %v6963_v37 }
 0x71f   :  { %7445 = vmatpush1.bf16.msra.mxu1 %v6839_v50  ;;  %7609 = vmatpush1.bf16.msra.mxu0 %v6841_v46  ;;  %v6863_v50 = vld [vmem:[#allocation5 + $0xd60] sm:$0xff]  ;;  %v6865_v46 = vld [vmem:[#allocation5 + $0xd70] sm:$0xff] }
 0x720   :  { %7446 = vmatprep.subr.bf16.mxu1 %v6848_v55  ;;  %7610 = vmatprep.subr.bf16.mxu0 %v6850_v45 }
 0x723   :  { %7447 = vmatpush1.bf16.msra.mxu1 %v6847_v47  ;;  %7611 = vmatpush1.bf16.msra.mxu0 %v6849_v60  ;;  %v6872_v47 = vld [vmem:[#allocation5 + $0xda8] sm:$0xff]  ;;  %v6874_v60 = vld [vmem:[#allocation5 + $0xdb8] sm:$0xff] }
 0x724   :  { %7448 = vmatprep.subr.bf16.mxu1 %v6856_v59  ;;  %7612 = vmatprep.subr.bf16.mxu0 %v6858_v38 }
 0x727   :  { %7449 = vmatpush1.bf16.msra.mxu1 %v6855_v52  ;;  %7613 = vmatpush1.bf16.msra.mxu0 %v6857_v51 }
 0x728   :  { %7450 = vmatprep.subr.bf16.mxu1 %v6864_v63  ;;  %7614 = vmatprep.subr.bf16.mxu0 %v6866_v36 }
 0x729   :  { %v7146_v55 = vpop.f32.mrb[4].mxu1  ;;  %v7310_v45 = vpop.f32.mrb[64].mxu0 }
 0x72a   :  { %v10984_v59 = vadd.f32 %v7146_v55, %v6952_v43  ;;  %v10986_v38 = vadd.f32 %v7310_v45, %v6960_v54  ;;  %v7148_v39 = vpop.f32.mrb[5].mxu1  ;;  %v7312_v44 = vpop.f32.mrb[65].mxu0  ;;  %v6871_v43 = vld [vmem:[#allocation5 + $0xda0] sm:$0xff]  ;;  %v6873_v54 = vld [vmem:[#allocation5 + $0xdb0] sm:$0xff]  ;;  %v6882_v45 = vld [vmem:[#allocation5 + $0xdf8] sm:$0xff] }
 0x72b   :  { %v10988_v52 = vadd.f32 %v7148_v39, %v6956_v62  ;;  %v10990_v51 = vadd.f32 %v7312_v44, %v6964_v35  ;;  %v7150_v34 = vpop.f32.mrb[6].mxu1  ;;  %v7314_v37 = vpop.f32.mrb[66].mxu0  ;;  %7451 = vmatpush1.bf16.msra.mxu1 %v6863_v50  ;;  %7615 = vmatpush1.bf16.msra.mxu0 %v6865_v46  ;;  %v6880_v35 = vld [vmem:[#allocation5 + $0xde8] sm:$0xff]  ;;  %v6879_v50 = vld [vmem:[#allocation5 + $0xde0] sm:$0xff]  ;;  %v6881_v46 = vld [vmem:[#allocation5 + $0xdf0] sm:$0xff] }
 0x72c   :  { %v7151_v42 = vpop.f32.mrb[7].mxu1  ;;  %v7315_v49 = vpop.f32.mrb[67].mxu0  ;;  %7452 = vmatprep.subr.bf16.mxu1 %v6872_v47  ;;  %7616 = vmatprep.subr.bf16.mxu0 %v6874_v60  ;;  %v6888_v39 = vld [vmem:[#allocation5 + $0xe28] sm:$0xff]  ;;  %v6890_v44 = vld [vmem:[#allocation5 + $0xe38] sm:$0xff]  ;;  %v6895_v34 = vld [vmem:[#allocation5 + $0xe60] sm:$0xff] }
 0x72d   :  { %v6887_v42 = vld [vmem:[#allocation5 + $0xe20] sm:$0xff]  ;;  %v6889_v49 = vld [vmem:[#allocation5 + $0xe30] sm:$0xff]  ;;  %v6896_v47 = vld [vmem:[#allocation5 + $0xe68] sm:$0xff] }
 0x72e   :  { %v6898_v60 = vld [vmem:[#allocation5 + $0xe78] sm:$0xff]  ;;  %v6897_v37 = vld [vmem:[#allocation5 + $0xe70] sm:$0xff] }
 0x72f   :  { %7453 = vmatpush1.bf16.msra.mxu1 %v6871_v43  ;;  %7617 = vmatpush1.bf16.msra.mxu0 %v6873_v54  ;;  %v6904_v43 = vld [vmem:[#allocation5 + $0xea8] sm:$0xff]  ;;  %v6906_v54 = vld [vmem:[#allocation5 + $0xeb8] sm:$0xff] }
 0x730   :  { %7454 = vmatprep.subr.bf16.mxu1 %v6880_v35  ;;  %7618 = vmatprep.subr.bf16.mxu0 %v6882_v45  ;;  %v6903_v35 = vld [vmem:[#allocation5 + $0xea0] sm:$0xff]  ;;  %v6905_v45 = vld [vmem:[#allocation5 + $0xeb0] sm:$0xff] }
 0x733   :  { %7455 = vmatpush1.bf16.msra.mxu1 %v6879_v50  ;;  %7619 = vmatpush1.bf16.msra.mxu0 %v6881_v46  ;;  %v6912_v50 = vld [vmem:[#allocation5 + $0xee8] sm:$0xff]  ;;  %v6914_v46 = vld [vmem:[#allocation5 + $0xef8] sm:$0xff] }
 0x734   :  { %7456 = vmatprep.subr.bf16.mxu1 %v6888_v39  ;;  %7620 = vmatprep.subr.bf16.mxu0 %v6890_v44  ;;  %v6911_v39 = vld [vmem:[#allocation5 + $0xee0] sm:$0xff]  ;;  %v6913_v44 = vld [vmem:[#allocation5 + $0xef0] sm:$0xff] }
 0x737   :  { %7457 = vmatpush1.bf16.msra.mxu1 %v6887_v42  ;;  %7621 = vmatpush1.bf16.msra.mxu0 %v6889_v49  ;;  %v6920_v42 = vld [vmem:[#allocation5 + $0xf28] sm:$0xff]  ;;  %v6922_v49 = vld [vmem:[#allocation5 + $0xf38] sm:$0xff] }
 0x738   :  { %7458 = vmatprep.subr.bf16.mxu1 %v6896_v47  ;;  %7622 = vmatprep.subr.bf16.mxu0 %v6898_v60  ;;  %v6919_v47 = vld [vmem:[#allocation5 + $0xf20] sm:$0xff]  ;;  %v6921_v60 = vld [vmem:[#allocation5 + $0xf30] sm:$0xff] }
 0x73b   :  { %7459 = vmatpush1.bf16.msra.mxu1 %v6895_v34  ;;  %7623 = vmatpush1.bf16.msra.mxu0 %v6897_v37  ;;  %v6928_v34 = vld [vmem:[#allocation5 + $0xf68] sm:$0xff]  ;;  %v6930_v37 = vld [vmem:[#allocation5 + $0xf78] sm:$0xff] }
 0x73c   :  { %7460 = vmatprep.subr.bf16.mxu1 %v6904_v43  ;;  %7624 = vmatprep.subr.bf16.mxu0 %v6906_v54  ;;  %v6927_v43 = vld [vmem:[#allocation5 + $0xf60] sm:$0xff]  ;;  %v6929_v54 = vld [vmem:[#allocation5 + $0xf70] sm:$0xff] }
 0x73f   :  { %7461 = vmatpush1.bf16.msra.mxu1 %v6903_v35  ;;  %7625 = vmatpush1.bf16.msra.mxu0 %v6905_v45  ;;  %v6936_v35 = vld [vmem:[#allocation5 + $0xfa8] sm:$0xff]  ;;  %v6938_v45 = vld [vmem:[#allocation5 + $0xfb8] sm:$0xff] }
 0x740   :  { %7462 = vmatprep.subr.bf16.mxu1 %v6912_v50  ;;  %7626 = vmatprep.subr.bf16.mxu0 %v6914_v46  ;;  %v6935_v50 = vld [vmem:[#allocation5 + $0xfa0] sm:$0xff]  ;;  %v6937_v46 = vld [vmem:[#allocation5 + $0xfb0] sm:$0xff] }
 0x743   :  { %7463 = vmatpush1.bf16.msra.mxu1 %v6911_v39  ;;  %7627 = vmatpush1.bf16.msra.mxu0 %v6913_v44  ;;  %v6944_v39 = vld [vmem:[#allocation5 + $0xfe8] sm:$0xff]  ;;  %v6946_v44 = vld [vmem:[#allocation5 + $0xff8] sm:$0xff] }
 0x744   :  { %7464 = vmatprep.subr.bf16.mxu1 %v6920_v42  ;;  %7628 = vmatprep.subr.bf16.mxu0 %v6922_v49  ;;  %v6943_v42 = vld [vmem:[#allocation5 + $0xfe0] sm:$0xff]  ;;  %v6945_v49 = vld [vmem:[#allocation5 + $0xff0] sm:$0xff] }
 0x747   :  { %7465 = vmatpush1.bf16.msra.mxu1 %v6919_v47  ;;  %7629 = vmatpush1.bf16.msra.mxu0 %v6921_v60  ;;  %v6967_v47 = vsub.s32 4, %v10830_v61  ;;  %v6975_v60 = vsub.s32 6, %v10830_v61 }
 0x748   :  { %7466 = vmatprep.subr.bf16.mxu1 %v6928_v34  ;;  %7630 = vmatprep.subr.bf16.mxu0 %v6930_v37  ;;  %v6971_v34 = vsub.s32 5, %v10830_v61  ;;  %v6979_v37 = vsub.s32 7, %v10830_v61 }
 0x74b   :  { %7467 = vmatpush1.bf16.msra.mxu1 %v6927_v43  ;;  %7631 = vmatpush1.bf16.msra.mxu0 %v6929_v54  ;;  %v6968_v43 = vrot.slane %v10976_v53, %v6967_v47  ;;  %v6976_v54 = vrot.slane %v10976_v53, %v6975_v60 }
 0x74c   :  { %7468 = vmatprep.subr.bf16.mxu1 %v6936_v35  ;;  %7632 = vmatprep.subr.bf16.mxu0 %v6938_v45  ;;  %v6972_v35 = vrot.slane %v10976_v53, %v6971_v34  ;;  %v6980_v45 = vrot.slane %v10976_v53, %v6979_v37  ;;  %v11148_v37 = vmax.f32 %v10988_v52, 0.0 }
 0x74f   :  { %7469 = vmatpush1.bf16.msra.mxu1 %v6935_v50  ;;  %7633 = vmatpush1.bf16.msra.mxu0 %v6937_v46 }
 0x750   :  { %7470 = vmatprep.subr.bf16.mxu1 %v6944_v39  ;;  %7634 = vmatprep.subr.bf16.mxu0 %v6946_v44 }
 0x753   :  { %7471 = vmatpush1.bf16.msra.mxu1 %v6943_v42  ;;  %7635 = vmatpush1.bf16.msra.mxu0 %v6945_v49 }
 0x754   :  { %8205 = vmatprep.subr.bf16.mxu1 %v9819_v8  ;;  %8227 = vmatprep.subr.bf16.mxu0 %v9899_v24 }
 0x756   :  { %7473 = vmatmul.mubr.bf16.vlgmr.msra.gmra.mrb[8].mxu1 %v10953_v58  ;;  %7637 = vmatmul.mubr.bf16.vlgmr.msra.gmra.mrb[68].mxu0 %v10953_v58 }
 0x829   :  { %v7474_v50 = vpop.f32.mrb[8].mxu1  ;;  %v7638_v46 = vpop.f32.mrb[68].mxu0 }
 0x82a   :  { %v11006_v39 = vadd.f32 %v7474_v50, %v6968_v43  ;;  %v11008_v58 = vadd.f32 %v7638_v46, %v6976_v54  ;;  %v7476_v44 = vpop.f32.mrb[9].mxu1  ;;  %v7640_v42 = vpop.f32.mrb[69].mxu0  ;;  %v7657_v43 = vpack.c.bf16 %v11148_v37, %v11148_v37  ;;  %v11149_v54 = vmax.f32 %v10990_v51, 0.0 }
 0x82b   :  { %v8495_v49 = vadd.f32 %v7476_v44, %v6972_v35  ;;  %v8497_v36 = vadd.f32 %v7640_v42, %v6980_v45  ;;  %v7478_v63 = vpop.f32.mrb[10].mxu1  ;;  %v7642_v61 = vpop.f32.mrb[70].mxu0 }
 0x82c   :  { %v7649_v47 = vmax.f32 %v11006_v39, 0.0  ;;  %v7651_v60 = vmax.f32 %v11008_v58, 0.0  ;;  %v7479_v62 = vpop.f32.mrb[11].mxu1  ;;  %v7643_v34 = vpop.f32.mrb[71].mxu0  ;;  %v7659_v63 = vpack.c.bf16 %v11149_v54, %v11149_v54 }
 0x82d   :  { %v7650_v55 = vmax.f32 %v8495_v49, 0.0  ;;  %v7652_v53 = vmax.f32 %v8497_v36, 0.0 }
 0x82e   :  { %8634 = dma.done.wait [#allocation7 + $0x1], 8192 }
 0x82f   :  { %8635 = vsyncadd [#allocation7 + $0x1], 4294959104  ;;  %8206 = vmatpush3.bf16.msra.mxu1 %v9779_v0  ;;  %8228 = vmatpush3.bf16.msra.mxu0 %v9859_v16  ;;  %v11150_v0 = vmax.f32 %v10984_v59, 0.0  ;;  %v11154_v8 = vld [vmem:[#allocation34_spill] sm:$0xff]  ;;  %v11162_v16 = vld [vmem:[#allocation36_spill] sm:$0xff] }
 0x830   :  { %8207 = vmatprep.subr.bf16.mxu1 %v9824_v9  ;;  %8229 = vmatprep.subr.bf16.mxu0 %v9904_v25  ;;  %v11155_v9 = vld [vmem:[#allocation15_spill] sm:$0xff]  ;;  %v11170_v24 = vld [vmem:[#allocation38_spill] sm:$0xff] }
 0x831   :  { %7767 = vmatprep.mubr.bf16.mxu1 %v7657_v43  ;;  %7807 = vmatprep.mubr.bf16.mxu0 %v7659_v63  ;;  %v11171_v25 = vld [vmem:[#allocation19_spill] sm:$0xff] }
 0x833   :  { %8208 = vmatpush3.bf16.msra.mxu1 %v9784_v1  ;;  %8230 = vmatpush3.bf16.msra.mxu0 %v9864_v17  ;;  %v7656_v1 = vpack.c.bf16 %v11150_v0, %v11150_v0  ;;  %v11163_v17 = vld [vmem:[#allocation17_spill] sm:$0xff] }
 0x834   :  { %8209 = vmatprep.subr.bf16.mxu1 %v9829_v10  ;;  %8231 = vmatprep.subr.bf16.mxu0 %v9909_v26  ;;  %v11156_v10 = vld [vmem:[#allocation28_spill] sm:$0xff] }
 0x835   :  { %v11172_v26 = vld [vmem:[#allocation32_spill] sm:$0xff] }
 0x837   :  { %8210 = vmatpush3.bf16.msra.mxu1 %v9789_v2  ;;  %8232 = vmatpush3.bf16.msra.mxu0 %v9869_v18  ;;  %v11151_v2 = vmax.f32 %v10986_v38, 0.0  ;;  %v11164_v18 = vld [vmem:[#allocation30_spill] sm:$0xff] }
 0x838   :  { %8211 = vmatprep.subr.bf16.mxu1 %v9834_v11  ;;  %8233 = vmatprep.subr.bf16.mxu0 %v9914_v27  ;;  %v11157_v11 = vld [vmem:[#allocation22_spill] sm:$0xff] }
 0x839   :  { %v11173_v27 = vld [vmem:[#allocation26_spill] sm:$0xff] }
 0x83b   :  { %8212 = vmatpush3.bf16.msra.mxu1 %v9794_v3  ;;  %8234 = vmatpush3.bf16.msra.mxu0 %v9874_v19  ;;  %v7658_v3 = vpack.c.bf16 %v11151_v2, %v11151_v2  ;;  %v11165_v19 = vld [vmem:[#allocation24_spill] sm:$0xff] }
 0x83c   :  { %8213 = vmatprep.subr.bf16.mxu1 %v9839_v12  ;;  %8235 = vmatprep.subr.bf16.mxu0 %v9919_v28  ;;  %v11158_v12 = vld [vmem:[#allocation35_spill] sm:$0xff] }
 0x83d   :  { %v11174_v28 = vld [vmem:[#allocation39_spill] sm:$0xff] }
 0x83f   :  { %8214 = vmatpush3.bf16.msra.mxu1 %v9799_v4  ;;  %8236 = vmatpush3.bf16.msra.mxu0 %v9879_v20  ;;  %v7661_v4 = vpack.c.bf16 %v7650_v55, %v7650_v55  ;;  %v11166_v20 = vld [vmem:[#allocation37_spill] sm:$0xff] }
 0x840   :  { %8215 = vmatprep.subr.bf16.mxu1 %v9844_v13  ;;  %8237 = vmatprep.subr.bf16.mxu0 %v9924_v29  ;;  %v11159_v13 = vld [vmem:[#allocation16_spill] sm:$0xff]  ;;  %v7660_v29 = vpack.c.bf16 %v7649_v47, %v7649_v47 }
 0x843   :  { %8216 = vmatpush3.bf16.msra.mxu1 %v9804_v5  ;;  %8238 = vmatpush3.bf16.msra.mxu0 %v9884_v21  ;;  %v7663_v5 = vpack.c.bf16 %v7652_v53, %v7652_v53  ;;  %v11167_v21 = vld [vmem:[#allocation18_spill] sm:$0xff] }
 0x844   :  { %8217 = vmatprep.subr.bf16.mxu1 %v9849_v14  ;;  %8239 = vmatprep.subr.bf16.mxu0 %v9929_v30  ;;  %v11160_v14 = vld [vmem:[#allocation29_spill] sm:$0xff]  ;;  %v7662_v30 = vpack.c.bf16 %v7651_v60, %v7651_v60 }
 0x847   :  { %8218 = vmatpush3.bf16.msra.mxu1 %v9809_v6  ;;  %8240 = vmatpush3.bf16.msra.mxu0 %v9889_v22  ;;  %v11152_v6 = vld [vmem:[#allocation27_spill] sm:$0xff] }
 0x848   :  { %8219 = vmatprep.subr.bf16.mxu1 %v9854_v15  ;;  %8241 = vmatprep.subr.bf16.mxu0 %v9934_v31  ;;  %v11161_v15 = vld [vmem:[#allocation23_spill] sm:$0xff]  ;;  %v11175_v31 = vld [vmem:[#allocation20_spill] sm:$0xff] }
 0x849   :  { %v11168_v22 = vld [vmem:[#allocation31_spill] sm:$0xff] }
 0x84b   :  { %8220 = vmatpush3.bf16.msra.mxu1 %v9814_v7  ;;  %8242 = vmatpush3.bf16.msra.mxu0 %v9894_v23  ;;  %v11153_v7 = vld [vmem:[#allocation21_spill] sm:$0xff] }
 0x84c   :  { %8249 = vmatprep.subr.bf16.mxu1 %v9979_v40  ;;  %8271 = vmatprep.subr.bf16.mxu0 %v10059_v56  ;;  %v11169_v23 = vld [vmem:[#allocation25_spill] sm:$0xff] }
 0x84e   :  { %7768 = vmatmul.mubr.bf16.vlgmr.msra.gmra.mrb[12].mxu1 %v7656_v1  ;;  %7808 = vmatmul.mubr.bf16.vlgmr.msra.gmra.mrb[72].mxu0 %v7658_v3 }
 0x84f   :  { %8250 = vmatpush3.bf16.msra.mxu1 %v9939_v32  ;;  %8272 = vmatpush3.bf16.msra.mxu0 %v10019_v48  ;;  %v11176_v32 = vld [vmem:[#allocation33_spill] sm:$0xff] }
 0x850   :  { %8251 = vmatprep.subr.bf16.mxu1 %v9984_v41  ;;  %8273 = vmatprep.subr.bf16.mxu0 %v10064_v57  ;;  %v8115_v41 = vld [vmem:[%s11117_s8] ss:$0 sm:$0xff]  ;;  %s8665_s8 = smov [#allocation8]  }
 0x851   :  { %7847 = vmatprep.mubr.bf16.mxu1 %v7661_v4  ;;  %7887 = vmatprep.mubr.bf16.mxu0 %v7663_v5  ;;  %s7902_s26 = sshll.u32 %s8665_s8, 4  ;;  %s7903_s26 = int_to_ptr.vmem [resolvable:$true] %s7902_s26 }
 0x852   :  { %s8594_s27 = scalar_lea.vmem %s7903_s26, 32  ;;  %p8599_p3 = scmp.lt.s32.totalorder %s7903_s26, %s7903_s26 }
 0x853   :  { %8252 = vmatpush3.bf16.msra.mxu1 %v9944_v33  ;;  %8274 = vmatpush3.bf16.msra.mxu0 %v11152_v6  ;;  %p8595_p2 = scmp.ne.s32.totalorder %s7903_s26, %s8594_s27  ;;  %p8600_p4 = scmp.lt.s32.totalorder %s8594_s27, %s8594_s27 }
 0x854   :  { %8253 = vmatprep.subr.bf16.mxu1 %v11153_v7  ;;  %8275 = vmatprep.subr.bf16.mxu0 %v11154_v8 }
 0x855   :  { %p8601_p5 = por %p8600_p4, %p8599_p3 }
 0x857   :  { %8254 = vmatpush3.bf16.msra.mxu1 %v11155_v9  ;;  %8276 = vmatpush3.bf16.msra.mxu0 %v11156_v10  ;;  %p8602_p6 = pnand %p8601_p5, %p8595_p2 }
 0x858   :  { %8255 = vmatprep.subr.bf16.mxu1 %v11157_v11  ;;  %8277 = vmatprep.subr.bf16.mxu0 %v11158_v12 }
 0x85b   :  { %8256 = vmatpush3.bf16.msra.mxu1 %v11159_v13  ;;  %8278 = vmatpush3.bf16.msra.mxu0 %v11160_v14 }
 0x85c   :  { %8257 = vmatprep.subr.bf16.mxu1 %v11161_v15  ;;  %8279 = vmatprep.subr.bf16.mxu0 %v11162_v16 }
 0x85f   :  { %8258 = vmatpush3.bf16.msra.mxu1 %v11163_v17  ;;  %8280 = vmatpush3.bf16.msra.mxu0 %v11164_v18 }
 0x860   :  { %8259 = vmatprep.subr.bf16.mxu1 %v11165_v19  ;;  %8281 = vmatprep.subr.bf16.mxu0 %v11166_v20 }
 0x863   :  { %8260 = vmatpush3.bf16.msra.mxu1 %v11167_v21  ;;  %8282 = vmatpush3.bf16.msra.mxu0 %v11168_v22 }
 0x864   :  { %8261 = vmatprep.subr.bf16.mxu1 %v11169_v23  ;;  %8283 = vmatprep.subr.bf16.mxu0 %v11170_v24 }
 0x867   :  { %8262 = vmatpush3.bf16.msra.mxu1 %v11171_v25  ;;  %8284 = vmatpush3.bf16.msra.mxu0 %v11172_v26 }
 0x868   :  { %8263 = vmatprep.subr.bf16.mxu1 %v11173_v27  ;;  %8285 = vmatprep.subr.bf16.mxu0 %v11174_v28 }
 0x86b   :  { %8264 = vmatpush3.bf16.msra.mxu1 %v11175_v31  ;;  %8286 = vmatpush3.bf16.msra.mxu0 %v11176_v32 }
 0x86e   :  { %7848 = vmatmul.mubr.bf16.vlgmr.msra.gmra.mrb[16].mxu1 %v7660_v29  ;;  %7888 = vmatmul.mubr.bf16.vlgmr.msra.gmra.mrb[76].mxu0 %v7662_v30 }
 0x921   :  { %v8221_v33 = vpop.f32.mrb[12].mxu1  ;;  %v8243_v40 = vpop.f32.mrb[72].mxu0 }
 0x922   :  { %v8222_v48 = vpop.f32.mrb[13].mxu1  ;;  %v8244_v56 = vpop.f32.mrb[73].mxu0 }
 0x923   :  { %v8223_v57 = vadd.f32 %v8222_v48, %v8221_v33  ;;  %v8245_v59 = vadd.f32 %v8244_v56, %v8243_v40  ;;  %v8224_v38 = vpop.f32.mrb[14].mxu1  ;;  %v8246_v52 = vpop.f32.mrb[74].mxu0 }
 0x924   :  { %v8225_v51 = vpop.f32.mrb[15].mxu1  ;;  %v8247_v36 = vpop.f32.mrb[75].mxu0 }
 0x925   :  { %v7770_v55 = vadd.f32 %v8223_v57, %v8115_v41 }
 0x927   :  { %v7810_v62 = vadd.f32 %v8245_v59, %v7770_v55 }
 0x941   :  { %v8265_v35 = vpop.f32.mrb[16].mxu1  ;;  %v8287_v45 = vpop.f32.mrb[76].mxu0 }
 0x942   :  { %v8266_v50 = vpop.f32.mrb[17].mxu1  ;;  %v8288_v46 = vpop.f32.mrb[77].mxu0 }
 0x943   :  { %v8267_v39 = vadd.f32 %v8266_v50, %v8265_v35  ;;  %v8289_v58 = vadd.f32 %v8288_v46, %v8287_v45  ;;  %v8268_v44 = vpop.f32.mrb[18].mxu1  ;;  %v8290_v42 = vpop.f32.mrb[78].mxu0 }
 0x944   :  { %v8269_v49 = vpop.f32.mrb[19].mxu1  ;;  %v8291_v61 = vpop.f32.mrb[79].mxu0 }
 0x945   :  { %v7850_v47 = vadd.f32 %v8267_v39, %v7810_v62 }
 0x947   :  { %v7890_v60 = vadd.f32 %v8289_v58, %v7850_v47 }
 0x949   :  { %7895 = vst [vmem:[#allocation8] sm:$0x3] %v7890_v60 }
 0x94a   :  { %8605 = shalt.err (!%p8602_p6)
}
 0x94b   :  { %s8606_s29 = scalar_lea.hbm %s11118_s9, 32 }
 0x94c   :  { %p8607_p7 = scmp.ne.s32.totalorder %s11118_s9, %s8606_s29  ;;  %p8610_p8 = scmp.lt.u32.totalorder %s8606_s29, %s11118_s9 }
 0x94e   :  { %p8612_p9 = pnand %p8610_p8, %p8607_p7 }
 0x950   :  { %8615 = shalt.err (!%p8612_p9)
}
 0x951   :  { %7905 = dma.vmem_to_hbm [thread:$0]  %s7903_s26, 32, %s11118_s9, [#allocation9]  }
 0x952   :  { %8636 = dma.done.wait [#allocation9], 32  }
 0x953   :  { %8637 = vsyncadd [#allocation9], 4294967264 }
 0x954   :  { %7909 = vsyncpa [#allocation9], 1 }
 0x955   :  { %7910 = vsyncmov [#allocation7] }
 0x958   :  { %s7911_s12 = vpop.sfrf %7910 }
 0x959   :  { %p8116_p10 = scmp.ne.s32.totalorder %s7911_s12, 0 }
 0x95b   :  { %7915 = shalt.err (%p8116_p10)  }
 0x95c   :  { %7917 = vsyncmov [#allocation7 + $0x1] }
 0x95f   :  { %s7918_s13 = vpop.sfrf %7917 }
 0x960   :  { %p8117_p11 = scmp.ne.s32.totalorder %s7918_s13, 0 }
 0x962   :  { %7922 = shalt.err (%p8117_p11)  }

</bundles_post_ra>
